<compile_context>
chip_gen: v7x
topology: tpu7x:2x2x1
jax: 0.10.0
libtpu: 0.0.40
codegen_flags: <defaults>
</compile_context>

<pallas_src>
import numpy as np

import jax
import jax.numpy as jnp
from jax import lax
from jax.experimental import pallas as pl
from jax.experimental.pallas import tpu as pltpu

C = 128          # lane-padded channel width used everywhere
_EPS = 1e-5


def _compiler_params():
    return pltpu.CompilerParams(
        dimension_semantics=("parallel",),
        vmem_limit_bytes=32 * 1024 * 1024,
    )


# ----------------------------------------------------------------------------
# Static index / mask tables (numpy, trace-time constants)
# ----------------------------------------------------------------------------
# Stage A keeps conv1's output in "4-phase padded" layout: 4 phases x 32 rows,
# phase (i,j) row a*6+b  <->  padded-y1[i+2a, j+2b] = y1[i+2a-1, j+2b-1].
def _phase_gather_and_mask():
    idx = np.zeros((128,), np.int32)
    msk = np.zeros((128, 1), np.float32)
    for i in range(2):
        for j in range(2):
            ph = i * 2 + j
            for a in range(5):
                for b in range(5):
                    r = ph * 32 + a * 6 + b
                    oh, ow = i + 2 * a - 1, j + 2 * b - 1
                    if 0 <= oh < 8 and 0 <= ow < 8:
                        idx[r] = oh * 8 + ow
                        msk[r, 0] = 1.0
    return idx, msk


_ROW_IDX_NP, _ROW_MASK_NP = _phase_gather_and_mask()

# 24-row layout (width 6): flat row q = oh*6 + ow, valid iff ow < 4.
_MASK24_NP = ((np.arange(24) % 6) < 4).astype(np.float32)[:, None]


def _pmask104():
    # 104-row layout of the convT4 input: 10x10 zero-padded 8x8 image + 4 pad
    # rows; valid (interior) iff 1 <= row//10 <= 8 and 1 <= row%10 <= 8.
    r = np.arange(104)
    ok = (r < 100) & (r // 10 >= 1) & (r // 10 <= 8) & (r % 10 >= 1) & (r % 10 <= 8)
    return ok.astype(np.float32)[:, None]


_PMASK104_NP = _pmask104()


# ----------------------------------------------------------------------------
# Stage A: fused Conv2d(3,64,4,2,1)+ReLU  ->  Conv2d(64,128,4,2,1) (+BN2 stats)
# ----------------------------------------------------------------------------
def _stage_a_kernel(lhs1_ref, w1_ref, b1_ref, m1_ref, w2_ref, b2_ref, vm_ref,
                    y2_ref, st2_ref, y1ph_ref, lhs2_ref):
    # conv1: ONE (128,128)x(128,128) matmul. Its rows are already ordered as
    # the 4 stride-2 phases of the zero-padded conv1 output; invalid rows are
    # masked back to exactly 0 so they act as conv2's spatial padding.
    y1 = jnp.dot(lhs1_ref[0], w1_ref[...], preferred_element_type=jnp.float32)
    y1 = jnp.maximum(y1 + b1_ref[...], 0.0) * m1_ref[...]
    y1ph_ref[...] = y1.astype(jnp.bfloat16)

    # conv2: build the K-concatenated LHS (24, 16*128) from 16 shifted phase
    # windows, then a single MXU dot (internal f32 accumulation over K=2048).
    for kh in range(4):
        for kw in range(4):
            t = kh * 4 + kw
            base = ((kh % 2) * 2 + (kw % 2)) * 32 + (kh // 2) * 6 + (kw // 2)
            lhs2_ref[:, t * C:(t + 1) * C] = y1ph_ref[base:base + 24, :]
    acc = jnp.dot(lhs2_ref[...], w2_ref[...], preferred_element_type=jnp.float32)
    acc = acc + b2_ref[...]

    vm = vm_ref[...]                                         # (24,1) valid rows
    masked = acc * vm
    st2_ref[0] = jnp.concatenate(                            # single (2,C) store
        [jnp.sum(masked, axis=0, keepdims=True),
         jnp.sum(masked * acc, axis=0, keepdims=True)], axis=0)
    y2_ref[0] = acc                                          # pre-BN, f32


def _stage_a(lhs1, w1, b1, m1, w2, b2, vm):
    n = lhs1.shape[0]
    return pl.pallas_call(
        _stage_a_kernel,
        grid=(n,),
        in_specs=[
            pl.BlockSpec((1, 128, C), lambda i: (i, 0, 0)),
            pl.BlockSpec((128, C), lambda i: (0, 0)),
            pl.BlockSpec((1, C), lambda i: (0, 0)),
            pl.BlockSpec((128, 1), lambda i: (0, 0)),
            pl.BlockSpec((16 * C, C), lambda i: (0, 0)),
            pl.BlockSpec((1, C), lambda i: (0, 0)),
            pl.BlockSpec((24, 1), lambda i: (0, 0)),
        ],
        out_specs=[
            pl.BlockSpec((1, 24, C), lambda i: (i, 0, 0)),
            pl.BlockSpec((1, 2, C), lambda i: (i, 0, 0)),
        ],
        out_shape=[
            jax.ShapeDtypeStruct((n, 24, C), jnp.float32),
            jax.ShapeDtypeStruct((n, 2, C), jnp.float32),
        ],
        scratch_shapes=[pltpu.VMEM((128, C), jnp.bfloat16),     # y1 phase buffer
                        pltpu.VMEM((24, 16 * C), jnp.bfloat16)],  # conv2 LHS
        compiler_params=_compiler_params(),
    )(lhs1, w1, b1, m1, w2, b2, vm)


# ----------------------------------------------------------------------------
# Stage B: ConvT(128,64,4,2,1) with fused BN2+ReLU prologue (+BN3 stats)
# ----------------------------------------------------------------------------
def _stage_b_kernel(y2_ref, s2_ref, t2_ref, w3_ref, b3_ref, m_ref,
                    y3_ref, st3_ref, xpad_ref, lhs_ref):
    m = m_ref[...]                                           # (24,1)
    bn = jnp.maximum(y2_ref[0] * s2_ref[...] + t2_ref[...], 0.0) * m
    # place the BN'd 4x4 image at the interior of the 6x6 zero-padded buffer
    # (row = q + 7 in the width-6 flat layout).
    xpad_ref[...] = jnp.zeros((40, C), jnp.bfloat16)
    xpad_ref[7:31, :] = bn.astype(jnp.bfloat16)

    ssum = jnp.zeros((1, C), jnp.float32)
    ssq = jnp.zeros((1, C), jnp.float32)
    for p, (a, b) in enumerate(((0, 0), (0, 1), (1, 0), (1, 1))):
        for t, (dh, dw) in enumerate(((0, 0), (0, 1), (1, 0), (1, 1))):
            shift = (a + dh) * 6 + (b + dw)
            lhs_ref[:, t * C:(t + 1) * C] = xpad_ref[shift:shift + 24, :]
        acc = jnp.dot(lhs_ref[...], w3_ref[p],
                      preferred_element_type=jnp.float32) + b3_ref[...]
        masked = acc * m
        ssum = ssum + jnp.sum(masked, axis=0, keepdims=True)
        ssq = ssq + jnp.sum(masked * acc, axis=0, keepdims=True)
        y3_ref[0, p] = acc                                   # pre-BN, f32
    st3_ref[0] = jnp.concatenate([ssum, ssq], axis=0)


def _stage_b(y2, s2, t2, w3, b3, m):
    n = y2.shape[0]
    return pl.pallas_call(
        _stage_b_kernel,
        grid=(n,),
        in_specs=[
            pl.BlockSpec((1, 24, C), lambda i: (i, 0, 0)),
            pl.BlockSpec((1, C), lambda i: (0, 0)),
            pl.BlockSpec((1, C), lambda i: (0, 0)),
            pl.BlockSpec((4, 4 * C, C), lambda i: (0, 0, 0)),
            pl.BlockSpec((1, C), lambda i: (0, 0)),
            pl.BlockSpec((24, 1), lambda i: (0, 0)),
        ],
        out_specs=[
            pl.BlockSpec((1, 4, 24, C), lambda i: (i, 0, 0, 0)),
            pl.BlockSpec((1, 2, C), lambda i: (i, 0, 0)),
        ],
        out_shape=[
            jax.ShapeDtypeStruct((n, 4, 24, C), jnp.float32),
            jax.ShapeDtypeStruct((n, 2, C), jnp.float32),
        ],
        scratch_shapes=[pltpu.VMEM((40, C), jnp.bfloat16),
                        pltpu.VMEM((24, 4 * C), jnp.bfloat16)],
        compiler_params=_compiler_params(),
    )(y2, s2, t2, w3, b3, m)


# ----------------------------------------------------------------------------
# Stage C: ConvT(64,1,4,2,1) with fused BN3+ReLU prologue and exact sigmoid
# ----------------------------------------------------------------------------
def _stage_c_kernel(x_ref, s3_ref, t3_ref, pm_ref, w4_ref, b4_ref,
                    y4_ref, xbn_ref, lhs_ref):
    bn = jnp.maximum(x_ref[0] * s3_ref[...] + t3_ref[...], 0.0) * pm_ref[...]
    xbn_ref[...] = bn.astype(jnp.bfloat16)
    for p, (a, b) in enumerate(((0, 0), (0, 1), (1, 0), (1, 1))):
        for t, (dh, dw) in enumerate(((0, 0), (0, 1), (1, 0), (1, 1))):
            shift = (a + dh) * 10 + (b + dw)
            lhs_ref[:, t * C:(t + 1) * C] = xbn_ref[shift:shift + 80, :]
        acc = jnp.dot(lhs_ref[...], w4_ref[p],
                      preferred_element_type=jnp.float32) + b4_ref[...]
        y4_ref[0, p] = 1.0 / (1.0 + jnp.exp(-acc))           # exact sigmoid


def _stage_c(x, s3, t3, pm, w4, b4):
    n = x.shape[0]
    # TODO(synk): the (4,80,128) f32 writeback keeps 127 zero channels; a
    # lane-dense in-kernel repack only pays off at larger resolutions.
    return pl.pallas_call(
        _stage_c_kernel,
        grid=(n,),
        in_specs=[
            pl.BlockSpec((1, 104, C), lambda i: (i, 0, 0)),
            pl.BlockSpec((1, C), lambda i: (0, 0)),
            pl.BlockSpec((1, C), lambda i: (0, 0)),
            pl.BlockSpec((104, 1), lambda i: (0, 0)),
            pl.BlockSpec((4, 4 * C, C), lambda i: (0, 0, 0)),
            pl.BlockSpec((1, C), lambda i: (0, 0)),
        ],
        out_specs=pl.BlockSpec((1, 4, 80, C), lambda i: (i, 0, 0, 0)),
        out_shape=jax.ShapeDtypeStruct((n, 4, 80, C), jnp.float32),
        scratch_shapes=[pltpu.VMEM((104, C), jnp.bfloat16),
                        pltpu.VMEM((80, 4 * C), jnp.bfloat16)],
        compiler_params=_compiler_params(),
    )(x, s3, t3, pm, w4, b4)


# ----------------------------------------------------------------------------
# Parameters: construction and one-time packing into K-concatenated bf16 RHS
# ----------------------------------------------------------------------------
def init_params(key):
    ks = jax.random.split(key, 12)
    s = 0.05
    return {
        "w1": jax.random.normal(ks[0], (64, 3, 4, 4), jnp.float32) * s,
        "b1": jax.random.normal(ks[1], (64,), jnp.float32) * s,
        "w2": jax.random.normal(ks[2], (128, 64, 4, 4), jnp.float32) * s,
        "b2": jax.random.normal(ks[3], (128,), jnp.float32) * s,
        "g2": 1.0 + 0.1 * jax.random.normal(ks[4], (128,), jnp.float32),
        "bt2": 0.1 * jax.random.normal(ks[5], (128,), jnp.float32),
        "w3": jax.random.normal(ks[6], (128, 64, 4, 4), jnp.float32) * s,
        "b3": jax.random.normal(ks[7], (64,), jnp.float32) * s,
        "g3": 1.0 + 0.1 * jax.random.normal(ks[8], (64,), jnp.float32),
        "bt3": 0.1 * jax.random.normal(ks[9], (64,), jnp.float32),
        "w4": jax.random.normal(ks[10], (64, 1, 4, 4), jnp.float32) * s,
        "b4": jax.random.normal(ks[11], (1,), jnp.float32) * s,
    }


def _pad_vec(v, n=C):
    return jnp.pad(v, (0, n - v.shape[0])).astype(jnp.float32)


def _pack_conv(w, cin_p):
    # Conv2d weight (Cout,Cin,4,4) -> K-concatenated RHS (16*cin_p, 128);
    # K row = (kh*4+kw)*cin_p + cin.
    cout, cin = w.shape[0], w.shape[1]
    t = jnp.transpose(w, (2, 3, 1, 0))                            # (4,4,cin,cout)
    t = jnp.pad(t, ((0, 0), (0, 0), (0, cin_p - cin), (0, C - cout)))
    return t.reshape(16 * cin_p, C).astype(jnp.bfloat16)


def _pack_convT(w):
    # ConvTranspose2d weight (Cin,Cout,4,4) -> (4 phases, 4*128, 128); output
    # pixel (2i+a,2j+b), tap (dh,dw) uses kernel element (3-a-2dh, 3-b-2dw).
    cin, cout = w.shape[0], w.shape[1]
    blocks = []
    for a in range(2):
        for b in range(2):
            taps = []
            for dh in range(2):
                for dw in range(2):
                    k = w[:, :, 3 - a - 2 * dh, 3 - b - 2 * dw]   # (cin,cout)
                    taps.append(jnp.pad(k, ((0, C - cin), (0, C - cout))))
            blocks.append(jnp.concatenate(taps, axis=0))          # (4*128,128)
    return jnp.stack(blocks, axis=0).astype(jnp.bfloat16)          # (4,512,128)


def prepare_params(p):
    return {
        "w1": _pack_conv(p["w1"], 8), "b1": _pad_vec(p["b1"]).reshape(1, C),
        "w2": _pack_conv(p["w2"], C), "b2": _pad_vec(p["b2"]).reshape(1, C),
        "g2": _pad_vec(p["g2"]), "bt2": _pad_vec(p["bt2"]),
        "w3": _pack_convT(p["w3"]), "b3": _pad_vec(p["b3"]).reshape(1, C),
        "g3": _pad_vec(p["g3"]), "bt3": _pad_vec(p["bt3"]),
        "w4": _pack_convT(p["w4"]), "b4": _pad_vec(p["b4"]).reshape(1, C),
    }


def bn_scale_shift(stats, gamma, beta, count):
    """Fold training-mode BatchNorm (biased batch var, eps=1e-5) into y*s + t."""
    tot = jnp.sum(stats, axis=0)                     # (2, C)
    mean = tot[0] / count
    var = jnp.maximum(tot[1] / count - mean * mean, 0.0)
    s = gamma * lax.rsqrt(var + _EPS)
    t = beta - mean * s
    return s.reshape(1, C), t.reshape(1, C)


# ----------------------------------------------------------------------------
# Generator forward (NCHW in / NCHW out, like PyTorch)
# ----------------------------------------------------------------------------
def generator_forward(x_nchw, pp):
    n = x_nchw.shape[0]
    row_idx = jnp.asarray(_ROW_IDX_NP)
    row_mask = jnp.asarray(_ROW_MASK_NP)
    mask24 = jnp.asarray(_MASK24_NP)
    pmask104 = jnp.asarray(_PMASK104_NP)

    # NHWC, zero-pad spatial (+1) and channels (3 -> 8) in one op.
    x = jnp.transpose(x_nchw, (0, 2, 3, 1)).astype(jnp.float32)
    x = jnp.pad(x, ((0, 0), (1, 1), (1, 1), (0, 5)))              # (N,18,18,8)

    # Layer-1 im2col: 16 taps x 8 chan = 128 lane-dense K, gathered into the
    # 4-phase padded layout stage A's conv2 consumes directly.
    patches = jnp.stack([x[:, kh:kh + 16:2, kw:kw + 16:2, :]
                         for kh in range(4) for kw in range(4)], axis=3)
    patches = patches.reshape(n, 64, 128)
    lhs1 = jnp.take(patches, row_idx, axis=1).astype(jnp.bfloat16)  # (N,128,128)

    # --- fused conv1 + conv2 (+ BN2 batch statistics) ---
    y2, st2 = _stage_a(lhs1, pp["w1"], pp["b1"], row_mask,
                       pp["w2"], pp["b2"], mask24)
    s2, t2 = bn_scale_shift(st2, pp["g2"], pp["bt2"], count=n * 16)

    # --- convT3 with fused BN2+ReLU prologue (+ BN3 batch statistics) ---
    y3, st3 = _stage_b(y2, s2, t2, pp["w3"], pp["b3"], mask24)
    s3, t3 = bn_scale_shift(st3, pp["g3"], pp["bt3"], count=n * 64)

    # De-interleave the 4 convT3 output phases to NHWC and zero-pad for convT4.
    v = y3.reshape(n, 2, 2, 4, 6, C)[:, :, :, :, :4, :]           # (N,a,b,i,j,C)
    v = jnp.transpose(v, (0, 3, 1, 4, 2, 5)).reshape(n, 8, 8, C)
    v = jnp.pad(v, ((0, 0), (1, 1), (1, 1), (0, 0))).reshape(n, 100, C)
    v = jnp.pad(v, ((0, 0), (0, 4), (0, 0)))                       # (N,104,C)

    # --- convT4 with fused BN3+ReLU prologue and exact sigmoid ---
    y4 = _stage_c(v, s3, t3, pmask104, pp["w4"], pp["b4"])         # (N,4,80,C)

    o = y4[..., 0].reshape(n, 2, 2, 8, 10)[:, :, :, :, :8]
    o = jnp.transpose(o, (0, 3, 1, 4, 2)).reshape(n, 16, 16)
    return o[:, None, :, :]                                        # (N,1,16,16)


# ----------------------------------------------------------------------------
# Pure-JAX reference (training-mode BN, f32) for a numerical sanity check
# ----------------------------------------------------------------------------
def _bn_ref(y, g, b):
    mean = y.mean(axis=(0, 2, 3), keepdims=True)
    var = y.var(axis=(0, 2, 3), keepdims=True)
    return (y - mean) * lax.rsqrt(var + _EPS) * g[None, :, None, None] \
        + b[None, :, None, None]


def _convT_ref(y, w, b):
    # ConvTranspose2d(k=4,s=2,p=1) == conv with input dilation 2, pad 2, and a
    # spatially flipped, (Cin,Cout)->(Cout,Cin) transposed kernel.
    wr = jnp.transpose(w[:, :, ::-1, ::-1], (1, 0, 2, 3))
    out = lax.conv_general_dilated(
        y, wr, window_strides=(1, 1), padding=((2, 2), (2, 2)),
        lhs_dilation=(2, 2), dimension_numbers=("NCHW", "OIHW", "NCHW"),
        precision=lax.Precision.HIGHEST)
    return out + b[None, :, None, None]


def reference_forward(x, p):
    dn = ("NCHW", "OIHW", "NCHW")
    y = lax.conv_general_dilated(x, p["w1"], (2, 2), ((1, 1), (1, 1)),
                                 dimension_numbers=dn,
                                 precision=lax.Precision.HIGHEST)
    y = jnp.maximum(y + p["b1"][None, :, None, None], 0.0)
    y = lax.conv_general_dilated(y, p["w2"], (2, 2), ((1, 1), (1, 1)),
                                 dimension_numbers=dn,
                                 precision=lax.Precision.HIGHEST)
    y = y + p["b2"][None, :, None, None]
    y = jnp.maximum(_bn_ref(y, p["g2"], p["bt2"]), 0.0)
    y = _convT_ref(y, p["w3"], p["b3"])
    y = jnp.maximum(_bn_ref(y, p["g3"], p["bt3"]), 0.0)
    y = _convT_ref(y, p["w4"], p["b4"])
    return jax.nn.sigmoid(y)


if __name__ == "__main__":
    key = jax.random.PRNGKey(0)
    k_param, k_x = jax.random.split(key)
    params = init_params(k_param)
    packed = prepare_params(params)                 # weights packed once
    x = jax.random.normal(k_x, (2, 3, 16, 16), jnp.float32)

    out = jax.jit(generator_forward)(x, packed)
    out = jax.block_until_ready(out)

    assert out.shape == (2, 1, 16, 16), out.shape
    assert out.dtype == jnp.float32
    assert bool(jnp.all(jnp.isfinite(out)))
    assert bool(jnp.all((out >= 0.0) & (out <= 1.0)))   # sigmoid range

    ref = jax.block_until_ready(jax.jit(reference_forward)(x, params))
    max_err = float(jnp.max(jnp.abs(out - ref)))
    assert max_err < 5e-2, f"max |pallas - reference| = {max_err}"
    print("KERNEL_OK")
</pallas_src>

<mosaic_0001>
module attributes {stable_mosaic.version = 11 : i64} {
  func.func @_stage_a_kernel(%arg0: i32, %arg1: memref<1x128x128xbf16, #tpu.memory_space<vmem>>, %arg2: memref<128x128xbf16, #tpu.memory_space<vmem>>, %arg3: memref<1x128xf32, #tpu.memory_space<vmem>>, %arg4: memref<128x1xf32, #tpu.memory_space<vmem>>, %arg5: memref<2048x128xbf16, #tpu.memory_space<vmem>>, %arg6: memref<1x128xf32, #tpu.memory_space<vmem>>, %arg7: memref<24x1xf32, #tpu.memory_space<vmem>>, %arg8: memref<1x24x128xf32, #tpu.memory_space<vmem>>, %arg9: memref<1x2x128xf32, #tpu.memory_space<vmem>>, %arg10: memref<128x128xbf16, #tpu.memory_space<vmem>>, %arg11: memref<24x2048xbf16, #tpu.memory_space<vmem>>) attributes {dimension_semantics = [#tpu.dimension_semantics<parallel>], iteration_bounds = array<i64: 2>, scalar_prefetch = 0 : i64, scratch_operands = 2 : i64, tpu.core_type = #tpu.core_type<tc>, window_params = [{transform_indices = @transform_0, window_bounds = array<i64: 1, 128, 128>}, {pipeline_mode = #tpu.pipeline_mode<synchronous>, transform_indices = @transform_1, window_bounds = array<i64: 128, 128>}, {pipeline_mode = #tpu.pipeline_mode<synchronous>, transform_indices = @transform_2, window_bounds = array<i64: 1, 128>}, {pipeline_mode = #tpu.pipeline_mode<synchronous>, transform_indices = @transform_3, window_bounds = array<i64: 128, 1>}, {pipeline_mode = #tpu.pipeline_mode<synchronous>, transform_indices = @transform_4, window_bounds = array<i64: 2048, 128>}, {pipeline_mode = #tpu.pipeline_mode<synchronous>, transform_indices = @transform_5, window_bounds = array<i64: 1, 128>}, {pipeline_mode = #tpu.pipeline_mode<synchronous>, transform_indices = @transform_6, window_bounds = array<i64: 24, 1>}, {transform_indices = @transform_7, window_bounds = array<i64: 1, 24, 128>}, {transform_indices = @transform_8, window_bounds = array<i64: 1, 2, 128>}]} {
    %c0 = arith.constant 0 : index
    %c0_0 = arith.constant 0 : index
    %c0_1 = arith.constant 0 : index
    %0 = vector.load %arg1[%c0, %c0_0, %c0_1] : memref<1x128x128xbf16, #tpu.memory_space<vmem>>, vector<1x128x128xbf16>
    %1 = vector.shape_cast %0 : vector<1x128x128xbf16> to vector<128x128xbf16>
    %c0_2 = arith.constant 0 : index
    %c0_3 = arith.constant 0 : index
    %2 = vector.load %arg2[%c0_2, %c0_3] : memref<128x128xbf16, #tpu.memory_space<vmem>>, vector<128x128xbf16>
    %cst = arith.constant dense<0.000000e+00> : vector<128x128xf32>
    %3 = tpu.matmul %1, %2, %cst {dimension_numbers = #tpu.dot_dimension_numbers<[1], [0], [0], [1], [0, 0, 1, 1], [], []>} : vector<128x128xbf16>, vector<128x128xbf16>, vector<128x128xf32> -> vector<128x128xf32>
    %c0_4 = arith.constant 0 : index
    %c0_5 = arith.constant 0 : index
    %4 = vector.load %arg3[%c0_4, %c0_5] : memref<1x128xf32, #tpu.memory_space<vmem>>, vector<1x128xf32>
    %5 = vector.broadcast %4 : vector<1x128xf32> to vector<128x128xf32>
    %6 = arith.addf %3, %5 : vector<128x128xf32>
    %cst_6 = arith.constant 0.000000e+00 : f32
    %7 = vector.broadcast %cst_6 : f32 to vector<128x128xf32>
    %8 = arith.maximumf %6, %7 : vector<128x128xf32>
    %c0_7 = arith.constant 0 : index
    %c0_8 = arith.constant 0 : index
    %9 = vector.load %arg4[%c0_7, %c0_8] : memref<128x1xf32, #tpu.memory_space<vmem>>, vector<128x1xf32>
    %10 = vector.broadcast %9 : vector<128x1xf32> to vector<128x128xf32>
    %11 = arith.mulf %8, %10 : vector<128x128xf32>
    %12 = arith.truncf %11 : vector<128x128xf32> to vector<128x128xbf16>
    %c0_9 = arith.constant 0 : index
    %c0_10 = arith.constant 0 : index
    %13 = vector.load %arg10[%c0_9, %c0_10] : memref<128x128xbf16, #tpu.memory_space<vmem>>, vector<128x128xbf16>
    tpu.vector_store %arg10[%c0_9, %c0_10], %12 {strides = array<i32>} : memref<128x128xbf16, #tpu.memory_space<vmem>>, vector<128x128xbf16>,
    %c0_11 = arith.constant 0 : index
    %c0_12 = arith.constant 0 : index
    %14 = vector.load %arg10[%c0_11, %c0_12] : memref<128x128xbf16, #tpu.memory_space<vmem>>, vector<24x128xbf16>
    %c0_13 = arith.constant 0 : index
    %c0_14 = arith.constant 0 : index
    %15 = vector.load %arg11[%c0_13, %c0_14] : memref<24x2048xbf16, #tpu.memory_space<vmem>>, vector<24x128xbf16>
    tpu.vector_store %arg11[%c0_13, %c0_14], %14 {strides = array<i32>} : memref<24x2048xbf16, #tpu.memory_space<vmem>>, vector<24x128xbf16>,
    %c32 = arith.constant 32 : index
    %c0_15 = arith.constant 0 : index
    %16 = vector.load %arg10[%c32, %c0_15] : memref<128x128xbf16, #tpu.memory_space<vmem>>, vector<24x128xbf16>
    %c0_16 = arith.constant 0 : index
    %c128 = arith.constant 128 : index
    %17 = vector.load %arg11[%c0_16, %c128] : memref<24x2048xbf16, #tpu.memory_space<vmem>>, vector<24x128xbf16>
    tpu.vector_store %arg11[%c0_16, %c128], %16 {strides = array<i32>} : memref<24x2048xbf16, #tpu.memory_space<vmem>>, vector<24x128xbf16>,
    %c1 = arith.constant 1 : index
    %c0_17 = arith.constant 0 : index
    %18 = vector.load %arg10[%c1, %c0_17] : memref<128x128xbf16, #tpu.memory_space<vmem>>, vector<24x128xbf16>
    %c0_18 = arith.constant 0 : index
    %c256 = arith.constant 256 : index
    %19 = vector.load %arg11[%c0_18, %c256] : memref<24x2048xbf16, #tpu.memory_space<vmem>>, vector<24x128xbf16>
    tpu.vector_store %arg11[%c0_18, %c256], %18 {strides = array<i32>} : memref<24x2048xbf16, #tpu.memory_space<vmem>>, vector<24x128xbf16>,
    %c33 = arith.constant 33 : index
    %c0_19 = arith.constant 0 : index
    %20 = vector.load %arg10[%c33, %c0_19] : memref<128x128xbf16, #tpu.memory_space<vmem>>, vector<24x128xbf16>
    %c0_20 = arith.constant 0 : index
    %c384 = arith.constant 384 : index
    %21 = vector.load %arg11[%c0_20, %c384] : memref<24x2048xbf16, #tpu.memory_space<vmem>>, vector<24x128xbf16>
    tpu.vector_store %arg11[%c0_20, %c384], %20 {strides = array<i32>} : memref<24x2048xbf16, #tpu.memory_space<vmem>>, vector<24x128xbf16>,
    %c64 = arith.constant 64 : index
    %c0_21 = arith.constant 0 : index
    %22 = vector.load %arg10[%c64, %c0_21] : memref<128x128xbf16, #tpu.memory_space<vmem>>, vector<24x128xbf16>
    %c0_22 = arith.constant 0 : index
    %c512 = arith.constant 512 : index
    %23 = vector.load %arg11[%c0_22, %c512] : memref<24x2048xbf16, #tpu.memory_space<vmem>>, vector<24x128xbf16>
    tpu.vector_store %arg11[%c0_22, %c512], %22 {strides = array<i32>} : memref<24x2048xbf16, #tpu.memory_space<vmem>>, vector<24x128xbf16>,
    %c96 = arith.constant 96 : index
    %c0_23 = arith.constant 0 : index
    %24 = vector.load %arg10[%c96, %c0_23] : memref<128x128xbf16, #tpu.memory_space<vmem>>, vector<24x128xbf16>
    %c0_24 = arith.constant 0 : index
    %c640 = arith.constant 640 : index
    %25 = vector.load %arg11[%c0_24, %c640] : memref<24x2048xbf16, #tpu.memory_space<vmem>>, vector<24x128xbf16>
    tpu.vector_store %arg11[%c0_24, %c640], %24 {strides = array<i32>} : memref<24x2048xbf16, #tpu.memory_space<vmem>>, vector<24x128xbf16>,
    %c65 = arith.constant 65 : index
    %c0_25 = arith.constant 0 : index
    %26 = vector.load %arg10[%c65, %c0_25] : memref<128x128xbf16, #tpu.memory_space<vmem>>, vector<24x128xbf16>
    %c0_26 = arith.constant 0 : index
    %c768 = arith.constant 768 : index
    %27 = vector.load %arg11[%c0_26, %c768] : memref<24x2048xbf16, #tpu.memory_space<vmem>>, vector<24x128xbf16>
    tpu.vector_store %arg11[%c0_26, %c768], %26 {strides = array<i32>} : memref<24x2048xbf16, #tpu.memory_space<vmem>>, vector<24x128xbf16>,
    %c97 = arith.constant 97 : index
    %c0_27 = arith.constant 0 : index
    %28 = vector.load %arg10[%c97, %c0_27] : memref<128x128xbf16, #tpu.memory_space<vmem>>, vector<24x128xbf16>
    %c0_28 = arith.constant 0 : index
    %c896 = arith.constant 896 : index
    %29 = vector.load %arg11[%c0_28, %c896] : memref<24x2048xbf16, #tpu.memory_space<vmem>>, vector<24x128xbf16>
    tpu.vector_store %arg11[%c0_28, %c896], %28 {strides = array<i32>} : memref<24x2048xbf16, #tpu.memory_space<vmem>>, vector<24x128xbf16>,
    %c6 = arith.constant 6 : index
    %c0_29 = arith.constant 0 : index
    %30 = vector.load %arg10[%c6, %c0_29] : memref<128x128xbf16, #tpu.memory_space<vmem>>, vector<24x128xbf16>
    %c0_30 = arith.constant 0 : index
    %c1024 = arith.constant 1024 : index
    %31 = vector.load %arg11[%c0_30, %c1024] : memref<24x2048xbf16, #tpu.memory_space<vmem>>, vector<24x128xbf16>
    tpu.vector_store %arg11[%c0_30, %c1024], %30 {strides = array<i32>} : memref<24x2048xbf16, #tpu.memory_space<vmem>>, vector<24x128xbf16>,
    %c38 = arith.constant 38 : index
    %c0_31 = arith.constant 0 : index
    %32 = vector.load %arg10[%c38, %c0_31] : memref<128x128xbf16, #tpu.memory_space<vmem>>, vector<24x128xbf16>
    %c0_32 = arith.constant 0 : index
    %c1152 = arith.constant 1152 : index
    %33 = vector.load %arg11[%c0_32, %c1152] : memref<24x2048xbf16, #tpu.memory_space<vmem>>, vector<24x128xbf16>
    tpu.vector_store %arg11[%c0_32, %c1152], %32 {strides = array<i32>} : memref<24x2048xbf16, #tpu.memory_space<vmem>>, vector<24x128xbf16>,
    %c7 = arith.constant 7 : index
    %c0_33 = arith.constant 0 : index
    %34 = vector.load %arg10[%c7, %c0_33] : memref<128x128xbf16, #tpu.memory_space<vmem>>, vector<24x128xbf16>
    %c0_34 = arith.constant 0 : index
    %c1280 = arith.constant 1280 : index
    %35 = vector.load %arg11[%c0_34, %c1280] : memref<24x2048xbf16, #tpu.memory_space<vmem>>, vector<24x128xbf16>
    tpu.vector_store %arg11[%c0_34, %c1280], %34 {strides = array<i32>} : memref<24x2048xbf16, #tpu.memory_space<vmem>>, vector<24x128xbf16>,
    %c39 = arith.constant 39 : index
    %c0_35 = arith.constant 0 : index
    %36 = vector.load %arg10[%c39, %c0_35] : memref<128x128xbf16, #tpu.memory_space<vmem>>, vector<24x128xbf16>
    %c0_36 = arith.constant 0 : index
    %c1408 = arith.constant 1408 : index
    %37 = vector.load %arg11[%c0_36, %c1408] : memref<24x2048xbf16, #tpu.memory_space<vmem>>, vector<24x128xbf16>
    tpu.vector_store %arg11[%c0_36, %c1408], %36 {strides = array<i32>} : memref<24x2048xbf16, #tpu.memory_space<vmem>>, vector<24x128xbf16>,
    %c70 = arith.constant 70 : index
    %c0_37 = arith.constant 0 : index
    %38 = vector.load %arg10[%c70, %c0_37] : memref<128x128xbf16, #tpu.memory_space<vmem>>, vector<24x128xbf16>
    %c0_38 = arith.constant 0 : index
    %c1536 = arith.constant 1536 : index
    %39 = vector.load %arg11[%c0_38, %c1536] : memref<24x2048xbf16, #tpu.memory_space<vmem>>, vector<24x128xbf16>
    tpu.vector_store %arg11[%c0_38, %c1536], %38 {strides = array<i32>} : memref<24x2048xbf16, #tpu.memory_space<vmem>>, vector<24x128xbf16>,
    %c102 = arith.constant 102 : index
    %c0_39 = arith.constant 0 : index
    %40 = vector.load %arg10[%c102, %c0_39] : memref<128x128xbf16, #tpu.memory_space<vmem>>, vector<24x128xbf16>
    %c0_40 = arith.constant 0 : index
    %c1664 = arith.constant 1664 : index
    %41 = vector.load %arg11[%c0_40, %c1664] : memref<24x2048xbf16, #tpu.memory_space<vmem>>, vector<24x128xbf16>
    tpu.vector_store %arg11[%c0_40, %c1664], %40 {strides = array<i32>} : memref<24x2048xbf16, #tpu.memory_space<vmem>>, vector<24x128xbf16>,
    %c71 = arith.constant 71 : index
    %c0_41 = arith.constant 0 : index
    %42 = vector.load %arg10[%c71, %c0_41] : memref<128x128xbf16, #tpu.memory_space<vmem>>, vector<24x128xbf16>
    %c0_42 = arith.constant 0 : index
    %c1792 = arith.constant 1792 : index
    %43 = vector.load %arg11[%c0_42, %c1792] : memref<24x2048xbf16, #tpu.memory_space<vmem>>, vector<24x128xbf16>
    tpu.vector_store %arg11[%c0_42, %c1792], %42 {strides = array<i32>} : memref<24x2048xbf16, #tpu.memory_space<vmem>>, vector<24x128xbf16>,
    %c103 = arith.constant 103 : index
    %c0_43 = arith.constant 0 : index
    %44 = vector.load %arg10[%c103, %c0_43] : memref<128x128xbf16, #tpu.memory_space<vmem>>, vector<24x128xbf16>
    %c0_44 = arith.constant 0 : index
    %c1920 = arith.constant 1920 : index
    %45 = vector.load %arg11[%c0_44, %c1920] : memref<24x2048xbf16, #tpu.memory_space<vmem>>, vector<24x128xbf16>
    tpu.vector_store %arg11[%c0_44, %c1920], %44 {strides = array<i32>} : memref<24x2048xbf16, #tpu.memory_space<vmem>>, vector<24x128xbf16>,
    %c0_45 = arith.constant 0 : index
    %c0_46 = arith.constant 0 : index
    %46 = vector.load %arg11[%c0_45, %c0_46] : memref<24x2048xbf16, #tpu.memory_space<vmem>>, vector<24x2048xbf16>
    %c0_47 = arith.constant 0 : index
    %c0_48 = arith.constant 0 : index
    %47 = vector.load %arg5[%c0_47, %c0_48] : memref<2048x128xbf16, #tpu.memory_space<vmem>>, vector<2048x128xbf16>
    %cst_49 = arith.constant dense<0.000000e+00> : vector<24x128xf32>
    %48 = tpu.matmul %46, %47, %cst_49 {dimension_numbers = #tpu.dot_dimension_numbers<[1], [0], [0], [1], [0, 0, 1, 1], [], []>} : vector<24x2048xbf16>, vector<2048x128xbf16>, vector<24x128xf32> -> vector<24x128xf32>
    %c0_50 = arith.constant 0 : index
    %c0_51 = arith.constant 0 : index
    %49 = vector.load %arg6[%c0_50, %c0_51] : memref<1x128xf32, #tpu.memory_space<vmem>>, vector<1x128xf32>
    %50 = vector.broadcast %49 : vector<1x128xf32> to vector<24x128xf32>
    %51 = arith.addf %48, %50 : vector<24x128xf32>
    %c0_52 = arith.constant 0 : index
    %c0_53 = arith.constant 0 : index
    %52 = vector.load %arg7[%c0_52, %c0_53] : memref<24x1xf32, #tpu.memory_space<vmem>>, vector<24x1xf32>
    %53 = vector.broadcast %52 : vector<24x1xf32> to vector<24x128xf32>
    %54 = arith.mulf %51, %53 : vector<24x128xf32>
    %cst_54 = arith.constant dense<0.000000e+00> : vector<128xf32>
    %55 = vector.multi_reduction <add>, %54, %cst_54 [0] : vector<24x128xf32> to vector<128xf32>
    %56 = vector.shape_cast %55 : vector<128xf32> to vector<1x128xf32>
    %57 = arith.mulf %54, %51 : vector<24x128xf32>
    %cst_55 = arith.constant dense<0.000000e+00> : vector<128xf32>
    %58 = vector.multi_reduction <add>, %57, %cst_55 [0] : vector<24x128xf32> to vector<128xf32>
    %59 = vector.shape_cast %58 : vector<128xf32> to vector<1x128xf32>
    %60 = tpu.concatenate %56, %59 in 0 : vector<1x128xf32>, vector<1x128xf32> -> vector<2x128xf32>
    %c0_56 = arith.constant 0 : index
    %c0_57 = arith.constant 0 : index
    %c0_58 = arith.constant 0 : index
    %61 = vector.load %arg9[%c0_56, %c0_57, %c0_58] : memref<1x2x128xf32, #tpu.memory_space<vmem>>, vector<1x2x128xf32>
    %62 = vector.shape_cast %61 : vector<1x2x128xf32> to vector<2x128xf32>
    %63 = vector.shape_cast %60 : vector<2x128xf32> to vector<1x2x128xf32>
    tpu.vector_store %arg9[%c0_56, %c0_57, %c0_58], %63 {strides = array<i32>} : memref<1x2x128xf32, #tpu.memory_space<vmem>>, vector<1x2x128xf32>,
    %c0_59 = arith.constant 0 : index
    %c0_60 = arith.constant 0 : index
    %c0_61 = arith.constant 0 : index
    %64 = vector.load %arg8[%c0_59, %c0_60, %c0_61] : memref<1x24x128xf32, #tpu.memory_space<vmem>>, vector<1x24x128xf32>
    %65 = vector.shape_cast %64 : vector<1x24x128xf32> to vector<24x128xf32>
    %66 = vector.shape_cast %51 : vector<24x128xf32> to vector<1x24x128xf32>
    tpu.vector_store %arg8[%c0_59, %c0_60, %c0_61], %66 {strides = array<i32>} : memref<1x24x128xf32, #tpu.memory_space<vmem>>, vector<1x24x128xf32>,
    return
  }
  func.func @transform_0(%arg0: i32) -> (i32, i32, i32) {
    %c0_i32 = arith.constant 0 : i32
    %c0_i32_0 = arith.constant 0 : i32
    %c0_i32_1 = arith.constant 0 : i32
    return %arg0, %c0_i32, %c0_i32_0 : i32, i32, i32
  }
  func.func @transform_1(%arg0: i32) -> (i32, i32) {
    %c0_i32 = arith.constant 0 : i32
    %c0_i32_0 = arith.constant 0 : i32
    %c0_i32_1 = arith.constant 0 : i32
    return %c0_i32, %c0_i32_0 : i32, i32
  }
  func.func @transform_2(%arg0: i32) -> (i32, i32) {
    %c0_i32 = arith.constant 0 : i32
    %c0_i32_0 = arith.constant 0 : i32
    %c0_i32_1 = arith.constant 0 : i32
    return %c0_i32, %c0_i32_0 : i32, i32
  }
  func.func @transform_3(%arg0: i32) -> (i32, i32) {
    %c0_i32 = arith.constant 0 : i32
    %c0_i32_0 = arith.constant 0 : i32
    %c0_i32_1 = arith.constant 0 : i32
    return %c0_i32, %c0_i32_0 : i32, i32
  }
  func.func @transform_4(%arg0: i32) -> (i32, i32) {
    %c0_i32 = arith.constant 0 : i32
    %c0_i32_0 = arith.constant 0 : i32
    %c0_i32_1 = arith.constant 0 : i32
    return %c0_i32, %c0_i32_0 : i32, i32
  }
  func.func @transform_5(%arg0: i32) -> (i32, i32) {
    %c0_i32 = arith.constant 0 : i32
    %c0_i32_0 = arith.constant 0 : i32
    %c0_i32_1 = arith.constant 0 : i32
    return %c0_i32, %c0_i32_0 : i32, i32
  }
  func.func @transform_6(%arg0: i32) -> (i32, i32) {
    %c0_i32 = arith.constant 0 : i32
    %c0_i32_0 = arith.constant 0 : i32
    %c0_i32_1 = arith.constant 0 : i32
    return %c0_i32, %c0_i32_0 : i32, i32
  }
  func.func @transform_7(%arg0: i32) -> (i32, i32, i32) {
    %c0_i32 = arith.constant 0 : i32
    %c0_i32_0 = arith.constant 0 : i32
    %c0_i32_1 = arith.constant 0 : i32
    return %arg0, %c0_i32, %c0_i32_0 : i32, i32, i32
  }
  func.func @transform_8(%arg0: i32) -> (i32, i32, i32) {
    %c0_i32 = arith.constant 0 : i32
    %c0_i32_0 = arith.constant 0 : i32
    %c0_i32_1 = arith.constant 0 : i32
    return %arg0, %c0_i32, %c0_i32_0 : i32, i32, i32
  }
}

module attributes {stable_mosaic.version = 11 : i64} {
  func.func @_stage_b_kernel(%arg0: i32, %arg1: memref<1x24x128xf32, #tpu.memory_space<vmem>>, %arg2: memref<1x128xf32, #tpu.memory_space<vmem>>, %arg3: memref<1x128xf32, #tpu.memory_space<vmem>>, %arg4: memref<4x512x128xbf16, #tpu.memory_space<vmem>>, %arg5: memref<1x128xf32, #tpu.memory_space<vmem>>, %arg6: memref<24x1xf32, #tpu.memory_space<vmem>>, %arg7: memref<1x4x24x128xf32, #tpu.memory_space<vmem>>, %arg8: memref<1x2x128xf32, #tpu.memory_space<vmem>>, %arg9: memref<40x128xbf16, #tpu.memory_space<vmem>>, %arg10: memref<24x512xbf16, #tpu.memory_space<vmem>>) attributes {dimension_semantics = [#tpu.dimension_semantics<parallel>], iteration_bounds = array<i64: 2>, scalar_prefetch = 0 : i64, scratch_operands = 2 : i64, tpu.core_type = #tpu.core_type<tc>, window_params = [{transform_indices = @transform_0, window_bounds = array<i64: 1, 24, 128>}, {pipeline_mode = #tpu.pipeline_mode<synchronous>, transform_indices = @transform_1, window_bounds = array<i64: 1, 128>}, {pipeline_mode = #tpu.pipeline_mode<synchronous>, transform_indices = @transform_2, window_bounds = array<i64: 1, 128>}, {pipeline_mode = #tpu.pipeline_mode<synchronous>, transform_indices = @transform_3, window_bounds = array<i64: 4, 512, 128>}, {pipeline_mode = #tpu.pipeline_mode<synchronous>, transform_indices = @transform_4, window_bounds = array<i64: 1, 128>}, {pipeline_mode = #tpu.pipeline_mode<synchronous>, transform_indices = @transform_5, window_bounds = array<i64: 24, 1>}, {transform_indices = @transform_6, window_bounds = array<i64: 1, 4, 24, 128>}, {transform_indices = @transform_7, window_bounds = array<i64: 1, 2, 128>}]} {
    %c0 = arith.constant 0 : index
    %c0_0 = arith.constant 0 : index
    %0 = vector.load %arg6[%c0, %c0_0] : memref<24x1xf32, #tpu.memory_space<vmem>>, vector<24x1xf32>
    %c0_1 = arith.constant 0 : index
    %c0_2 = arith.constant 0 : index
    %c0_3 = arith.constant 0 : index
    %1 = vector.load %arg1[%c0_1, %c0_2, %c0_3] : memref<1x24x128xf32, #tpu.memory_space<vmem>>, vector<1x24x128xf32>
    %2 = vector.shape_cast %1 : vector<1x24x128xf32> to vector<24x128xf32>
    %c0_4 = arith.constant 0 : index
    %c0_5 = arith.constant 0 : index
    %3 = vector.load %arg2[%c0_4, %c0_5] : memref<1x128xf32, #tpu.memory_space<vmem>>, vector<1x128xf32>
    %4 = vector.broadcast %3 : vector<1x128xf32> to vector<24x128xf32>
    %5 = arith.mulf %2, %4 : vector<24x128xf32>
    %c0_6 = arith.constant 0 : index
    %c0_7 = arith.constant 0 : index
    %6 = vector.load %arg3[%c0_6, %c0_7] : memref<1x128xf32, #tpu.memory_space<vmem>>, vector<1x128xf32>
    %7 = vector.broadcast %6 : vector<1x128xf32> to vector<24x128xf32>
    %8 = arith.addf %5, %7 : vector<24x128xf32>
    %cst = arith.constant 0.000000e+00 : f32
    %9 = vector.broadcast %cst : f32 to vector<24x128xf32>
    %10 = arith.maximumf %8, %9 : vector<24x128xf32>
    %11 = vector.broadcast %0 : vector<24x1xf32> to vector<24x128xf32>
    %12 = arith.mulf %10, %11 : vector<24x128xf32>
    %cst_8 = arith.constant 0.000000e+00 : bf16
    %13 = vector.broadcast %cst_8 : bf16 to vector<40x128xbf16>
    %c0_9 = arith.constant 0 : index
    %c0_10 = arith.constant 0 : index
    %14 = vector.load %arg9[%c0_9, %c0_10] : memref<40x128xbf16, #tpu.memory_space<vmem>>, vector<40x128xbf16>
    tpu.vector_store %arg9[%c0_9, %c0_10], %13 {strides = array<i32>} : memref<40x128xbf16, #tpu.memory_space<vmem>>, vector<40x128xbf16>,
    %15 = arith.truncf %12 : vector<24x128xf32> to vector<24x128xbf16>
    %c7 = arith.constant 7 : index
    %c0_11 = arith.constant 0 : index
    %16 = vector.load %arg9[%c7, %c0_11] : memref<40x128xbf16, #tpu.memory_space<vmem>>, vector<24x128xbf16>
    tpu.vector_store %arg9[%c7, %c0_11], %15 {strides = array<i32>} : memref<40x128xbf16, #tpu.memory_space<vmem>>, vector<24x128xbf16>,
    %cst_12 = arith.constant 0.000000e+00 : f32
    %17 = vector.broadcast %cst_12 : f32 to vector<1x128xf32>
    %cst_13 = arith.constant 0.000000e+00 : f32
    %18 = vector.broadcast %cst_13 : f32 to vector<1x128xf32>
    %c0_14 = arith.constant 0 : index
    %c0_15 = arith.constant 0 : index
    %19 = vector.load %arg9[%c0_14, %c0_15] : memref<40x128xbf16, #tpu.memory_space<vmem>>, vector<24x128xbf16>
    %c0_16 = arith.constant 0 : index
    %c0_17 = arith.constant 0 : index
    %20 = vector.load %arg10[%c0_16, %c0_17] : memref<24x512xbf16, #tpu.memory_space<vmem>>, vector<24x128xbf16>
    tpu.vector_store %arg10[%c0_16, %c0_17], %19 {strides = array<i32>} : memref<24x512xbf16, #tpu.memory_space<vmem>>, vector<24x128xbf16>,
    %c1 = arith.constant 1 : index
    %c0_18 = arith.constant 0 : index
    %21 = vector.load %arg9[%c1, %c0_18] : memref<40x128xbf16, #tpu.memory_space<vmem>>, vector<24x128xbf16>
    %c0_19 = arith.constant 0 : index
    %c128 = arith.constant 128 : index
    %22 = vector.load %arg10[%c0_19, %c128] : memref<24x512xbf16, #tpu.memory_space<vmem>>, vector<24x128xbf16>
    tpu.vector_store %arg10[%c0_19, %c128], %21 {strides = array<i32>} : memref<24x512xbf16, #tpu.memory_space<vmem>>, vector<24x128xbf16>,
    %c6 = arith.constant 6 : index
    %c0_20 = arith.constant 0 : index
    %23 = vector.load %arg9[%c6, %c0_20] : memref<40x128xbf16, #tpu.memory_space<vmem>>, vector<24x128xbf16>
    %c0_21 = arith.constant 0 : index
    %c256 = arith.constant 256 : index
    %24 = vector.load %arg10[%c0_21, %c256] : memref<24x512xbf16, #tpu.memory_space<vmem>>, vector<24x128xbf16>
    tpu.vector_store %arg10[%c0_21, %c256], %23 {strides = array<i32>} : memref<24x512xbf16, #tpu.memory_space<vmem>>, vector<24x128xbf16>,
    %c7_22 = arith.constant 7 : index
    %c0_23 = arith.constant 0 : index
    %25 = vector.load %arg9[%c7_22, %c0_23] : memref<40x128xbf16, #tpu.memory_space<vmem>>, vector<24x128xbf16>
    %c0_24 = arith.constant 0 : index
    %c384 = arith.constant 384 : index
    %26 = vector.load %arg10[%c0_24, %c384] : memref<24x512xbf16, #tpu.memory_space<vmem>>, vector<24x128xbf16>
    tpu.vector_store %arg10[%c0_24, %c384], %25 {strides = array<i32>} : memref<24x512xbf16, #tpu.memory_space<vmem>>, vector<24x128xbf16>,
    %c0_25 = arith.constant 0 : index
    %c0_26 = arith.constant 0 : index
    %27 = vector.load %arg10[%c0_25, %c0_26] : memref<24x512xbf16, #tpu.memory_space<vmem>>, vector<24x512xbf16>
    %c0_27 = arith.constant 0 : index
    %c0_28 = arith.constant 0 : index
    %c0_29 = arith.constant 0 : index
    %28 = vector.load %arg4[%c0_27, %c0_28, %c0_29] : memref<4x512x128xbf16, #tpu.memory_space<vmem>>, vector<1x512x128xbf16>
    %29 = vector.shape_cast %28 : vector<1x512x128xbf16> to vector<512x128xbf16>
    %cst_30 = arith.constant dense<0.000000e+00> : vector<24x128xf32>
    %30 = tpu.matmul %27, %29, %cst_30 {dimension_numbers = #tpu.dot_dimension_numbers<[1], [0], [0], [1], [0, 0, 1, 1], [], []>} : vector<24x512xbf16>, vector<512x128xbf16>, vector<24x128xf32> -> vector<24x128xf32>
    %c0_31 = arith.constant 0 : index
    %c0_32 = arith.constant 0 : index
    %31 = vector.load %arg5[%c0_31, %c0_32] : memref<1x128xf32, #tpu.memory_space<vmem>>, vector<1x128xf32>
    %32 = vector.broadcast %31 : vector<1x128xf32> to vector<24x128xf32>
    %33 = arith.addf %30, %32 : vector<24x128xf32>
    %34 = vector.broadcast %0 : vector<24x1xf32> to vector<24x128xf32>
    %35 = arith.mulf %33, %34 : vector<24x128xf32>
    %cst_33 = arith.constant dense<0.000000e+00> : vector<128xf32>
    %36 = vector.multi_reduction <add>, %35, %cst_33 [0] : vector<24x128xf32> to vector<128xf32>
    %37 = vector.shape_cast %36 : vector<128xf32> to vector<1x128xf32>
    %38 = arith.addf %17, %37 : vector<1x128xf32>
    %39 = arith.mulf %35, %33 : vector<24x128xf32>
    %cst_34 = arith.constant dense<0.000000e+00> : vector<128xf32>
    %40 = vector.multi_reduction <add>, %39, %cst_34 [0] : vector<24x128xf32> to vector<128xf32>
    %41 = vector.shape_cast %40 : vector<128xf32> to vector<1x128xf32>
    %42 = arith.addf %18, %41 : vector<1x128xf32>
    %c0_35 = arith.constant 0 : index
    %c0_36 = arith.constant 0 : index
    %c0_37 = arith.constant 0 : index
    %c0_38 = arith.constant 0 : index
    %43 = vector.load %arg7[%c0_35, %c0_36, %c0_37, %c0_38] : memref<1x4x24x128xf32, #tpu.memory_space<vmem>>, vector<1x1x24x128xf32>
    %44 = vector.shape_cast %43 : vector<1x1x24x128xf32> to vector<24x128xf32>
    %45 = vector.shape_cast %33 : vector<24x128xf32> to vector<1x1x24x128xf32>
    tpu.vector_store %arg7[%c0_35, %c0_36, %c0_37, %c0_38], %45 {strides = array<i32>} : memref<1x4x24x128xf32, #tpu.memory_space<vmem>>, vector<1x1x24x128xf32>,
    %c1_39 = arith.constant 1 : index
    %c0_40 = arith.constant 0 : index
    %46 = vector.load %arg9[%c1_39, %c0_40] : memref<40x128xbf16, #tpu.memory_space<vmem>>, vector<24x128xbf16>
    %c0_41 = arith.constant 0 : index
    %c0_42 = arith.constant 0 : index
    %47 = vector.load %arg10[%c0_41, %c0_42] : memref<24x512xbf16, #tpu.memory_space<vmem>>, vector<24x128xbf16>
    tpu.vector_store %arg10[%c0_41, %c0_42], %46 {strides = array<i32>} : memref<24x512xbf16, #tpu.memory_space<vmem>>, vector<24x128xbf16>,
    %c2 = arith.constant 2 : index
    %c0_43 = arith.constant 0 : index
    %48 = vector.load %arg9[%c2, %c0_43] : memref<40x128xbf16, #tpu.memory_space<vmem>>, vector<24x128xbf16>
    %c0_44 = arith.constant 0 : index
    %c128_45 = arith.constant 128 : index
    %49 = vector.load %arg10[%c0_44, %c128_45] : memref<24x512xbf16, #tpu.memory_space<vmem>>, vector<24x128xbf16>
    tpu.vector_store %arg10[%c0_44, %c128_45], %48 {strides = array<i32>} : memref<24x512xbf16, #tpu.memory_space<vmem>>, vector<24x128xbf16>,
    %c7_46 = arith.constant 7 : index
    %c0_47 = arith.constant 0 : index
    %50 = vector.load %arg9[%c7_46, %c0_47] : memref<40x128xbf16, #tpu.memory_space<vmem>>, vector<24x128xbf16>
    %c0_48 = arith.constant 0 : index
    %c256_49 = arith.constant 256 : index
    %51 = vector.load %arg10[%c0_48, %c256_49] : memref<24x512xbf16, #tpu.memory_space<vmem>>, vector<24x128xbf16>
    tpu.vector_store %arg10[%c0_48, %c256_49], %50 {strides = array<i32>} : memref<24x512xbf16, #tpu.memory_space<vmem>>, vector<24x128xbf16>,
    %c8 = arith.constant 8 : index
    %c0_50 = arith.constant 0 : index
    %52 = vector.load %arg9[%c8, %c0_50] : memref<40x128xbf16, #tpu.memory_space<vmem>>, vector<24x128xbf16>
    %c0_51 = arith.constant 0 : index
    %c384_52 = arith.constant 384 : index
    %53 = vector.load %arg10[%c0_51, %c384_52] : memref<24x512xbf16, #tpu.memory_space<vmem>>, vector<24x128xbf16>
    tpu.vector_store %arg10[%c0_51, %c384_52], %52 {strides = array<i32>} : memref<24x512xbf16, #tpu.memory_space<vmem>>, vector<24x128xbf16>,
    %c0_53 = arith.constant 0 : index
    %c0_54 = arith.constant 0 : index
    %54 = vector.load %arg10[%c0_53, %c0_54] : memref<24x512xbf16, #tpu.memory_space<vmem>>, vector<24x512xbf16>
    %c1_55 = arith.constant 1 : index
    %c0_56 = arith.constant 0 : index
    %c0_57 = arith.constant 0 : index
    %55 = vector.load %arg4[%c1_55, %c0_56, %c0_57] : memref<4x512x128xbf16, #tpu.memory_space<vmem>>, vector<1x512x128xbf16>
    %56 = vector.shape_cast %55 : vector<1x512x128xbf16> to vector<512x128xbf16>
    %cst_58 = arith.constant dense<0.000000e+00> : vector<24x128xf32>
    %57 = tpu.matmul %54, %56, %cst_58 {dimension_numbers = #tpu.dot_dimension_numbers<[1], [0], [0], [1], [0, 0, 1, 1], [], []>} : vector<24x512xbf16>, vector<512x128xbf16>, vector<24x128xf32> -> vector<24x128xf32>
    %c0_59 = arith.constant 0 : index
    %c0_60 = arith.constant 0 : index
    %58 = vector.load %arg5[%c0_59, %c0_60] : memref<1x128xf32, #tpu.memory_space<vmem>>, vector<1x128xf32>
    %59 = vector.broadcast %58 : vector<1x128xf32> to vector<24x128xf32>
    %60 = arith.addf %57, %59 : vector<24x128xf32>
    %61 = vector.broadcast %0 : vector<24x1xf32> to vector<24x128xf32>
    %62 = arith.mulf %60, %61 : vector<24x128xf32>
    %cst_61 = arith.constant dense<0.000000e+00> : vector<128xf32>
    %63 = vector.multi_reduction <add>, %62, %cst_61 [0] : vector<24x128xf32> to vector<128xf32>
    %64 = vector.shape_cast %63 : vector<128xf32> to vector<1x128xf32>
    %65 = arith.addf %38, %64 : vector<1x128xf32>
    %66 = arith.mulf %62, %60 : vector<24x128xf32>
    %cst_62 = arith.constant dense<0.000000e+00> : vector<128xf32>
    %67 = vector.multi_reduction <add>, %66, %cst_62 [0] : vector<24x128xf32> to vector<128xf32>
    %68 = vector.shape_cast %67 : vector<128xf32> to vector<1x128xf32>
    %69 = arith.addf %42, %68 : vector<1x128xf32>
    %c0_63 = arith.constant 0 : index
    %c1_64 = arith.constant 1 : index
    %c0_65 = arith.constant 0 : index
    %c0_66 = arith.constant 0 : index
    %70 = vector.load %arg7[%c0_63, %c1_64, %c0_65, %c0_66] : memref<1x4x24x128xf32, #tpu.memory_space<vmem>>, vector<1x1x24x128xf32>
    %71 = vector.shape_cast %70 : vector<1x1x24x128xf32> to vector<24x128xf32>
    %72 = vector.shape_cast %60 : vector<24x128xf32> to vector<1x1x24x128xf32>
    tpu.vector_store %arg7[%c0_63, %c1_64, %c0_65, %c0_66], %72 {strides = array<i32>} : memref<1x4x24x128xf32, #tpu.memory_space<vmem>>, vector<1x1x24x128xf32>,
    %c6_67 = arith.constant 6 : index
    %c0_68 = arith.constant 0 : index
    %73 = vector.load %arg9[%c6_67, %c0_68] : memref<40x128xbf16, #tpu.memory_space<vmem>>, vector<24x128xbf16>
    %c0_69 = arith.constant 0 : index
    %c0_70 = arith.constant 0 : index
    %74 = vector.load %arg10[%c0_69, %c0_70] : memref<24x512xbf16, #tpu.memory_space<vmem>>, vector<24x128xbf16>
    tpu.vector_store %arg10[%c0_69, %c0_70], %73 {strides = array<i32>} : memref<24x512xbf16, #tpu.memory_space<vmem>>, vector<24x128xbf16>,
    %c7_71 = arith.constant 7 : index
    %c0_72 = arith.constant 0 : index
    %75 = vector.load %arg9[%c7_71, %c0_72] : memref<40x128xbf16, #tpu.memory_space<vmem>>, vector<24x128xbf16>
    %c0_73 = arith.constant 0 : index
    %c128_74 = arith.constant 128 : index
    %76 = vector.load %arg10[%c0_73, %c128_74] : memref<24x512xbf16, #tpu.memory_space<vmem>>, vector<24x128xbf16>
    tpu.vector_store %arg10[%c0_73, %c128_74], %75 {strides = array<i32>} : memref<24x512xbf16, #tpu.memory_space<vmem>>, vector<24x128xbf16>,
    %c12 = arith.constant 12 : index
    %c0_75 = arith.constant 0 : index
    %77 = vector.load %arg9[%c12, %c0_75] : memref<40x128xbf16, #tpu.memory_space<vmem>>, vector<24x128xbf16>
    %c0_76 = arith.constant 0 : index
    %c256_77 = arith.constant 256 : index
    %78 = vector.load %arg10[%c0_76, %c256_77] : memref<24x512xbf16, #tpu.memory_space<vmem>>, vector<24x128xbf16>
    tpu.vector_store %arg10[%c0_76, %c256_77], %77 {strides = array<i32>} : memref<24x512xbf16, #tpu.memory_space<vmem>>, vector<24x128xbf16>,
    %c13 = arith.constant 13 : index
    %c0_78 = arith.constant 0 : index
    %79 = vector.load %arg9[%c13, %c0_78] : memref<40x128xbf16, #tpu.memory_space<vmem>>, vector<24x128xbf16>
    %c0_79 = arith.constant 0 : index
    %c384_80 = arith.constant 384 : index
    %80 = vector.load %arg10[%c0_79, %c384_80] : memref<24x512xbf16, #tpu.memory_space<vmem>>, vector<24x128xbf16>
    tpu.vector_store %arg10[%c0_79, %c384_80], %79 {strides = array<i32>} : memref<24x512xbf16, #tpu.memory_space<vmem>>, vector<24x128xbf16>,
    %c0_81 = arith.constant 0 : index
    %c0_82 = arith.constant 0 : index
    %81 = vector.load %arg10[%c0_81, %c0_82] : memref<24x512xbf16, #tpu.memory_space<vmem>>, vector<24x512xbf16>
    %c2_83 = arith.constant 2 : index
    %c0_84 = arith.constant 0 : index
    %c0_85 = arith.constant 0 : index
    %82 = vector.load %arg4[%c2_83, %c0_84, %c0_85] : memref<4x512x128xbf16, #tpu.memory_space<vmem>>, vector<1x512x128xbf16>
    %83 = vector.shape_cast %82 : vector<1x512x128xbf16> to vector<512x128xbf16>
    %cst_86 = arith.constant dense<0.000000e+00> : vector<24x128xf32>
    %84 = tpu.matmul %81, %83, %cst_86 {dimension_numbers = #tpu.dot_dimension_numbers<[1], [0], [0], [1], [0, 0, 1, 1], [], []>} : vector<24x512xbf16>, vector<512x128xbf16>, vector<24x128xf32> -> vector<24x128xf32>
    %c0_87 = arith.constant 0 : index
    %c0_88 = arith.constant 0 : index
    %85 = vector.load %arg5[%c0_87, %c0_88] : memref<1x128xf32, #tpu.memory_space<vmem>>, vector<1x128xf32>
    %86 = vector.broadcast %85 : vector<1x128xf32> to vector<24x128xf32>
    %87 = arith.addf %84, %86 : vector<24x128xf32>
    %88 = vector.broadcast %0 : vector<24x1xf32> to vector<24x128xf32>
    %89 = arith.mulf %87, %88 : vector<24x128xf32>
    %cst_89 = arith.constant dense<0.000000e+00> : vector<128xf32>
    %90 = vector.multi_reduction <add>, %89, %cst_89 [0] : vector<24x128xf32> to vector<128xf32>
    %91 = vector.shape_cast %90 : vector<128xf32> to vector<1x128xf32>
    %92 = arith.addf %65, %91 : vector<1x128xf32>
    %93 = arith.mulf %89, %87 : vector<24x128xf32>
    %cst_90 = arith.constant dense<0.000000e+00> : vector<128xf32>
    %94 = vector.multi_reduction <add>, %93, %cst_90 [0] : vector<24x128xf32> to vector<128xf32>
    %95 = vector.shape_cast %94 : vector<128xf32> to vector<1x128xf32>
    %96 = arith.addf %69, %95 : vector<1x128xf32>
    %c0_91 = arith.constant 0 : index
    %c2_92 = arith.constant 2 : index
    %c0_93 = arith.constant 0 : index
    %c0_94 = arith.constant 0 : index
    %97 = vector.load %arg7[%c0_91, %c2_92, %c0_93, %c0_94] : memref<1x4x24x128xf32, #tpu.memory_space<vmem>>, vector<1x1x24x128xf32>
    %98 = vector.shape_cast %97 : vector<1x1x24x128xf32> to vector<24x128xf32>
    %99 = vector.shape_cast %87 : vector<24x128xf32> to vector<1x1x24x128xf32>
    tpu.vector_store %arg7[%c0_91, %c2_92, %c0_93, %c0_94], %99 {strides = array<i32>} : memref<1x4x24x128xf32, #tpu.memory_space<vmem>>, vector<1x1x24x128xf32>,
    %c7_95 = arith.constant 7 : index
    %c0_96 = arith.constant 0 : index
    %100 = vector.load %arg9[%c7_95, %c0_96] : memref<40x128xbf16, #tpu.memory_space<vmem>>, vector<24x128xbf16>
    %c0_97 = arith.constant 0 : index
    %c0_98 = arith.constant 0 : index
    %101 = vector.load %arg10[%c0_97, %c0_98] : memref<24x512xbf16, #tpu.memory_space<vmem>>, vector<24x128xbf16>
    tpu.vector_store %arg10[%c0_97, %c0_98], %100 {strides = array<i32>} : memref<24x512xbf16, #tpu.memory_space<vmem>>, vector<24x128xbf16>,
    %c8_99 = arith.constant 8 : index
    %c0_100 = arith.constant 0 : index
    %102 = vector.load %arg9[%c8_99, %c0_100] : memref<40x128xbf16, #tpu.memory_space<vmem>>, vector<24x128xbf16>
    %c0_101 = arith.constant 0 : index
    %c128_102 = arith.constant 128 : index
    %103 = vector.load %arg10[%c0_101, %c128_102] : memref<24x512xbf16, #tpu.memory_space<vmem>>, vector<24x128xbf16>
    tpu.vector_store %arg10[%c0_101, %c128_102], %102 {strides = array<i32>} : memref<24x512xbf16, #tpu.memory_space<vmem>>, vector<24x128xbf16>,
    %c13_103 = arith.constant 13 : index
    %c0_104 = arith.constant 0 : index
    %104 = vector.load %arg9[%c13_103, %c0_104] : memref<40x128xbf16, #tpu.memory_space<vmem>>, vector<24x128xbf16>
    %c0_105 = arith.constant 0 : index
    %c256_106 = arith.constant 256 : index
    %105 = vector.load %arg10[%c0_105, %c256_106] : memref<24x512xbf16, #tpu.memory_space<vmem>>, vector<24x128xbf16>
    tpu.vector_store %arg10[%c0_105, %c256_106], %104 {strides = array<i32>} : memref<24x512xbf16, #tpu.memory_space<vmem>>, vector<24x128xbf16>,
    %c14 = arith.constant 14 : index
    %c0_107 = arith.constant 0 : index
    %106 = vector.load %arg9[%c14, %c0_107] : memref<40x128xbf16, #tpu.memory_space<vmem>>, vector<24x128xbf16>
    %c0_108 = arith.constant 0 : index
    %c384_109 = arith.constant 384 : index
    %107 = vector.load %arg10[%c0_108, %c384_109] : memref<24x512xbf16, #tpu.memory_space<vmem>>, vector<24x128xbf16>
    tpu.vector_store %arg10[%c0_108, %c384_109], %106 {strides = array<i32>} : memref<24x512xbf16, #tpu.memory_space<vmem>>, vector<24x128xbf16>,
    %c0_110 = arith.constant 0 : index
    %c0_111 = arith.constant 0 : index
    %108 = vector.load %arg10[%c0_110, %c0_111] : memref<24x512xbf16, #tpu.memory_space<vmem>>, vector<24x512xbf16>
    %c3 = arith.constant 3 : index
    %c0_112 = arith.constant 0 : index
    %c0_113 = arith.constant 0 : index
    %109 = vector.load %arg4[%c3, %c0_112, %c0_113] : memref<4x512x128xbf16, #tpu.memory_space<vmem>>, vector<1x512x128xbf16>
    %110 = vector.shape_cast %109 : vector<1x512x128xbf16> to vector<512x128xbf16>
    %cst_114 = arith.constant dense<0.000000e+00> : vector<24x128xf32>
    %111 = tpu.matmul %108, %110, %cst_114 {dimension_numbers = #tpu.dot_dimension_numbers<[1], [0], [0], [1], [0, 0, 1, 1], [], []>} : vector<24x512xbf16>, vector<512x128xbf16>, vector<24x128xf32> -> vector<24x128xf32>
    %c0_115 = arith.constant 0 : index
    %c0_116 = arith.constant 0 : index
    %112 = vector.load %arg5[%c0_115, %c0_116] : memref<1x128xf32, #tpu.memory_space<vmem>>, vector<1x128xf32>
    %113 = vector.broadcast %112 : vector<1x128xf32> to vector<24x128xf32>
    %114 = arith.addf %111, %113 : vector<24x128xf32>
    %115 = vector.broadcast %0 : vector<24x1xf32> to vector<24x128xf32>
    %116 = arith.mulf %114, %115 : vector<24x128xf32>
    %cst_117 = arith.constant dense<0.000000e+00> : vector<128xf32>
    %117 = vector.multi_reduction <add>, %116, %cst_117 [0] : vector<24x128xf32> to vector<128xf32>
    %118 = vector.shape_cast %117 : vector<128xf32> to vector<1x128xf32>
    %119 = arith.addf %92, %118 : vector<1x128xf32>
    %120 = arith.mulf %116, %114 : vector<24x128xf32>
    %cst_118 = arith.constant dense<0.000000e+00> : vector<128xf32>
    %121 = vector.multi_reduction <add>, %120, %cst_118 [0] : vector<24x128xf32> to vector<128xf32>
    %122 = vector.shape_cast %121 : vector<128xf32> to vector<1x128xf32>
    %123 = arith.addf %96, %122 : vector<1x128xf32>
    %c0_119 = arith.constant 0 : index
    %c3_120 = arith.constant 3 : index
    %c0_121 = arith.constant 0 : index
    %c0_122 = arith.constant 0 : index
    %124 = vector.load %arg7[%c0_119, %c3_120, %c0_121, %c0_122] : memref<1x4x24x128xf32, #tpu.memory_space<vmem>>, vector<1x1x24x128xf32>
    %125 = vector.shape_cast %124 : vector<1x1x24x128xf32> to vector<24x128xf32>
    %126 = vector.shape_cast %114 : vector<24x128xf32> to vector<1x1x24x128xf32>
    tpu.vector_store %arg7[%c0_119, %c3_120, %c0_121, %c0_122], %126 {strides = array<i32>} : memref<1x4x24x128xf32, #tpu.memory_space<vmem>>, vector<1x1x24x128xf32>,
    %127 = tpu.concatenate %119, %123 in 0 : vector<1x128xf32>, vector<1x128xf32> -> vector<2x128xf32>
    %c0_123 = arith.constant 0 : index
    %c0_124 = arith.constant 0 : index
    %c0_125 = arith.constant 0 : index
    %128 = vector.load %arg8[%c0_123, %c0_124, %c0_125] : memref<1x2x128xf32, #tpu.memory_space<vmem>>, vector<1x2x128xf32>
    %129 = vector.shape_cast %128 : vector<1x2x128xf32> to vector<2x128xf32>
    %130 = vector.shape_cast %127 : vector<2x128xf32> to vector<1x2x128xf32>
    tpu.vector_store %arg8[%c0_123, %c0_124, %c0_125], %130 {strides = array<i32>} : memref<1x2x128xf32, #tpu.memory_space<vmem>>, vector<1x2x128xf32>,
    return
  }
  func.func @transform_0(%arg0: i32) -> (i32, i32, i32) {
    %c0_i32 = arith.constant 0 : i32
    %c0_i32_0 = arith.constant 0 : i32
    %c0_i32_1 = arith.constant 0 : i32
    return %arg0, %c0_i32, %c0_i32_0 : i32, i32, i32
  }
  func.func @transform_1(%arg0: i32) -> (i32, i32) {
    %c0_i32 = arith.constant 0 : i32
    %c0_i32_0 = arith.constant 0 : i32
    %c0_i32_1 = arith.constant 0 : i32
    return %c0_i32, %c0_i32_0 : i32, i32
  }
  func.func @transform_2(%arg0: i32) -> (i32, i32) {
    %c0_i32 = arith.constant 0 : i32
    %c0_i32_0 = arith.constant 0 : i32
    %c0_i32_1 = arith.constant 0 : i32
    return %c0_i32, %c0_i32_0 : i32, i32
  }
  func.func @transform_3(%arg0: i32) -> (i32, i32, i32) {
    %c0_i32 = arith.constant 0 : i32
    %c0_i32_0 = arith.constant 0 : i32
    %c0_i32_1 = arith.constant 0 : i32
    %c0_i32_2 = arith.constant 0 : i32
    return %c0_i32, %c0_i32_0, %c0_i32_1 : i32, i32, i32
  }
  func.func @transform_4(%arg0: i32) -> (i32, i32) {
    %c0_i32 = arith.constant 0 : i32
    %c0_i32_0 = arith.constant 0 : i32
    %c0_i32_1 = arith.constant 0 : i32
    return %c0_i32, %c0_i32_0 : i32, i32
  }
  func.func @transform_5(%arg0: i32) -> (i32, i32) {
    %c0_i32 = arith.constant 0 : i32
    %c0_i32_0 = arith.constant 0 : i32
    %c0_i32_1 = arith.constant 0 : i32
    return %c0_i32, %c0_i32_0 : i32, i32
  }
  func.func @transform_6(%arg0: i32) -> (i32, i32, i32, i32) {
    %c0_i32 = arith.constant 0 : i32
    %c0_i32_0 = arith.constant 0 : i32
    %c0_i32_1 = arith.constant 0 : i32
    %c0_i32_2 = arith.constant 0 : i32
    return %arg0, %c0_i32, %c0_i32_0, %c0_i32_1 : i32, i32, i32, i32
  }
  func.func @transform_7(%arg0: i32) -> (i32, i32, i32) {
    %c0_i32 = arith.constant 0 : i32
    %c0_i32_0 = arith.constant 0 : i32
    %c0_i32_1 = arith.constant 0 : i32
    return %arg0, %c0_i32, %c0_i32_0 : i32, i32, i32
  }
}

module attributes {stable_mosaic.version = 11 : i64} {
  func.func @_stage_c_kernel(%arg0: i32, %arg1: memref<1x104x128xf32, #tpu.memory_space<vmem>>, %arg2: memref<1x128xf32, #tpu.memory_space<vmem>>, %arg3: memref<1x128xf32, #tpu.memory_space<vmem>>, %arg4: memref<104x1xf32, #tpu.memory_space<vmem>>, %arg5: memref<4x512x128xbf16, #tpu.memory_space<vmem>>, %arg6: memref<1x128xf32, #tpu.memory_space<vmem>>, %arg7: memref<1x4x80x128xf32, #tpu.memory_space<vmem>>, %arg8: memref<104x128xbf16, #tpu.memory_space<vmem>>, %arg9: memref<80x512xbf16, #tpu.memory_space<vmem>>) attributes {dimension_semantics = [#tpu.dimension_semantics<parallel>], iteration_bounds = array<i64: 2>, scalar_prefetch = 0 : i64, scratch_operands = 2 : i64, tpu.core_type = #tpu.core_type<tc>, window_params = [{transform_indices = @transform_0, window_bounds = array<i64: 1, 104, 128>}, {pipeline_mode = #tpu.pipeline_mode<synchronous>, transform_indices = @transform_1, window_bounds = array<i64: 1, 128>}, {pipeline_mode = #tpu.pipeline_mode<synchronous>, transform_indices = @transform_2, window_bounds = array<i64: 1, 128>}, {pipeline_mode = #tpu.pipeline_mode<synchronous>, transform_indices = @transform_3, window_bounds = array<i64: 104, 1>}, {pipeline_mode = #tpu.pipeline_mode<synchronous>, transform_indices = @transform_4, window_bounds = array<i64: 4, 512, 128>}, {pipeline_mode = #tpu.pipeline_mode<synchronous>, transform_indices = @transform_5, window_bounds = array<i64: 1, 128>}, {transform_indices = @transform_6, window_bounds = array<i64: 1, 4, 80, 128>}]} {
    %c0 = arith.constant 0 : index
    %c0_0 = arith.constant 0 : index
    %c0_1 = arith.constant 0 : index
    %0 = vector.load %arg1[%c0, %c0_0, %c0_1] : memref<1x104x128xf32, #tpu.memory_space<vmem>>, vector<1x104x128xf32>
    %1 = vector.shape_cast %0 : vector<1x104x128xf32> to vector<104x128xf32>
    %c0_2 = arith.constant 0 : index
    %c0_3 = arith.constant 0 : index
    %2 = vector.load %arg2[%c0_2, %c0_3] : memref<1x128xf32, #tpu.memory_space<vmem>>, vector<1x128xf32>
    %3 = vector.broadcast %2 : vector<1x128xf32> to vector<104x128xf32>
    %4 = arith.mulf %1, %3 : vector<104x128xf32>
    %c0_4 = arith.constant 0 : index
    %c0_5 = arith.constant 0 : index
    %5 = vector.load %arg3[%c0_4, %c0_5] : memref<1x128xf32, #tpu.memory_space<vmem>>, vector<1x128xf32>
    %6 = vector.broadcast %5 : vector<1x128xf32> to vector<104x128xf32>
    %7 = arith.addf %4, %6 : vector<104x128xf32>
    %cst = arith.constant 0.000000e+00 : f32
    %8 = vector.broadcast %cst : f32 to vector<104x128xf32>
    %9 = arith.maximumf %7, %8 : vector<104x128xf32>
    %c0_6 = arith.constant 0 : index
    %c0_7 = arith.constant 0 : index
    %10 = vector.load %arg4[%c0_6, %c0_7] : memref<104x1xf32, #tpu.memory_space<vmem>>, vector<104x1xf32>
    %11 = vector.broadcast %10 : vector<104x1xf32> to vector<104x128xf32>
    %12 = arith.mulf %9, %11 : vector<104x128xf32>
    %13 = arith.truncf %12 : vector<104x128xf32> to vector<104x128xbf16>
    %c0_8 = arith.constant 0 : index
    %c0_9 = arith.constant 0 : index
    %14 = vector.load %arg8[%c0_8, %c0_9] : memref<104x128xbf16, #tpu.memory_space<vmem>>, vector<104x128xbf16>
    tpu.vector_store %arg8[%c0_8, %c0_9], %13 {strides = array<i32>} : memref<104x128xbf16, #tpu.memory_space<vmem>>, vector<104x128xbf16>,
    %c0_10 = arith.constant 0 : index
    %c0_11 = arith.constant 0 : index
    %15 = vector.load %arg8[%c0_10, %c0_11] : memref<104x128xbf16, #tpu.memory_space<vmem>>, vector<80x128xbf16>
    %c0_12 = arith.constant 0 : index
    %c0_13 = arith.constant 0 : index
    %16 = vector.load %arg9[%c0_12, %c0_13] : memref<80x512xbf16, #tpu.memory_space<vmem>>, vector<80x128xbf16>
    tpu.vector_store %arg9[%c0_12, %c0_13], %15 {strides = array<i32>} : memref<80x512xbf16, #tpu.memory_space<vmem>>, vector<80x128xbf16>,
    %c1 = arith.constant 1 : index
    %c0_14 = arith.constant 0 : index
    %17 = vector.load %arg8[%c1, %c0_14] : memref<104x128xbf16, #tpu.memory_space<vmem>>, vector<80x128xbf16>
    %c0_15 = arith.constant 0 : index
    %c128 = arith.constant 128 : index
    %18 = vector.load %arg9[%c0_15, %c128] : memref<80x512xbf16, #tpu.memory_space<vmem>>, vector<80x128xbf16>
    tpu.vector_store %arg9[%c0_15, %c128], %17 {strides = array<i32>} : memref<80x512xbf16, #tpu.memory_space<vmem>>, vector<80x128xbf16>,
    %c10 = arith.constant 10 : index
    %c0_16 = arith.constant 0 : index
    %19 = vector.load %arg8[%c10, %c0_16] : memref<104x128xbf16, #tpu.memory_space<vmem>>, vector<80x128xbf16>
    %c0_17 = arith.constant 0 : index
    %c256 = arith.constant 256 : index
    %20 = vector.load %arg9[%c0_17, %c256] : memref<80x512xbf16, #tpu.memory_space<vmem>>, vector<80x128xbf16>
    tpu.vector_store %arg9[%c0_17, %c256], %19 {strides = array<i32>} : memref<80x512xbf16, #tpu.memory_space<vmem>>, vector<80x128xbf16>,
    %c11 = arith.constant 11 : index
    %c0_18 = arith.constant 0 : index
    %21 = vector.load %arg8[%c11, %c0_18] : memref<104x128xbf16, #tpu.memory_space<vmem>>, vector<80x128xbf16>
    %c0_19 = arith.constant 0 : index
    %c384 = arith.constant 384 : index
    %22 = vector.load %arg9[%c0_19, %c384] : memref<80x512xbf16, #tpu.memory_space<vmem>>, vector<80x128xbf16>
    tpu.vector_store %arg9[%c0_19, %c384], %21 {strides = array<i32>} : memref<80x512xbf16, #tpu.memory_space<vmem>>, vector<80x128xbf16>,
    %c0_20 = arith.constant 0 : index
    %c0_21 = arith.constant 0 : index
    %23 = vector.load %arg9[%c0_20, %c0_21] : memref<80x512xbf16, #tpu.memory_space<vmem>>, vector<80x512xbf16>
    %c0_22 = arith.constant 0 : index
    %c0_23 = arith.constant 0 : index
    %c0_24 = arith.constant 0 : index
    %24 = vector.load %arg5[%c0_22, %c0_23, %c0_24] : memref<4x512x128xbf16, #tpu.memory_space<vmem>>, vector<1x512x128xbf16>
    %25 = vector.shape_cast %24 : vector<1x512x128xbf16> to vector<512x128xbf16>
    %cst_25 = arith.constant dense<0.000000e+00> : vector<80x128xf32>
    %26 = tpu.matmul %23, %25, %cst_25 {dimension_numbers = #tpu.dot_dimension_numbers<[1], [0], [0], [1], [0, 0, 1, 1], [], []>} : vector<80x512xbf16>, vector<512x128xbf16>, vector<80x128xf32> -> vector<80x128xf32>
    %c0_26 = arith.constant 0 : index
    %c0_27 = arith.constant 0 : index
    %27 = vector.load %arg6[%c0_26, %c0_27] : memref<1x128xf32, #tpu.memory_space<vmem>>, vector<1x128xf32>
    %28 = vector.broadcast %27 : vector<1x128xf32> to vector<80x128xf32>
    %29 = arith.addf %26, %28 : vector<80x128xf32>
    %cst_28 = arith.constant 0.000000e+00 : f32
    %30 = vector.broadcast %cst_28 : f32 to vector<80x128xf32>
    %31 = arith.subf %30, %29 : vector<80x128xf32>
    %32 = math.exp %31 : vector<80x128xf32>
    %cst_29 = arith.constant 1.000000e+00 : f32
    %33 = vector.broadcast %cst_29 : f32 to vector<80x128xf32>
    %34 = arith.addf %33, %32 : vector<80x128xf32>
    %cst_30 = arith.constant 1.000000e+00 : f32
    %35 = vector.broadcast %cst_30 : f32 to vector<80x128xf32>
    %36 = arith.divf %35, %34 : vector<80x128xf32>
    %c0_31 = arith.constant 0 : index
    %c0_32 = arith.constant 0 : index
    %c0_33 = arith.constant 0 : index
    %c0_34 = arith.constant 0 : index
    %37 = vector.load %arg7[%c0_31, %c0_32, %c0_33, %c0_34] : memref<1x4x80x128xf32, #tpu.memory_space<vmem>>, vector<1x1x80x128xf32>
    %38 = vector.shape_cast %37 : vector<1x1x80x128xf32> to vector<80x128xf32>
    %39 = vector.shape_cast %36 : vector<80x128xf32> to vector<1x1x80x128xf32>
    tpu.vector_store %arg7[%c0_31, %c0_32, %c0_33, %c0_34], %39 {strides = array<i32>} : memref<1x4x80x128xf32, #tpu.memory_space<vmem>>, vector<1x1x80x128xf32>,
    %c1_35 = arith.constant 1 : index
    %c0_36 = arith.constant 0 : index
    %40 = vector.load %arg8[%c1_35, %c0_36] : memref<104x128xbf16, #tpu.memory_space<vmem>>, vector<80x128xbf16>
    %c0_37 = arith.constant 0 : index
    %c0_38 = arith.constant 0 : index
    %41 = vector.load %arg9[%c0_37, %c0_38] : memref<80x512xbf16, #tpu.memory_space<vmem>>, vector<80x128xbf16>
    tpu.vector_store %arg9[%c0_37, %c0_38], %40 {strides = array<i32>} : memref<80x512xbf16, #tpu.memory_space<vmem>>, vector<80x128xbf16>,
    %c2 = arith.constant 2 : index
    %c0_39 = arith.constant 0 : index
    %42 = vector.load %arg8[%c2, %c0_39] : memref<104x128xbf16, #tpu.memory_space<vmem>>, vector<80x128xbf16>
    %c0_40 = arith.constant 0 : index
    %c128_41 = arith.constant 128 : index
    %43 = vector.load %arg9[%c0_40, %c128_41] : memref<80x512xbf16, #tpu.memory_space<vmem>>, vector<80x128xbf16>
    tpu.vector_store %arg9[%c0_40, %c128_41], %42 {strides = array<i32>} : memref<80x512xbf16, #tpu.memory_space<vmem>>, vector<80x128xbf16>,
    %c11_42 = arith.constant 11 : index
    %c0_43 = arith.constant 0 : index
    %44 = vector.load %arg8[%c11_42, %c0_43] : memref<104x128xbf16, #tpu.memory_space<vmem>>, vector<80x128xbf16>
    %c0_44 = arith.constant 0 : index
    %c256_45 = arith.constant 256 : index
    %45 = vector.load %arg9[%c0_44, %c256_45] : memref<80x512xbf16, #tpu.memory_space<vmem>>, vector<80x128xbf16>
    tpu.vector_store %arg9[%c0_44, %c256_45], %44 {strides = array<i32>} : memref<80x512xbf16, #tpu.memory_space<vmem>>, vector<80x128xbf16>,
    %c12 = arith.constant 12 : index
    %c0_46 = arith.constant 0 : index
    %46 = vector.load %arg8[%c12, %c0_46] : memref<104x128xbf16, #tpu.memory_space<vmem>>, vector<80x128xbf16>
    %c0_47 = arith.constant 0 : index
    %c384_48 = arith.constant 384 : index
    %47 = vector.load %arg9[%c0_47, %c384_48] : memref<80x512xbf16, #tpu.memory_space<vmem>>, vector<80x128xbf16>
    tpu.vector_store %arg9[%c0_47, %c384_48], %46 {strides = array<i32>} : memref<80x512xbf16, #tpu.memory_space<vmem>>, vector<80x128xbf16>,
    %c0_49 = arith.constant 0 : index
    %c0_50 = arith.constant 0 : index
    %48 = vector.load %arg9[%c0_49, %c0_50] : memref<80x512xbf16, #tpu.memory_space<vmem>>, vector<80x512xbf16>
    %c1_51 = arith.constant 1 : index
    %c0_52 = arith.constant 0 : index
    %c0_53 = arith.constant 0 : index
    %49 = vector.load %arg5[%c1_51, %c0_52, %c0_53] : memref<4x512x128xbf16, #tpu.memory_space<vmem>>, vector<1x512x128xbf16>
    %50 = vector.shape_cast %49 : vector<1x512x128xbf16> to vector<512x128xbf16>
    %cst_54 = arith.constant dense<0.000000e+00> : vector<80x128xf32>
    %51 = tpu.matmul %48, %50, %cst_54 {dimension_numbers = #tpu.dot_dimension_numbers<[1], [0], [0], [1], [0, 0, 1, 1], [], []>} : vector<80x512xbf16>, vector<512x128xbf16>, vector<80x128xf32> -> vector<80x128xf32>
    %c0_55 = arith.constant 0 : index
    %c0_56 = arith.constant 0 : index
    %52 = vector.load %arg6[%c0_55, %c0_56] : memref<1x128xf32, #tpu.memory_space<vmem>>, vector<1x128xf32>
    %53 = vector.broadcast %52 : vector<1x128xf32> to vector<80x128xf32>
    %54 = arith.addf %51, %53 : vector<80x128xf32>
    %cst_57 = arith.constant 0.000000e+00 : f32
    %55 = vector.broadcast %cst_57 : f32 to vector<80x128xf32>
    %56 = arith.subf %55, %54 : vector<80x128xf32>
    %57 = math.exp %56 : vector<80x128xf32>
    %cst_58 = arith.constant 1.000000e+00 : f32
    %58 = vector.broadcast %cst_58 : f32 to vector<80x128xf32>
    %59 = arith.addf %58, %57 : vector<80x128xf32>
    %cst_59 = arith.constant 1.000000e+00 : f32
    %60 = vector.broadcast %cst_59 : f32 to vector<80x128xf32>
    %61 = arith.divf %60, %59 : vector<80x128xf32>
    %c0_60 = arith.constant 0 : index
    %c1_61 = arith.constant 1 : index
    %c0_62 = arith.constant 0 : index
    %c0_63 = arith.constant 0 : index
    %62 = vector.load %arg7[%c0_60, %c1_61, %c0_62, %c0_63] : memref<1x4x80x128xf32, #tpu.memory_space<vmem>>, vector<1x1x80x128xf32>
    %63 = vector.shape_cast %62 : vector<1x1x80x128xf32> to vector<80x128xf32>
    %64 = vector.shape_cast %61 : vector<80x128xf32> to vector<1x1x80x128xf32>
    tpu.vector_store %arg7[%c0_60, %c1_61, %c0_62, %c0_63], %64 {strides = array<i32>} : memref<1x4x80x128xf32, #tpu.memory_space<vmem>>, vector<1x1x80x128xf32>,
    %c10_64 = arith.constant 10 : index
    %c0_65 = arith.constant 0 : index
    %65 = vector.load %arg8[%c10_64, %c0_65] : memref<104x128xbf16, #tpu.memory_space<vmem>>, vector<80x128xbf16>
    %c0_66 = arith.constant 0 : index
    %c0_67 = arith.constant 0 : index
    %66 = vector.load %arg9[%c0_66, %c0_67] : memref<80x512xbf16, #tpu.memory_space<vmem>>, vector<80x128xbf16>
    tpu.vector_store %arg9[%c0_66, %c0_67], %65 {strides = array<i32>} : memref<80x512xbf16, #tpu.memory_space<vmem>>, vector<80x128xbf16>,
    %c11_68 = arith.constant 11 : index
    %c0_69 = arith.constant 0 : index
    %67 = vector.load %arg8[%c11_68, %c0_69] : memref<104x128xbf16, #tpu.memory_space<vmem>>, vector<80x128xbf16>
    %c0_70 = arith.constant 0 : index
    %c128_71 = arith.constant 128 : index
    %68 = vector.load %arg9[%c0_70, %c128_71] : memref<80x512xbf16, #tpu.memory_space<vmem>>, vector<80x128xbf16>
    tpu.vector_store %arg9[%c0_70, %c128_71], %67 {strides = array<i32>} : memref<80x512xbf16, #tpu.memory_space<vmem>>, vector<80x128xbf16>,
    %c20 = arith.constant 20 : index
    %c0_72 = arith.constant 0 : index
    %69 = vector.load %arg8[%c20, %c0_72] : memref<104x128xbf16, #tpu.memory_space<vmem>>, vector<80x128xbf16>
    %c0_73 = arith.constant 0 : index
    %c256_74 = arith.constant 256 : index
    %70 = vector.load %arg9[%c0_73, %c256_74] : memref<80x512xbf16, #tpu.memory_space<vmem>>, vector<80x128xbf16>
    tpu.vector_store %arg9[%c0_73, %c256_74], %69 {strides = array<i32>} : memref<80x512xbf16, #tpu.memory_space<vmem>>, vector<80x128xbf16>,
    %c21 = arith.constant 21 : index
    %c0_75 = arith.constant 0 : index
    %71 = vector.load %arg8[%c21, %c0_75] : memref<104x128xbf16, #tpu.memory_space<vmem>>, vector<80x128xbf16>
    %c0_76 = arith.constant 0 : index
    %c384_77 = arith.constant 384 : index
    %72 = vector.load %arg9[%c0_76, %c384_77] : memref<80x512xbf16, #tpu.memory_space<vmem>>, vector<80x128xbf16>
    tpu.vector_store %arg9[%c0_76, %c384_77], %71 {strides = array<i32>} : memref<80x512xbf16, #tpu.memory_space<vmem>>, vector<80x128xbf16>,
    %c0_78 = arith.constant 0 : index
    %c0_79 = arith.constant 0 : index
    %73 = vector.load %arg9[%c0_78, %c0_79] : memref<80x512xbf16, #tpu.memory_space<vmem>>, vector<80x512xbf16>
    %c2_80 = arith.constant 2 : index
    %c0_81 = arith.constant 0 : index
    %c0_82 = arith.constant 0 : index
    %74 = vector.load %arg5[%c2_80, %c0_81, %c0_82] : memref<4x512x128xbf16, #tpu.memory_space<vmem>>, vector<1x512x128xbf16>
    %75 = vector.shape_cast %74 : vector<1x512x128xbf16> to vector<512x128xbf16>
    %cst_83 = arith.constant dense<0.000000e+00> : vector<80x128xf32>
    %76 = tpu.matmul %73, %75, %cst_83 {dimension_numbers = #tpu.dot_dimension_numbers<[1], [0], [0], [1], [0, 0, 1, 1], [], []>} : vector<80x512xbf16>, vector<512x128xbf16>, vector<80x128xf32> -> vector<80x128xf32>
    %c0_84 = arith.constant 0 : index
    %c0_85 = arith.constant 0 : index
    %77 = vector.load %arg6[%c0_84, %c0_85] : memref<1x128xf32, #tpu.memory_space<vmem>>, vector<1x128xf32>
    %78 = vector.broadcast %77 : vector<1x128xf32> to vector<80x128xf32>
    %79 = arith.addf %76, %78 : vector<80x128xf32>
    %cst_86 = arith.constant 0.000000e+00 : f32
    %80 = vector.broadcast %cst_86 : f32 to vector<80x128xf32>
    %81 = arith.subf %80, %79 : vector<80x128xf32>
    %82 = math.exp %81 : vector<80x128xf32>
    %cst_87 = arith.constant 1.000000e+00 : f32
    %83 = vector.broadcast %cst_87 : f32 to vector<80x128xf32>
    %84 = arith.addf %83, %82 : vector<80x128xf32>
    %cst_88 = arith.constant 1.000000e+00 : f32
    %85 = vector.broadcast %cst_88 : f32 to vector<80x128xf32>
    %86 = arith.divf %85, %84 : vector<80x128xf32>
    %c0_89 = arith.constant 0 : index
    %c2_90 = arith.constant 2 : index
    %c0_91 = arith.constant 0 : index
    %c0_92 = arith.constant 0 : index
    %87 = vector.load %arg7[%c0_89, %c2_90, %c0_91, %c0_92] : memref<1x4x80x128xf32, #tpu.memory_space<vmem>>, vector<1x1x80x128xf32>
    %88 = vector.shape_cast %87 : vector<1x1x80x128xf32> to vector<80x128xf32>
    %89 = vector.shape_cast %86 : vector<80x128xf32> to vector<1x1x80x128xf32>
    tpu.vector_store %arg7[%c0_89, %c2_90, %c0_91, %c0_92], %89 {strides = array<i32>} : memref<1x4x80x128xf32, #tpu.memory_space<vmem>>, vector<1x1x80x128xf32>,
    %c11_93 = arith.constant 11 : index
    %c0_94 = arith.constant 0 : index
    %90 = vector.load %arg8[%c11_93, %c0_94] : memref<104x128xbf16, #tpu.memory_space<vmem>>, vector<80x128xbf16>
    %c0_95 = arith.constant 0 : index
    %c0_96 = arith.constant 0 : index
    %91 = vector.load %arg9[%c0_95, %c0_96] : memref<80x512xbf16, #tpu.memory_space<vmem>>, vector<80x128xbf16>
    tpu.vector_store %arg9[%c0_95, %c0_96], %90 {strides = array<i32>} : memref<80x512xbf16, #tpu.memory_space<vmem>>, vector<80x128xbf16>,
    %c12_97 = arith.constant 12 : index
    %c0_98 = arith.constant 0 : index
    %92 = vector.load %arg8[%c12_97, %c0_98] : memref<104x128xbf16, #tpu.memory_space<vmem>>, vector<80x128xbf16>
    %c0_99 = arith.constant 0 : index
    %c128_100 = arith.constant 128 : index
    %93 = vector.load %arg9[%c0_99, %c128_100] : memref<80x512xbf16, #tpu.memory_space<vmem>>, vector<80x128xbf16>
    tpu.vector_store %arg9[%c0_99, %c128_100], %92 {strides = array<i32>} : memref<80x512xbf16, #tpu.memory_space<vmem>>, vector<80x128xbf16>,
    %c21_101 = arith.constant 21 : index
    %c0_102 = arith.constant 0 : index
    %94 = vector.load %arg8[%c21_101, %c0_102] : memref<104x128xbf16, #tpu.memory_space<vmem>>, vector<80x128xbf16>
    %c0_103 = arith.constant 0 : index
    %c256_104 = arith.constant 256 : index
    %95 = vector.load %arg9[%c0_103, %c256_104] : memref<80x512xbf16, #tpu.memory_space<vmem>>, vector<80x128xbf16>
    tpu.vector_store %arg9[%c0_103, %c256_104], %94 {strides = array<i32>} : memref<80x512xbf16, #tpu.memory_space<vmem>>, vector<80x128xbf16>,
    %c22 = arith.constant 22 : index
    %c0_105 = arith.constant 0 : index
    %96 = vector.load %arg8[%c22, %c0_105] : memref<104x128xbf16, #tpu.memory_space<vmem>>, vector<80x128xbf16>
    %c0_106 = arith.constant 0 : index
    %c384_107 = arith.constant 384 : index
    %97 = vector.load %arg9[%c0_106, %c384_107] : memref<80x512xbf16, #tpu.memory_space<vmem>>, vector<80x128xbf16>
    tpu.vector_store %arg9[%c0_106, %c384_107], %96 {strides = array<i32>} : memref<80x512xbf16, #tpu.memory_space<vmem>>, vector<80x128xbf16>,
    %c0_108 = arith.constant 0 : index
    %c0_109 = arith.constant 0 : index
    %98 = vector.load %arg9[%c0_108, %c0_109] : memref<80x512xbf16, #tpu.memory_space<vmem>>, vector<80x512xbf16>
    %c3 = arith.constant 3 : index
    %c0_110 = arith.constant 0 : index
    %c0_111 = arith.constant 0 : index
    %99 = vector.load %arg5[%c3, %c0_110, %c0_111] : memref<4x512x128xbf16, #tpu.memory_space<vmem>>, vector<1x512x128xbf16>
    %100 = vector.shape_cast %99 : vector<1x512x128xbf16> to vector<512x128xbf16>
    %cst_112 = arith.constant dense<0.000000e+00> : vector<80x128xf32>
    %101 = tpu.matmul %98, %100, %cst_112 {dimension_numbers = #tpu.dot_dimension_numbers<[1], [0], [0], [1], [0, 0, 1, 1], [], []>} : vector<80x512xbf16>, vector<512x128xbf16>, vector<80x128xf32> -> vector<80x128xf32>
    %c0_113 = arith.constant 0 : index
    %c0_114 = arith.constant 0 : index
    %102 = vector.load %arg6[%c0_113, %c0_114] : memref<1x128xf32, #tpu.memory_space<vmem>>, vector<1x128xf32>
    %103 = vector.broadcast %102 : vector<1x128xf32> to vector<80x128xf32>
    %104 = arith.addf %101, %103 : vector<80x128xf32>
    %cst_115 = arith.constant 0.000000e+00 : f32
    %105 = vector.broadcast %cst_115 : f32 to vector<80x128xf32>
    %106 = arith.subf %105, %104 : vector<80x128xf32>
    %107 = math.exp %106 : vector<80x128xf32>
    %cst_116 = arith.constant 1.000000e+00 : f32
    %108 = vector.broadcast %cst_116 : f32 to vector<80x128xf32>
    %109 = arith.addf %108, %107 : vector<80x128xf32>
    %cst_117 = arith.constant 1.000000e+00 : f32
    %110 = vector.broadcast %cst_117 : f32 to vector<80x128xf32>
    %111 = arith.divf %110, %109 : vector<80x128xf32>
    %c0_118 = arith.constant 0 : index
    %c3_119 = arith.constant 3 : index
    %c0_120 = arith.constant 0 : index
    %c0_121 = arith.constant 0 : index
    %112 = vector.load %arg7[%c0_118, %c3_119, %c0_120, %c0_121] : memref<1x4x80x128xf32, #tpu.memory_space<vmem>>, vector<1x1x80x128xf32>
    %113 = vector.shape_cast %112 : vector<1x1x80x128xf32> to vector<80x128xf32>
    %114 = vector.shape_cast %111 : vector<80x128xf32> to vector<1x1x80x128xf32>
    tpu.vector_store %arg7[%c0_118, %c3_119, %c0_120, %c0_121], %114 {strides = array<i32>} : memref<1x4x80x128xf32, #tpu.memory_space<vmem>>, vector<1x1x80x128xf32>,
    return
  }
  func.func @transform_0(%arg0: i32) -> (i32, i32, i32) {
    %c0_i32 = arith.constant 0 : i32
    %c0_i32_0 = arith.constant 0 : i32
    %c0_i32_1 = arith.constant 0 : i32
    return %arg0, %c0_i32, %c0_i32_0 : i32, i32, i32
  }
  func.func @transform_1(%arg0: i32) -> (i32, i32) {
    %c0_i32 = arith.constant 0 : i32
    %c0_i32_0 = arith.constant 0 : i32
    %c0_i32_1 = arith.constant 0 : i32
    return %c0_i32, %c0_i32_0 : i32, i32
  }
  func.func @transform_2(%arg0: i32) -> (i32, i32) {
    %c0_i32 = arith.constant 0 : i32
    %c0_i32_0 = arith.constant 0 : i32
    %c0_i32_1 = arith.constant 0 : i32
    return %c0_i32, %c0_i32_0 : i32, i32
  }
  func.func @transform_3(%arg0: i32) -> (i32, i32) {
    %c0_i32 = arith.constant 0 : i32
    %c0_i32_0 = arith.constant 0 : i32
    %c0_i32_1 = arith.constant 0 : i32
    return %c0_i32, %c0_i32_0 : i32, i32
  }
  func.func @transform_4(%arg0: i32) -> (i32, i32, i32) {
    %c0_i32 = arith.constant 0 : i32
    %c0_i32_0 = arith.constant 0 : i32
    %c0_i32_1 = arith.constant 0 : i32
    %c0_i32_2 = arith.constant 0 : i32
    return %c0_i32, %c0_i32_0, %c0_i32_1 : i32, i32, i32
  }
  func.func @transform_5(%arg0: i32) -> (i32, i32) {
    %c0_i32 = arith.constant 0 : i32
    %c0_i32_0 = arith.constant 0 : i32
    %c0_i32_1 = arith.constant 0 : i32
    return %c0_i32, %c0_i32_0 : i32, i32
  }
  func.func @transform_6(%arg0: i32) -> (i32, i32, i32, i32) {
    %c0_i32 = arith.constant 0 : i32
    %c0_i32_0 = arith.constant 0 : i32
    %c0_i32_1 = arith.constant 0 : i32
    %c0_i32_2 = arith.constant 0 : i32
    return %arg0, %c0_i32, %c0_i32_0, %c0_i32_1 : i32, i32, i32, i32
  }
}

</mosaic_0001>

<bundles_post_ra>
// kernel: generator_forward.3
= control target key start
LH: loop header
LB: loop body
LE: loop exit
PB: predicated region body
PF: predicated region fallthrough
CT: control target
= control target key end

     0   :  { %s3814_s27 = smov 0   ;;  %s4848_s0 = inlined_call_operand.vmem [shape: bf16[2,128,128], index: 0, kind: input, shape index: {}]   ;;  %s4849_s1 = inlined_call_operand.vmem [shape: bf16[128,128], index: 1, kind: input, shape index: {}]   ;;  %s4850_s2 = inlined_call_operand.vmem [shape: f32[1,128], index: 2, kind: input, shape index: {}]   ;;  %s4851_s3 = inlined_call_operand.vmem [shape: f32[128,1], index: 3, kind: input, shape index: {}]   ;;  %s4852_s4 = inlined_call_operand.vmem [shape: bf16[2048,128], index: 4, kind: input, shape index: {}]   ;;  %s4853_s5 = inlined_call_operand.vmem [shape: f32[1,128], index: 5, kind: input, shape index: {}]   ;;  %s4854_s6 = inlined_call_operand.vmem [shape: f32[24,1], index: 6, kind: input, shape index: {}]   ;;  %s4855_s7 = inlined_call_operand.vmem [shape: f32[2,24,128], index: 7, kind: output, shape index: {0}]   ;;  %s4856_s8 = inlined_call_operand.vmem [shape: f32[2,2,128], index: 8, kind: output, shape index: {1}]  }
   0x1 LB: > { %s2990_s28 = sadd.s32 4294967295, %s3766_s27   ;;  %p2994_p0 = scmp.ge.s32.totalorder %s3766_s27, 1  ;;  %s3766_s27 = sphi %s3814_s27, %s19_s27  }
   0x2   : > { %p265_p1 = scmp.lt.s32.totalorder %s3766_s27, 3 }
   0x4   : > { %p266_p2 = pnand %p2994_p0, %p265_p1 }
   0x6   : > { %269 = sbr.rel (%p266_p2) target bundleno = 668 (0x29c), region = 48 }
   0xd   : > { %v3548_v0 = vld [vmem:[%s4849_s1] sm:$0xff]   ;;  %p303_p3 = scmp.lt.s32.totalorder %s2990_s28, 1  ;;  %v3549_v1 = vld [vmem:[%s4849_s1 + $0x8] sm:$0xff]   ;;  %v3768_v2 = vmov 0   ;;  %v3550_v3 = vld [vmem:[%s4849_s1 + $0x10] sm:$0xff]   ;;  %vm981_vm2 = vcmask 1040384  }
   0xe   : > { %3488 = vmatprep.subr.bf16.mxu0 %v3548_v0  ;;  %3546 = vset.pattern.permute.xlu0 %v3768_v2  ;;  %v3551_v4 = vld [vmem:[%s4849_s1 + $0x18] sm:$0xff]   ;;  %v3552_v6 = vld [vmem:[%s4849_s1 + $0x20] sm:$0xff]   ;;  %v3553_v7 = vld [vmem:[%s4849_s1 + $0x28] sm:$0xff]   ;;  %vm738_vm0 = vsmask.f32 3328  ;;  %vm982_vm3 = vcmask 1044484  }
   0xf   : > { %s4916_s28 = smov (!%p303_p3, %s2990_s28), 1  ;;  %3489 = vmatpush3.bf16.msra.mxu0 %v3548_v0  ;;  %3547 = vset.pattern.permute.xlu1 %v3768_v2  ;;  %v566_v8 = vld [vmem:[%s4851_s3] sm:$0xff]  ;;  %v567_v10 = vld [vmem:[%s4851_s3 + $0x8] sm:$0xff]  ;;  %v3554_v12 = vld [vmem:[%s4849_s1 + $0x30] sm:$0xff]   ;;  %vm739_vm1 = vsmask.f32 7440 }
  0x10   : > { %3490 = vmatprep.subr.bf16.mxu0 %v3549_v1  ;;  %s3247_s13 = sshll.u32 %s4916_s28, 6  ;;  %v570_v9 = vld [vmem:[%s4851_s3 + $0x20] sm:$0xff]  ;;  %584 = vperm.xlu0 %3546, %v566_v8   ;;  %v571_v11 = vld [vmem:[%s4851_s3 + $0x28] sm:$0xff]  ;;  %v568_v13 = vld [vmem:[%s4851_s3 + $0x10] sm:$0xff]  ;;  %vm1040_vm6 = vsmask.f32 256 }
  0x11   : > { %s3837_s16 = scalar_lea.vmem %s4848_s0, %s3247_s13  ;;  %604 = vperm.xlu1 %3547, %v570_v9   ;;  %v3555_v14 = vld [vmem:[%s4849_s1 + $0x38] sm:$0xff]   ;;  %v572_v16 = vld [vmem:[%s4851_s3 + $0x30] sm:$0xff]  ;;  %v574_v19 = vld [vmem:[%s4851_s3 + $0x40] sm:$0xff]  ;;  %vm1041_vm7 = vsmask.f32 4368  ;;  %s3536_s29 = smul.u32 24, %s4916_s28 }
  0x12   : > { %v3556_v5 = vld [vmem:[%s3837_s16] sm:$0xff]   ;;  %v569_v15 = vld [vmem:[%s4851_s3 + $0x18] sm:$0xff]  ;;  %v3557_v18 = vld [vmem:[%s3837_s16 + $0x8] sm:$0xff]   ;;  %s2998_s11 = sshll.u32 %s4916_s28, 1 }
  0x13   : > { %3491 = vmatpush3.bf16.msra.mxu0 %v3549_v1  ;;  %3504 = vmatprep.mubr.bf16.mxu0 %v3556_v5  ;;  %v573_v17 = vld [vmem:[%s4851_s3 + $0x38] sm:$0xff]  ;;  %v575_v20 = vld [vmem:[%s4851_s3 + $0x48] sm:$0xff]  ;;  %v3558_v21 = vld [vmem:[%s3837_s16 + $0x10] sm:$0xff]   ;;  %s312_s10 = scalar_lea.vmem %s4855_s7, %s3536_s29  ;;  %s316_s14 = scalar_lea.vmem %s4856_s8, %s2998_s11 }
  0x14   : > { %3492 = vmatprep.subr.bf16.mxu0 %v3550_v3  ;;  %589 = vperm.xlu0 %3546, %v567_v10   ;;  %v578_v22 = vld [vmem:[%s4851_s3 + $0x60] sm:$0xff]  ;;  %v579_v23 = vld [vmem:[%s4851_s3 + $0x68] sm:$0xff]  ;;  %v3559_v24 = vld [vmem:[%s3837_s16 + $0x18] sm:$0xff]  }
  0x15   : > { %609 = vperm.xlu1 %3547, %v571_v11   ;;  %v576_v25 = vld [vmem:[%s4851_s3 + $0x50] sm:$0xff]  ;;  %v577_v26 = vld [vmem:[%s4851_s3 + $0x58] sm:$0xff]  ;;  %v3560_v27 = vld [vmem:[%s3837_s16 + $0x20] sm:$0xff]  }
  0x16   : > { %v580_v28 = vld [vmem:[%s4851_s3 + $0x70] sm:$0xff]  ;;  %v581_v29 = vld [vmem:[%s4851_s3 + $0x78] sm:$0xff]  ;;  %v3561_v30 = vld [vmem:[%s3837_s16 + $0x28] sm:$0xff]  }
  0x17   : > { %3493 = vmatpush3.bf16.msra.mxu0 %v3550_v3  ;;  %v2858_v31 = vld [vmem:[%s4854_s6] sm:$0xff]  ;;  %v2859_v32 = vld [vmem:[%s4854_s6 + $0x8] sm:$0xff]  ;;  %v3562_v33 = vld [vmem:[%s3837_s16 + $0x30] sm:$0xff]  }
  0x18   : > { %3494 = vmatprep.subr.bf16.mxu0 %v3551_v4  ;;  %594 = vperm.xlu0 %3546, %v568_v13   ;;  %v2860_v34 = vld [vmem:[%s4854_s6 + $0x10] sm:$0xff]  ;;  %v3563_v35 = vld [vmem:[%s3837_s16 + $0x38] sm:$0xff]   ;;  %v3572_v36 = vld [vmem:[%s4852_s4 + $0x40] sm:$0xff]  }
  0x19   : > { %599 = vperm.xlu1 %3547, %v569_v15   ;;  %v3573_v37 = vld [vmem:[%s4852_s4] sm:$0xff]   ;;  %3264 = vmatprep.subr.bf16.mxu1 %v3572_v36  ;;  %v3582_v38 = vld [vmem:[%s4852_s4 + $0x48] sm:$0xff]   ;;  %v3584_v40 = vld [vmem:[%s4852_s4 + $0x50] sm:$0xff]  }
  0x1a   : > { %3265 = vmatpush3.bf16.msra.mxu1 %v3573_v37  ;;  %v3583_v39 = vld [vmem:[%s4852_s4 + $0x8] sm:$0xff]   ;;  %v3585_v41 = vld [vmem:[%s4852_s4 + $0x10] sm:$0xff]   ;;  %v3586_v42 = vld [vmem:[%s4852_s4 + $0xc0] sm:$0xff]  }
  0x1b   : > { %3495 = vmatpush3.bf16.msra.mxu0 %v3551_v4  ;;  %3266 = vmatprep.subr.bf16.mxu1 %v3582_v38  ;;  %v3591_v43 = vld [vmem:[%s4852_s4 + $0x80] sm:$0xff]   ;;  %v3596_v44 = vld [vmem:[%s4852_s4 + $0x58] sm:$0xff]   ;;  %v3598_v46 = vld [vmem:[%s4852_s4 + $0xc8] sm:$0xff]  }
  0x1c   : > { %3496 = vmatprep.subr.bf16.mxu0 %v3552_v6  ;;  %614 = vperm.xlu0 %3546, %v572_v16   ;;  %v3597_v45 = vld [vmem:[%s4852_s4 + $0x18] sm:$0xff]   ;;  %v3600_v47 = vld [vmem:[%s4852_s4 + $0x60] sm:$0xff]   ;;  %v3599_v48 = vld [vmem:[%s4852_s4 + $0x88] sm:$0xff]  }
  0x1d   : > { %619 = vperm.xlu1 %3547, %v573_v17   ;;  %v3601_v49 = vld [vmem:[%s4852_s4 + $0x20] sm:$0xff]   ;;  %v3602_v50 = vld [vmem:[%s4852_s4 + $0xd0] sm:$0xff]   ;;  %v3612_v52 = vld [vmem:[%s4852_s4 + $0x68] sm:$0xff]  }
  0x1e   : > { %3267 = vmatpush3.bf16.msra.mxu1 %v3583_v39  ;;  %v3607_v51 = vld [vmem:[%s4852_s4 + $0x90] sm:$0xff]   ;;  %v3613_v53 = vld [vmem:[%s4852_s4 + $0x28] sm:$0xff]   ;;  %v3614_v54 = vld [vmem:[%s4852_s4 + $0xd8] sm:$0xff]  }
  0x1f   : > { %3497 = vmatpush3.bf16.msra.mxu0 %v3552_v6  ;;  %3268 = vmatprep.subr.bf16.mxu1 %v3584_v40  ;;  %v3616_v55 = vld [vmem:[%s4852_s4 + $0x70] sm:$0xff]   ;;  %v3615_v56 = vld [vmem:[%s4852_s4 + $0x98] sm:$0xff]   ;;  %v3618_v58 = vld [vmem:[%s4852_s4 + $0xe0] sm:$0xff]  }
  0x20   : > { %3498 = vmatprep.subr.bf16.mxu0 %v3553_v7  ;;  %624 = vperm.xlu0 %3546, %v574_v19   ;;  %v3617_v57 = vld [vmem:[%s4852_s4 + $0x30] sm:$0xff]   ;;  %v3620_v59 = vld [vmem:[%s4852_s4 + $0x78] sm:$0xff]   ;;  %v3619_v60 = vld [vmem:[%s4852_s4 + $0xa0] sm:$0xff]  }
  0x21   : > { %629 = vperm.xlu1 %3547, %v575_v20   ;;  %v3621_v61 = vld [vmem:[%s4852_s4 + $0x38] sm:$0xff]   ;;  %v3622_v62 = vld [vmem:[%s4852_s4 + $0xe8] sm:$0xff]   ;;  %v3624_v63 = vld [vmem:[%s4852_s4 + $0x140] sm:$0xff]  }
  0x22   : > { %3269 = vmatpush3.bf16.msra.mxu1 %v3585_v41  ;;  %v3623_v0 = vld [vmem:[%s4852_s4 + $0xa8] sm:$0xff]   ;;  %v3625_v1 = vld [vmem:[%s4852_s4 + $0xf0] sm:$0xff]   ;;  %v3632_v3 = vld [vmem:[%s4852_s4 + $0xf8] sm:$0xff]  }
  0x23   : > { %3499 = vmatpush3.bf16.msra.mxu0 %v3553_v7  ;;  %3270 = vmatprep.subr.bf16.mxu1 %v3596_v44  ;;  %v3630_v2 = vld [vmem:[%s4852_s4 + $0xb0] sm:$0xff]   ;;  %v3634_v4 = vld [vmem:[%s4852_s4 + $0xb8] sm:$0xff]   ;;  %v3638_v5 = vld [vmem:[%s4852_s4 + $0x1c0] sm:$0xff]  }
  0x24   : > { %3500 = vmatprep.subr.bf16.mxu0 %v3554_v12  ;;  %644 = vperm.xlu0 %3546, %v578_v22   ;;  %v4026_v9 = vld [vmem:[%s4850_s2] ss:$0 sm:$0xff]  ;;  %vm4266_vm4 = vmor %vm738_vm0, %vm739_vm1 }
  0x25   : > { %649 = vperm.xlu1 %3547, %v579_v23   ;;  %vm4325_vm5 = vmor %vm981_vm2, %vm982_vm3 }
  0x26   : > { %3271 = vmatpush3.bf16.msra.mxu1 %v3597_v45  ;;  %vm4462_vm8 = vmor %vm1040_vm6, %vm1041_vm7 }
  0x27   : > { %3501 = vmatpush3.bf16.msra.mxu0 %v3554_v12  ;;  %3272 = vmatprep.subr.bf16.mxu1 %v3600_v47 }
  0x28   : > { %3502 = vmatprep.subr.bf16.mxu0 %v3555_v14  ;;  %634 = vperm.xlu0 %3546, %v576_v25  }
  0x29   : > { %639 = vperm.xlu1 %3547, %v577_v26  }
  0x2a   : > { %3273 = vmatpush3.bf16.msra.mxu1 %v3601_v49 }
  0x2b   : > { %3503 = vmatpush3.bf16.msra.mxu0 %v3555_v14  ;;  %3274 = vmatprep.subr.bf16.mxu1 %v3612_v52 }
  0x2c   : > { %654 = vperm.xlu0 %3546, %v580_v28   ;;  %3292 = vmatprep.subr.bf16.mxu0 %v3586_v42 }
  0x2d   : > { %659 = vperm.xlu1 %3547, %v581_v29  }
  0x2e   : > { %3505 = vmatmul.mubr.bf16.vlgmr.msra.gmra.mrb[0].mxu0 %v3557_v18  ;;  %3275 = vmatpush3.bf16.msra.mxu1 %v3613_v53 }
  0x2f   : > { %3508 = vmatprep.mubr.bf16.mxu0 %v3558_v21  ;;  %3293 = vmatpush3.bf16.msra.mxu0 %v3591_v43 }
  0x30   : > { %2863 = vperm.xlu0 %3546, %v2858_v31   ;;  %3294 = vmatprep.subr.bf16.mxu0 %v3598_v46 }
  0x31   : > { %2868 = vperm.xlu1 %3547, %v2859_v32   ;;  %3276 = vmatprep.subr.bf16.mxu1 %v3616_v55 }
  0x32   : > { %3277 = vmatpush3.bf16.msra.mxu1 %v3617_v57 }
  0x33   : > { %3295 = vmatpush3.bf16.msra.mxu0 %v3599_v48  ;;  %3278 = vmatprep.subr.bf16.mxu1 %v3620_v59 }
  0x34   : > { %2873 = vperm.xlu0 %3546, %v2860_v34   ;;  %3296 = vmatprep.subr.bf16.mxu0 %v3602_v50 }
  0x36   : > { %3509 = vmatmul.mubr.bf16.gmra.mrb[4].mxu0 %v3559_v24  ;;  %3279 = vmatpush3.bf16.msra.mxu1 %v3621_v61 }
  0x37   : > { %3512 = vmatprep.mubr.bf16.mxu0 %v3560_v27  ;;  %3297 = vmatpush3.bf16.msra.mxu0 %v3607_v51 }
  0x38   : > { %3298 = vmatprep.subr.bf16.mxu0 %v3614_v54  ;;  %3320 = vmatprep.subr.bf16.mxu1 %v3624_v63 }
  0x3b   : > { %3299 = vmatpush3.bf16.msra.mxu0 %v3615_v56 }
  0x3c   : > { %3300 = vmatprep.subr.bf16.mxu0 %v3618_v58 }
  0x3e   : > { %3513 = vmatmul.mubr.bf16.gmra.mrb[8].mxu0 %v3561_v30 }
  0x3f   : > { %3516 = vmatprep.mubr.bf16.mxu0 %v3562_v33  ;;  %3301 = vmatpush3.bf16.msra.mxu0 %v3619_v60 }
  0x40   : > { %3302 = vmatprep.subr.bf16.mxu0 %v3622_v62 }
  0x43   : > { %3303 = vmatpush3.bf16.msra.mxu0 %v3623_v0 }
  0x44   : > { %3304 = vmatprep.subr.bf16.mxu0 %v3625_v1 }
  0x46   : > { %3517 = vmatmul.mubr.bf16.gmra.mrb[12].mxu0 %v3563_v35 }
  0x47   : > { %3305 = vmatpush3.bf16.msra.mxu0 %v3630_v2 }
  0x48   : > { %3306 = vmatprep.subr.bf16.mxu0 %v3632_v3 }
  0x4b   : > { %3307 = vmatpush3.bf16.msra.mxu0 %v3634_v4 }
  0x4c   : > { %3348 = vmatprep.subr.bf16.mxu0 %v3638_v5 }
  0x8f   : > { %v585_v6 = vpop.permute.xlu0 %584 }
  0x90   : > { %v4021_v7 = vpop.permute.xlu1 %604 }
  0x93   : > { %v590_v8 = vpop.permute.xlu0 %589 }
  0x94   : > { %v4028_v10 = vpop.permute.xlu1 %609 }
  0x97   : > { %v595_v11 = vpop.permute.xlu0 %594 }
  0x98   : > { %v600_v22 = vpop.permute.xlu1 %599 }
  0x9b   : > { %v615_v24 = vpop.permute.xlu0 %614 }
  0x9c   : > { %v4036_v37 = vpop.permute.xlu1 %619 }
  0x9f   : > { %v4040_v41 = vpop.permute.xlu0 %624 }
  0xa0   : > { %v4060_v62 = vpop.permute.xlu1 %629 }
  0xa3   : > { %v4068_v4 = vpop.permute.xlu0 %644 }
 0x101   : > { %v3506_v12 = vpop.f32.mrb[0].mxu0 }
 0x102   : > { %v496_v13 = vadd.f32 %v3506_v12, %v4026_v9  ;;  %v487_v14 = vpop.f32.mrb[1].mxu0 }
 0x103   : > { %v488_v15 = vadd.f32 %v4026_v9, %v487_v14  ;;  %v3507_v16 = vpop.f32.mrb[2].mxu0 }
 0x104   : > { %v552_v17 = vmax.f32 %v496_v13, 0.0  ;;  %v499_v18 = vadd.f32 %v3507_v16, %v4026_v9  ;;  %v490_v19 = vpop.f32.mrb[3].mxu0 }
 0x105   : > { %v550_v20 = vmax.f32 %v488_v15, 0.0  ;;  %v491_v21 = vadd.f32 %v4026_v9, %v490_v19 }
 0x106   : > { %v553_v23 = vmax.f32 %v499_v18, 0.0  ;;  %v664_v26 = vmul.f32 %v595_v11, %v552_v17 }
 0x107   : > { %v551_v25 = vmax.f32 %v491_v21, 0.0  ;;  %v662_v28 = vmul.f32 %v585_v6, %v550_v20 }
 0x108   : > { %v665_v27 = vmul.f32 %v600_v22, %v553_v23  ;;  %v3744_v38 = vpack.c.bf16 %v664_v26, %v664_v26 }
 0x109   : > { %v663_v29 = vmul.f32 %v590_v8, %v551_v25  ;;  %v3510_v30 = vpop.f32.mrb[4].mxu0  ;;  %v3746_v42 = vpack.c.bf16 %v662_v28, %v662_v28 }
 0x10a   : > { %v679_v31 = vpack.c.bf16 %v665_v27, %v664_v26  ;;  %v512_v32 = vadd.f32 %v3510_v30, %v4026_v9  ;;  %v503_v33 = vpop.f32.mrb[5].mxu0  ;;  %v4038_v39 = vpack.c.bf16 %v665_v27, %v665_v27  ;;  %v1058_v46 = vshrl.u32 %v3744_v38, 16 }
 0x10b   : > { %v678_v34 = vpack.c.bf16 %v663_v29, %v662_v28  ;;  %v504_v35 = vadd.f32 %v4026_v9, %v503_v33  ;;  %v3511_v36 = vpop.f32.mrb[6].mxu0  ;;  %v3747_v43 = vpack.c.bf16 %v663_v29, %v663_v29  ;;  %v742_v50 = vshrl.u32 %v3746_v42, 16  ;;  %707 = vst [vmem:[#allocation3] sm:$0xf] %v3746_v42 }
 0x10c   : > { %687 = vst [vmem:[#allocation2 + $0x8] sm:$0xff] %v679_v31  ;;  %v506_v40 = vpop.f32.mrb[7].mxu0  ;;  %v556_v44 = vmax.f32 %v512_v32, 0.0  ;;  %v4043_v45 = vadd.f32 %v3511_v36, %v4026_v9  ;;  %v1067_v47 = vshrl.u32 %v4038_v39, 16  ;;  %v745_v51 = vshll.u32 %v3746_v42, 16  ;;  %v635_v42 = vpop.permute.xlu0 %634 }
 0x10d   : > { %686 = vst [vmem:[#allocation2] sm:$0xff] %v678_v34  ;;  %v554_v48 = vmax.f32 %v504_v35, 0.0  ;;  %v4047_v49 = vadd.f32 %v4026_v9, %v506_v40  ;;  %v751_v52 = vshll.u32 %v3747_v43, 16  ;;  %v755_v53 = vshrl.u32 %v3747_v43, 16  ;;  %708 = vst [vmem:[#allocation3 + $0x40] sm:$0xf] %v3747_v43  ;;  %v4094_v34 = vpop.permute.xlu1 %649 }
 0x10e   : > { %v4049_v54 = vrot.slane %v1058_v46, 7  ;;  %v1061_v55 = vshll.u32 %v3744_v38, 16  ;;  %v4052_v57 = vrot.slane %v1067_v47, 7  ;;  %v4054_v58 = vrot.slane %v742_v50, 4 }
 0x10f   : > { %v4056_v59 = vrot.slane %v745_v51, 5  ;;  %v4058_v60 = vmul.f32 %v615_v24, %v556_v44  ;;  %v4062_v63 = vrot.slane %v751_v52, 5  ;;  %v4064_v0 = vrot.slane %v755_v53, 4 }
 0x110   : > { %4864 = vst [vmem:[#allocation4_spill] sm:$0xff] %v4049_v54  ;;  %v557_v1 = vmax.f32 %v4043_v45, 0.0  ;;  %v555_v2 = vmax.f32 %v4047_v49, 0.0  ;;  %v666_v8 = vmul.f32 %v4021_v7, %v554_v48  ;;  %v4078_v13 = vor.u32 %v1061_v55, %v4049_v54 }
 0x111   : > { %v3514_v61 = vpop.f32.mrb[8].mxu0 }
 0x112   : > { %v519_v3 = vpop.f32.mrb[9].mxu0  ;;  %v4072_v11 = vadd.f32 %v3514_v61, %v4026_v9  ;;  %v669_v49 = vmul.f32 %v4036_v37, %v557_v1  ;;  %v667_v50 = vmul.f32 %v4028_v10, %v555_v2 }
 0x113   : > { %v727_v5 = vld [vmem:[#allocation2 + $0x8] sm:$0x1f]  ;;  %v4075_v12 = vadd.f32 %v4026_v9, %v519_v3  ;;  %v3515_v20 = vpop.f32.mrb[10].mxu0 }
 0x114   : > { %v970_v6 = vld [vmem:[#allocation2 + $0x8] sm:$0x7f]  ;;  %v3024_v14 = vcombine.low %v727_v5, %v727_v5  ;;  %v3025_v15 = vcombine.high %v727_v5, %v727_v5  ;;  %v969_v18 = vld [vmem:[#allocation2] sm:$0xf8]  ;;  %v522_v24 = vpop.f32.mrb[11].mxu0  ;;  %v560_v51 = vmax.f32 %v4072_v11, 0.0  ;;  %v531_v55 = vadd.f32 %v3515_v20, %v4026_v9 }
 0x115   : > { %v3046_v16 = vcombine.low %v970_v6, %v970_v6  ;;  %v3047_v17 = vcombine.high %v970_v6, %v970_v6  ;;  %v1028_v19 = vld [vmem:[#allocation2] sm:$0xf8]  ;;  %v3044_v21 = vcombine.low %v969_v18, %v969_v18  ;;  %v3045_v22 = vcombine.high %v969_v18, %v969_v18  ;;  %v3627_v25 = vld [vmem:[#allocation2 + $0x8] ss:$0 sps:$4 sm:$0xff]  }
 0x116   : > { %v3054_v23 = vcombine.low %v1028_v19, %v1028_v19  ;;  %v4080_v7 = vcombine.high %v1028_v19, %v1028_v19  ;;  %v761_v26 = vshll.u32 %v3024_v14, 16  ;;  %v765_v27 = vshrl.u32 %v3024_v14, 16  ;;  %709 = vst [vmem:[#allocation3 + $0x80] sm:$0xf] %v3627_v25 }
 0x117   : > { %v4082_v28 = vshll.u32 %v3025_v15, 16  ;;  %v4084_v29 = vrot.slane %v3046_v16, 7  ;;  %v4086_v30 = vrot.slane %v3045_v22, 7  ;;  %v4100_v38 = vrot.slane %v3047_v17, 7  ;;  %v640_v16 = vpop.permute.xlu1 %639 }
 0x118   : > { %v4088_v31 = vshrl.u32 %v3054_v23, 16  ;;  %v4096_v35 = vrot.slane %v761_v26, 5  ;;  %v4098_v36 = vrot.slane %v765_v27, 4  ;;  %v4102_v40 = vrot.slane %v3044_v21, 11  ;;  %v655_v21 = vpop.permute.xlu0 %654 }
 0x119   : > { %v1049_v46 = vshrl.u32 %v4080_v7, 16  ;;  %v3518_v47 = vpop.f32.mrb[12].mxu0  ;;  %v558_v53 = vmax.f32 %v4075_v12, 0.0  ;;  %v523_v61 = vadd.f32 %v4026_v9, %v522_v24  ;;  %v681_v37 = vpack.c.bf16 %v669_v49, %v4058_v60 }
 0x11a   : > { %v535_v52 = vpop.f32.mrb[13].mxu0  ;;  %v544_v3 = vadd.f32 %v3518_v47, %v4026_v9  ;;  %v680_v1 = vpack.c.bf16 %v667_v50, %v666_v8  ;;  %v561_v2 = vmax.f32 %v531_v55, 0.0  ;;  %v4125_v17 = vpack.c.bf16 %v4058_v60, %v4058_v60 }
 0x11b   : > { %v3519_v5 = vpop.f32.mrb[14].mxu0  ;;  %v4116_v6 = vrot.slane %v1049_v46, 7  ;;  %v559_v11 = vmax.f32 %v523_v61, 0.0  ;;  %v536_v12 = vadd.f32 %v4026_v9, %v535_v52  ;;  %689 = vst [vmem:[#allocation2 + $0x18] sm:$0xff] %v681_v37  ;;  %v4127_v18 = vpack.c.bf16 %v669_v49, %v669_v49 }
 0x11c   : > { %v4120_v10 = vpop.f32.mrb[15].mxu0  ;;  %v564_v15 = vmax.f32 %v544_v3, 0.0  ;;  %688 = vst [vmem:[#allocation2 + $0x10] sm:$0xff] %v680_v1  ;;  %v3750_v19 = vpack.c.bf16 %v666_v8, %v666_v8  ;;  %v3751_v20 = vpack.c.bf16 %v667_v50, %v667_v50  ;;  %v672_v22 = vmul.f32 %v635_v42, %v560_v51 }
 0x11d   : > { %4865 = vst [vmem:[#allocation5_spill] sm:$0xff] %v4127_v18  ;;  %v670_v23 = vmul.f32 %v4040_v41, %v558_v53  ;;  %v673_v24 = vmul.f32 %v640_v16, %v561_v2  ;;  %v671_v25 = vmul.f32 %v4060_v62, %v559_v11  ;;  %v1107_v26 = vshrl.u32 %v4125_v17, 16 }
 0x11e   : > { %v1116_v27 = vshrl.u32 %v4127_v18, 16  ;;  %v4133_v46 = vmul.f32 %v655_v21, %v564_v15  ;;  %v562_v60 = vmax.f32 %v536_v12, 0.0  ;;  %723 = vst [vmem:[#allocation3 + $0x4] sm:$0xf] %v3750_v19  ;;  %724 = vst [vmem:[#allocation3 + $0x44] sm:$0xf] %v3751_v20  ;;  %v4153_v12 = vpack.c.bf16 %v672_v22, %v672_v22 }
 0x11f   : > { %v794_v47 = vshrl.u32 %v3750_v19, 16  ;;  %v797_v49 = vshll.u32 %v3750_v19, 16  ;;  %v803_v8 = vshll.u32 %v3751_v20, 16  ;;  %v807_v50 = vshrl.u32 %v3751_v20, 16 }
 0x120   : > { %v683_v51 = vpack.c.bf16 %v673_v24, %v672_v22  ;;  %v682_v52 = vpack.c.bf16 %v671_v25, %v670_v23  ;;  %v4137_v62 = vrot.slane %v1107_v26, 7  ;;  %v4139_v53 = vrot.slane %v1116_v27, 7  ;;  %4867 = vst [vmem:[#allocation7_spill] sm:$0xff] %v4153_v12 }
 0x121   : > { %v4141_v55 = vrot.slane %v794_v47, 4  ;;  %v4143_v61 = vrot.slane %v797_v49, 5  ;;  %v4145_v3 = vrot.slane %v803_v8, 5  ;;  %v4147_v37 = vrot.slane %v807_v50, 4 }
 0x122   : > { %4866 = vst [vmem:[#allocation6_spill] sm:$0xff] %v4139_v53  ;;  %691 = vst [vmem:[#allocation2 + $0x28] sm:$0xff] %v683_v51  ;;  %v4149_v1 = vpack.c.bf16 %v670_v23, %v670_v23  ;;  %v4151_v2 = vpack.c.bf16 %v671_v25, %v671_v25  ;;  %v782_v11 = vld [vmem:[#allocation2 + $0x18] sm:$0x1f]  ;;  %v4155_v16 = vpack.c.bf16 %v673_v24, %v673_v24 }
 0x123   : > { %690 = vst [vmem:[#allocation2 + $0x20] sm:$0xff] %v682_v52  ;;  %v1001_v15 = vld [vmem:[#allocation2 + $0x18] sm:$0x7f]  ;;  %v4158_v19 = vmul.f32 %v4068_v4, %v562_v60  ;;  %v4161_v20 = vadd.f32 %v3519_v5, %v4026_v9  ;;  %v3028_v21 = vcombine.low %v782_v11, %v782_v11  ;;  %v3029_v26 = vcombine.high %v782_v11, %v782_v11  ;;  %v1000_v23 = vld [vmem:[#allocation2 + $0x10] sm:$0xf8] }
 0x124   : > { %4868 = vst [vmem:[#allocation8_spill] sm:$0xff] %v4155_v16  ;;  %v3051_v27 = vcombine.low %v1001_v15, %v1001_v15  ;;  %v3052_v47 = vcombine.high %v1001_v15, %v1001_v15  ;;  %v1080_v49 = vld [vmem:[#allocation2 + $0x10] sm:$0xf8]  ;;  %v3628_v25 = vld [vmem:[#allocation2 + $0x18] ss:$0 sps:$4 sm:$0xff]   ;;  %v3049_v22 = vcombine.low %v1000_v23, %v1000_v23  ;;  %v3050_v24 = vcombine.high %v1000_v23, %v1000_v23 }
 0x125   : > { %846 = vst [vmem:[#allocation3 + $0x10] sm:$0xf] %v4149_v1  ;;  %847 = vst [vmem:[#allocation3 + $0x50] sm:$0xf] %v4151_v2  ;;  %v3059_v8 = vcombine.low %v1080_v49, %v1080_v49  ;;  %v4165_v50 = vcombine.high %v1080_v49, %v1080_v49  ;;  %v813_v4 = vshll.u32 %v3028_v21, 16  ;;  %v817_v60 = vshrl.u32 %v3028_v21, 16 }
 0x126   : > { %v4167_v5 = vshll.u32 %v3029_v26, 16  ;;  %v4169_v51 = vrot.slane %v3051_v27, 7  ;;  %725 = vst [vmem:[#allocation3 + $0x84] sm:$0xf] %v3628_v25  ;;  %v4171_v52 = vrot.slane %v3050_v24, 7  ;;  %v4177_v15 = vadd.f32 %v4026_v9, %v4120_v10  ;;  %v1283_v41 = vld [vmem:[#allocation3] sm:$0xff] }
 0x127   : > { %v4173_v11 = vshrl.u32 %v3059_v8, 16  ;;  %v1291_v23 = vld [vmem:[#allocation3 + $0x40] sm:$0xff]  ;;  %v4181_v48 = vrot.slane %v813_v4, 5  ;;  %v4183_v21 = vrot.slane %v817_v60, 4  ;;  %v4185_v26 = vrot.slane %v3052_v47, 7  ;;  %v3631_v10 = vld [vmem:[%s4852_s4 + $0x148] sm:$0xff]  }
 0x128   : > { %v4187_v27 = vrot.slane %v3049_v22, 11  ;;  %v3626_v25 = vld [vmem:[%s4852_s4 + $0x100] sm:$0xff]   ;;  %v1098_v8 = vshrl.u32 %v4165_v50, 16  ;;  %v1212_v47 = vshrl.u32 %v4153_v12, 16  ;;  %v3085_v22 = vcombine.low %v1283_v41, %v1291_v23 }
 0x129   : > { %v866_v60 = vld [vmem:[#allocation2 + $0x28] sm:$0x1f]  ;;  %v3086_v42 = vcombine.high %v1283_v41, %v1291_v23  ;;  %v1221_v49 = vshrl.u32 %v4155_v16, 16  ;;  %v878_v9 = vshrl.u32 %v4149_v1, 16 }
 0x12a   : > { %v1130_v44 = vld [vmem:[#allocation2 + $0x28] sm:$0x7f]  ;;  %v3038_v56 = vcombine.low %v866_v60, %v866_v60  ;;  %v3039_v45 = vcombine.high %v866_v60, %v866_v60  ;;  %v4202_v24 = vrot.slane %v1098_v8, 7  ;;  %v1129_v18 = vld [vmem:[#allocation2 + $0x20] sm:$0xf8]  ;;  %v4213_v8 = vrot.slane %v1212_v47, 7 }
 0x12b   : > { %v3066_v43 = vcombine.low %v1130_v44, %v1130_v44  ;;  %v3067_v4 = vcombine.high %v1130_v44, %v1130_v44  ;;  %2506 = vmatprep.mubr.bf16.mxu1 %v3086_v42  ;;  %v3633_v41 = vld [vmem:[%s4852_s4 + $0x108] sm:$0xff]   ;;  %v881_v42 = vshll.u32 %v4149_v1, 16  ;;  %v1185_v12 = vld [vmem:[#allocation2 + $0x20] sm:$0xf8]  ;;  %v3635_v47 = vld [vmem:[%s4852_s4 + $0x150] sm:$0xff]   ;;  %v563_v1 = vmax.f32 %v4177_v15, 0.0 }
 0x12c   : > { %v3663_v23 = vld [vmem:[#allocation2 + $0x28] ss:$0 sps:$4 sm:$0xff]   ;;  %v897_v60 = vshll.u32 %v3038_v56, 16  ;;  %v901_v14 = vshrl.u32 %v3038_v56, 16  ;;  %v4209_v33 = vshll.u32 %v3039_v45, 16  ;;  %2507 = vmatmul.mubr.bf16.vlgmr.msra.gmra.mrb[0].mxu1 %v3085_v22  ;;  %4870 = vst [vmem:[#allocation10_spill] sm:$0xff] %v4213_v8  ;;  %v3074_v44 = vcombine.low %v1185_v12, %v1185_v12 }
 0x12d   : > { %v4211_v32 = vrot.slane %v3066_v43, 7  ;;  %3321 = vmatpush3.bf16.msra.mxu1 %v3626_v25  ;;  %848 = vst [vmem:[#allocation3 + $0x90] sm:$0xf] %v3663_v23  ;;  %v4222_v45 = vrot.slane %v3067_v4, 7  ;;  %v4224_v43 = vrot.slane %v1221_v49, 7  ;;  %v887_v25 = vshll.u32 %v4151_v2, 16 }
 0x12e   : > { %v4218_v53 = vrot.slane %v897_v60, 5  ;;  %v4220_v56 = vrot.slane %v901_v14, 4  ;;  %3322 = vmatprep.subr.bf16.mxu1 %v3631_v10  ;;  %v891_v23 = vshrl.u32 %v4151_v2, 16  ;;  %v3064_v60 = vcombine.low %v1129_v18, %v1129_v18  ;;  %v1299_v49 = vld [vmem:[#allocation3 + $0x80] sm:$0xff]  ;;  %v3637_v2 = vld [vmem:[%s4852_s4 + $0x110] sm:$0xff]  }
 0x12f   : > { %4869 = vst [vmem:[#allocation9_spill] sm:$0xff] %v4211_v32  ;;  %4871 = vst [vmem:[#allocation11_spill] sm:$0xff] %v4222_v45  ;;  %v3065_v14 = vcombine.high %v1129_v18, %v1129_v18  ;;  %v4233_v4 = vcombine.high %v1185_v12, %v1185_v12  ;;  %v4235_v10 = vrot.slane %v878_v9, 4  ;;  %v4237_v16 = vrot.slane %v881_v42, 5  ;;  %v660_v18 = vpop.permute.xlu1 %659 }
 0x130   : > { %4872 = vst [vmem:[#allocation12_spill] sm:$0xff] %v4224_v43  ;;  %v565_v22 = vmax.f32 %v4161_v20, 0.0  ;;  %v4244_v43 = vrot.slane %v887_v25, 5  ;;  %v4246_v12 = vrot.slane %v891_v23, 4  ;;  %v4250_v9 = vshrl.u32 %v3074_v44, 16  ;;  %v3641_v20 = vld [vmem:[%s4852_s4 + $0x158] sm:$0xff]  }
 0x131   : > { %3323 = vmatpush3.bf16.msra.mxu1 %v3633_v41  ;;  %v4248_v45 = vrot.slane %v3065_v14, 7  ;;  %v4255_v15 = vrot.slane %v3064_v60, 11  ;;  %v675_v42 = vmul.f32 %v4094_v34, %v563_v1  ;;  %v3102_v8 = vcombine.high %v1299_v49, %v1299_v49  ;;  %v3642_v60 = vld [vmem:[%s4852_s4 + $0x118] sm:$0xff]  }
 0x132   : > { %3324 = vmatprep.subr.bf16.mxu1 %v3635_v47  ;;  %v677_v41 = vmul.f32 %v660_v18, %v565_v22  ;;  %v1203_v23 = vshrl.u32 %v4233_v4, 16  ;;  %v3101_v32 = vcombine.low %v1299_v49, %v1299_v49  ;;  %v4875_v34 = vor.u32 %v4056_v59, %v4054_v58  ;;  %v3645_v59 = vld [vmem:[%s4852_s4 + $0x160] sm:$0xff]  }
 0x133   : > { %v684_v54 = vpack.c.bf16 %v675_v42, %v4158_v19  ;;  %2514 = vmatprep.mubr.bf16.mxu1 %v3102_v8  ;;  %v4876_v49 = vor.u32 %v4064_v0, %v4062_v63  ;;  %v4877_v18 = vor.u32 %v4143_v61, %v4141_v55  ;;  %v810_v14 = vor.u32 %v4147_v37, %v4145_v3 }
 0x134   : > { %v685_v47 = vpack.c.bf16 %v677_v41, %v4133_v46  ;;  %v749_v1 = vrot.slane %v4875_v34, 4  ;;  %2515 = vmatmul.mubr.bf16.gmra.mrb[4].mxu1 %v3101_v32  ;;  %v768_v58 = vor.u32 %v4098_v36, %v4096_v35  ;;  %v4291_v0 = vpack.c.bf16 %v4133_v46, %v4133_v46 }
 0x135   : > { %3325 = vmatpush3.bf16.msra.mxu1 %v3637_v2  ;;  %v759_v8 = vrot.slane %v4876_v49, 4  ;;  %v801_v44 = vrot.slane %v4877_v18, 4  ;;  %v4293_v32 = vpack.c.bf16 %v677_v41, %v677_v41  ;;  %692 = vst [vmem:[#allocation2 + $0x30] sm:$0xff] %v684_v54  ;;  %v3758_v55 = vpack.c.bf16 %v4158_v19, %v4158_v19 }
 0x136   : > { %3326 = vmatprep.subr.bf16.mxu1 %v3641_v20  ;;  %693 = vst [vmem:[#allocation2 + $0x38] sm:$0xff] %v685_v47  ;;  %v3759_v61 = vpack.c.bf16 %v675_v42, %v675_v42  ;;  %v4297_v37 = vrot.slane %v1203_v23, 7  ;;  %v754_v36 = vsel %vm4266_vm4, %v749_v1, %v4062_v63  ;;  %v1261_v54 = vshrl.u32 %v4291_v0, 16  ;;  %v3646_v63 = vld [vmem:[%s4852_s4 + $0x120] sm:$0xff]   ;;  %v3680_v1 = vld [vmem:[%s4852_s4 + $0x218] sm:$0xff]  }
 0x137   : > { %v764_v2 = vsel %vm4266_vm4, %v759_v8, %v4096_v35  ;;  %v806_v46 = vsel %vm4266_vm4, %v801_v44, %v4145_v3  ;;  %v1270_v20 = vshrl.u32 %v4293_v32, 16  ;;  %778 = vst [vmem:[#allocation3 + $0x8] sm:$0xf] %v754_v36  ;;  %v811_v19 = vrot.slane %v810_v14, 4  ;;  %862 = vst [vmem:[#allocation3 + $0x14] sm:$0xf] %v3758_v55 }
 0x138   : > { %779 = vst [vmem:[#allocation3 + $0x48] sm:$0xf] %v764_v2  ;;  %830 = vst [vmem:[#allocation3 + $0xc] sm:$0xf] %v806_v46  ;;  %v820_v41 = vor.u32 %v4183_v21, %v4181_v48  ;;  %v930_v35 = vshrl.u32 %v3758_v55, 16  ;;  %v933_v3 = vshll.u32 %v3758_v55, 16 }
 0x139   : > { %3327 = vmatpush3.bf16.msra.mxu1 %v3642_v60  ;;  %863 = vst [vmem:[#allocation3 + $0x54] sm:$0xf] %v3759_v61  ;;  %v939_v42 = vshll.u32 %v3759_v61, 16  ;;  %v943_v23 = vshrl.u32 %v3759_v61, 16  ;;  %v3650_v14 = vld [vmem:[%s4852_s4 + $0x168] sm:$0xff]   ;;  %v816_v47 = vsel %vm4266_vm4, %v811_v19, %v4181_v48  ;;  %v769_v34 = vrot.slane %v768_v58, 4 }
 0x13a   : > { %3328 = vmatprep.subr.bf16.mxu1 %v3645_v59  ;;  %v4329_v60 = vrot.slane %v1261_v54, 7  ;;  %v4331_v49 = vrot.slane %v1270_v20, 7  ;;  %v4333_v8 = vrot.slane %v930_v35, 4  ;;  %v4335_v18 = vrot.slane %v933_v3, 5  ;;  %831 = vst [vmem:[#allocation3 + $0x4c] sm:$0xf] %v816_v47 }
 0x13b   : > { %v4337_v59 = vrot.slane %v939_v42, 5  ;;  %v4339_v55 = vrot.slane %v943_v23, 4  ;;  %v4880_v48 = vrot.slane %v4082_v28, 5  ;;  %v821_v61 = vrot.slane %v820_v41, 4  ;;  %v3651_v36 = vld [vmem:[%s4852_s4 + $0x128] sm:$0xff]   ;;  %v3654_v2 = vld [vmem:[%s4852_s4 + $0x170] sm:$0xff]  }
 0x13c   : > { %v884_v28 = vor.u32 %v4237_v16, %v4235_v10  ;;  %v987_v20 = vsel %vm4325_vm5, %v4102_v40, %v4086_v30  ;;  %v4881_v19 = vrot.slane %v4086_v30, 4  ;;  %v1157_v10 = vld [vmem:[#allocation2 + $0x30] sm:$0xf8]  ;;  %v3643_v21 = vld [vmem:[%s4852_s4 + $0x1c8] sm:$0xff]   ;;  %v4897_v22 = vrot.slane %v4248_v45, 4 }
 0x13d   : > { %v774_v58 = vsel %vm4266_vm4, %v769_v34, %v4880_v48  ;;  %3329 = vmatpush3.bf16.msra.mxu1 %v3646_v63  ;;  %v918_v46 = vld [vmem:[#allocation2 + $0x38] sm:$0x1f]  ;;  %v4882_v63 = vshll.u32 %v4038_v39, 16  ;;  %997 = vst [vmem:[#allocation3 + $0x20] sm:$0xf] %v987_v20  ;;  %v3069_v30 = vcombine.low %v1157_v10, %v1157_v10  ;;  %v3070_v40 = vcombine.high %v1157_v10, %v1157_v10 }
 0x13e   : > { %v1158_v54 = vld [vmem:[#allocation2 + $0x38] sm:$0x7f]  ;;  %780 = vst [vmem:[#allocation3 + $0x88] sm:$0xf] %v774_v58  ;;  %3330 = vmatprep.subr.bf16.mxu1 %v3650_v14  ;;  %v990_v41 = vsel %vm4325_vm5, %v4881_v19, %v4084_v29  ;;  %v3042_v3 = vcombine.low %v918_v46, %v918_v46  ;;  %v3043_v42 = vcombine.high %v918_v46, %v918_v46  ;;  %v1234_v14 = vld [vmem:[#allocation2 + $0x30] sm:$0xf8] }
 0x13f   : > { %v4365_v35 = vor.u32 %v4882_v63, %v4052_v57  ;;  %v3071_v23 = vcombine.low %v1158_v54, %v1158_v54  ;;  %v3072_v16 = vcombine.high %v1158_v54, %v1158_v54  ;;  %v3664_v47 = vld [vmem:[#allocation2 + $0x38] ss:$0 sps:$4 sm:$0xff]   ;;  %998 = vst [vmem:[#allocation3 + $0x60] sm:$0xf] %v990_v41  ;;  %v3079_v34 = vcombine.low %v1234_v14, %v1234_v14  ;;  %v3655_v46 = vld [vmem:[%s4852_s4 + $0x130] sm:$0xff]  }
 0x140   : > { %v4367_v48 = vcombine.high %v1234_v14, %v1234_v14  ;;  %v949_v58 = vshll.u32 %v3042_v3, 16  ;;  %v953_v39 = vshrl.u32 %v3042_v3, 16  ;;  %v4369_v57 = vshll.u32 %v3043_v42, 16  ;;  %864 = vst [vmem:[#allocation3 + $0x94] sm:$0xf] %v3664_v47  ;;  %v4380_v41 = vld [vmem:[#allocation3 + $0x10] sm:$0xff] }
 0x141   : > { %3331 = vmatpush3.bf16.msra.mxu1 %v3651_v36  ;;  %v894_v54 = vor.u32 %v4246_v12, %v4244_v43  ;;  %v4376_v20 = vrot.slane %v3071_v23, 7  ;;  %v4378_v19 = vrot.slane %v3070_v40, 7  ;;  %v936_v63 = vor.u32 %v4335_v18, %v4333_v8  ;;  %v3658_v3 = vld [vmem:[%s4852_s4 + $0x178] sm:$0xff]   ;;  %v1292_v14 = vld [vmem:[#allocation3 + $0x48] sm:$0xff] }
 0x142   : > { %3332 = vmatprep.subr.bf16.mxu1 %v3654_v2  ;;  %v946_v36 = vor.u32 %v4339_v55, %v4337_v59  ;;  %v4389_v42 = vrot.slane %v949_v58, 5  ;;  %v4391_v12 = vrot.slane %v3072_v16, 7  ;;  %v4393_v23 = vrot.slane %v3069_v30, 11  ;;  %v1293_v2 = vld [vmem:[#allocation3 + $0x50] sm:$0xff]  ;;  %v1284_v40 = vld [vmem:[#allocation3 + $0x8] sm:$0xff]  ;;  %v3639_v16 = vld [vmem:[%s4852_s4 + $0x180] sm:$0xff]  }
 0x143   : > { %v4395_v10 = vshrl.u32 %v3079_v34, 16  ;;  %v955_v47 = vrot.slane %v953_v39, 4  ;;  %v961_v8 = vrot.slane %v4369_v57, 5  ;;  %v1252_v55 = vshrl.u32 %v4367_v48, 16  ;;  %v3659_v39 = vld [vmem:[%s4852_s4 + $0x138] sm:$0xff]   ;;  %v4896_v57 = vld [vmem:[#allocation9_spill] sm:$0xff] }
 0x144   : > { %v3087_v58 = vcombine.low %v1284_v40, %v1292_v14  ;;  %v3088_v44 = vcombine.high %v1284_v40, %v1292_v14  ;;  %v4883_v30 = vrot.slane %v4167_v5, 5  ;;  %v3089_v14 = vcombine.low %v4380_v41, %v1293_v2  ;;  %v3662_v5 = vld [vmem:[%s4852_s4 + $0x240] sm:$0xff]  }
 0x145   : > { %3333 = vmatpush3.bf16.msra.mxu1 %v3655_v46  ;;  %v3090_v40 = vcombine.high %v4380_v41, %v1293_v2  ;;  %v885_v18 = vrot.slane %v884_v28, 4  ;;  %v895_v25 = vrot.slane %v894_v54, 4  ;;  %v947_v46 = vrot.slane %v946_v36, 4 }
 0x146   : > { %v826_v34 = vsel %vm4266_vm4, %v821_v61, %v4883_v30  ;;  %3334 = vmatprep.subr.bf16.mxu1 %v3658_v3  ;;  %2554 = vmatprep.mubr.bf16.mxu0 %v3088_v44  ;;  %v937_v61 = vrot.slane %v936_v63, 4  ;;  %v1015_v30 = vsel %vm4325_vm5, %v4187_v27, %v4171_v52  ;;  %v1056_v27 = vrot.slane %v4116_v6, 4 }
 0x147   : > { %832 = vst [vmem:[#allocation3 + $0x8c] sm:$0xf] %v826_v34  ;;  %v4884_v34 = vrot.slane %v4171_v52, 4  ;;  %2555 = vmatmul.mubr.bf16.vlgmr.msra.gmra.mrb[16].mxu0 %v3087_v58  ;;  %2602 = vmatprep.mubr.bf16.mxu1 %v3090_v40  ;;  %v890_v54 = vsel %vm4266_vm4, %v885_v18, %v4244_v43  ;;  %v900_v44 = vsel %vm4266_vm4, %v895_v25, %v4218_v53  ;;  %v4434_v41 = vld [vmem:[#allocation3 + $0x90] sm:$0xff]  ;;  %1025 = vst [vmem:[#allocation3 + $0x24] sm:$0xf] %v1015_v30 }
 0x148   : > { %v904_v52 = vor.u32 %v4220_v56, %v4218_v53  ;;  %v4439_v63 = vrot.slane %v1252_v55, 7  ;;  %3349 = vmatpush3.bf16.msra.mxu0 %v3639_v16  ;;  %v3644_v43 = vld [vmem:[%s4852_s4 + $0x188] sm:$0xff]   ;;  %914 = vst [vmem:[#allocation3 + $0x18] sm:$0xf] %v890_v54  ;;  %915 = vst [vmem:[#allocation3 + $0x58] sm:$0xf] %v900_v44  ;;  %v942_v25 = vsel %vm4266_vm4, %v937_v61, %v4337_v59 }
 0x149   : > { %v1018_v28 = vsel %vm4325_vm5, %v4884_v34, %v4169_v51  ;;  %v952_v36 = vsel %vm4266_vm4, %v947_v46, %v4389_v42  ;;  %3335 = vmatpush3.bf16.msra.mxu1 %v3659_v39  ;;  %v1105_v53 = vrot.slane %v4202_v24, 4  ;;  %3350 = vmatprep.subr.bf16.mxu0 %v3643_v21  ;;  %v3647_v56 = vld [vmem:[%s4852_s4 + $0x1d0] sm:$0xff]   ;;  %966 = vst [vmem:[#allocation3 + $0x1c] sm:$0xf] %v942_v25  ;;  %v3667_v59 = vld [vmem:[%s4852_s4 + $0x200] sm:$0xff]   ;;  %v4887_v55 = vshll.u32 %v4080_v7, 16 }
 0x14a   : > { %1026 = vst [vmem:[#allocation3 + $0x64] sm:$0xf] %v1018_v28  ;;  %967 = vst [vmem:[#allocation3 + $0x5c] sm:$0xf] %v952_v36  ;;  %3376 = vmatprep.subr.bf16.mxu1 %v3662_v5  ;;  %v3106_v3 = vcombine.high %v4434_v41, %v4434_v41  ;;  %v905_v2 = vrot.slane %v904_v52, 4  ;;  %v956_v18 = vor.u32 %v955_v47, %v4389_v42  ;;  %v3669_v16 = vld [vmem:[%s4852_s4 + $0x248] sm:$0xff]  }
 0x14b   : > { %v1054_v58 = vor.u32 %v4887_v55, %v4116_v6  ;;  %v1064_v39 = vsel %vm4462_vm8, %v1056_v27, %v4078_v13  ;;  %v4888_v42 = vshll.u32 %v4165_v50, 16  ;;  %v4889_v40 = vshll.u32 %v4125_v17, 16  ;;  %v3671_v54 = vld [vmem:[%s4852_s4 + $0x208] sm:$0xff]   ;;  %v3652_v52 = vld [vmem:[%s4852_s4 + $0x1d8] sm:$0xff]   ;;  %v3674_v27 = vld [vmem:[%s4852_s4 + $0x250] sm:$0xff]  }
 0x14c   : > { %v4890_v7 = vrot.slane %v4084_v29, 4  ;;  %2603 = vmatmul.mubr.bf16.vlgmr.msra.gmra.mrb[8].mxu1 %v3089_v14  ;;  %v4891_v61 = vrot.slane %v4209_v33, 5  ;;  %v957_v46 = vrot.slane %v956_v18, 4  ;;  %v4892_v50 = vrot.slane %v4088_v31, 11  ;;  %1078 = vst [vmem:[#allocation3 + $0x68] sm:$0xf] %v1064_v39  ;;  %3351 = vmatpush3.bf16.msra.mxu0 %v3644_v43 }
 0x14d   : > { %v1103_v47 = vor.u32 %v4888_v42, %v4202_v24  ;;  %v1112_v5 = vor.u32 %v4889_v40, %v4137_v62  ;;  %v4893_v29 = vrot.slane %v4169_v51, 4  ;;  %2610 = vmatprep.mubr.bf16.mxu1 %v3106_v3  ;;  %v4894_v33 = vrot.slane %v4173_v11, 11  ;;  %3352 = vmatprep.subr.bf16.mxu0 %v3647_v56  ;;  %v3649_v11 = vld [vmem:[%s4852_s4 + $0x190] sm:$0xff]   ;;  %v4900_v3 = vld [vmem:[#allocation5_spill] sm:$0xff]  ;;  %v4904_v39 = vld [vmem:[#allocation7_spill] sm:$0xff] }
 0x14e   : > { %v993_v6 = vsel %vm4325_vm5, %v4890_v7, %v4100_v38  ;;  %v910_v13 = vsel %vm4266_vm4, %v905_v2, %v4891_v61  ;;  %v1055_v24 = vsel %vm4462_vm8, %v4892_v50, %v1054_v58  ;;  %v1300_v17 = vld [vmem:[#allocation3 + $0x88] sm:$0xff]  ;;  %v1144_v51 = vsel %vm4325_vm5, %v4255_v15, %v4248_v45  ;;  %3377 = vmatpush3.bf16.msra.mxu1 %v3667_v59  ;;  %v3656_v61 = vld [vmem:[%s4852_s4 + $0x1e0] sm:$0xff]  }
 0x14f   : > { %999 = vst [vmem:[#allocation3 + $0xa0] sm:$0xf] %v993_v6  ;;  %v1021_v38 = vsel %vm4325_vm5, %v4893_v29, %v4185_v26  ;;  %916 = vst [vmem:[#allocation3 + $0x98] sm:$0xf] %v910_v13  ;;  %v1104_v31 = vsel %vm4462_vm8, %v4894_v33, %v1103_v47  ;;  %v1113_v14 = vsel %vm4462_vm8, %v1105_v53, %v1112_v5  ;;  %v4895_v26 = vld [vmem:[#allocation4_spill] sm:$0xff]  ;;  %v1114_v15 = vrot.slane %v4137_v62, 4 }
 0x150   : > { %1077 = vst [vmem:[#allocation3 + $0x28] sm:$0xf] %v1055_v24  ;;  %1027 = vst [vmem:[#allocation3 + $0xa4] sm:$0xf] %v1021_v38  ;;  %v1065_v30 = vrot.slane %v4895_v26, 4  ;;  %v3104_v34 = vcombine.high %v1300_v17, %v1300_v17  ;;  %v3103_v28 = vcombine.low %v1300_v17, %v1300_v17  ;;  %v962_v44 = vsel %vm4266_vm4, %v957_v46, %v961_v8  ;;  %v4554_v55 = vld [vmem:[#allocation3 + $0x18] sm:$0xff] }
 0x151   : > { %1126 = vst [vmem:[#allocation3 + $0x2c] sm:$0xf] %v1104_v31  ;;  %1127 = vst [vmem:[#allocation3 + $0x6c] sm:$0xf] %v1113_v14  ;;  %3378 = vmatprep.subr.bf16.mxu1 %v3669_v16  ;;  %v4527_v43 = vld [vmem:[#allocation3 + $0x60] sm:$0xff]  ;;  %v1147_v8 = vsel %vm4325_vm5, %v4897_v22, %v4896_v57  ;;  %v1172_v62 = vsel %vm4325_vm5, %v4393_v23, %v4378_v19  ;;  %v4898_v25 = vrot.slane %v4378_v19, 4  ;;  %3353 = vmatpush3.bf16.msra.mxu0 %v3649_v11 }
 0x152   : > { %1154 = vst [vmem:[#allocation3 + $0x30] sm:$0xf] %v1144_v51  ;;  %968 = vst [vmem:[#allocation3 + $0x9c] sm:$0xf] %v962_v44  ;;  %v1073_v53 = vsel %vm4462_vm8, %v1065_v30, %v4365_v35  ;;  %v1176_v45 = vrot.slane %v4376_v20, 4  ;;  %v3083_v56 = vrot.slane %v4395_v10, 11  ;;  %2562 = vmatprep.mubr.bf16.mxu0 %v3104_v34  ;;  %3379 = vmatpush3.bf16.msra.mxu1 %v3671_v54 }
 0x153   : > { %v1175_v36 = vsel %vm4325_vm5, %v4898_v25, %v4376_v20  ;;  %1155 = vst [vmem:[#allocation3 + $0x70] sm:$0xf] %v1147_v8  ;;  %1182 = vst [vmem:[#allocation3 + $0x34] sm:$0xf] %v1172_v62  ;;  %v4899_v23 = vld [vmem:[#allocation6_spill] sm:$0xff]  ;;  %v4901_v59 = vshll.u32 %v4900_v3, 16  ;;  %2563 = vmatmul.mubr.bf16.gmra.mrb[20].mxu0 %v3103_v28  ;;  %v3105_v20 = vcombine.low %v4434_v41, %v4434_v41  ;;  %3354 = vmatprep.subr.bf16.mxu0 %v3652_v52 }
 0x154   : > { %1183 = vst [vmem:[#allocation3 + $0x74] sm:$0xf] %v1175_v36  ;;  %1079 = vst [vmem:[#allocation3 + $0xa8] sm:$0xf] %v1073_v53  ;;  %v4902_v2 = vshll.u32 %v4233_v4, 16  ;;  %v4556_v35 = vld [vmem:[#allocation3 + $0x58] sm:$0xff]  ;;  %3380 = vmatprep.subr.bf16.mxu1 %v3674_v27  ;;  %v1178_v14 = vsel %vm4325_vm5, %v1176_v45, %v4391_v12 }
 0x155   : > { %v1121_v19 = vor.u32 %v4901_v59, %v4899_v23  ;;  %v4560_v10 = vld [vmem:[#allocation3 + $0x20] sm:$0xff]  ;;  %v1210_v58 = vrot.slane %v4297_v37, 4  ;;  %v4903_v16 = vld [vmem:[#allocation10_spill] sm:$0xff]  ;;  %v4905_v42 = vshll.u32 %v4904_v39, 16  ;;  %v4906_v4 = vshll.u32 %v4367_v48, 16  ;;  %v3653_v5 = vld [vmem:[%s4852_s4 + $0x198] sm:$0xff]   ;;  %2611 = vmatmul.mubr.bf16.gmra.mrb[12].mxu1 %v3105_v20 }
 0x156   : > { %v1208_v18 = vor.u32 %v4902_v2, %v4297_v37  ;;  %v3092_v41 = vcombine.high %v4554_v55, %v4556_v35  ;;  %v3675_v37 = vld [vmem:[%s4852_s4 + $0x210] sm:$0xff]   ;;  %v3094_v7 = vcombine.high %v4560_v10, %v4527_v43  ;;  %v1259_v6 = vrot.slane %v4439_v63, 4  ;;  %v3679_v13 = vld [vmem:[%s4852_s4 + $0x258] sm:$0xff]   ;;  %1184 = vst [vmem:[#allocation3 + $0xb4] sm:$0xf] %v1178_v14  ;;  %v4911_v26 = vld [vmem:[#allocation12_spill] sm:$0xff]  ;;  %3355 = vmatpush3.bf16.msra.mxu0 %v3653_v5 }
 0x157   : > { %v1217_v47 = vor.u32 %v4905_v42, %v4903_v16  ;;  %v1257_v40 = vor.u32 %v4906_v4, %v4439_v63  ;;  %v1122_v48 = vsel %vm4462_vm8, %v1114_v15, %v1121_v19  ;;  %v4907_v46 = vrot.slane %v4250_v9, 11  ;;  %v4909_v9 = vld [vmem:[#allocation11_spill] sm:$0xff]  ;;  %v4912_v30 = vld [vmem:[#allocation8_spill] sm:$0xff]  ;;  %3381 = vmatpush3.bf16.msra.mxu1 %v3675_v37  ;;  %3356 = vmatprep.subr.bf16.mxu0 %v3656_v61  ;;  %v3660_v12 = vld [vmem:[%s4852_s4 + $0x1e8] sm:$0xff]  }
 0x158   : > { %1128 = vst [vmem:[#allocation3 + $0xac] sm:$0xf] %v1122_v48  ;;  %v1219_v29 = vrot.slane %v4903_v16, 4  ;;  %2650 = vmatprep.mubr.bf16.mxu0 %v3092_v41  ;;  %v4908_v38 = vshll.u32 %v4291_v0, 16  ;;  %v4910_v33 = vrot.slane %v4896_v57, 4  ;;  %v1268_v51 = vrot.slane %v4329_v60, 4  ;;  %2698 = vmatprep.mubr.bf16.mxu1 %v3094_v7 }
 0x159   : > { %v1209_v50 = vsel %vm4462_vm8, %v4907_v46, %v1208_v18  ;;  %v1218_v24 = vsel %vm4462_vm8, %v1210_v58, %v1217_v47  ;;  %v1258_v63 = vsel %vm4462_vm8, %v3083_v56, %v1257_v40  ;;  %v4913_v0 = vshll.u32 %v4912_v30, 16  ;;  %v3657_v54 = vld [vmem:[%s4852_s4 + $0x1a0] sm:$0xff]   ;;  %3382 = vmatprep.subr.bf16.mxu1 %v3679_v13  ;;  %v3661_v15 = vld [vmem:[%s4852_s4 + $0x1a8] sm:$0xff]   ;;  %v3666_v27 = vld [vmem:[%s4852_s4 + $0x1f0] sm:$0xff]  }
 0x15a   : > { %1231 = vst [vmem:[#allocation3 + $0x38] sm:$0xf] %v1209_v50  ;;  %1232 = vst [vmem:[#allocation3 + $0x78] sm:$0xf] %v1218_v24  ;;  %v1266_v17 = vor.u32 %v4908_v38, %v4329_v60  ;;  %v1150_v31 = vsel %vm4325_vm5, %v4910_v33, %v4909_v9  ;;  %v4914_v28 = vshll.u32 %v4293_v32, 16  ;;  %v3683_v32 = vld [vmem:[%s4852_s4 + $0x260] sm:$0xff]   ;;  %3357 = vmatpush3.bf16.msra.mxu0 %v3657_v54 }
 0x15b   : > { %1280 = vst [vmem:[#allocation3 + $0x3c] sm:$0xf] %v1258_v63  ;;  %1156 = vst [vmem:[#allocation3 + $0xb0] sm:$0xf] %v1150_v31  ;;  %v1226_v34 = vor.u32 %v4913_v0, %v4911_v26  ;;  %3383 = vmatpush3.bf16.msra.mxu1 %v3680_v1  ;;  %v3685_v52 = vld [vmem:[%s4852_s4 + $0x220] sm:$0xff]   ;;  %3358 = vmatprep.subr.bf16.mxu0 %v3660_v12  ;;  %v3688_v21 = vld [vmem:[%s4852_s4 + $0x268] sm:$0xff]   ;;  %v3091_v3 = vcombine.low %v4554_v55, %v4556_v35 }
 0x15c   : > { %v1275_v11 = vor.u32 %v4914_v28, %v4331_v49  ;;  %v1267_v60 = vsel %vm4462_vm8, %v1259_v6, %v1266_v17  ;;  %3384 = vmatprep.subr.bf16.mxu1 %v3683_v32  ;;  %v3668_v57 = vld [vmem:[%s4852_s4 + $0x1b0] sm:$0xff]   ;;  %v3689_v22 = vld [vmem:[%s4852_s4 + $0x228] sm:$0xff]   ;;  %v3670_v8 = vld [vmem:[%s4852_s4 + $0x1f8] sm:$0xff]   ;;  %v3093_v58 = vcombine.low %v4560_v10, %v4527_v43 }
 0x15d   : > { %1281 = vst [vmem:[#allocation3 + $0x7c] sm:$0xf] %v1267_v60  ;;  %v1227_v49 = vsel %vm4462_vm8, %v1219_v29, %v1226_v34  ;;  %v3692_v62 = vld [vmem:[%s4852_s4 + $0x270] sm:$0xff]   ;;  %v3672_v25 = vld [vmem:[%s4852_s4 + $0x1b8] sm:$0xff]   ;;  %v3676_v53 = vld [vmem:[%s4852_s4 + $0x2c0] sm:$0xff]  }
 0x15e   : > { %1233 = vst [vmem:[#allocation3 + $0xb8] sm:$0xf] %v1227_v49  ;;  %v1276_v44 = vsel %vm4462_vm8, %v1268_v51, %v1275_v11  ;;  %3359 = vmatpush3.bf16.msra.mxu0 %v3661_v15  ;;  %v3693_v36 = vld [vmem:[%s4852_s4 + $0x230] sm:$0xff]   ;;  %v3696_v45 = vld [vmem:[%s4852_s4 + $0x278] sm:$0xff]   ;;  %v3678_v23 = vld [vmem:[%s4852_s4 + $0x280] sm:$0xff]  }
 0x15f   : > { %1282 = vst [vmem:[#allocation3 + $0xbc] sm:$0xf] %v1276_v44  ;;  %3385 = vmatpush3.bf16.msra.mxu1 %v3685_v52  ;;  %3360 = vmatprep.subr.bf16.mxu0 %v3666_v27  ;;  %v1302_v56 = vld [vmem:[#allocation3 + $0x98] sm:$0xff]  ;;  %v3681_v59 = vld [vmem:[%s4852_s4 + $0x2c8] sm:$0xff]   ;;  %v3700_v18 = vld [vmem:[%s4852_s4 + $0x340] sm:$0xff]  }
 0x160   : > { %3386 = vmatprep.subr.bf16.mxu1 %v3688_v21  ;;  %v3697_v19 = vld [vmem:[%s4852_s4 + $0x238] sm:$0xff]   ;;  %v3108_v2 = vcombine.high %v1302_v56, %v1302_v56  ;;  %v3682_v55 = vld [vmem:[%s4852_s4 + $0x288] sm:$0xff]   ;;  %v1303_v35 = vld [vmem:[#allocation3 + $0xa0] sm:$0xff]  ;;  %v3107_v43 = vcombine.low %v1302_v56, %v1302_v56 }
 0x161   : > { %v3686_v20 = vld [vmem:[%s4852_s4 + $0x2d0] sm:$0xff]   ;;  %v3703_v16 = vld [vmem:[%s4852_s4 + $0x300] sm:$0xff]   ;;  %v4694_v39 = vld [vmem:[#allocation3 + $0x28] sm:$0xff]  ;;  %v3110_v47 = vcombine.high %v1303_v35, %v1303_v35  ;;  %v3109_v61 = vcombine.low %v1303_v35, %v1303_v35 }
 0x162   : > { %3361 = vmatpush3.bf16.msra.mxu0 %v3668_v57  ;;  %v4696_v42 = vld [vmem:[#allocation3 + $0x68] sm:$0xff]  ;;  %v3687_v40 = vld [vmem:[%s4852_s4 + $0x290] sm:$0xff]   ;;  %v3690_v10 = vld [vmem:[%s4852_s4 + $0x2d8] sm:$0xff]  }
 0x163   : > { %3387 = vmatpush3.bf16.msra.mxu1 %v3689_v22  ;;  %3362 = vmatprep.subr.bf16.mxu0 %v3670_v8  ;;  %v3705_v4 = vld [vmem:[%s4852_s4 + $0x348] sm:$0xff]   ;;  %v3096_v5 = vcombine.high %v4694_v39, %v4696_v42  ;;  %v3710_v37 = vld [vmem:[%s4852_s4 + $0x350] sm:$0xff]   ;;  %v3691_v7 = vld [vmem:[%s4852_s4 + $0x298] sm:$0xff]   ;;  %v3095_v12 = vcombine.low %v4694_v39, %v4696_v42 }
 0x164   : > { %3388 = vmatprep.subr.bf16.mxu1 %v3692_v62  ;;  %v3707_v41 = vld [vmem:[%s4852_s4 + $0x308] sm:$0xff]   ;;  %v4718_v48 = vld [vmem:[#allocation3 + $0x70] sm:$0xff]  ;;  %v3694_v6 = vld [vmem:[%s4852_s4 + $0x2e0] sm:$0xff]  }
 0x165   : > { %v3711_v13 = vld [vmem:[%s4852_s4 + $0x310] sm:$0xff]   ;;  %v3715_v24 = vld [vmem:[%s4852_s4 + $0x358] sm:$0xff]   ;;  %v3695_v63 = vld [vmem:[%s4852_s4 + $0x2a0] sm:$0xff]  }
 0x166   : > { %3363 = vmatpush3.bf16.msra.mxu0 %v3672_v25  ;;  %v4726_v46 = vld [vmem:[#allocation3 + $0x30] sm:$0xff]  ;;  %v3698_v29 = vld [vmem:[%s4852_s4 + $0x2e8] sm:$0xff]   ;;  %v3716_v38 = vld [vmem:[%s4852_s4 + $0x318] sm:$0xff]  }
 0x167   : > { %3389 = vmatpush3.bf16.msra.mxu1 %v3693_v36  ;;  %3404 = vmatprep.subr.bf16.mxu0 %v3676_v53  ;;  %v3098_v50 = vcombine.high %v4726_v46, %v4718_v48  ;;  %v3719_v17 = vld [vmem:[%s4852_s4 + $0x360] sm:$0xff]   ;;  %v3699_v9 = vld [vmem:[%s4852_s4 + $0x2a8] sm:$0xff]   ;;  %v3702_v33 = vld [vmem:[%s4852_s4 + $0x2f0] sm:$0xff]   ;;  %v3097_v21 = vcombine.low %v4726_v46, %v4718_v48 }
 0x168   : > { %3390 = vmatprep.subr.bf16.mxu1 %v3696_v45  ;;  %v3721_v31 = vld [vmem:[%s4852_s4 + $0x320] sm:$0xff]   ;;  %v3724_v14 = vld [vmem:[%s4852_s4 + $0x368] sm:$0xff]   ;;  %v3704_v51 = vld [vmem:[%s4852_s4 + $0x2b0] sm:$0xff]  }
 0x169   : > { %2651 = vmatmul.mubr.bf16.vlgmr.msra.gmra.mrb[24].mxu0 %v3091_v3  ;;  %v3706_v26 = vld [vmem:[%s4852_s4 + $0x2f8] sm:$0xff]   ;;  %v3725_v30 = vld [vmem:[%s4852_s4 + $0x328] sm:$0xff]   ;;  %v3728_v0 = vld [vmem:[%s4852_s4 + $0x370] sm:$0xff]  }
 0x16a   : > { %2658 = vmatprep.mubr.bf16.mxu0 %v3108_v2  ;;  %3405 = vmatpush3.bf16.msra.mxu0 %v3678_v23  ;;  %v3708_v34 = vld [vmem:[%s4852_s4 + $0x2b8] sm:$0xff]   ;;  %v3712_v28 = vld [vmem:[%s4852_s4 + $0x3c0] sm:$0xff]   ;;  %v3729_v11 = vld [vmem:[%s4852_s4 + $0x330] sm:$0xff]  }
 0x16b   : > { %3406 = vmatprep.subr.bf16.mxu0 %v3681_v59  ;;  %3391 = vmatpush3.bf16.msra.mxu1 %v3697_v19  ;;  %v1304_v54 = vld [vmem:[#allocation3 + $0xa8] sm:$0xff]  ;;  %v3732_v1 = vld [vmem:[%s4852_s4 + $0x378] sm:$0xff]   ;;  %v3714_v60 = vld [vmem:[%s4852_s4 + $0x380] sm:$0xff]  }
 0x16c   : > { %3432 = vmatprep.subr.bf16.mxu1 %v3700_v18  ;;  %v3717_v32 = vld [vmem:[%s4852_s4 + $0x3c8] sm:$0xff]   ;;  %v3112_v49 = vcombine.high %v1304_v54, %v1304_v54  ;;  %v3733_v44 = vld [vmem:[%s4852_s4 + $0x338] sm:$0xff]   ;;  %v3722_v52 = vld [vmem:[%s4852_s4 + $0x3d0] sm:$0xff]   ;;  %v3111_v25 = vcombine.low %v1304_v54, %v1304_v54 }
 0x16d   : > { %v3718_v15 = vld [vmem:[%s4852_s4 + $0x388] sm:$0xff]   ;;  %v1305_v27 = vld [vmem:[#allocation3 + $0xb0] sm:$0xff]  ;;  %v1290_v57 = vld [vmem:[#allocation3 + $0x38] sm:$0xff] }
 0x16e   : > { %3407 = vmatpush3.bf16.msra.mxu0 %v3682_v55  ;;  %2699 = vmatmul.mubr.bf16.vlgmr.msra.gmra.mrb[16].mxu1 %v3093_v58  ;;  %v1298_v22 = vld [vmem:[#allocation3 + $0x78] sm:$0xff]  ;;  %v3723_v8 = vld [vmem:[%s4852_s4 + $0x390] sm:$0xff]   ;;  %v3114_v62 = vcombine.high %v1305_v27, %v1305_v27  ;;  %v3730_v56 = vld [vmem:[%s4852_s4 + $0x3e0] sm:$0xff]   ;;  %v3113_v3 = vcombine.low %v1305_v27, %v1305_v27 }
 0x16f   : > { %3408 = vmatprep.subr.bf16.mxu0 %v3686_v20  ;;  %2706 = vmatprep.mubr.bf16.mxu1 %v3110_v47  ;;  %v3726_v36 = vld [vmem:[%s4852_s4 + $0x3d8] sm:$0xff]   ;;  %v3100_v53 = vcombine.high %v1290_v57, %v1298_v22  ;;  %v3731_v59 = vld [vmem:[%s4852_s4 + $0x3a0] sm:$0xff]   ;;  %v3734_v2 = vld [vmem:[%s4852_s4 + $0x3e8] sm:$0xff]  }
 0x170   : > { %3433 = vmatpush3.bf16.msra.mxu1 %v3703_v16  ;;  %v3727_v45 = vld [vmem:[%s4852_s4 + $0x398] sm:$0xff]   ;;  %v3735_v18 = vld [vmem:[%s4852_s4 + $0x3a8] sm:$0xff]   ;;  %v3737_v55 = vld [vmem:[%s4852_s4 + $0x3f0] sm:$0xff]   ;;  %v3099_v16 = vcombine.low %v1290_v57, %v1298_v22 }
 0x171   : > { %2659 = vmatmul.mubr.bf16.gmra.mrb[28].mxu0 %v3107_v43  ;;  %3434 = vmatprep.subr.bf16.mxu1 %v3705_v4  ;;  %v1306_v23 = vld [vmem:[#allocation3 + $0xb8] sm:$0xff]  ;;  %v3738_v35 = vld [vmem:[%s4852_s4 + $0x3b0] sm:$0xff]  }
 0x172   : > { %3409 = vmatpush3.bf16.msra.mxu0 %v3687_v40  ;;  %2746 = vmatprep.mubr.bf16.mxu0 %v3096_v5  ;;  %v3116_v19 = vcombine.high %v1306_v23, %v1306_v23  ;;  %v3739_v20 = vld [vmem:[%s4852_s4 + $0x3f8] sm:$0xff]   ;;  %v3115_v39 = vcombine.low %v1306_v23, %v1306_v23 }
 0x173   : > { %3410 = vmatprep.subr.bf16.mxu0 %v3690_v10  ;;  %v3740_v58 = vld [vmem:[%s4852_s4 + $0x3b8] sm:$0xff]  }
 0x174   : > { %3435 = vmatpush3.bf16.msra.mxu1 %v3707_v41 }
 0x175   : > { %3436 = vmatprep.subr.bf16.mxu1 %v3710_v37 }
 0x176   : > { %3411 = vmatpush3.bf16.msra.mxu0 %v3691_v7  ;;  %2707 = vmatmul.mubr.bf16.gmra.mrb[20].mxu1 %v3109_v61 }
 0x177   : > { %3412 = vmatprep.subr.bf16.mxu0 %v3694_v6  ;;  %2794 = vmatprep.mubr.bf16.mxu1 %v3098_v50  ;;  %v3084_v6 = vld [vmem:[%s4853_s5] ss:$0 sm:$0xff] }
 0x178   : > { %3437 = vmatpush3.bf16.msra.mxu1 %v3711_v13 }
 0x179   : > { %3438 = vmatprep.subr.bf16.mxu1 %v3715_v24 }
 0x17a   : > { %3413 = vmatpush3.bf16.msra.mxu0 %v3695_v63 }
 0x17b   : > { %3414 = vmatprep.subr.bf16.mxu0 %v3698_v29 }
 0x17c   : > { %3439 = vmatpush3.bf16.msra.mxu1 %v3716_v38 }
 0x17d   : > { %3440 = vmatprep.subr.bf16.mxu1 %v3719_v17 }
 0x17e   : > { %3415 = vmatpush3.bf16.msra.mxu0 %v3699_v9 }
 0x17f   : > { %3416 = vmatprep.subr.bf16.mxu0 %v3702_v33 }
 0x180   : > { %3441 = vmatpush3.bf16.msra.mxu1 %v3721_v31 }
 0x181   : > { %3442 = vmatprep.subr.bf16.mxu1 %v3724_v14 }
 0x182   : > { %3417 = vmatpush3.bf16.msra.mxu0 %v3704_v51 }
 0x183   : > { %3418 = vmatprep.subr.bf16.mxu0 %v3706_v26 }
 0x184   : > { %3443 = vmatpush3.bf16.msra.mxu1 %v3725_v30 }
 0x185   : > { %3444 = vmatprep.subr.bf16.mxu1 %v3728_v0 }
 0x186   : > { %3419 = vmatpush3.bf16.msra.mxu0 %v3708_v34 }
 0x187   : > { %3460 = vmatprep.subr.bf16.mxu0 %v3712_v28 }
 0x188   : > { %3445 = vmatpush3.bf16.msra.mxu1 %v3729_v11 }
 0x189   : > { %2747 = vmatmul.mubr.bf16.vlgmr.msra.gmra.mrb[32].mxu0 %v3095_v12  ;;  %3446 = vmatprep.subr.bf16.mxu1 %v3732_v1 }
 0x18a   : > { %2754 = vmatprep.mubr.bf16.mxu0 %v3112_v49  ;;  %3461 = vmatpush3.bf16.msra.mxu0 %v3714_v60 }
 0x18b   : > { %3462 = vmatprep.subr.bf16.mxu0 %v3717_v32 }
 0x18c   : > { %3447 = vmatpush3.bf16.msra.mxu1 %v3733_v44 }
 0x18d   : > { %3520 = vmatprep.subr.bf16.mxu1 %v3712_v28 }
 0x18e   : > { %3463 = vmatpush3.bf16.msra.mxu0 %v3718_v15 }
 0x18f   : > { %3464 = vmatprep.subr.bf16.mxu0 %v3722_v52  ;;  %2795 = vmatmul.mubr.bf16.vlgmr.msra.gmra.mrb[24].mxu1 %v3097_v21 }
 0x190   : > { %2802 = vmatprep.mubr.bf16.mxu1 %v3114_v62  ;;  %3528 = vmatpush3.bf16.msra.mxu1 %v3714_v60 }
 0x191   : > { %2755 = vmatmul.mubr.bf16.gmra.mrb[36].mxu0 %v3111_v25  ;;  %3521 = vmatprep.subr.bf16.mxu1 %v3717_v32 }
 0x192   : > { %3465 = vmatpush3.bf16.msra.mxu0 %v3723_v8  ;;  %2842 = vmatprep.mubr.bf16.mxu0 %v3100_v53 }
 0x193   : > { %3466 = vmatprep.subr.bf16.mxu0 %v3726_v36 }
 0x194   : > { %3529 = vmatpush3.bf16.msra.mxu1 %v3718_v15 }
 0x195   : > { %3522 = vmatprep.subr.bf16.mxu1 %v3722_v52 }
 0x196   : > { %3467 = vmatpush3.bf16.msra.mxu0 %v3727_v45 }
 0x197   : > { %3468 = vmatprep.subr.bf16.mxu0 %v3730_v56  ;;  %2803 = vmatmul.mubr.bf16.gmra.mrb[28].mxu1 %v3113_v3 }
 0x198   : > { %3530 = vmatpush3.bf16.msra.mxu1 %v3723_v8  ;;  %2850 = vmatprep.mubr.bf16.mxu1 %v3116_v19 }
 0x199   : > { %3523 = vmatprep.subr.bf16.mxu1 %v3726_v36 }
 0x19a   : > { %3469 = vmatpush3.bf16.msra.mxu0 %v3731_v59 }
 0x19b   : > { %3470 = vmatprep.subr.bf16.mxu0 %v3734_v2 }
 0x19c   : > { %3531 = vmatpush3.bf16.msra.mxu1 %v3727_v45 }
 0x19d   : > { %3524 = vmatprep.subr.bf16.mxu1 %v3730_v56 }
 0x19e   : > { %3471 = vmatpush3.bf16.msra.mxu0 %v3735_v18 }
 0x19f   : > { %3472 = vmatprep.subr.bf16.mxu0 %v3737_v55 }
 0x1a0   : > { %3532 = vmatpush3.bf16.msra.mxu1 %v3731_v59 }
 0x1a1   : > { %3525 = vmatprep.subr.bf16.mxu1 %v3734_v2 }
 0x1a2   : > { %3473 = vmatpush3.bf16.msra.mxu0 %v3738_v35 }
 0x1a3   : > { %3474 = vmatprep.subr.bf16.mxu0 %v3739_v20 }
 0x1a4   : > { %3533 = vmatpush3.bf16.msra.mxu1 %v3735_v18 }
 0x1a5   : > { %3526 = vmatprep.subr.bf16.mxu1 %v3737_v55 }
 0x1a6   : > { %3475 = vmatpush3.bf16.msra.mxu0 %v3740_v58 }
 0x1a8   : > { %3534 = vmatpush3.bf16.msra.mxu1 %v3738_v35 }
 0x1a9   : > { %2843 = vmatmul.mubr.bf16.vlgmr.msra.gmra.mrb[40].mxu0 %v3099_v16  ;;  %3527 = vmatprep.subr.bf16.mxu1 %v3739_v20 }
 0x1ac   : > { %3535 = vmatpush3.bf16.msra.mxu1 %v3740_v58 }
 0x1af   : > { %2851 = vmatmul.mubr.bf16.vlgmr.msra.gmra.mrb[32].mxu1 %v3115_v39 }
 0x1ff   : > { %v3280_v42 = vpop.f32.mrb[0].mxu1 }
 0x200   : > { %v3281_v47 = vpop.f32.mrb[1].mxu1 }
 0x201   : > { %v3282_v4 = vadd.f32 %v3281_v47, %v3280_v42  ;;  %v3283_v40 = vpop.f32.mrb[2].mxu1 }
 0x202   : > { %v3284_v43 = vpop.f32.mrb[3].mxu1 }
 0x203   : > { %v3285_v10 = vadd.f32 %v3284_v43, %v3283_v40  ;;  %v2509_v46 = vadd.f32 %v3282_v4, %v3084_v6 }
 0x205   : > { %v2512_v29 = vadd.f32 %v3285_v10, %v3084_v6 }
 0x207   : > { %v3286_v5 = vpop.f32.mrb[4].mxu1 }
 0x208   : > { %v3287_v41 = vpop.f32.mrb[5].mxu1 }
 0x209   : > { %v3288_v37 = vadd.f32 %v3287_v41, %v3286_v5  ;;  %v3289_v7 = vpop.f32.mrb[6].mxu1 }
 0x20a   : > { %v3290_v48 = vpop.f32.mrb[7].mxu1 }
 0x20b   : > { %v2517_v54 = vadd.f32 %v3288_v37, %v3084_v6 }
 0x21a   : > { %v3308_v61 = vpop.f32.mrb[16].mxu0 }
 0x21b   : > { %v3309_v13 = vpop.f32.mrb[17].mxu0 }
 0x21c   : > { %v3310_v50 = vadd.f32 %v3309_v13, %v3308_v61  ;;  %v3311_v24 = vpop.f32.mrb[18].mxu0 }
 0x21d   : > { %v3312_v63 = vpop.f32.mrb[19].mxu0 }
 0x21e   : > { %v2557_v38 = vadd.f32 %v3310_v50, %v2509_v46  ;;  %v3313_v17 = vadd.f32 %v3312_v63, %v3311_v24 }
 0x21f   : > { %v3336_v9 = vpop.f32.mrb[8].mxu1 }
 0x220   : > { %v3337_v33 = vpop.f32.mrb[9].mxu1  ;;  %v2560_v31 = vadd.f32 %v3313_v17, %v2512_v29 }
 0x221   : > { %v3338_v14 = vadd.f32 %v3337_v33, %v3336_v9  ;;  %v3339_v51 = vpop.f32.mrb[10].mxu1 }
 0x222   : > { %v3340_v26 = vpop.f32.mrb[11].mxu1 }
 0x223   : > { %v2605_v30 = vadd.f32 %v3338_v14, %v2557_v38  ;;  %v3341_v0 = vadd.f32 %v3340_v26, %v3339_v51 }
 0x225   : > { %v2608_v11 = vadd.f32 %v3341_v0, %v2560_v31 }
 0x226   : > { %v3314_v34 = vpop.f32.mrb[20].mxu0 }
 0x227   : > { %v3315_v28 = vpop.f32.mrb[21].mxu0 }
 0x228   : > { %v3316_v1 = vadd.f32 %v3315_v28, %v3314_v34  ;;  %v3317_v60 = vpop.f32.mrb[22].mxu0  ;;  %v3342_v32 = vpop.f32.mrb[12].mxu1 }
 0x229   : > { %v3318_v12 = vpop.f32.mrb[23].mxu0  ;;  %v3343_v44 = vpop.f32.mrb[13].mxu1 }
 0x22a   : > { %v2565_v49 = vadd.f32 %v3316_v1, %v2517_v54  ;;  %v3344_v15 = vadd.f32 %v3343_v44, %v3342_v32  ;;  %v3345_v52 = vpop.f32.mrb[14].mxu1 }
 0x22b   : > { %v3346_v27 = vpop.f32.mrb[15].mxu1 }
 0x22c   : > { %v2613_v21 = vadd.f32 %v3344_v15, %v2565_v49 }
 0x23c   : > { %v3364_v57 = vpop.f32.mrb[24].mxu0 }
 0x23d   : > { %v3365_v22 = vpop.f32.mrb[25].mxu0 }
 0x23e   : > { %v3366_v8 = vadd.f32 %v3365_v22, %v3364_v57  ;;  %v3367_v62 = vpop.f32.mrb[26].mxu0 }
 0x23f   : > { %v3368_v25 = vpop.f32.mrb[27].mxu0 }
 0x240   : > { %v2653_v36 = vadd.f32 %v3366_v8, %v2605_v30  ;;  %v3369_v53 = vadd.f32 %v3368_v25, %v3367_v62  ;;  %v2869_v62 = vpop.permute.xlu1 %2868 }
 0x241   : > { %v3392_v45 = vpop.f32.mrb[16].mxu1 }
 0x242   : > { %v2656_v56 = vadd.f32 %v3369_v53, %v2608_v11  ;;  %v3393_v23 = vpop.f32.mrb[17].mxu1 }
 0x243   : > { %v3394_v3 = vadd.f32 %v3393_v23, %v3392_v45  ;;  %v3395_v59 = vpop.f32.mrb[18].mxu1 }
 0x244   : > { %v3370_v19 = vpop.f32.mrb[28].mxu0  ;;  %v3396_v2 = vpop.f32.mrb[19].mxu1 }
 0x245   : > { %v3371_v18 = vpop.f32.mrb[29].mxu0  ;;  %v2701_v55 = vadd.f32 %v3394_v3, %v2653_v36  ;;  %v3397_v35 = vadd.f32 %v3396_v2, %v3395_v59 }
 0x246   : > { %v3372_v20 = vadd.f32 %v3371_v18, %v3370_v19  ;;  %v3373_v58 = vpop.f32.mrb[30].mxu0 }
 0x247   : > { %v3374_v16 = vpop.f32.mrb[31].mxu0  ;;  %v2704_v39 = vadd.f32 %v3397_v35, %v2656_v56 }
 0x248   : > { %v2661_v42 = vadd.f32 %v3372_v20, %v2613_v21  ;;  %v2864_v21 = vpop.permute.xlu0 %2863 }
 0x249   : > { %v3398_v47 = vpop.f32.mrb[20].mxu1 }
 0x24a   : > { %v3399_v4 = vpop.f32.mrb[21].mxu1 }
 0x24b   : > { %v3400_v40 = vadd.f32 %v3399_v4, %v3398_v47  ;;  %v3401_v43 = vpop.f32.mrb[22].mxu1 }
 0x24c   : > { %v3402_v10 = vpop.f32.mrb[23].mxu1  ;;  %v2874_v2 = vpop.permute.xlu0 %2873 }
 0x24d   : > { %v2709_v5 = vadd.f32 %v3400_v40, %v2661_v42 }
 0x25c   : > { %v3420_v41 = vpop.f32.mrb[32].mxu0 }
 0x25d   : > { %v3421_v37 = vpop.f32.mrb[33].mxu0 }
 0x25e   : > { %v3422_v7 = vadd.f32 %v3421_v37, %v3420_v41  ;;  %v3423_v48 = vpop.f32.mrb[34].mxu0 }
 0x25f   : > { %v3424_v6 = vpop.f32.mrb[35].mxu0 }
 0x260   : > { %v2749_v61 = vadd.f32 %v3422_v7, %v2701_v55  ;;  %v3425_v13 = vadd.f32 %v3424_v6, %v3423_v48 }
 0x262   : > { %v2752_v46 = vadd.f32 %v3425_v13, %v2704_v39  ;;  %v3448_v50 = vpop.f32.mrb[24].mxu1 }
 0x263   : > { %v3449_v24 = vpop.f32.mrb[25].mxu1 }
 0x264   : > { %v3426_v63 = vpop.f32.mrb[36].mxu0  ;;  %v3450_v29 = vadd.f32 %v3449_v24, %v3448_v50  ;;  %v3451_v38 = vpop.f32.mrb[26].mxu1 }
 0x265   : > { %v3427_v17 = vpop.f32.mrb[37].mxu0  ;;  %v3452_v9 = vpop.f32.mrb[27].mxu1 }
 0x266   : > { %v3428_v33 = vadd.f32 %v3427_v17, %v3426_v63  ;;  %v3429_v31 = vpop.f32.mrb[38].mxu0  ;;  %v2797_v14 = vadd.f32 %v3450_v29, %v2749_v61  ;;  %v3453_v51 = vadd.f32 %v3452_v9, %v3451_v38 }
 0x267   : > { %v3430_v26 = vpop.f32.mrb[39].mxu0 }
 0x268   : > { %v2757_v30 = vadd.f32 %v3428_v33, %v2709_v5  ;;  %v2800_v0 = vadd.f32 %v3453_v51, %v2752_v46 }
 0x26a   : > { %v3454_v34 = vpop.f32.mrb[28].mxu1 }
 0x26b   : > { %v3455_v28 = vpop.f32.mrb[29].mxu1 }
 0x26c   : > { %v3456_v11 = vadd.f32 %v3455_v28, %v3454_v34  ;;  %v3457_v54 = vpop.f32.mrb[30].mxu1 }
 0x26d   : > { %v3458_v1 = vpop.f32.mrb[31].mxu1 }
 0x26e   : > { %v2805_v60 = vadd.f32 %v3456_v11, %v2757_v30 }
 0x27c   : > { %v3476_v12 = vpop.f32.mrb[40].mxu0 }
 0x27d   : > { %v3477_v32 = vpop.f32.mrb[41].mxu0 }
 0x27e   : > { %v3478_v49 = vadd.f32 %v3477_v32, %v3476_v12  ;;  %v3479_v44 = vpop.f32.mrb[42].mxu0 }
 0x27f   : > { %v3480_v15 = vpop.f32.mrb[43].mxu0 }
 0x280   : > { %v2845_v52 = vadd.f32 %v3478_v49, %v2797_v14  ;;  %v3481_v27 = vadd.f32 %v3480_v15, %v3479_v44 }
 0x282   : > { %v2876_v57 = vmul.f32 %v2864_v21, %v2845_v52  ;;  %2901 = vst [vmem:[%s312_s10] sm:$0xff] %v2845_v52  ;;  %v2848_v22 = vadd.f32 %v3481_v27, %v2800_v0  ;;  %v3482_v8 = vpop.f32.mrb[32].mxu1 }
 0x283   : > { %v3483_v25 = vpop.f32.mrb[33].mxu1 }
 0x284   : > { %v2877_v36 = vmul.f32 %v2869_v62, %v2848_v22  ;;  %2902 = vst [vmem:[%s312_s10 + $0x8] sm:$0xff] %v2848_v22  ;;  %v3484_v53 = vadd.f32 %v3483_v25, %v3482_v8  ;;  %v3485_v45 = vpop.f32.mrb[34].mxu1  ;;  %v2887_v23 = vmul.f32 %v2876_v57, %v2845_v52 }
 0x285   : > { %v3486_v56 = vpop.f32.mrb[35].mxu1 }
 0x286   : > { %v2879_v3 = vadd.f32 %v2877_v36, %v2876_v57  ;;  %v2888_v59 = vmul.f32 %v2877_v36, %v2848_v22  ;;  %v2853_v19 = vadd.f32 %v3484_v53, %v2805_v60 }
 0x288   : > { %v2890_v18 = vadd.f32 %v2888_v59, %v2887_v23  ;;  %v2878_v55 = vmul.f32 %v2874_v2, %v2853_v19  ;;  %2903 = vst [vmem:[%s312_s10 + $0x10] sm:$0xff] %v2853_v19 }
 0x28a   : > { %v2880_v35 = vadd.f32 %v2879_v3, %v2878_v55  ;;  %v2889_v20 = vmul.f32 %v2878_v55, %v2853_v19 }
 0x28c   : > { %v2881_v58 = vrot.slane %v2880_v35, 4  ;;  %v2891_v16 = vadd.f32 %v2890_v18, %v2889_v20 }
 0x28e   : > { %v2882_v39 = vadd.f32 %v2881_v58, %v2880_v35  ;;  %v2892_v42 = vrot.slane %v2891_v16, 4 }
 0x290   : > { %v2883_v47 = vrot.slane %v2882_v39, 2  ;;  %v2893_v4 = vadd.f32 %v2892_v42, %v2891_v16 }
 0x292   : > { %v2884_v40 = vadd.f32 %v2883_v47, %v2882_v39  ;;  %v2894_v43 = vrot.slane %v2893_v4, 2 }
 0x294   : > { %v2885_v10 = vrot.slane %v2884_v40, 1  ;;  %v2895_v5 = vadd.f32 %v2894_v43, %v2893_v4 }
 0x296   : > { %v2896_v41 = vrot.slane %v2895_v5, 1  ;;  %v2886_v37 = vadd.f32 %v2885_v10, %v2884_v40 }
 0x298   : > { %v2897_v7 = vadd.f32 %v2896_v41, %v2895_v5 }
 0x29a   : > { %v2899_v48 = vsel %vm981_vm2, %v2886_v37, %v2897_v7 }
 0x29b   : > { %2900 = vst [vmem:[%s316_s14] sm:$0x3] %v2899_v48 }
 0x29c PF: > { %s19_s27 = sadd.s32 1, %s3766_s27  }
 0x29d   : > { %p16_p4 = scmp.ge.s32.totalorder %s19_s27, 4  }
 0x29f   :  { %18 = sbr.rel (!%p16_p4) target bundleno = 1 (0x1), region = 90 }

// kernel: generator_forward.4
= control target key start
LH: loop header
LB: loop body
LE: loop exit
PB: predicated region body
PF: predicated region fallthrough
CT: control target
= control target key end

     0   :  { %s3540_s24 = smov 0   ;;  %s4315_s0 = inlined_call_operand.vmem [shape: f32[2,24,128], index: 0, kind: input, shape index: {}]   ;;  %s4316_s1 = inlined_call_operand.vmem [shape: f32[1,128], index: 1, kind: input, shape index: {}]   ;;  %s4317_s2 = inlined_call_operand.vmem [shape: f32[1,128], index: 2, kind: input, shape index: {}]   ;;  %s4318_s3 = inlined_call_operand.vmem [shape: bf16[4,512,128], index: 3, kind: input, shape index: {}]   ;;  %s4319_s4 = inlined_call_operand.vmem [shape: f32[1,128], index: 4, kind: input, shape index: {}]   ;;  %s4320_s5 = inlined_call_operand.vmem [shape: f32[24,1], index: 5, kind: input, shape index: {}]   ;;  %s4321_s6 = inlined_call_operand.vmem [shape: f32[2,4,24,128], index: 6, kind: output, shape index: {0}]   ;;  %s4322_s7 = inlined_call_operand.vmem [shape: f32[2,2,128], index: 7, kind: output, shape index: {1}]  }
   0x1 LB: > { %s2702_s25 = sadd.s32 4294967295, %s3497_s24   ;;  %p2706_p0 = scmp.ge.s32.totalorder %s3497_s24, 1  ;;  %s3497_s24 = sphi %s3540_s24, %s18_s24  }
   0x2   : > { %p240_p1 = scmp.lt.s32.totalorder %s3497_s24, 3 }
   0x4   : > { %p241_p2 = pnand %p2706_p0, %p240_p1 }
   0x5   : > { %v291_v0 = vld [vmem:[%s4320_s5] sm:$0xff] (!%p241_p2)  ;;  %v293_v1 = vld [vmem:[%s4320_s5 + $0x10] sm:$0xff] (!%p241_p2)  ;;  %v3499_v2 = vmov (!%p241_p2), 0   ;;  %v292_v3 = vld [vmem:[%s4320_s5 + $0x8] sm:$0xff] (!%p241_p2)  ;;  %p276_p3 = scmp.lt.s32.totalorder (!%p241_p2), %s2702_s25, 1  ;;  %vm389_vm1 = vcmask (!%p241_p2), 1043459  }
   0x6   : > { %244 = sbr.rel (%p241_p2) target bundleno = 540 (0x21c), region = 44  ;;  %3329 = vset.pattern.permute.xlu0 (!%p241_p2), %v3499_v2  ;;  %338 = vst [vmem:[#allocation2] sm:$0xf] (!%p241_p2), %v3499_v2  ;;  %342 = vst [vmem:[#allocation2 + $0x10] sm:$0xf] (!%p241_p2), %v3499_v2  ;;  %3330 = vset.pattern.permute.xlu1 (!%p241_p2), %v3499_v2  ;;  %v3331_v4 = vld [vmem:[%s4318_s3 + $0x40] sm:$0xff] (!%p241_p2)  }
   0x7   : > { %339 = vst [vmem:[#allocation2 + $0x4] sm:$0xf] (!%p241_p2), %v3499_v2  ;;  %340 = vst [vmem:[#allocation2 + $0x8] sm:$0xf] (!%p241_p2), %v3499_v2  ;;  %322 = vperm.xlu0 (!%p241_p2), %3329, %v291_v0   ;;  %332 = vperm.xlu1 (!%p241_p2), %3330, %v293_v1   ;;  %v3332_v5 = vld [vmem:[%s4318_s3] sm:$0xff] (!%p241_p2)   ;;  %v3335_v8 = vld [vmem:[%s4318_s3 + $0x48] sm:$0xff] (!%p241_p2)  }
   0x8   : > { %341 = vst [vmem:[#allocation2 + $0xc] sm:$0xf] (!%p241_p2), %v3499_v2  ;;  %3094 = vmatprep.subr.bf16.mxu0 (!%p241_p2), %v3331_v4  ;;  %v3333_v6 = vld [vmem:[%s4318_s3 + $0xc0] sm:$0xff] (!%p241_p2)   ;;  %v3336_v9 = vld [vmem:[%s4318_s3 + $0x8] sm:$0xff] (!%p241_p2)   ;;  %v3339_v12 = vld [vmem:[%s4318_s3 + $0x50] sm:$0xff] (!%p241_p2)   ;;  %vm397_vm3 = vcmask (!%p241_p2), 1043456  }
   0x9   : > { %3095 = vmatpush3.bf16.msra.mxu0 (!%p241_p2), %v3332_v5  ;;  %v3334_v7 = vld [vmem:[%s4318_s3 + $0x80] sm:$0xff] (!%p241_p2)   ;;  %3122 = vmatprep.subr.bf16.mxu1 (!%p241_p2), %v3333_v6  ;;  %v3337_v10 = vld [vmem:[%s4318_s3 + $0xc8] sm:$0xff] (!%p241_p2)   ;;  %v3340_v13 = vld [vmem:[%s4318_s3 + $0x10] sm:$0xff] (!%p241_p2)   ;;  %vm390_vm0 = vsmask.f32 (!%p241_p2), 7950  ;;  %vm1001_vm8 = vcmask (!%p241_p2), 1042432  }
   0xa   : > { %3123 = vmatpush3.bf16.msra.mxu1 (!%p241_p2), %v3334_v7  ;;  %3096 = vmatprep.subr.bf16.mxu0 (!%p241_p2), %v3335_v8  ;;  %v3338_v11 = vld [vmem:[%s4318_s3 + $0x88] sm:$0xff] (!%p241_p2)   ;;  %v3341_v14 = vld [vmem:[%s4318_s3 + $0xd0] sm:$0xff] (!%p241_p2)   ;;  %v3343_v16 = vld [vmem:[%s4318_s3 + $0x58] sm:$0xff] (!%p241_p2)   ;;  %vm353_vm4 = vsmask.f32 (!%p241_p2), 3328  ;;  %vm1002_vm9 = vcmask (!%p241_p2), 1046532  }
   0xb   : > { %327 = vperm.xlu0 (!%p241_p2), %3329, %v292_v3   ;;  %3124 = vmatprep.subr.bf16.mxu1 (!%p241_p2), %v3337_v10  ;;  %v3342_v15 = vld [vmem:[%s4318_s3 + $0x90] sm:$0xff] (!%p241_p2)   ;;  %v3344_v17 = vld [vmem:[%s4318_s3 + $0x18] sm:$0xff] (!%p241_p2)   ;;  %v3347_v20 = vld [vmem:[%s4318_s3 + $0x60] sm:$0xff] (!%p241_p2)   ;;  %vm354_vm5 = vsmask.f32 (!%p241_p2), 7440  ;;  %vm460_vm10 = vcmask (!%p241_p2), 1040384  }
   0xc   : > { %v3345_v18 = vld [vmem:[%s4318_s3 + $0xd8] sm:$0xff] (!%p241_p2)   ;;  %v3348_v21 = vld [vmem:[%s4318_s3 + $0x20] sm:$0xff] (!%p241_p2)   ;;  %v3351_v24 = vld [vmem:[%s4318_s3 + $0x68] sm:$0xff] (!%p241_p2)   ;;  %vm461_vm11 = vcmask (!%p241_p2), 1044484   ;;  %vm483_vm12 = vsmask.f32 (!%p241_p2), 256 }
   0xd   : > { %3097 = vmatpush3.bf16.msra.mxu0 %v3336_v9  ;;  %v3346_v19 = vld [vmem:[%s4318_s3 + $0x98] sm:$0xff]   ;;  %v3349_v22 = vld [vmem:[%s4318_s3 + $0xe0] sm:$0xff]   ;;  %v3352_v25 = vld [vmem:[%s4318_s3 + $0x28] sm:$0xff]   ;;  %s4336_s25 = smov (!%p276_p3, %s2702_s25), 1  ;;  %vm484_vm13 = vsmask.f32 4368 }
   0xe   : > { %3125 = vmatpush3.bf16.msra.mxu1 %v3338_v11  ;;  %3098 = vmatprep.subr.bf16.mxu0 %v3339_v12  ;;  %v3350_v23 = vld [vmem:[%s4318_s3 + $0xa0] sm:$0xff]   ;;  %v3353_v26 = vld [vmem:[%s4318_s3 + $0xe8] sm:$0xff]   ;;  %v3355_v28 = vld [vmem:[%s4318_s3 + $0x70] sm:$0xff]   ;;  %s3318_s14 = smul.u32 24, %s4336_s25  ;;  %s2709_s29 = sshll.u32 %s4336_s25, 1 }
   0xf   : > { %3126 = vmatprep.subr.bf16.mxu1 %v3341_v14  ;;  %v3354_v27 = vld [vmem:[%s4318_s3 + $0xa8] sm:$0xff]   ;;  %v3356_v29 = vld [vmem:[%s4318_s3 + $0x30] sm:$0xff]   ;;  %v3359_v32 = vld [vmem:[%s4318_s3 + $0x78] sm:$0xff]   ;;  %s3319_s23 = smul.u32 96, %s4336_s25  ;;  %s289_s9 = scalar_lea.vmem %s4322_s7, %s2709_s29 }
  0x10   : > { %v3357_v30 = vld [vmem:[%s4318_s3 + $0xf0] sm:$0xff]   ;;  %v3360_v33 = vld [vmem:[%s4318_s3 + $0x38] sm:$0xff]   ;;  %v3365_v36 = vld [vmem:[%s4318_s3 + $0x140] sm:$0xff]   ;;  %s280_s17 = scalar_lea.vmem %s4315_s0, %s3318_s14 }
  0x11   : > { %3099 = vmatpush3.bf16.msra.mxu0 %v3340_v13  ;;  %v3358_v31 = vld [vmem:[%s4318_s3 + $0xb0] sm:$0xff]   ;;  %v3361_v34 = vld [vmem:[%s4318_s3 + $0xf8] sm:$0xff]   ;;  %v3369_v37 = vld [vmem:[%s4318_s3 + $0x1c0] sm:$0xff]   ;;  %s4271_s28 = scalar_lea.vmem %s4321_s6, %s3319_s23 }
  0x12   : > { %3127 = vmatpush3.bf16.msra.mxu1 %v3342_v15  ;;  %3100 = vmatprep.subr.bf16.mxu0 %v3343_v16  ;;  %v3362_v35 = vld [vmem:[%s4318_s3 + $0xb8] sm:$0xff]   ;;  %v2710_v38 = vld [vmem:[%s4316_s1] ss:$0 sm:$0xff]  ;;  %v296_v40 = vld [vmem:[%s280_s17 + $0x10] sm:$0xff] }
  0x13   : > { %3128 = vmatprep.subr.bf16.mxu1 %v3345_v18  ;;  %v294_v39 = vld [vmem:[%s280_s17] sm:$0xff]  ;;  %v306_v42 = vmul.f32 %v2710_v38, %v296_v40  ;;  %v295_v44 = vld [vmem:[%s280_s17 + $0x8] sm:$0xff]  ;;  %vm391_vm2 = vmand %vm389_vm1, %vm390_vm0  ;;  %vm1568_vm1 = vcmask 1041408  }
  0x14   : > { %v304_v41 = vmul.f32 %v2710_v38, %v294_v39  ;;  %v2711_v43 = vld [vmem:[%s4317_s2] ss:$0 sm:$0xff]  ;;  %v305_v47 = vmul.f32 %v2710_v38, %v295_v44  ;;  %v392_v63 = vld [vmem:[#allocation2] sm:$0x8]  ;;  %vm398_vm6 = vmand %vm397_vm3, %vm353_vm4  ;;  %vm1591_vm3 = vsmask.f32 1280 }
  0x15   : > { %3101 = vmatpush3.bf16.msra.mxu0 %v3344_v17  ;;  %v316_v46 = vadd.f32 %v2711_v43, %v306_v42  ;;  %v399_v9 = vld [vmem:[#allocation2 + $0xc] sm:$0xf]  ;;  %vm3684_vm7 = vmor %vm353_vm4, %vm354_vm5  ;;  %vm1592_vm4 = vsmask.f32 5392 }
  0x16   : > { %3129 = vmatpush3.bf16.msra.mxu1 %v3346_v19  ;;  %3102 = vmatprep.subr.bf16.mxu0 %v3347_v20  ;;  %v314_v45 = vadd.f32 %v2711_v43, %v304_v41  ;;  %v315_v50 = vadd.f32 %v2711_v43, %v305_v47  ;;  %vm3714_vm14 = vmor %vm1001_vm8, %vm1002_vm9  ;;  %v3376_v13 = vld [vmem:[%s4318_s3 + $0x188] sm:$0xff]  }
  0x17   : > { %3130 = vmatprep.subr.bf16.mxu1 %v3349_v22  ;;  %v319_v49 = vmax.f32 %v316_v46, 0.0  ;;  %vm3720_vm15 = vmor %vm460_vm10, %vm461_vm11 }
  0x18   : > { %v317_v48 = vmax.f32 %v314_v45, 0.0  ;;  %v318_v55 = vmax.f32 %v315_v50, 0.0  ;;  %vm3746_vm0 = vmor %vm483_vm12, %vm484_vm13 }
  0x19   : > { %3103 = vmatpush3.bf16.msra.mxu0 %v3348_v21  ;;  %v3690_v21 = vld [vmem:[#allocation2 + $0x10] sm:$0x7] }
  0x1a   : > { %3131 = vmatpush3.bf16.msra.mxu1 %v3350_v23  ;;  %3104 = vmatprep.subr.bf16.mxu0 %v3351_v24 }
  0x1b   : > { %3132 = vmatprep.subr.bf16.mxu1 %v3353_v26 }
  0x1d   : > { %3105 = vmatpush3.bf16.msra.mxu0 %v3352_v25 }
  0x1e   : > { %3133 = vmatpush3.bf16.msra.mxu1 %v3354_v27  ;;  %3106 = vmatprep.subr.bf16.mxu0 %v3355_v28 }
  0x1f   : > { %3134 = vmatprep.subr.bf16.mxu1 %v3357_v30 }
  0x21   : > { %3107 = vmatpush3.bf16.msra.mxu0 %v3356_v29 }
  0x22   : > { %3135 = vmatpush3.bf16.msra.mxu1 %v3358_v31  ;;  %3108 = vmatprep.subr.bf16.mxu0 %v3359_v32  ;;  %v1624_v31 = vshrl.u32 %v3690_v21, 16 }
  0x23   : > { %3136 = vmatprep.subr.bf16.mxu1 %v3361_v34 }
  0x25   : > { %3109 = vmatpush3.bf16.msra.mxu0 %v3360_v33 }
  0x26   : > { %3137 = vmatpush3.bf16.msra.mxu1 %v3362_v35  ;;  %3150 = vmatprep.subr.bf16.mxu0 %v3365_v36  ;;  %v1627_v36 = vshll.u32 %v3690_v21, 16  ;;  %v3402_v21 = vld [vmem:[%s4318_s3 + $0x138] sm:$0xff]  }
  0x27   : > { %3178 = vmatprep.subr.bf16.mxu1 %v3369_v37 }
  0x86   : > { %v3675_v51 = vpop.permute.xlu0 %322  ;;  %v3677_v52 = vpop.permute.xlu1 %332 }
  0x87   : > { %v335_v53 = vmul.f32 %v3675_v51, %v317_v48  ;;  %v337_v54 = vmul.f32 %v3677_v52, %v319_v49 }
  0x89   : > { %v3091_v56 = vpack.c.bf16 %v335_v53, %v335_v53  ;;  %v3093_v57 = vpack.c.bf16 %v337_v54, %v337_v54 }
  0x8a   : > { %v3681_v58 = vpop.permute.xlu0 %327 }
  0x8b   : > { %v357_v59 = vshll.u32 %v3091_v56, 16  ;;  %v360_v60 = vshrl.u32 %v3091_v56, 16  ;;  %v376_v61 = vshll.u32 %v3093_v57, 16  ;;  %v380_v62 = vshrl.u32 %v3093_v57, 16 }
  0x8c   : > { %v336_v0 = vmul.f32 %v3681_v58, %v318_v55 }
  0x8d   : > { %v359_v1 = vrot.slane %v357_v59, 5  ;;  %v362_v2 = vrot.slane %v360_v60, 4  ;;  %v378_v3 = vrot.slane %v376_v61, 5  ;;  %v382_v4 = vrot.slane %v380_v62, 4 }
  0x8e   : > { %v3092_v5 = vpack.c.bf16 %v336_v0, %v336_v0 }
  0x8f   : > { %v363_v6 = vor.u32 %v362_v2, %v359_v1  ;;  %v393_v7 = vsel %vm391_vm2, %v359_v1, %v392_v63  ;;  %v383_v8 = vor.u32 %v382_v4, %v378_v3  ;;  %vm1569_vm2 = vcmask 1045508  }
  0x90   : > { %394 = vst [vmem:[#allocation2] sm:$0x8] %v393_v7  ;;  %v366_v10 = vshll.u32 %v3092_v5, 16  ;;  %v370_v11 = vshrl.u32 %v3092_v5, 16  ;;  %vm3883_vm5 = vmor %vm1568_vm1, %vm1569_vm2 }
  0x91   : > { %v364_v12 = vrot.slane %v363_v6, 4  ;;  %v384_v14 = vrot.slane %v383_v8, 4 }
  0x92   : > { %v368_v15 = vrot.slane %v366_v10, 5  ;;  %v372_v16 = vrot.slane %v370_v11, 4 }
  0x93   : > { %v400_v17 = vsel %vm398_vm6, %v384_v14, %v399_v9  ;;  %vm3935_vm6 = vmor %vm1591_vm3, %vm1592_vm4 }
  0x94   : > { %401 = vst [vmem:[#allocation2 + $0xc] sm:$0xf] %v400_v17  ;;  %v369_v18 = vsel %vm3684_vm7, %v364_v12, %v368_v15  ;;  %v373_v19 = vor.u32 %v372_v16, %v368_v15 }
  0x95   : > { %395 = vst [vmem:[#allocation2 + $0x4] sm:$0xf] %v369_v18 }
  0x96   : > { %v374_v20 = vrot.slane %v373_v19, 4 }
  0x97   : > { %v402_v22 = vld [vmem:[#allocation2] sm:$0xf] }
  0x98   : > { %v408_v23 = vld [vmem:[#allocation2] sm:$0xf]  ;;  %v379_v25 = vsel %vm3684_vm7, %v374_v20, %v378_v3  ;;  %405 = vst [vmem:[#allocation3] sm:$0xf] %v402_v22 }
  0x99   : > { %v949_v24 = vld [vmem:[#allocation2] sm:$0xf]  ;;  %v413_v26 = vshrl.u32 %v408_v23, 16  ;;  %v416_v27 = vshll.u32 %v408_v23, 16  ;;  %396 = vst [vmem:[#allocation2 + $0x8] sm:$0xf] %v379_v25 }
  0x9a   : > { %v954_v28 = vshrl.u32 %v949_v24, 16  ;;  %v3694_v29 = vld [vmem:[#allocation2] sm:$0xe]  ;;  %v957_v30 = vshll.u32 %v949_v24, 16 }
  0x9b   : > { %v415_v32 = vrot.slane %v413_v26, 4  ;;  %v418_v33 = vrot.slane %v416_v27, 5  ;;  %v3697_v35 = vld [vmem:[#allocation2] sm:$0x8]  ;;  %v2758_v38 = vrot.slane %v3694_v29, 9 }
  0x9c   : > { %v956_v34 = vrot.slane %v954_v28, 4  ;;  %v959_v37 = vrot.slane %v957_v30, 5  ;;  %v479_v39 = vld [vmem:[#allocation2] sm:$0x8]  ;;  %v403_v41 = vld [vmem:[#allocation2 + $0x4] sm:$0xf] }
  0x9d   : > { %v3701_v40 = vld [vmem:[#allocation2] sm:$0x8]  ;;  %v409_v42 = vld [vmem:[#allocation2 + $0x4] sm:$0xf]  ;;  %v419_v43 = vor.u32 %v418_v33, %v415_v32  ;;  %406 = vst [vmem:[#allocation3 + $0x10] sm:$0xf] %v403_v41 }
  0x9e   : > { %v950_v44 = vld [vmem:[#allocation2 + $0x4] sm:$0xf]  ;;  %v422_v45 = vshll.u32 %v409_v42, 16  ;;  %v426_v46 = vshrl.u32 %v409_v42, 16  ;;  %v2715_v49 = vrot.slane %v3697_v35, 11  ;;  %v960_v53 = vor.u32 %v959_v37, %v956_v34 }
  0x9f   : > { %v963_v47 = vshll.u32 %v950_v44, 16  ;;  %v994_v48 = vld [vmem:[#allocation2 + $0x4] sm:$0xf]  ;;  %v420_v50 = vrot.slane %v419_v43, 4  ;;  %v967_v54 = vshrl.u32 %v950_v44, 16  ;;  %v487_v55 = vshrl.u32 %v479_v39, 16 }
  0xa0   : > { %v424_v56 = vrot.slane %v422_v45, 5  ;;  %v428_v57 = vrot.slane %v426_v46, 4  ;;  %v1025_v60 = vshrl.u32 %v3701_v40, 16  ;;  %v410_v61 = vld [vmem:[#allocation2 + $0x8] sm:$0xf]  ;;  %v1006_v0 = vrot.slane %v994_v48, 5 }
  0xa1   : > { %v3704_v59 = vrot.slane %v963_v47, 5  ;;  %v951_v62 = vld [vmem:[#allocation2 + $0x8] sm:$0xf]  ;;  %v969_v63 = vrot.slane %v967_v54, 4  ;;  %v432_v3 = vshll.u32 %v410_v61, 16  ;;  %v436_v4 = vshrl.u32 %v410_v61, 16 }
  0xa2   : > { %v425_v1 = vsel %vm3684_vm7, %v420_v50, %v424_v56  ;;  %v429_v2 = vor.u32 %v428_v57, %v424_v56  ;;  %v995_v5 = vld [vmem:[#allocation2 + $0x8] sm:$0xf]  ;;  %v453_v6 = vld [vmem:[#allocation2 + $0x4] sm:$0xf]  ;;  %v3709_v7 = vrot.slane %v960_v53, 4  ;;  %v973_v9 = vshll.u32 %v951_v62, 16 }
  0xa3   : > { %449 = vst [vmem:[#allocation3 + $0x4] sm:$0xf] %v425_v1  ;;  %v970_v8 = vor.u32 %v969_v63, %v3704_v59  ;;  %v977_v10 = vshrl.u32 %v951_v62, 16  ;;  %v434_v14 = vrot.slane %v432_v3, 5  ;;  %v438_v15 = vrot.slane %v436_v4, 4  ;;  %v3432_v57 = vld [vmem:[%s4318_s3 + $0x220] sm:$0xff]  }
  0xa4   : > { %v430_v12 = vrot.slane %v429_v2, 4  ;;  %v1009_v16 = vrot.slane %v995_v5, 5  ;;  %v480_v18 = vld [vmem:[#allocation2 + $0x4] sm:$0xf]  ;;  %v975_v20 = vrot.slane %v973_v9, 5  ;;  %v465_v24 = vrot.slane %v453_v6, 7 }
  0xa5   : > { %v971_v19 = vrot.slane %v970_v8, 4  ;;  %v979_v22 = vrot.slane %v977_v10, 4  ;;  %v454_v23 = vld [vmem:[#allocation2 + $0x8] sm:$0xf]  ;;  %v439_v26 = vor.u32 %v438_v15, %v434_v14  ;;  %v1008_v27 = vrot.slane %v1006_v0, 4  ;;  %v3366_v5 = vld [vmem:[%s4318_s3 + $0x100] sm:$0xff]  }
  0xa6   : > { %v435_v25 = vsel %vm3684_vm7, %v430_v12, %v434_v14  ;;  %v481_v28 = vld [vmem:[#allocation2 + $0x8] sm:$0xf]  ;;  %v2716_v29 = vrot.slane %v487_v55, 11  ;;  %v966_v32 = vsel %vm3684_vm7, %v3709_v7, %v3704_v59  ;;  %v1007_v34 = vsel %vm3714_vm14, %v2758_v38, %v1006_v0  ;;  %v1021_v37 = vld [vmem:[#allocation2 + $0x4] sm:$0xf] }
  0xa7   : > { %v404_v30 = vld [vmem:[#allocation2 + $0x8] sm:$0xf]  ;;  %450 = vst [vmem:[#allocation3 + $0x14] sm:$0xf] %v435_v25  ;;  %v980_v33 = vor.u32 %v979_v22, %v975_v20  ;;  %v466_v35 = vsel %vm3720_vm15, %v2715_v49, %v465_v24  ;;  %v1010_v39 = vsel %vm3714_vm14, %v1008_v27, %v1009_v16  ;;  %v467_v41 = vrot.slane %v465_v24, 4 }
  0xa8   : > { %407 = vst [vmem:[#allocation3 + $0x20] sm:$0xf] %v404_v30  ;;  %v468_v42 = vrot.slane %v454_v23, 7  ;;  %476 = vst [vmem:[#allocation3 + $0x8] sm:$0xf] %v466_v35  ;;  %v492_v43 = vshrl.u32 %v480_v18, 16  ;;  %v976_v46 = vsel %vm3684_vm7, %v971_v19, %v975_v20 }
  0xa9   : > { %v1022_v44 = vld [vmem:[#allocation2 + $0x8] sm:$0xf]  ;;  %v440_v45 = vrot.slane %v439_v26, 4  ;;  %v3738_v47 = vrot.slane %v1009_v16, 4  ;;  %v501_v38 = vshrl.u32 %v481_v28, 16  ;;  %v495_v53 = vshll.u32 %v480_v18, 16 }
  0xaa   : > { %v411_v48 = vld [vmem:[#allocation2 + $0xc] sm:$0x1]  ;;  %v469_v49 = vsel %vm3720_vm15, %v467_v41, %v468_v42  ;;  %v494_v50 = vrot.slane %v492_v43, 7  ;;  %v1030_v54 = vshrl.u32 %v1021_v37, 16  ;;  %v3742_v56 = vrot.slane %v980_v33, 4  ;;  %v523_v12 = vld [vmem:[#allocation3] sm:$0xff] }
  0xab   : > { %v952_v55 = vld [vmem:[#allocation2 + $0xc] sm:$0x1]  ;;  %477 = vst [vmem:[#allocation3 + $0x18] sm:$0xf] %v469_v49  ;;  %v3750_v59 = vrot.slane %v501_v38, 7  ;;  %v504_v61 = vshll.u32 %v481_v28, 16 }
  0xac   : > { %v1039_v62 = vshrl.u32 %v1022_v44, 16  ;;  %v3752_v63 = vld [vmem:[#allocation2 + $0xc] sm:$0x1]  ;;  %v497_v0 = vor.u32 %v495_v53, %v494_v50  ;;  %v3754_v1 = vrot.slane %v1030_v54, 7  ;;  %v1033_v2 = vshll.u32 %v1021_v37, 16 }
  0xad   : > { %v442_v3 = vshll.u32 %v411_v48, 16  ;;  %v455_v4 = vld [vmem:[#allocation2 + $0xc] sm:$0x7]  ;;  %v470_v6 = vrot.slane %v468_v42, 4  ;;  %v499_v7 = vrot.slane %v494_v50, 4  ;;  %v506_v8 = vor.u32 %v504_v61, %v3750_v59 }
  0xae   : > { %v3760_v9 = vrot.slane %v1039_v62, 7  ;;  %v482_v10 = vld [vmem:[#allocation2 + $0xc] sm:$0xf]  ;;  %v525_v14 = vld [vmem:[#allocation3 + $0x10] sm:$0xff]  ;;  %v498_v16 = vsel %vm3746_vm0, %v2716_v29, %v497_v0  ;;  %v3765_v18 = vor.u32 %v1033_v2, %v3754_v1  ;;  %v983_v20 = vshll.u32 %v952_v55, 16 }
  0xaf   : > { %v3363_v15 = vld [vmem:[#allocation3 + $0x4] ss:$16 sps:$4 sm:$0xff]   ;;  %v444_v19 = vrot.slane %v442_v3, 5  ;;  %990 = vst [vmem:[#allocation3] sm:$0xf] %v966_v32  ;;  %v2718_v22 = vcombine.low %v523_v12, %v525_v14  ;;  %v507_v23 = vsel %vm3746_vm0, %v499_v7, %v506_v8  ;;  %v3771_v24 = vrot.slane %v1025_v60, 11 }
  0xb0   : > { %991 = vst [vmem:[#allocation3 + $0x10] sm:$0xf] %v976_v46  ;;  %1017 = vst [vmem:[#allocation3 + $0x4] sm:$0xf] %v1007_v34  ;;  %v1042_v25 = vshll.u32 %v1022_v44, 16  ;;  %v3373_v27 = vld [vmem:[%s4318_s3 + $0x148] sm:$0xff]   ;;  %858 = vmatprep.mubr.bf16.mxu0 %v3363_v15 }
  0xb1   : > { %1018 = vst [vmem:[#allocation3 + $0x14] sm:$0xf] %v1010_v39  ;;  %520 = vst [vmem:[#allocation3 + $0xc] sm:$0xf] %v498_v16  ;;  %v3773_v26 = vld [vmem:[#allocation2 + $0xc] sm:$0xf]  ;;  %v445_v28 = vsel %vm3684_vm7, %v440_v45, %v444_v19  ;;  %859 = vmatmul.mubr.bf16.vlgmr.msra.gmra.mrb[0].mxu0 %v2718_v22  ;;  %v1036_v39 = vsel %vm3746_vm0, %v3771_v24, %v3765_v18 }
  0xb2   : > { %521 = vst [vmem:[#allocation3 + $0x1c] sm:$0xf] %v507_v23  ;;  %v1012_v29 = vrot.slane %v3752_v63, 5  ;;  %v471_v30 = vrot.slane %v455_v4, 7  ;;  %v1496_v32 = vld [vmem:[#allocation2 + $0x4] sm:$0xf]  ;;  %v1044_v60 = vor.u32 %v1042_v25, %v3760_v9  ;;  %3151 = vmatpush3.bf16.msra.mxu0 %v3366_v5 }
  0xb3   : > { %v3781_v33 = vld [vmem:[#allocation2 + $0x8] sm:$0xf]  ;;  %v1037_v40 = vrot.slane %v3754_v1, 4  ;;  %451 = vst [vmem:[#allocation3 + $0x24] sm:$0xf] %v445_v28  ;;  %v510_v34 = vshrl.u32 %v482_v10, 16  ;;  %3152 = vmatprep.subr.bf16.mxu0 %v3373_v27 }
  0xb4   : > { %v1519_v35 = vld [vmem:[#allocation2] sm:$0x8]  ;;  %v1520_v37 = vld [vmem:[#allocation2 + $0x4] sm:$0xf]  ;;  %v985_v41 = vrot.slane %v983_v20, 5  ;;  %v472_v42 = vsel %vm3720_vm15, %v470_v6, %v471_v30  ;;  %v513_v43 = vshll.u32 %v482_v10, 16  ;;  %v1013_v54 = vsel %vm3714_vm14, %v3738_v47, %v1012_v29 }
  0xb5   : > { %v3374_v44 = vld [vmem:[%s4318_s3 + $0x108] sm:$0xff]   ;;  %v3377_v45 = vld [vmem:[%s4318_s3 + $0x150] sm:$0xff]   ;;  %v1495_v46 = vld [vmem:[#allocation2] sm:$0x8]  ;;  %478 = vst [vmem:[#allocation3 + $0x28] sm:$0xf] %v472_v42  ;;  %v1045_v8 = vsel %vm3746_vm0, %v1037_v40, %v1044_v60 }
  0xb6   : > { %v508_v38 = vrot.slane %v3750_v59, 4  ;;  %v512_v48 = vrot.slane %v510_v34, 7  ;;  %v1048_v49 = vshrl.u32 %v3773_v26, 16  ;;  %v1505_v50 = vrot.slane %v1496_v32, 7  ;;  %v3799_v53 = vld [vmem:[#allocation2 + $0x8] sm:$0xf]  ;;  %3153 = vmatpush3.bf16.msra.mxu0 %v3374_v44 }
  0xb7   : > { %v1508_v55 = vrot.slane %v3781_v33, 7  ;;  %v1524_v61 = vshrl.u32 %v1519_v35, 16  ;;  %v1529_v62 = vshrl.u32 %v1520_v37, 16  ;;  %v1061_v63 = vld [vmem:[#allocation2 + $0x4] sm:$0xf]  ;;  %v1051_v2 = vshll.u32 %v3773_v26, 16  ;;  %3154 = vmatprep.subr.bf16.mxu0 %v3377_v45 }
  0xb8   : > { %v1062_v0 = vld [vmem:[#allocation2 + $0x8] sm:$0xf]  ;;  %v3370_v59 = vld [vmem:[%s4318_s3 + $0x180] sm:$0xff]   ;;  %v515_v1 = vor.u32 %v513_v43, %v512_v48  ;;  %v3378_v3 = vld [vmem:[%s4318_s3 + $0x110] sm:$0xff]   ;;  %v2868_v4 = vrot.slane %v1495_v46, 11  ;;  %v1507_v11 = vrot.slane %v1505_v50, 4  ;;  %v986_v27 = vsel %vm3684_vm7, %v3742_v56, %v985_v41 }
  0xb9   : > { %v3812_v47 = vld [vmem:[#allocation2] sm:$0x8]  ;;  %v3814_v5 = vld [vmem:[#allocation2 + $0x4] sm:$0xf]  ;;  %v3816_v6 = vld [vmem:[#allocation2 + $0x8] sm:$0xf] }
  0xba   : > { %v524_v7 = vld [vmem:[#allocation3 + $0x8] sm:$0xff]  ;;  %v3375_v10 = vld [vmem:[%s4318_s3 + $0x1c8] sm:$0xff]   ;;  %v3823_v12 = vrot.slane %v1529_v62, 7  ;;  %v1532_v14 = vshll.u32 %v1520_v37, 16  ;;  %v1538_v15 = vshrl.u32 %v3799_v53, 16  ;;  %v516_v19 = vsel %vm3746_vm0, %v508_v38, %v515_v1  ;;  %v527_v26 = vld [vmem:[#allocation3 + $0x20] sm:$0xff]  ;;  %3155 = vmatpush3.bf16.msra.mxu0 %v3378_v3 }
  0xbb   : > { %v526_v16 = vld [vmem:[#allocation3 + $0x18] sm:$0xff]  ;;  %v1050_v20 = vrot.slane %v1048_v49, 7  ;;  %v3379_v22 = vld [vmem:[#allocation3 + $0x4] ss:$16 sps:$4 sm:$0xff]   ;;  %v1506_v23 = vsel %vm3720_vm15, %v2868_v4, %v1505_v50  ;;  %v1509_v24 = vsel %vm3720_vm15, %v1507_v11, %v1508_v55  ;;  %1058 = vst [vmem:[#allocation3 + $0x8] sm:$0xf] %v1036_v39  ;;  %v2723_v40 = vcombine.high %v527_v26, %v527_v26 }
  0xbc   : > { %v3367_v18 = vld [vmem:[#allocation3 + $0xc] ss:$16 sps:$4 sm:$0xff]   ;;  %1059 = vst [vmem:[#allocation3 + $0x18] sm:$0xf] %v1045_v8  ;;  %v2720_v25 = vcombine.low %v524_v7, %v526_v16  ;;  %522 = vst [vmem:[#allocation3 + $0x2c] sm:$0xf] %v516_v19  ;;  %v1534_v32 = vor.u32 %v1532_v14, %v3823_v12  ;;  %v2722_v56 = vcombine.low %v527_v26, %v527_v26 }
  0xbd   : > { %1064 = vst [vmem:[#allocation3 + $0xc] sm:$0xf] %v1061_v63  ;;  %1065 = vst [vmem:[#allocation3 + $0x1c] sm:$0xf] %v1062_v0  ;;  %v3383_v28 = vld [vmem:[%s4318_s3 + $0x158] sm:$0xff]   ;;  %v2869_v30 = vrot.slane %v1524_v61, 11  ;;  %906 = vmatprep.mubr.bf16.mxu1 %v3367_v18  ;;  %866 = vmatprep.mubr.bf16.mxu0 %v2723_v40  ;;  %v1053_v38 = vor.u32 %v1051_v2, %v1050_v20 }
  0xbe   : > { %v3386_v29 = vld [vmem:[%s4318_s3 + $0x118] sm:$0xff]   ;;  %1516 = vst [vmem:[#allocation3] sm:$0xf] %v1506_v23  ;;  %1517 = vst [vmem:[#allocation3 + $0x10] sm:$0xf] %v1509_v24  ;;  %v3847_v60 = vrot.slane %v1538_v15, 7  ;;  %907 = vmatmul.mubr.bf16.vlgmr.msra.gmra.mrb[0].mxu1 %v2720_v25  ;;  %867 = vmatmul.mubr.bf16.gmra.mrb[4].mxu0 %v2722_v56 }
  0xbf   : > { %992 = vst [vmem:[#allocation3 + $0x20] sm:$0xf] %v986_v27  ;;  %1019 = vst [vmem:[#allocation3 + $0x24] sm:$0xf] %v1013_v54  ;;  %v1541_v34 = vshll.u32 %v3799_v53, 16  ;;  %v3389_v39 = vld [vmem:[%s4318_s3 + $0x160] sm:$0xff]   ;;  %v1535_v41 = vsel %vm3746_vm0, %v2869_v30, %v1534_v32  ;;  %3179 = vmatpush3.bf16.msra.mxu1 %v3370_v59  ;;  %1403 = vmatprep.mubr.bf16.mxu0 %v3379_v22 }
  0xc0   : > { %v1561_v35 = vld [vmem:[#allocation2 + $0x8] sm:$0xf]  ;;  %v3850_v37 = vld [vmem:[#allocation2 + $0xc] sm:$0xf]  ;;  %v2071_v42 = vshrl.u32 %v3812_v47, 16  ;;  %v2076_v43 = vshrl.u32 %v3814_v5, 16  ;;  %3180 = vmatprep.subr.bf16.mxu1 %v3375_v10  ;;  %3156 = vmatprep.subr.bf16.mxu0 %v3383_v28 }
  0xc1   : > { %v2085_v44 = vshrl.u32 %v3816_v6, 16  ;;  %v1587_v45 = vld [vmem:[#allocation2 + $0x4] sm:$0xc]  ;;  %v1046_v46 = vrot.slane %v3760_v9, 4  ;;  %v1536_v48 = vrot.slane %v3823_v12, 4  ;;  %v1543_v49 = vor.u32 %v1541_v34, %v3847_v60  ;;  %v3381_v54 = vld [vmem:[%s4318_s3 + $0x1d0] sm:$0xff]   ;;  %3157 = vmatpush3.bf16.msra.mxu0 %v3386_v29 }
  0xc2   : > { %1557 = vst [vmem:[#allocation3 + $0x4] sm:$0xf] %v1535_v41  ;;  %v1560_v50 = vld [vmem:[#allocation2 + $0x4] sm:$0xc]  ;;  %v3863_v53 = vld [vmem:[#allocation2 + $0x8] sm:$0xf]  ;;  %3158 = vmatprep.subr.bf16.mxu0 %v3389_v39 }
  0xc3   : > { %v3390_v61 = vld [vmem:[%s4318_s3 + $0x120] sm:$0xff]   ;;  %v3871_v9 = vrot.slane %v2076_v43, 7  ;;  %v2079_v62 = vshll.u32 %v3814_v5, 16  ;;  %v3874_v63 = vrot.slane %v2085_v44, 7  ;;  %v1573_v0 = vrot.slane %v1561_v35, 6  ;;  %v3393_v1 = vld [vmem:[%s4318_s3 + $0x168] sm:$0xff]   ;;  %3181 = vmatpush3.bf16.msra.mxu1 %v3376_v13 }
  0xc4   : > { %v1063_v59 = vld [vmem:[#allocation2 + $0xc] sm:$0xf]  ;;  %v1544_v2 = vsel %vm3746_vm0, %v1536_v48, %v1543_v49  ;;  %v1576_v4 = vrot.slane %v3850_v37, 6  ;;  %v1595_v11 = vshrl.u32 %v1587_v45, 16  ;;  %v1598_v47 = vshll.u32 %v1587_v45, 16  ;;  %v3382_v5 = vld [vmem:[%s4318_s3 + $0x190] sm:$0xff]   ;;  %3182 = vmatprep.subr.bf16.mxu1 %v3381_v54 }
  0xc5   : > { %1558 = vst [vmem:[#allocation3 + $0x14] sm:$0xf] %v1544_v2  ;;  %v3891_v7 = vrot.slane %v2071_v42, 11  ;;  %v2088_v8 = vshll.u32 %v3816_v6, 16  ;;  %v2870_v10 = vrot.slane %v1560_v50, 10  ;;  %v1604_v14 = vshrl.u32 %v3863_v53, 16  ;;  %3159 = vmatpush3.bf16.msra.mxu0 %v3390_v61 }
  0xc6   : > { %v1589_v12 = vld [vmem:[#allocation2 + $0xc] sm:$0xf]  ;;  %v528_v15 = vld [vmem:[#allocation3 + $0x28] sm:$0xff]  ;;  %v1054_v16 = vsel %vm3746_vm0, %v1046_v46, %v1053_v38  ;;  %v1575_v18 = vrot.slane %v1573_v0, 4  ;;  %v1597_v19 = vrot.slane %v1595_v11, 6  ;;  %v1600_v20 = vrot.slane %v1598_v47, 7  ;;  %3160 = vmatprep.subr.bf16.mxu0 %v3393_v1 }
  0xc7   : > { %v2725_v22 = vcombine.high %v528_v15, %v528_v15  ;;  %1060 = vst [vmem:[#allocation3 + $0x28] sm:$0xf] %v1054_v16  ;;  %1066 = vst [vmem:[#allocation3 + $0x2c] sm:$0xf] %v1063_v59  ;;  %v3384_v23 = vld [vmem:[#allocation3 + $0xc] ss:$16 sps:$4 sm:$0xff]   ;;  %v2081_v6 = vor.u32 %v2079_v62, %v3871_v9  ;;  %v1574_v24 = vsel %vm3883_vm5, %v2870_v10, %v1573_v0  ;;  %3183 = vmatpush3.bf16.msra.mxu1 %v3382_v5 }
  0xc8   : > { %v3900_v25 = vld [vmem:[#allocation2 + $0x4] sm:$0xc]  ;;  %v2114_v26 = vld [vmem:[#allocation2 + $0x8] sm:$0xf]  ;;  %v2724_v27 = vcombine.low %v528_v15, %v528_v15  ;;  %v3387_v28 = vld [vmem:[%s4318_s3 + $0x1d8] sm:$0xff]   ;;  %v2090_v29 = vor.u32 %v2088_v8, %v3874_v63  ;;  %v1577_v30 = vsel %vm3883_vm5, %v1575_v18, %v1576_v4  ;;  %v1601_v32 = vor.u32 %v1600_v20, %v1597_v19 }
  0xc9   : > { %1584 = vst [vmem:[#allocation3 + $0x8] sm:$0xf] %v1574_v24  ;;  %914 = vmatprep.mubr.bf16.mxu1 %v2725_v22  ;;  %v3388_v40 = vld [vmem:[%s4318_s3 + $0x198] sm:$0xff]   ;;  %v3394_v13 = vld [vmem:[%s4318_s3 + $0x128] sm:$0xff]   ;;  %v3397_v56 = vld [vmem:[%s4318_s3 + $0x170] sm:$0xff]   ;;  %v1606_v34 = vrot.slane %v1604_v14, 6  ;;  %3184 = vmatprep.subr.bf16.mxu1 %v3387_v28 }
  0xca   : > { %1585 = vst [vmem:[#allocation3 + $0x18] sm:$0xf] %v1577_v30  ;;  %v1607_v35 = vshll.u32 %v3863_v53, 16  ;;  %v1614_v39 = vshrl.u32 %v1589_v12, 16  ;;  %v1617_v41 = vshll.u32 %v1589_v12, 16  ;;  %915 = vmatmul.mubr.bf16.gmra.mrb[4].mxu1 %v2724_v27  ;;  %v3391_v42 = vld [vmem:[%s4318_s3 + $0x1e0] sm:$0xff]   ;;  %3161 = vmatpush3.bf16.msra.mxu0 %v3394_v13 }
  0xcb   : > { %v2083_v43 = vrot.slane %v3871_v9, 4  ;;  %v2115_v44 = vld [vmem:[#allocation2 + $0xc] sm:$0xf]  ;;  %v2118_v45 = vshrl.u32 %v3900_v25, 16  ;;  %v2121_v46 = vshll.u32 %v3900_v25, 16  ;;  %v2127_v38 = vshrl.u32 %v2114_v26, 16  ;;  %1451 = vmatprep.mubr.bf16.mxu1 %v3384_v23  ;;  %3162 = vmatprep.subr.bf16.mxu0 %v3397_v56 }
  0xcc   : > { %v2107_v48 = vld [vmem:[#allocation2 + $0x4] sm:$0xf]  ;;  %v1609_v49 = vrot.slane %v1607_v35, 7  ;;  %v1616_v50 = vrot.slane %v1614_v39, 6  ;;  %v1619_v53 = vrot.slane %v1617_v41, 7  ;;  %v2130_v54 = vshll.u32 %v2114_v26, 16  ;;  %3185 = vmatpush3.bf16.msra.mxu1 %v3388_v40 }
  0xcd   : > { %v3926_v61 = vld [vmem:[#allocation3 + $0x4] ss:$16 sps:$4 sm:$0xff]   ;;  %v2082_v9 = vsel %vm3746_vm0, %v3891_v7, %v2081_v6  ;;  %v2091_v62 = vsel %vm3746_vm0, %v2083_v43, %v2090_v29  ;;  %v1602_v1 = vrot.slane %v1601_v32, 4  ;;  %v2129_v2 = vrot.slane %v2127_v38, 6  ;;  %v3392_v11 = vld [vmem:[%s4318_s3 + $0x1a0] sm:$0xff]   ;;  %v3398_v47 = vld [vmem:[%s4318_s3 + $0x130] sm:$0xff]   ;;  %3186 = vmatprep.subr.bf16.mxu1 %v3391_v42 }
  0xce   : > { %v2108_v0 = vld [vmem:[#allocation2 + $0x8] sm:$0xf]  ;;  %2104 = vst [vmem:[#allocation3] sm:$0xf] %v2082_v9  ;;  %2105 = vst [vmem:[#allocation3 + $0x10] sm:$0xf] %v2091_v62  ;;  %v1610_v5 = vor.u32 %v1609_v49, %v1606_v34  ;;  %v3945_v7 = vor.u32 %v1619_v53, %v1616_v50  ;;  %3163 = vmatpush3.bf16.msra.mxu0 %v3398_v47 }
  0xcf   : > { %2110 = vst [vmem:[#allocation3 + $0x4] sm:$0xf] %v2107_v48  ;;  %2111 = vst [vmem:[#allocation3 + $0x14] sm:$0xf] %v2108_v0  ;;  %v2132_v8 = vrot.slane %v2130_v54, 7  ;;  %v2137_v10 = vshrl.u32 %v2115_v44, 16 }
  0xd0   : > { %v3947_v12 = vld [vmem:[#allocation2 + $0x8] sm:$0xf]  ;;  %v3401_v14 = vld [vmem:[%s4318_s3 + $0x178] sm:$0xff]   ;;  %v2140_v15 = vshll.u32 %v2115_v44, 16  ;;  %v3952_v16 = vld [vmem:[#allocation2 + $0x10] sm:$0x3]  ;;  %v1611_v22 = vsel %vm3935_vm6, %v1602_v1, %v1610_v5  ;;  %3187 = vmatpush3.bf16.msra.mxu1 %v3392_v11 }
  0xd1   : > { %v3956_v18 = vrot.slane %v1624_v31, 6  ;;  %v3960_v19 = vrot.slane %v1627_v36, 7  ;;  %v3395_v20 = vld [vmem:[%s4318_s3 + $0x1e8] sm:$0xff]   ;;  %v1612_v23 = vrot.slane %v1610_v5, 4  ;;  %v2120_v6 = vrot.slane %v2118_v45, 6  ;;  %v3399_v56 = vld [vmem:[%s4318_s3 + $0x1f0] sm:$0xff]   ;;  %3164 = vmatprep.subr.bf16.mxu0 %v3401_v14 }
  0xd2   : > { %v2123_v24 = vrot.slane %v2121_v46, 7  ;;  %v3967_v25 = vld [vmem:[#allocation2 + $0x10] sm:$0x7]  ;;  %1635 = vst [vmem:[#allocation3 + $0xc] sm:$0xf] %v1611_v22  ;;  %v2171_v36 = vrot.slane %v3947_v12, 7  ;;  %v3976_v28 = vor.u32 %v2132_v8, %v2129_v2  ;;  %3188 = vmatprep.subr.bf16.mxu1 %v3395_v20  ;;  %3165 = vmatpush3.bf16.msra.mxu0 %v3402_v21 }
  0xd3   : > { %v2161_v31 = vld [vmem:[#allocation2 + $0x4] sm:$0x8]  ;;  %v1498_v26 = vld [vmem:[#allocation2 + $0xc] sm:$0x7]  ;;  %v1621_v27 = vsel %vm3935_vm6, %v1612_v23, %v3945_v7  ;;  %v2139_v29 = vrot.slane %v2137_v10, 6  ;;  %v2142_v30 = vrot.slane %v2140_v15, 7  ;;  %v1630_v39 = vor.u32 %v3960_v19, %v3956_v18 }
  0xd4   : > { %v3978_v32 = vld [vmem:[#allocation2 + $0xc] sm:$0xf]  ;;  %v3406_v34 = vld [vmem:[%s4318_s3 + $0x240] sm:$0xff]   ;;  %1636 = vst [vmem:[#allocation3 + $0x1c] sm:$0xf] %v1621_v27  ;;  %v1579_v35 = vrot.slane %v3952_v16, 6  ;;  %v2124_v44 = vor.u32 %v2123_v24, %v2120_v6 }
  0xd5   : > { %v1522_v40 = vld [vmem:[#allocation2 + $0xc] sm:$0xf]  ;;  %v2147_v41 = vshrl.u32 %v3967_v25, 16  ;;  %v2150_v42 = vshll.u32 %v3967_v25, 16  ;;  %v3994_v43 = vld [vmem:[#allocation3 + $0x20] sm:$0xff]  ;;  %v2980_v45 = vrot.slane %v2161_v31, 11  ;;  %v4010_v0 = vor.u32 %v2142_v30, %v2139_v29  ;;  %3206 = vmatprep.subr.bf16.mxu0 %v3406_v34 }
  0xd6   : > { %v3396_v13 = vld [vmem:[%s4318_s3 + $0x1a8] sm:$0xff]   ;;  %v1510_v46 = vrot.slane %v1508_v55, 4  ;;  %v1511_v38 = vrot.slane %v1498_v26, 7  ;;  %v2173_v49 = vrot.slane %v2171_v36, 4  ;;  %v2174_v50 = vrot.slane %v3978_v32, 7  ;;  %v3408_v9 = vld [vmem:[%s4318_s3 + $0x200] sm:$0xff]  }
  0xd7   : > { %v3998_v48 = vld [vmem:[#allocation2 + $0xc] sm:$0xf]  ;;  %v1547_v53 = vshrl.u32 %v1522_v40, 16  ;;  %v1550_v54 = vshll.u32 %v1522_v40, 16  ;;  %v4004_v62 = vld [vmem:[#allocation3 + $0x28] sm:$0xff]  ;;  %v2135_v55 = vrot.slane %v3976_v28, 4  ;;  %3189 = vmatpush3.bf16.msra.mxu1 %v3396_v13  ;;  %v2830_v14 = vcombine.high %v3994_v43, %v3994_v43 }
  0xd8   : > { %v3413_v33 = vld [vmem:[%s4318_s3 + $0x248] sm:$0xff]   ;;  %v1512_v1 = vsel %vm3720_vm15, %v1510_v46, %v1511_v38  ;;  %v1578_v2 = vrot.slane %v1576_v4, 4  ;;  %v3405_v11 = vld [vmem:[#allocation3] ss:$16 sps:$4 sm:$0xff]   ;;  %v1545_v47 = vrot.slane %v3847_v60, 4  ;;  %v2094_v8 = vshrl.u32 %v3998_v48, 16  ;;  %3190 = vmatprep.subr.bf16.mxu1 %v3399_v56 }
  0xd9   : > { %1518 = vst [vmem:[#allocation3 + $0x20] sm:$0xf] %v1512_v1  ;;  %v1549_v5 = vrot.slane %v1547_v53, 7  ;;  %v1622_v10 = vrot.slane %v3945_v7, 4  ;;  %v3400_v12 = vld [vmem:[%s4318_s3 + $0x1b0] sm:$0xff]   ;;  %v2125_v37 = vrot.slane %v2124_v44, 4  ;;  %1404 = vmatmul.mubr.bf16.vlgmr.msra.gmra.mrb[8].mxu0 %v3405_v11  ;;  %v2172_v7 = vsel %vm3720_vm15, %v2980_v45, %v2171_v36 }
  0xda   : > { %v1580_v4 = vsel %vm3883_vm5, %v1578_v2, %v1579_v35  ;;  %v2149_v15 = vrot.slane %v2147_v41, 6  ;;  %v3403_v60 = vld [vmem:[%s4318_s3 + $0x1f8] sm:$0xff]   ;;  %v2152_v19 = vrot.slane %v2150_v42, 7  ;;  %1411 = vmatprep.mubr.bf16.mxu0 %v2830_v14  ;;  %3207 = vmatpush3.bf16.msra.mxu0 %v3408_v9  ;;  %v3414_v3 = vld [vmem:[%s4318_s3 + $0x208] sm:$0xff]   ;;  %v2144_v23 = vsel %vm3935_vm6, %v2135_v55, %v4010_v0  ;;  %v2164_v24 = vld [vmem:[#allocation2 + $0x10] sm:$0x7] }
  0xdb   : > { %v1552_v16 = vor.u32 %v1550_v54, %v1549_v5  ;;  %1586 = vst [vmem:[#allocation3 + $0x28] sm:$0xf] %v1580_v4  ;;  %v1631_v18 = vsel %vm3935_vm6, %v1622_v10, %v1630_v39  ;;  %v4036_v20 = vld [vmem:[#allocation3 + $0xc] ss:$16 sps:$4 sm:$0xff]   ;;  %v2134_v22 = vsel %vm3935_vm6, %v2125_v37, %v3976_v28  ;;  %v2175_v6 = vsel %vm3720_vm15, %v2173_v49, %v2174_v50  ;;  %v3404_v26 = vld [vmem:[%s4318_s3 + $0x1b8] sm:$0xff]   ;;  %v3415_v42 = vld [vmem:[%s4318_s3 + $0x2c8] sm:$0xff]  }
  0xdc   : > { %1637 = vst [vmem:[#allocation3 + $0x2c] sm:$0xf] %v1631_v18  ;;  %3208 = vmatprep.subr.bf16.mxu0 %v3413_v33  ;;  %v3418_v25 = vld [vmem:[%s4318_s3 + $0x250] sm:$0xff]   ;;  %2158 = vst [vmem:[#allocation3 + $0x8] sm:$0xf] %v2134_v22  ;;  %v2096_v31 = vrot.slane %v2094_v8, 7  ;;  %3191 = vmatpush3.bf16.msra.mxu1 %v3400_v12  ;;  %v2153_v29 = vor.u32 %v2152_v19, %v2149_v15  ;;  %v2829_v13 = vcombine.low %v3994_v43, %v3994_v43 }
  0xdd   : > { %2159 = vst [vmem:[#allocation3 + $0x18] sm:$0xf] %v2144_v23  ;;  %2182 = vst [vmem:[#allocation3 + $0xc] sm:$0xf] %v2172_v7  ;;  %v1553_v21 = vsel %vm3746_vm0, %v1545_v47, %v1552_v16  ;;  %v2097_v36 = vshll.u32 %v3998_v48, 16  ;;  %3192 = vmatprep.subr.bf16.mxu1 %v3403_v60  ;;  %v3410_v27 = vld [vmem:[%s4318_s3 + $0x2c0] sm:$0xff]   ;;  %v2832_v45 = vcombine.high %v4004_v62, %v4004_v62 }
  0xde   : > { %2183 = vst [vmem:[#allocation3 + $0x1c] sm:$0xf] %v2175_v6  ;;  %1559 = vst [vmem:[#allocation3 + $0x24] sm:$0xf] %v1553_v21  ;;  %v2145_v28 = vrot.slane %v4010_v0, 4  ;;  %v2176_v30 = vrot.slane %v2174_v50, 4  ;;  %3209 = vmatpush3.bf16.msra.mxu0 %v3414_v3  ;;  %v2831_v54 = vcombine.low %v4004_v62, %v4004_v62 }
  0xdf   : > { %v2177_v32 = vrot.slane %v2164_v24, 7  ;;  %v3419_v40 = vld [vmem:[%s4318_s3 + $0x210] sm:$0xff]   ;;  %3210 = vmatprep.subr.bf16.mxu0 %v3418_v25  ;;  %v3427_v56 = vld [vmem:[%s4318_s3 + $0x258] sm:$0xff]   ;;  %v2092_v34 = vrot.slane %v3874_v63, 4  ;;  %v2099_v35 = vor.u32 %v2097_v36, %v2096_v31  ;;  %v3412_v39 = vld [vmem:[%s4318_s3 + $0x280] sm:$0xff]  }
  0xe0   : > { %3193 = vmatpush3.bf16.msra.mxu1 %v3404_v26  ;;  %v2154_v44 = vsel %vm3935_vm6, %v2145_v28, %v2153_v29  ;;  %v3428_v46 = vld [vmem:[%s4318_s3 + $0x218] sm:$0xff]   ;;  %v3431_v59 = vld [vmem:[%s4318_s3 + $0x260] sm:$0xff]   ;;  %v2109_v48 = vld [vmem:[#allocation2 + $0xc] sm:$0xf] }
  0xe1   : > { %3234 = vmatprep.subr.bf16.mxu1 %v3410_v27  ;;  %1412 = vmatmul.mubr.bf16.gmra.mrb[12].mxu0 %v2829_v13  ;;  %v2178_v63 = vsel %vm3720_vm15, %v2176_v30, %v2177_v32  ;;  %v2100_v38 = vsel %vm3746_vm0, %v2092_v34, %v2099_v35  ;;  %v3423_v49 = vld [vmem:[%s4318_s3 + $0x2d0] sm:$0xff]   ;;  %v3435_v50 = vld [vmem:[%s4318_s3 + $0x268] sm:$0xff]   ;;  %v3429_v9 = vld [vmem:[%s4318_s3 + $0x2d8] sm:$0xff]  }
  0xe2   : > { %3211 = vmatpush3.bf16.msra.mxu0 %v3419_v40  ;;  %1974 = vmatprep.mubr.bf16.mxu0 %v3926_v61  ;;  %v3416_v61 = vld [vmem:[%s4318_s3 + $0x288] sm:$0xff]   ;;  %v3424_v53 = vld [vmem:[%s4318_s3 + $0x290] sm:$0xff]   ;;  %v3430_v62 = vld [vmem:[%s4318_s3 + $0x298] sm:$0xff]  }
  0xe3   : > { %v4074_v43 = vld [vmem:[#allocation3 + $0x28] sm:$0xff]  ;;  %3212 = vmatprep.subr.bf16.mxu0 %v3427_v56  ;;  %v3436_v33 = vld [vmem:[%s4318_s3 + $0x228] sm:$0xff]   ;;  %v3439_v55 = vld [vmem:[%s4318_s3 + $0x270] sm:$0xff]  }
  0xe4   : > { %v3409_v41 = vld [vmem:[#allocation3 + $0x8] ss:$16 sps:$4 sm:$0xff]   ;;  %2160 = vst [vmem:[#allocation3 + $0x28] sm:$0xf] %v2154_v44  ;;  %2184 = vst [vmem:[#allocation3 + $0x2c] sm:$0xf] %v2178_v63  ;;  %v2943_v28 = vcombine.high %v4074_v43, %v4074_v43  ;;  %v2942_v35 = vcombine.low %v4074_v43, %v4074_v43 }
  0xe5   : > { %1452 = vmatmul.mubr.bf16.vlgmr.msra.gmra.mrb[8].mxu1 %v3409_v41  ;;  %v4089_v17 = vld [vmem:[#allocation3 + $0x20] sm:$0xff]  ;;  %v3433_v0 = vld [vmem:[%s4318_s3 + $0x2e0] sm:$0xff]   ;;  %v3437_v47 = vld [vmem:[%s4318_s3 + $0x2e8] sm:$0xff]  }
  0xe6   : > { %1459 = vmatprep.mubr.bf16.mxu1 %v2832_v45  ;;  %3235 = vmatpush3.bf16.msra.mxu1 %v3412_v39  ;;  %2106 = vst [vmem:[#allocation3 + $0x20] sm:$0xf] %v2100_v38  ;;  %2112 = vst [vmem:[#allocation3 + $0x24] sm:$0xf] %v2109_v48  ;;  %v3440_v1 = vld [vmem:[%s4318_s3 + $0x230] sm:$0xff]   ;;  %v3443_v2 = vld [vmem:[%s4318_s3 + $0x278] sm:$0xff]   ;;  %v2941_v16 = vcombine.high %v4089_v17, %v4089_v17  ;;  %v2940_v25 = vcombine.low %v4089_v17, %v4089_v17 }
  0xe7   : > { %3236 = vmatprep.subr.bf16.mxu1 %v3415_v42  ;;  %3213 = vmatpush3.bf16.msra.mxu0 %v3428_v46  ;;  %v3434_v11 = vld [vmem:[%s4318_s3 + $0x2a0] sm:$0xff]   ;;  %v3444_v5 = vld [vmem:[%s4318_s3 + $0x238] sm:$0xff]   ;;  %v3438_v14 = vld [vmem:[%s4318_s3 + $0x2a8] sm:$0xff]  }
  0xe8   : > { %3214 = vmatprep.subr.bf16.mxu0 %v3431_v59  ;;  %v3447_v8 = vld [vmem:[%s4318_s3 + $0x340] sm:$0xff]   ;;  %v1638_v10 = vld [vmem:[#allocation3] sm:$0xff]  ;;  %v3453_v60 = vld [vmem:[%s4318_s3 + $0x348] sm:$0xff]  }
  0xe9   : > { %v1640_v12 = vld [vmem:[#allocation3 + $0x10] sm:$0xff]  ;;  %v3441_v37 = vld [vmem:[%s4318_s3 + $0x2f0] sm:$0xff]   ;;  %v3445_v18 = vld [vmem:[%s4318_s3 + $0x2f8] sm:$0xff]  }
  0xea   : > { %3237 = vmatpush3.bf16.msra.mxu1 %v3416_v61  ;;  %v3449_v4 = vld [vmem:[%s4318_s3 + $0x300] sm:$0xff]   ;;  %v2936_v15 = vcombine.low %v1638_v10, %v1640_v12  ;;  %v3442_v7 = vld [vmem:[%s4318_s3 + $0x2b0] sm:$0xff]   ;;  %v3454_v19 = vld [vmem:[%s4318_s3 + $0x308] sm:$0xff]  }
  0xeb   : > { %3238 = vmatprep.subr.bf16.mxu1 %v3423_v49  ;;  %3215 = vmatpush3.bf16.msra.mxu0 %v3432_v57  ;;  %v3457_v3 = vld [vmem:[%s4318_s3 + $0x350] sm:$0xff]   ;;  %v3450_v22 = vld [vmem:[%s4318_s3 + $0x3c0] sm:$0xff]   ;;  %v3467_v21 = vld [vmem:[%s4318_s3 + $0x358] sm:$0xff]  }
  0xec   : > { %3216 = vmatprep.subr.bf16.mxu0 %v3435_v50  ;;  %v1639_v23 = vld [vmem:[#allocation3 + $0x8] sm:$0xff]  ;;  %v1641_v6 = vld [vmem:[#allocation3 + $0x18] sm:$0xff]  ;;  %v3461_v36 = vld [vmem:[#allocation3 + $0x4] ss:$16 sps:$4 sm:$0xff]  }
  0xed   : > { %1460 = vmatmul.mubr.bf16.gmra.mrb[12].mxu1 %v2831_v54  ;;  %v3458_v24 = vld [vmem:[%s4318_s3 + $0x310] sm:$0xff]   ;;  %v3452_v31 = vld [vmem:[%s4318_s3 + $0x380] sm:$0xff]   ;;  %v2938_v26 = vcombine.low %v1639_v23, %v1641_v6  ;;  %v3455_v27 = vld [vmem:[%s4318_s3 + $0x3c8] sm:$0xff]  }
  0xee   : > { %3239 = vmatpush3.bf16.msra.mxu1 %v3424_v53  ;;  %2022 = vmatprep.mubr.bf16.mxu1 %v4036_v20  ;;  %v3446_v20 = vld [vmem:[%s4318_s3 + $0x2b8] sm:$0xff]   ;;  %v3471_v30 = vld [vmem:[%s4318_s3 + $0x360] sm:$0xff]   ;;  %v3456_v32 = vld [vmem:[%s4318_s3 + $0x388] sm:$0xff]  }
  0xef   : > { %3240 = vmatprep.subr.bf16.mxu1 %v3429_v9  ;;  %3217 = vmatpush3.bf16.msra.mxu0 %v3436_v33  ;;  %v3468_v29 = vld [vmem:[%s4318_s3 + $0x318] sm:$0xff]   ;;  %v3462_v40 = vld [vmem:[%s4318_s3 + $0x3d0] sm:$0xff]   ;;  %v3472_v13 = vld [vmem:[%s4318_s3 + $0x320] sm:$0xff]  }
  0xf0   : > { %3218 = vmatprep.subr.bf16.mxu0 %v3439_v55  ;;  %v3475_v56 = vld [vmem:[%s4318_s3 + $0x368] sm:$0xff]   ;;  %v3463_v34 = vld [vmem:[%s4318_s3 + $0x390] sm:$0xff]   ;;  %v3469_v39 = vld [vmem:[%s4318_s3 + $0x3d8] sm:$0xff]  }
  0xf1   : > { %v3466_v41 = vld [vmem:[#allocation3 + $0xc] ss:$16 sps:$4 sm:$0xff]   ;;  %v3476_v42 = vld [vmem:[%s4318_s3 + $0x328] sm:$0xff]   ;;  %v3470_v43 = vld [vmem:[%s4318_s3 + $0x398] sm:$0xff]  }
  0xf2   : > { %3241 = vmatpush3.bf16.msra.mxu1 %v3430_v62  ;;  %v3479_v44 = vld [vmem:[%s4318_s3 + $0x370] sm:$0xff]   ;;  %v3473_v63 = vld [vmem:[%s4318_s3 + $0x3e0] sm:$0xff]   ;;  %v3483_v46 = vld [vmem:[%s4318_s3 + $0x378] sm:$0xff]  }
  0xf3   : > { %3242 = vmatprep.subr.bf16.mxu1 %v3433_v0  ;;  %3219 = vmatpush3.bf16.msra.mxu0 %v3440_v1  ;;  %v3480_v45 = vld [vmem:[%s4318_s3 + $0x330] sm:$0xff]   ;;  %v3474_v59 = vld [vmem:[%s4318_s3 + $0x3a0] sm:$0xff]   ;;  %v3477_v17 = vld [vmem:[%s4318_s3 + $0x3e8] sm:$0xff]  }
  0xf4   : > { %3220 = vmatprep.subr.bf16.mxu0 %v3443_v2  ;;  %v3484_v38 = vld [vmem:[%s4318_s3 + $0x338] sm:$0xff]   ;;  %v3478_v48 = vld [vmem:[%s4318_s3 + $0x3a8] sm:$0xff]   ;;  %v3481_v61 = vld [vmem:[%s4318_s3 + $0x3f0] sm:$0xff]  }
  0xf5   : > { %v2189_v49 = vld [vmem:[#allocation3 + $0x20] sm:$0xff]  ;;  %v2190_v33 = vld [vmem:[#allocation3 + $0x28] sm:$0xff] }
  0xf6   : > { %3243 = vmatpush3.bf16.msra.mxu1 %v3434_v11  ;;  %v3459_v57 = vld [vmem:[#allocation3] ss:$16 sps:$4 sm:$0xff]   ;;  %v3051_v53 = vcombine.high %v2189_v49, %v2189_v49  ;;  %v3485_v54 = vld [vmem:[%s4318_s3 + $0x3f8] sm:$0xff]   ;;  %v3050_v55 = vcombine.low %v2189_v49, %v2189_v49  ;;  %v3053_v0 = vcombine.high %v2190_v33, %v2190_v33  ;;  %v3052_v1 = vcombine.low %v2190_v33, %v2190_v33  ;;  %v4263_v12 = vld [vmem:[%s4319_s4] ss:$0 sm:$0xff] }
  0xf7   : > { %3244 = vmatprep.subr.bf16.mxu1 %v3437_v47  ;;  %3221 = vmatpush3.bf16.msra.mxu0 %v3444_v5  ;;  %v3482_v50 = vld [vmem:[%s4318_s3 + $0x3b0] sm:$0xff]   ;;  %v3486_v9 = vld [vmem:[%s4318_s3 + $0x3b8] sm:$0xff]  }
  0xf8   : > { %3262 = vmatprep.subr.bf16.mxu0 %v3447_v8  ;;  %v3464_v62 = vld [vmem:[#allocation3 + $0x8] ss:$16 sps:$4 sm:$0xff]  }
  0xfa   : > { %3245 = vmatpush3.bf16.msra.mxu1 %v3438_v14  ;;  %1975 = vmatmul.mubr.bf16.vlgmr.msra.gmra.mrb[16].mxu0 %v2936_v15 }
  0xfb   : > { %3246 = vmatprep.subr.bf16.mxu1 %v3441_v37  ;;  %1982 = vmatprep.mubr.bf16.mxu0 %v2941_v16 }
  0xfc   : > { %3263 = vmatpush3.bf16.msra.mxu0 %v3449_v4 }
  0xfd   : > { %3264 = vmatprep.subr.bf16.mxu0 %v3453_v60 }
  0xfe   : > { %3247 = vmatpush3.bf16.msra.mxu1 %v3442_v7 }
  0xff   : > { %3248 = vmatprep.subr.bf16.mxu1 %v3445_v18 }
 0x100   : > { %3265 = vmatpush3.bf16.msra.mxu0 %v3454_v19 }
 0x101   : > { %3266 = vmatprep.subr.bf16.mxu0 %v3457_v3 }
 0x102   : > { %3249 = vmatpush3.bf16.msra.mxu1 %v3446_v20  ;;  %1983 = vmatmul.mubr.bf16.gmra.mrb[20].mxu0 %v2940_v25 }
 0x103   : > { %3290 = vmatprep.subr.bf16.mxu1 %v3450_v22  ;;  %2521 = vmatprep.mubr.bf16.mxu0 %v3461_v36 }
 0x104   : > { %3267 = vmatpush3.bf16.msra.mxu0 %v3458_v24 }
 0x105   : > { %2023 = vmatmul.mubr.bf16.vlgmr.msra.gmra.mrb[16].mxu1 %v2938_v26  ;;  %3268 = vmatprep.subr.bf16.mxu0 %v3467_v21 }
 0x106   : > { %2030 = vmatprep.mubr.bf16.mxu1 %v2943_v28  ;;  %3291 = vmatpush3.bf16.msra.mxu1 %v3452_v31 }
 0x107   : > { %3292 = vmatprep.subr.bf16.mxu1 %v3455_v27 }
 0x108   : > { %3269 = vmatpush3.bf16.msra.mxu0 %v3468_v29 }
 0x109   : > { %3270 = vmatprep.subr.bf16.mxu0 %v3471_v30 }
 0x10a   : > { %3293 = vmatpush3.bf16.msra.mxu1 %v3456_v32 }
 0x10b   : > { %3294 = vmatprep.subr.bf16.mxu1 %v3462_v40 }
 0x10c   : > { %3271 = vmatpush3.bf16.msra.mxu0 %v3472_v13 }
 0x10d   : > { %2031 = vmatmul.mubr.bf16.gmra.mrb[20].mxu1 %v2942_v35  ;;  %3272 = vmatprep.subr.bf16.mxu0 %v3475_v56 }
 0x10e   : > { %3295 = vmatpush3.bf16.msra.mxu1 %v3463_v34  ;;  %2569 = vmatprep.mubr.bf16.mxu1 %v3466_v41 }
 0x10f   : > { %3296 = vmatprep.subr.bf16.mxu1 %v3469_v39 }
 0x110   : > { %3273 = vmatpush3.bf16.msra.mxu0 %v3476_v42 }
 0x111   : > { %3274 = vmatprep.subr.bf16.mxu0 %v3479_v44 }
 0x112   : > { %3297 = vmatpush3.bf16.msra.mxu1 %v3470_v43 }
 0x113   : > { %3298 = vmatprep.subr.bf16.mxu1 %v3473_v63 }
 0x114   : > { %3275 = vmatpush3.bf16.msra.mxu0 %v3480_v45 }
 0x115   : > { %3276 = vmatprep.subr.bf16.mxu0 %v3483_v46 }
 0x116   : > { %3299 = vmatpush3.bf16.msra.mxu1 %v3474_v59 }
 0x117   : > { %3300 = vmatprep.subr.bf16.mxu1 %v3477_v17 }
 0x118   : > { %3277 = vmatpush3.bf16.msra.mxu0 %v3484_v38 }
 0x11a   : > { %3301 = vmatpush3.bf16.msra.mxu1 %v3478_v48 }
 0x11b   : > { %3302 = vmatprep.subr.bf16.mxu1 %v3481_v61  ;;  %2522 = vmatmul.mubr.bf16.vlgmr.msra.gmra.mrb[24].mxu0 %v3459_v57 }
 0x11c   : > { %2529 = vmatprep.mubr.bf16.mxu0 %v3051_v53 }
 0x11e   : > { %3303 = vmatpush3.bf16.msra.mxu1 %v3482_v50 }
 0x11f   : > { %3304 = vmatprep.subr.bf16.mxu1 %v3485_v54 }
 0x122   : > { %3305 = vmatpush3.bf16.msra.mxu1 %v3486_v9 }
 0x123   : > { %2530 = vmatmul.mubr.bf16.gmra.mrb[28].mxu0 %v3050_v55 }
 0x125   : > { %2570 = vmatmul.mubr.bf16.vlgmr.msra.gmra.mrb[24].mxu1 %v3464_v62 }
 0x126   : > { %2577 = vmatprep.mubr.bf16.mxu1 %v3053_v0 }
 0x12d   : > { %2578 = vmatmul.mubr.bf16.gmra.mrb[28].mxu1 %v3052_v1 }
 0x184   : > { %v3110_v2 = vpop.f32.mrb[0].mxu0 }
 0x185   : > { %v3111_v11 = vpop.f32.mrb[1].mxu0 }
 0x186   : > { %v3112_v47 = vadd.f32 %v3111_v11, %v3110_v2  ;;  %v3113_v5 = vpop.f32.mrb[2].mxu0 }
 0x187   : > { %v3114_v8 = vpop.f32.mrb[3].mxu0 }
 0x188   : > { %v3115_v10 = vadd.f32 %v3114_v8, %v3113_v5  ;;  %v861_v14 = vadd.f32 %v3112_v47, %v4263_v12 }
 0x18a   : > { %v864_v15 = vadd.f32 %v3115_v10, %v4263_v12 }
 0x191   : > { %v3138_v37 = vpop.f32.mrb[0].mxu1  ;;  %v3116_v16 = vpop.f32.mrb[4].mxu0 }
 0x192   : > { %v3139_v4 = vpop.f32.mrb[1].mxu1  ;;  %v3117_v19 = vpop.f32.mrb[5].mxu0 }
 0x193   : > { %v3140_v60 = vadd.f32 %v3139_v4, %v3138_v37  ;;  %v3141_v7 = vpop.f32.mrb[2].mxu1  ;;  %v3118_v22 = vadd.f32 %v3117_v19, %v3116_v16  ;;  %v3119_v23 = vpop.f32.mrb[6].mxu0 }
 0x194   : > { %v3142_v18 = vpop.f32.mrb[3].mxu1  ;;  %v3120_v6 = vpop.f32.mrb[7].mxu0 }
 0x195   : > { %v909_v3 = vadd.f32 %v3140_v60, %v861_v14  ;;  %v3143_v20 = vadd.f32 %v3142_v18, %v3141_v7  ;;  %v869_v31 = vadd.f32 %v3118_v22, %v4263_v12 }
 0x197   : > { %v922_v24 = vmul.f32 %v909_v3, %v3675_v51  ;;  %946 = vst [vmem:[%s4271_s28] sm:$0xff] %v909_v3  ;;  %v912_v25 = vadd.f32 %v3143_v20, %v864_v15 }
 0x199   : > { %v923_v21 = vmul.f32 %v912_v25, %v3681_v58  ;;  %947 = vst [vmem:[%s4271_s28 + $0x8] sm:$0xff] %v912_v25  ;;  %v934_v26 = vmul.f32 %v922_v24, %v909_v3 }
 0x19b   : > { %v925_v27 = vadd.f32 %v923_v21, %v922_v24  ;;  %v935_v28 = vmul.f32 %v923_v21, %v912_v25 }
 0x19d   : > { %v3144_v36 = vpop.f32.mrb[4].mxu1  ;;  %v937_v40 = vadd.f32 %v935_v28, %v934_v26 }
 0x19e   : > { %v3145_v29 = vpop.f32.mrb[5].mxu1 }
 0x19f   : > { %v3146_v30 = vadd.f32 %v3145_v29, %v3144_v36  ;;  %v3147_v32 = vpop.f32.mrb[6].mxu1 }
 0x1a0   : > { %v3148_v13 = vpop.f32.mrb[7].mxu1 }
 0x1a1   : > { %v917_v56 = vadd.f32 %v3146_v30, %v869_v31 }
 0x1a3   : > { %v924_v34 = vmul.f32 %v917_v56, %v3677_v52  ;;  %948 = vst [vmem:[%s4271_s28 + $0x10] sm:$0xff] %v917_v56 }
 0x1a5   : > { %v926_v35 = vadd.f32 %v925_v27, %v924_v34  ;;  %v936_v39 = vmul.f32 %v924_v34, %v917_v56 }
 0x1a7   : > { %v938_v41 = vadd.f32 %v937_v40, %v936_v39  ;;  %v927_v2 = vrot.slane %v926_v35, 4 }
 0x1a9   : > { %v939_v8 = vrot.slane %v938_v41, 4  ;;  %v928_v16 = vadd.f32 %v927_v2, %v926_v35 }
 0x1ab   : > { %v940_v3 = vadd.f32 %v939_v8, %v938_v41  ;;  %v929_v22 = vrot.slane %v928_v16, 2 }
 0x1ac   : > { %v3166_v42 = vpop.f32.mrb[8].mxu0 }
 0x1ad   : > { %v3167_v44 = vpop.f32.mrb[9].mxu0  ;;  %v941_v24 = vrot.slane %v940_v3, 2  ;;  %v930_v31 = vadd.f32 %v929_v22, %v928_v16 }
 0x1ae   : > { %v3168_v43 = vadd.f32 %v3167_v44, %v3166_v42  ;;  %v3169_v63 = vpop.f32.mrb[10].mxu0 }
 0x1af   : > { %v3170_v45 = vpop.f32.mrb[11].mxu0  ;;  %v942_v27 = vadd.f32 %v941_v24, %v940_v3  ;;  %v931_v40 = vrot.slane %v930_v31, 1 }
 0x1b0   : > { %v3171_v46 = vadd.f32 %v3170_v45, %v3169_v63  ;;  %v1406_v38 = vadd.f32 %v3168_v43, %v4263_v12 }
 0x1b1   : > { %v943_v41 = vrot.slane %v942_v27, 1  ;;  %v932_v63 = vadd.f32 %v931_v40, %v930_v31 }
 0x1b2   : > { %v1409_v53 = vadd.f32 %v3171_v46, %v4263_v12 }
 0x1b4   : > { %v3172_v59 = vpop.f32.mrb[12].mxu0 }
 0x1b5   : > { %v3173_v17 = vpop.f32.mrb[13].mxu0 }
 0x1b6   : > { %v3174_v61 = vadd.f32 %v3173_v17, %v3172_v59  ;;  %v3175_v49 = vpop.f32.mrb[14].mxu0  ;;  %v944_v59 = vadd.f32 %v943_v41, %v942_v27 }
 0x1b7   : > { %v3176_v50 = vpop.f32.mrb[15].mxu0 }
 0x1b8   : > { %v3194_v48 = vpop.f32.mrb[8].mxu1  ;;  %v1414_v47 = vadd.f32 %v3174_v61, %v4263_v12 }
 0x1b9   : > { %v3195_v57 = vpop.f32.mrb[9].mxu1 }
 0x1ba   : > { %v3196_v54 = vadd.f32 %v3195_v57, %v3194_v48  ;;  %v3197_v9 = vpop.f32.mrb[10].mxu1 }
 0x1bb   : > { %v3198_v33 = vpop.f32.mrb[11].mxu1 }
 0x1bc   : > { %v1454_v55 = vadd.f32 %v3196_v54, %v1406_v38  ;;  %v3199_v62 = vadd.f32 %v3198_v33, %v3197_v9 }
 0x1be   : > { %v1467_v0 = vmul.f32 %v1454_v55, %v3675_v51  ;;  %2865 = vst [vmem:[%s4271_s28 + $0x18] sm:$0xff] %v1454_v55  ;;  %v1457_v1 = vadd.f32 %v3199_v62, %v1409_v53 }
 0x1c0   : > { %v1468_v11 = vmul.f32 %v1457_v1, %v3681_v58  ;;  %2866 = vst [vmem:[%s4271_s28 + $0x20] sm:$0xff] %v1457_v1  ;;  %v3200_v5 = vpop.f32.mrb[12].mxu1  ;;  %v1479_v14 = vmul.f32 %v1467_v0, %v1454_v55 }
 0x1c1   : > { %v3201_v10 = vpop.f32.mrb[13].mxu1 }
 0x1c2   : > { %v1470_v37 = vadd.f32 %v1468_v11, %v1467_v0  ;;  %v1480_v4 = vmul.f32 %v1468_v11, %v1457_v1  ;;  %v3202_v15 = vadd.f32 %v3201_v10, %v3200_v5  ;;  %v3203_v60 = vpop.f32.mrb[14].mxu1 }
 0x1c3   : > { %v3204_v7 = vpop.f32.mrb[15].mxu1 }
 0x1c4   : > { %v1482_v18 = vadd.f32 %v1480_v4, %v1479_v14  ;;  %v1462_v19 = vadd.f32 %v3202_v15, %v1414_v47 }
 0x1c6   : > { %v1469_v20 = vmul.f32 %v1462_v19, %v3677_v52  ;;  %2867 = vst [vmem:[%s4271_s28 + $0x28] sm:$0xff] %v1462_v19 }
 0x1c8   : > { %v1471_v23 = vadd.f32 %v1470_v37, %v1469_v20  ;;  %v1481_v6 = vmul.f32 %v1469_v20, %v1462_v19 }
 0x1ca   : > { %v1472_v25 = vrot.slane %v1471_v23, 4  ;;  %v1483_v21 = vadd.f32 %v1482_v18, %v1481_v6 }
 0x1cc   : > { %v1473_v36 = vadd.f32 %v1472_v25, %v1471_v23  ;;  %v1484_v26 = vrot.slane %v1483_v21, 4 }
 0x1cd   : > { %v3222_v30 = vpop.f32.mrb[16].mxu0 }
 0x1ce   : > { %v1474_v28 = vrot.slane %v1473_v36, 2  ;;  %v1485_v29 = vadd.f32 %v1484_v26, %v1483_v21  ;;  %v3223_v32 = vpop.f32.mrb[17].mxu0 }
 0x1cf   : > { %v3224_v34 = vadd.f32 %v3223_v32, %v3222_v30  ;;  %v3225_v35 = vpop.f32.mrb[18].mxu0 }
 0x1d0   : > { %v1475_v13 = vadd.f32 %v1474_v28, %v1473_v36  ;;  %v1486_v56 = vrot.slane %v1485_v29, 2  ;;  %v3226_v39 = vpop.f32.mrb[19].mxu0 }
 0x1d1   : > { %v3227_v43 = vadd.f32 %v3226_v39, %v3225_v35  ;;  %v1977_v57 = vadd.f32 %v3224_v34, %v4263_v12 }
 0x1d2   : > { %v1476_v42 = vrot.slane %v1475_v13, 1  ;;  %v1487_v44 = vadd.f32 %v1486_v56, %v1485_v29 }
 0x1d3   : > { %v1980_v55 = vadd.f32 %v3227_v43, %v4263_v12 }
 0x1d4   : > { %v1477_v45 = vadd.f32 %v1476_v42, %v1475_v13  ;;  %v1488_v46 = vrot.slane %v1487_v44, 1 }
 0x1d5   : > { %v3228_v48 = vpop.f32.mrb[20].mxu0 }
 0x1d6   : > { %v1478_v17 = vadd.f32 %v1477_v45, %v932_v63  ;;  %v1489_v38 = vadd.f32 %v1488_v46, %v1487_v44  ;;  %v3229_v61 = vpop.f32.mrb[21].mxu0 }
 0x1d7   : > { %v3230_v53 = vadd.f32 %v3229_v61, %v3228_v48  ;;  %v3231_v54 = vpop.f32.mrb[22].mxu0 }
 0x1d8   : > { %v1490_v49 = vadd.f32 %v1489_v38, %v944_v59  ;;  %v3250_v50 = vpop.f32.mrb[16].mxu1  ;;  %v3232_v33 = vpop.f32.mrb[23].mxu0 }
 0x1d9   : > { %v3251_v9 = vpop.f32.mrb[17].mxu1  ;;  %v1985_v10 = vadd.f32 %v3230_v53, %v4263_v12 }
 0x1da   : > { %v3252_v62 = vadd.f32 %v3251_v9, %v3250_v50  ;;  %v3253_v0 = vpop.f32.mrb[18].mxu1 }
 0x1db   : > { %v3254_v1 = vpop.f32.mrb[19].mxu1 }
 0x1dc   : > { %v2025_v2 = vadd.f32 %v3252_v62, %v1977_v57  ;;  %v3255_v11 = vadd.f32 %v3254_v1, %v3253_v0 }
 0x1de   : > { %v2038_v47 = vmul.f32 %v2025_v2, %v3675_v51  ;;  %2976 = vst [vmem:[%s4271_s28 + $0x30] sm:$0xff] %v2025_v2  ;;  %v2028_v5 = vadd.f32 %v3255_v11, %v1980_v55 }
 0x1e0   : > { %v2039_v8 = vmul.f32 %v2028_v5, %v3681_v58  ;;  %2977 = vst [vmem:[%s4271_s28 + $0x38] sm:$0xff] %v2028_v5  ;;  %v3256_v14 = vpop.f32.mrb[20].mxu1  ;;  %v2050_v4 = vmul.f32 %v2038_v47, %v2025_v2 }
 0x1e1   : > { %v3257_v37 = vpop.f32.mrb[21].mxu1 }
 0x1e2   : > { %v2041_v15 = vadd.f32 %v2039_v8, %v2038_v47  ;;  %v2051_v60 = vmul.f32 %v2039_v8, %v2028_v5  ;;  %v3258_v7 = vadd.f32 %v3257_v37, %v3256_v14  ;;  %v3259_v16 = vpop.f32.mrb[22].mxu1 }
 0x1e3   : > { %v3260_v18 = vpop.f32.mrb[23].mxu1 }
 0x1e4   : > { %v2053_v19 = vadd.f32 %v2051_v60, %v2050_v4  ;;  %v2033_v3 = vadd.f32 %v3258_v7, %v1985_v10 }
 0x1e6   : > { %v2040_v20 = vmul.f32 %v2033_v3, %v3677_v52  ;;  %2978 = vst [vmem:[%s4271_s28 + $0x40] sm:$0xff] %v2033_v3 }
 0x1e8   : > { %v2042_v22 = vadd.f32 %v2041_v15, %v2040_v20  ;;  %v2052_v23 = vmul.f32 %v2040_v20, %v2033_v3 }
 0x1ea   : > { %v2043_v6 = vrot.slane %v2042_v22, 4  ;;  %v2054_v24 = vadd.f32 %v2053_v19, %v2052_v23 }
 0x1ec   : > { %v2044_v25 = vadd.f32 %v2043_v6, %v2042_v22  ;;  %v2055_v21 = vrot.slane %v2054_v24, 4 }
 0x1ee   : > { %v2045_v31 = vrot.slane %v2044_v25, 2  ;;  %v2056_v36 = vadd.f32 %v2055_v21, %v2054_v24  ;;  %v3278_v26 = vpop.f32.mrb[24].mxu0 }
 0x1ef   : > { %v3279_v27 = vpop.f32.mrb[25].mxu0 }
 0x1f0   : > { %v2046_v28 = vadd.f32 %v2045_v31, %v2044_v25  ;;  %v2057_v29 = vrot.slane %v2056_v36, 2  ;;  %v3280_v30 = vadd.f32 %v3279_v27, %v3278_v26  ;;  %v3281_v32 = vpop.f32.mrb[26].mxu0 }
 0x1f1   : > { %v3282_v40 = vpop.f32.mrb[27].mxu0 }
 0x1f2   : > { %v2047_v13 = vrot.slane %v2046_v28, 1  ;;  %v2058_v56 = vadd.f32 %v2057_v29, %v2056_v36  ;;  %v3283_v34 = vadd.f32 %v3282_v40, %v3281_v32  ;;  %v2524_v45 = vadd.f32 %v3280_v30, %v4263_v12 }
 0x1f4   : > { %v2048_v35 = vadd.f32 %v2047_v13, %v2046_v28  ;;  %v2059_v39 = vrot.slane %v2058_v56, 1  ;;  %v2527_v57 = vadd.f32 %v3283_v34, %v4263_v12 }
 0x1f6   : > { %v2049_v41 = vadd.f32 %v2048_v35, %v1478_v17  ;;  %v2060_v42 = vadd.f32 %v2059_v39, %v2058_v56  ;;  %v3284_v44 = vpop.f32.mrb[28].mxu0 }
 0x1f7   : > { %v3285_v43 = vpop.f32.mrb[29].mxu0 }
 0x1f8   : > { %v2061_v63 = vadd.f32 %v2060_v42, %v1490_v49  ;;  %v3306_v46 = vpop.f32.mrb[24].mxu1  ;;  %v3286_v59 = vadd.f32 %v3285_v43, %v3284_v44  ;;  %v3287_v38 = vpop.f32.mrb[30].mxu0 }
 0x1f9   : > { %v3307_v48 = vpop.f32.mrb[25].mxu1  ;;  %v3288_v61 = vpop.f32.mrb[31].mxu0 }
 0x1fa   : > { %v3308_v50 = vadd.f32 %v3307_v48, %v3306_v46  ;;  %v3309_v53 = vpop.f32.mrb[26].mxu1  ;;  %v2532_v62 = vadd.f32 %v3286_v59, %v4263_v12 }
 0x1fb   : > { %v3310_v54 = vpop.f32.mrb[27].mxu1 }
 0x1fc   : > { %v2572_v9 = vadd.f32 %v3308_v50, %v2524_v45  ;;  %v3311_v17 = vadd.f32 %v3310_v54, %v3309_v53 }
 0x1fe   : > { %v2585_v33 = vmul.f32 %v2572_v9, %v3675_v51  ;;  %3086 = vst [vmem:[%s4271_s28 + $0x48] sm:$0xff] %v2572_v9  ;;  %v2575_v49 = vadd.f32 %v3311_v17, %v2527_v57 }
 0x200   : > { %v2586_v55 = vmul.f32 %v2575_v49, %v3681_v58  ;;  %3087 = vst [vmem:[%s4271_s28 + $0x50] sm:$0xff] %v2575_v49  ;;  %v3312_v0 = vpop.f32.mrb[28].mxu1  ;;  %v2597_v2 = vmul.f32 %v2585_v33, %v2572_v9 }
 0x201   : > { %v3313_v1 = vpop.f32.mrb[29].mxu1 }
 0x202   : > { %v2588_v11 = vadd.f32 %v2586_v55, %v2585_v33  ;;  %v2598_v47 = vmul.f32 %v2586_v55, %v2575_v49  ;;  %v3314_v5 = vadd.f32 %v3313_v1, %v3312_v0  ;;  %v3315_v8 = vpop.f32.mrb[30].mxu1 }
 0x203   : > { %v3316_v10 = vpop.f32.mrb[31].mxu1 }
 0x204   : > { %v2600_v14 = vadd.f32 %v2598_v47, %v2597_v2  ;;  %v2580_v37 = vadd.f32 %v3314_v5, %v2532_v62 }
 0x206   : > { %v2587_v51 = vmul.f32 %v2580_v37, %v3677_v52  ;;  %3088 = vst [vmem:[%s4271_s28 + $0x58] sm:$0xff] %v2580_v37 }
 0x208   : > { %v2589_v4 = vadd.f32 %v2588_v11, %v2587_v51  ;;  %v2599_v15 = vmul.f32 %v2587_v51, %v2580_v37 }
 0x20a   : > { %v2590_v58 = vrot.slane %v2589_v4, 4  ;;  %v2601_v60 = vadd.f32 %v2600_v14, %v2599_v15 }
 0x20c   : > { %v2591_v7 = vadd.f32 %v2590_v58, %v2589_v4  ;;  %v2602_v12 = vrot.slane %v2601_v60, 4 }
 0x20e   : > { %v2592_v16 = vrot.slane %v2591_v7, 2  ;;  %v2603_v18 = vadd.f32 %v2602_v12, %v2601_v60 }
 0x210   : > { %v2593_v19 = vadd.f32 %v2592_v16, %v2591_v7  ;;  %v2604_v3 = vrot.slane %v2603_v18, 2 }
 0x212   : > { %v2594_v20 = vrot.slane %v2593_v19, 1  ;;  %v2605_v22 = vadd.f32 %v2604_v3, %v2603_v18 }
 0x214   : > { %v2595_v23 = vadd.f32 %v2594_v20, %v2593_v19  ;;  %v2606_v6 = vrot.slane %v2605_v22, 1 }
 0x216   : > { %v2596_v24 = vadd.f32 %v2595_v23, %v2049_v41  ;;  %v2607_v25 = vadd.f32 %v2606_v6, %v2605_v22 }
 0x218   : > { %v2608_v52 = vadd.f32 %v2607_v25, %v2061_v63 }
 0x21a   : > { %v2614_v21 = vsel %vm460_vm10, %v2596_v24, %v2608_v52 }
 0x21b   : > { %2615 = vst [vmem:[%s289_s9] sm:$0x3] %v2614_v21 }
 0x21c PF: > { %s18_s24 = sadd.s32 1, %s3497_s24  }
 0x21d   : > { %p15_p4 = scmp.ge.s32.totalorder %s18_s24, 4  }
 0x21f   :  { %17 = sbr.rel (!%p15_p4) target bundleno = 1 (0x1), region = 92 }

// kernel: squeeze.9
= control target key start
LH: loop header
LB: loop body
LE: loop exit
PB: predicated region body
PF: predicated region fallthrough
CT: control target
= control target key end

     0   :  { %vm11_vm0 = vcmask 80896   ;;  %s98_s12 = smov 98   ;;  %s99_s15 = smov 108   ;;  %s184_s0 = inlined_call_operand.vmem [shape: f32[2,4,80], index: 0, kind: input, shape index: {}]   ;;  %s185_s1 = inlined_call_operand.vmem [shape: f32[2,2,2,8,10], index: 1, kind: output, shape index: {}]  }
   0x1   :  { %v74_v0 = vld [vmem:[%s184_s0 + $0x4] sm:$0xf]  ;;  %v8_v1 = vld [vmem:[%s184_s0] sm:$0xf]  ;;  %s97_s0 = smov 118   ;;  %s100_s16 = smov 88  }
   0x2   :  { %7 = vst [vmem:[#allocation0 + $0x8] sm:$0xf] %v74_v0  ;;  %9 = vst [vmem:[#allocation0] sm:$0xf] %v8_v1  ;;  %s101_s17 = smov 78   ;;  %s102_s18 = smov 68  }
   0x3   :  { %s103_s19 = smov 58  }
   0x9   :  { %v18_v2 = vld.sshfl [vmem:[#allocation0] sm:$0xff pattern:$0xba983210]  }
   0xa   :  { %v10_v3 = vld [vmem:[#allocation0] sm:$0xf]   ;;  %19 = vrot.lane.b32.xlu0 %v18_v2, %s97_s0  ;;  %35 = vrot.lane.b32.xlu1 %v18_v2, %s98_s12  ;;  %v14_v4 = vld [vmem:[#allocation0 + $0x8] sm:$0xf]  }
   0xb   :  { %12 = vst.msk [vmem:[%s185_s1] ss:$8 sm:$0xf] %vm11_vm0, %v10_v3   ;;  %75 = vst.msk [vmem:[%s185_s1 + $0x20] ss:$8 sm:$0xf] %vm11_vm0, %v14_v4  }
   0xe   :  { %27 = vrot.lane.b32.xlu0 %v18_v2, %s99_s15  ;;  %43 = vrot.lane.b32.xlu1 %v18_v2, %s100_s16 }
  0x12   :  { %51 = vrot.lane.b32.xlu0 %v18_v2, %s101_s17  ;;  %59 = vrot.lane.b32.xlu1 %v18_v2, %s102_s18 }
  0x16   :  { %67 = vrot.lane.b32.xlu0 %v18_v2, %s103_s19 }
  0x7c   :  { %v20_v5 = vpop.permute.xlu0 %19   ;;  %v36_v6 = vpop.permute.xlu1 %35  }
  0x7d   :  { %76 = vst.msk [vmem:[%s185_s1 + $0x1] ss:$8 sm:$0xf] %vm11_vm0, %v20_v5   ;;  %77 = vst.msk [vmem:[%s185_s1 + $0x1] ss:$8 sm:$0xf0] %vm11_vm0, %v20_v5  }
  0x7e   :  { %80 = vst.msk [vmem:[%s185_s1 + $0x3] ss:$8 sm:$0xf] %vm11_vm0, %v36_v6   ;;  %81 = vst.msk [vmem:[%s185_s1 + $0x3] ss:$8 sm:$0xf0] %vm11_vm0, %v36_v6  }
  0x80   :  { %v28_v7 = vpop.permute.xlu0 %27   ;;  %v44_v8 = vpop.permute.xlu1 %43  }
  0x81   :  { %78 = vst.msk [vmem:[%s185_s1 + $0x2] ss:$8 sm:$0xf] %vm11_vm0, %v28_v7   ;;  %79 = vst.msk [vmem:[%s185_s1 + $0x2] ss:$8 sm:$0xf0] %vm11_vm0, %v28_v7  }
  0x82   :  { %82 = vst.msk [vmem:[%s185_s1 + $0x4] ss:$8 sm:$0xf] %vm11_vm0, %v44_v8   ;;  %83 = vst.msk [vmem:[%s185_s1 + $0x4] ss:$8 sm:$0xf0] %vm11_vm0, %v44_v8  }
  0x84   :  { %v52_v9 = vpop.permute.xlu0 %51   ;;  %v60_v10 = vpop.permute.xlu1 %59  }
  0x85   :  { %84 = vst.msk [vmem:[%s185_s1 + $0x5] ss:$8 sm:$0xf] %vm11_vm0, %v52_v9   ;;  %85 = vst.msk [vmem:[%s185_s1 + $0x5] ss:$8 sm:$0xf0] %vm11_vm0, %v52_v9  }
  0x86   :  { %86 = vst.msk [vmem:[%s185_s1 + $0x6] ss:$8 sm:$0xf] %vm11_vm0, %v60_v10   ;;  %87 = vst.msk [vmem:[%s185_s1 + $0x6] ss:$8 sm:$0xf0] %vm11_vm0, %v60_v10  }
  0x88   :  { %v68_v11 = vpop.permute.xlu0 %67  }
  0x89   :  { %88 = vst.msk [vmem:[%s185_s1 + $0x7] ss:$8 sm:$0xf] %vm11_vm0, %v68_v11   ;;  %89 = vst.msk [vmem:[%s185_s1 + $0x7] ss:$8 sm:$0xf0] %vm11_vm0, %v68_v11  }

// kernel: generator_forward.5
= control target key start
LH: loop header
LB: loop body
LE: loop exit
PB: predicated region body
PF: predicated region fallthrough
CT: control target
= control target key end

     0   :  { %s5132_s21 = smov 0   ;;  %s5920_s0 = inlined_call_operand.vmem [shape: f32[2,104,128], index: 0, kind: input, shape index: {}]   ;;  %s5921_s1 = inlined_call_operand.vmem [shape: f32[1,128], index: 1, kind: input, shape index: {}]   ;;  %s5922_s2 = inlined_call_operand.vmem [shape: f32[1,128], index: 2, kind: input, shape index: {}]   ;;  %s5923_s3 = inlined_call_operand.vmem [shape: f32[104,1], index: 3, kind: input, shape index: {}]   ;;  %s5924_s4 = inlined_call_operand.vmem [shape: bf16[4,512,128], index: 4, kind: input, shape index: {}]   ;;  %s5925_s5 = inlined_call_operand.vmem [shape: f32[1,128], index: 5, kind: input, shape index: {}]   ;;  %s5926_s6 = inlined_call_operand.vmem [shape: f32[2,4,80,128], index: 6, kind: output, shape index: {}]  }
   0x1 LB: > { %s3802_s22 = sadd.s32 4294967295, %s5094_s21   ;;  %p3806_p0 = scmp.ge.s32.totalorder %s5094_s21, 1  ;;  %s5094_s21 = sphi %s5132_s21, %s16_s21  }
   0x2   : > { %p212_p1 = scmp.lt.s32.totalorder %s5094_s21, 3 }
   0x4   : > { %p213_p2 = pnand %p3806_p0, %p212_p1 }
   0x5   : > { %v321_v0 = vld [vmem:[%s5923_s3 + $0x10] sm:$0xff] (!%p213_p2)  ;;  %v319_v1 = vld [vmem:[%s5923_s3] sm:$0xff] (!%p213_p2)  ;;  %v5096_v2 = vmov (!%p213_p2), 0   ;;  %v322_v3 = vld [vmem:[%s5923_s3 + $0x18] sm:$0xff] (!%p213_p2)  ;;  %p242_p3 = scmp.lt.s32.totalorder (!%p213_p2), %s3802_s22, 1  ;;  %vm654_vm2 = vcmask (!%p213_p2), 1046528  }
   0x6   : > { %216 = sbr.rel (%p213_p2) target bundleno = 564 (0x234), region = 44  ;;  %4703 = vset.pattern.permute.xlu1 (!%p213_p2), %v5096_v2  ;;  %4702 = vset.pattern.permute.xlu0 (!%p213_p2), %v5096_v2  ;;  %v320_v4 = vld [vmem:[%s5923_s3 + $0x8] sm:$0xff] (!%p213_p2)  ;;  %v323_v6 = vld [vmem:[%s5923_s3 + $0x20] sm:$0xff] (!%p213_p2)  ;;  %v326_v13 = vld [vmem:[%s5923_s3 + $0x38] sm:$0xff] (!%p213_p2)  ;;  %vm560_vm0 = vsmask.f32 (!%p213_p2), 7424 }
   0x7   : > { %344 = vperm.xlu1 (!%p213_p2), %4703, %v321_v0   ;;  %334 = vperm.xlu0 (!%p213_p2), %4702, %v319_v1   ;;  %v324_v5 = vld [vmem:[%s5923_s3 + $0x28] sm:$0xff] (!%p213_p2)  ;;  %v4704_v7 = vld [vmem:[%s5924_s4 + $0x40] sm:$0xff] (!%p213_p2)   ;;  %v325_v14 = vld [vmem:[%s5923_s3 + $0x30] sm:$0xff] (!%p213_p2)  ;;  %vm715_vm1 = vsmask.f32 (!%p213_p2), 6400  ;;  %vm1572_vm3 = vcmask (!%p213_p2), 1045504  }
   0x8   : > { %v4705_v8 = vld [vmem:[%s5924_s4] sm:$0xff] (!%p213_p2)   ;;  %4323 = vmatprep.subr.bf16.mxu0 (!%p213_p2), %v4704_v7  ;;  %v4707_v10 = vld [vmem:[%s5924_s4 + $0x48] sm:$0xff] (!%p213_p2)   ;;  %v4711_v17 = vld [vmem:[%s5924_s4 + $0x50] sm:$0xff] (!%p213_p2)   ;;  %vm2356_vm4 = vsmask.f32 (!%p213_p2), 5376  ;;  %vm3224_vm5 = vcmask (!%p213_p2), 1044480  }
   0x9   : > { %v4706_v9 = vld [vmem:[%s5924_s4 + $0xc0] sm:$0xff] (!%p213_p2)   ;;  %4324 = vmatpush3.bf16.msra.mxu0 (!%p213_p2), %v4705_v8  ;;  %v4709_v12 = vld [vmem:[%s5924_s4 + $0x8] sm:$0xff] (!%p213_p2)   ;;  %v4713_v20 = vld [vmem:[%s5924_s4 + $0x10] sm:$0xff] (!%p213_p2)  }
   0xa   : > { %4369 = vmatprep.subr.bf16.mxu1 (!%p213_p2), %v4706_v9  ;;  %v4708_v11 = vld [vmem:[%s5924_s4 + $0x80] sm:$0xff] (!%p213_p2)   ;;  %4325 = vmatprep.subr.bf16.mxu0 (!%p213_p2), %v4707_v10  ;;  %v4710_v15 = vld [vmem:[%s5924_s4 + $0xc8] sm:$0xff] (!%p213_p2)   ;;  %v330_v21 = vld [vmem:[%s5923_s3 + $0x58] sm:$0xff] (!%p213_p2) }
   0xb   : > { %349 = vperm.xlu1 (!%p213_p2), %4703, %v322_v3   ;;  %339 = vperm.xlu0 (!%p213_p2), %4702, %v320_v4   ;;  %v328_v16 = vld [vmem:[%s5923_s3 + $0x48] sm:$0xff] (!%p213_p2)  ;;  %v327_v19 = vld [vmem:[%s5923_s3 + $0x40] sm:$0xff] (!%p213_p2)  ;;  %v329_v22 = vld [vmem:[%s5923_s3 + $0x50] sm:$0xff] (!%p213_p2) }
   0xc   : > { %4370 = vmatpush3.bf16.msra.mxu1 (!%p213_p2), %v4708_v11  ;;  %v4712_v18 = vld [vmem:[%s5924_s4 + $0x88] sm:$0xff] (!%p213_p2)   ;;  %v4714_v23 = vld [vmem:[%s5924_s4 + $0xd0] sm:$0xff] (!%p213_p2)   ;;  %v4715_v24 = vld [vmem:[%s5924_s4 + $0x58] sm:$0xff] (!%p213_p2)  }
   0xd   : > { %4326 = vmatpush3.bf16.msra.mxu0 %v4709_v12  ;;  %4371 = vmatprep.subr.bf16.mxu1 %v4710_v15  ;;  %v4716_v25 = vld [vmem:[%s5924_s4 + $0x90] sm:$0xff]   ;;  %v4717_v26 = vld [vmem:[%s5924_s4 + $0x18] sm:$0xff]   ;;  %v331_v27 = vld [vmem:[%s5923_s3 + $0x60] sm:$0xff]  ;;  %s5928_s22 = smov (!%p242_p3, %s3802_s22), 1 }
   0xe   : > { %4327 = vmatprep.subr.bf16.mxu0 %v4711_v17  ;;  %v4718_v28 = vld [vmem:[%s5924_s4 + $0xd8] sm:$0xff]   ;;  %v4719_v29 = vld [vmem:[%s5924_s4 + $0x60] sm:$0xff]   ;;  %v4723_v33 = vld [vmem:[%s5924_s4 + $0x68] sm:$0xff]   ;;  %s4691_s29 = smul.u32 104, %s5928_s22 }
   0xf   : > { %359 = vperm.xlu1 %4703, %v324_v5   ;;  %354 = vperm.xlu0 %4702, %v323_v6   ;;  %v4720_v30 = vld [vmem:[%s5924_s4 + $0x98] sm:$0xff]   ;;  %v4721_v31 = vld [vmem:[%s5924_s4 + $0x20] sm:$0xff]   ;;  %v4725_v35 = vld [vmem:[%s5924_s4 + $0x28] sm:$0xff]  }
  0x10   : > { %4372 = vmatpush3.bf16.msra.mxu1 %v4712_v18  ;;  %v4722_v32 = vld [vmem:[%s5924_s4 + $0xe0] sm:$0xff]   ;;  %v4726_v36 = vld [vmem:[%s5924_s4 + $0xe8] sm:$0xff]   ;;  %v4727_v37 = vld [vmem:[%s5924_s4 + $0x70] sm:$0xff]   ;;  %s5291_s8 = scalar_lea.vmem %s5920_s0, %s4691_s29  ;;  %s4692_s29 = smul.u32 320, %s5928_s22 }
  0x11   : > { %4328 = vmatpush3.bf16.msra.mxu0 %v4713_v20  ;;  %4373 = vmatprep.subr.bf16.mxu1 %v4714_v23  ;;  %v4724_v34 = vld [vmem:[%s5924_s4 + $0xa0] sm:$0xff]   ;;  %v4728_v38 = vld [vmem:[%s5924_s4 + $0xa8] sm:$0xff]   ;;  %v4729_v39 = vld [vmem:[%s5924_s4 + $0x30] sm:$0xff]  }
  0x12   : > { %4329 = vmatprep.subr.bf16.mxu0 %v4715_v24  ;;  %v4730_v40 = vld [vmem:[%s5924_s4 + $0xf0] sm:$0xff]   ;;  %v4731_v41 = vld [vmem:[%s5924_s4 + $0x78] sm:$0xff]   ;;  %v4740_v46 = vld [vmem:[%s5924_s4 + $0x140] sm:$0xff]   ;;  %s5838_s22 = scalar_lea.vmem %s5926_s6, %s4692_s29 }
  0x13   : > { %369 = vperm.xlu1 %4703, %v326_v13   ;;  %364 = vperm.xlu0 %4702, %v325_v14   ;;  %v4732_v42 = vld [vmem:[%s5924_s4 + $0xb0] sm:$0xff]   ;;  %v4733_v43 = vld [vmem:[%s5924_s4 + $0x38] sm:$0xff]   ;;  %v4744_v47 = vld [vmem:[%s5924_s4 + $0x1c0] sm:$0xff]  }
  0x14   : > { %4374 = vmatpush3.bf16.msra.mxu1 %v4716_v25  ;;  %v4736_v44 = vld [vmem:[%s5924_s4 + $0xf8] sm:$0xff]   ;;  %v255_v48 = vld [vmem:[%s5291_s8 + $0x10] sm:$0xff]  ;;  %v3809_v49 = vld [vmem:[%s5921_s1] ss:$0 sm:$0xff] }
  0x15   : > { %4330 = vmatpush3.bf16.msra.mxu0 %v4717_v26  ;;  %4375 = vmatprep.subr.bf16.mxu1 %v4718_v28  ;;  %v4738_v45 = vld [vmem:[%s5924_s4 + $0xb8] sm:$0xff]   ;;  %v253_v50 = vld [vmem:[%s5291_s8] sm:$0xff]  ;;  %v254_v52 = vld [vmem:[%s5291_s8 + $0x8] sm:$0xff]  ;;  %v275_v53 = vmul.f32 %v3809_v49, %v255_v48 }
  0x16   : > { %4331 = vmatprep.subr.bf16.mxu0 %v4719_v29  ;;  %v256_v51 = vld [vmem:[%s5291_s8 + $0x18] sm:$0xff]  ;;  %v5303_v54 = vld [vmem:[%s5922_s2] ss:$0 sm:$0xff]  ;;  %v273_v55 = vmul.f32 %v3809_v49, %v253_v50  ;;  %v274_v57 = vmul.f32 %v3809_v49, %v254_v52  ;;  %v258_v58 = vld [vmem:[%s5291_s8 + $0x28] sm:$0xff] }
  0x17   : > { %379 = vperm.xlu1 %4703, %v328_v16   ;;  %374 = vperm.xlu0 %4702, %v327_v19   ;;  %v276_v56 = vmul.f32 %v3809_v49, %v256_v51  ;;  %v257_v59 = vld [vmem:[%s5291_s8 + $0x20] sm:$0xff]  ;;  %v295_v60 = vadd.f32 %v5303_v54, %v275_v53  ;;  %v278_v0 = vmul.f32 %v3809_v49, %v258_v58  ;;  %v260_v6 = vld [vmem:[%s5291_s8 + $0x38] sm:$0xff]  ;;  %v259_v7 = vld [vmem:[%s5291_s8 + $0x30] sm:$0xff] }
  0x18   : > { %4376 = vmatpush3.bf16.msra.mxu1 %v4720_v30  ;;  %v293_v61 = vadd.f32 %v5303_v54, %v273_v55  ;;  %v294_v63 = vadd.f32 %v5303_v54, %v274_v57  ;;  %v277_v1 = vmul.f32 %v3809_v49, %v257_v59  ;;  %v262_v10 = vld [vmem:[%s5291_s8 + $0x48] sm:$0xff]  ;;  %v261_v11 = vld [vmem:[%s5291_s8 + $0x40] sm:$0xff]  ;;  %v280_v14 = vmul.f32 %v3809_v49, %v260_v6  ;;  %v264_v28 = vld [vmem:[%s5291_s8 + $0x58] sm:$0xff] }
  0x19   : > { %4332 = vmatpush3.bf16.msra.mxu0 %v4721_v31  ;;  %4377 = vmatprep.subr.bf16.mxu1 %v4722_v32  ;;  %v296_v62 = vadd.f32 %v5303_v54, %v276_v56  ;;  %v308_v2 = vmax.f32 %v295_v60, 0.0  ;;  %v298_v8 = vadd.f32 %v5303_v54, %v278_v0  ;;  %v279_v15 = vmul.f32 %v3809_v49, %v259_v7  ;;  %v263_v29 = vld [vmem:[%s5291_s8 + $0x50] sm:$0xff]  ;;  %v265_v32 = vld [vmem:[%s5291_s8 + $0x60] sm:$0xff] }
  0x1a   : > { %4333 = vmatprep.subr.bf16.mxu0 %v4723_v33  ;;  %v306_v3 = vmax.f32 %v293_v61, 0.0  ;;  %v307_v5 = vmax.f32 %v294_v63, 0.0  ;;  %v297_v9 = vadd.f32 %v5303_v54, %v277_v1  ;;  %v300_v20 = vadd.f32 %v5303_v54, %v280_v14 }
  0x1b   : > { %389 = vperm.xlu1 %4703, %v330_v21   ;;  %384 = vperm.xlu0 %4702, %v329_v22   ;;  %v309_v4 = vmax.f32 %v296_v62, 0.0  ;;  %v311_v16 = vmax.f32 %v298_v8, 0.0  ;;  %v299_v21 = vadd.f32 %v5303_v54, %v279_v15  ;;  %v282_v22 = vmul.f32 %v3809_v49, %v262_v10 }
  0x1c   : > { %4378 = vmatpush3.bf16.msra.mxu1 %v4724_v34  ;;  %v310_v17 = vmax.f32 %v297_v9, 0.0  ;;  %v281_v23 = vmul.f32 %v3809_v49, %v261_v11 }
  0x1d   : > { %4334 = vmatpush3.bf16.msra.mxu0 %v4725_v35  ;;  %4379 = vmatprep.subr.bf16.mxu1 %v4726_v36  ;;  %v313_v35 = vmax.f32 %v300_v20, 0.0  ;;  %v312_v36 = vmax.f32 %v299_v21, 0.0  ;;  %v4748_v20 = vld [vmem:[%s5924_s4 + $0x148] sm:$0xff]  }
  0x1e   : > { %4335 = vmatprep.subr.bf16.mxu0 %v4727_v37  ;;  %v302_v37 = vadd.f32 %v5303_v54, %v282_v22 }
  0x1f   : > { %394 = vperm.xlu0 %4702, %v331_v27  }
  0x20   : > { %4380 = vmatpush3.bf16.msra.mxu1 %v4728_v38  ;;  %v301_v38 = vadd.f32 %v5303_v54, %v281_v23 }
  0x21   : > { %4336 = vmatpush3.bf16.msra.mxu0 %v4729_v39  ;;  %4381 = vmatprep.subr.bf16.mxu1 %v4730_v40 }
  0x22   : > { %4337 = vmatprep.subr.bf16.mxu0 %v4731_v41  ;;  %v284_v41 = vmul.f32 %v3809_v49, %v264_v28  ;;  %v314_v48 = vmax.f32 %v301_v38, 0.0 }
  0x24   : > { %4382 = vmatpush3.bf16.msra.mxu1 %v4732_v42  ;;  %v283_v42 = vmul.f32 %v3809_v49, %v263_v29  ;;  %v304_v52 = vadd.f32 %v5303_v54, %v284_v41  ;;  %v4755_v41 = vld [vmem:[%s5924_s4 + $0x150] sm:$0xff]  }
  0x25   : > { %4338 = vmatpush3.bf16.msra.mxu0 %v4733_v43  ;;  %4383 = vmatprep.subr.bf16.mxu1 %v4736_v44  ;;  %v285_v43 = vmul.f32 %v3809_v49, %v265_v32 }
  0x26   : > { %4415 = vmatprep.subr.bf16.mxu0 %v4740_v46  ;;  %v303_v53 = vadd.f32 %v5303_v54, %v283_v42  ;;  %v317_v60 = vmax.f32 %v304_v52, 0.0  ;;  %v4747_v42 = vld [vmem:[%s5924_s4 + $0x180] sm:$0xff]   ;;  %v4752_v52 = vld [vmem:[%s5924_s4 + $0x1c8] sm:$0xff]  }
  0x27   : > { %v305_v55 = vadd.f32 %v5303_v54, %v285_v43 }
  0x28   : > { %4384 = vmatpush3.bf16.msra.mxu1 %v4738_v45  ;;  %v316_v61 = vmax.f32 %v303_v53, 0.0 }
  0x29   : > { %4461 = vmatprep.subr.bf16.mxu1 %v4744_v47  ;;  %v315_v47 = vmax.f32 %v302_v37, 0.0  ;;  %v318_v0 = vmax.f32 %v305_v55, 0.0 }
  0x86   : > { %v345_v12 = vpop.permute.xlu1 %344  ;;  %v335_v13 = vpop.permute.xlu0 %334 }
  0x87   : > { %v399_v24 = vmul.f32 %v345_v12, %v308_v2  ;;  %v397_v25 = vmul.f32 %v335_v13, %v306_v3  ;;  %v4741_v13 = vld [vmem:[%s5924_s4 + $0x100] sm:$0xff]  }
  0x8a   : > { %v350_v18 = vpop.permute.xlu1 %349  ;;  %v340_v19 = vpop.permute.xlu0 %339 }
  0x8b   : > { %v400_v26 = vmul.f32 %v350_v18, %v309_v4  ;;  %v398_v27 = vmul.f32 %v340_v19, %v307_v5 }
  0x8d   : > { %v4296_v30 = vpack.c.bf16 %v400_v26, %v399_v24  ;;  %v4291_v31 = vpack.c.bf16 %v398_v27, %v397_v25 }
  0x8e   : > { %v360_v33 = vpop.permute.xlu1 %359  ;;  %v355_v34 = vpop.permute.xlu0 %354 }
  0x8f   : > { %4318 = vst [vmem:[#allocation2 + $0x8] sm:$0xff] %v4296_v30   ;;  %4292 = vst [vmem:[#allocation2] sm:$0xff] %v4291_v31   ;;  %v402_v39 = vmul.f32 %v360_v33, %v311_v16  ;;  %v401_v40 = vmul.f32 %v355_v34, %v310_v17 }
  0x91   : > { %v4301_v44 = vpack.c.bf16 %v402_v39, %v401_v40 }
  0x92   : > { %v370_v45 = vpop.permute.xlu1 %369  ;;  %v365_v46 = vpop.permute.xlu0 %364 }
  0x93   : > { %4319 = vst [vmem:[#allocation2 + $0x10] sm:$0xff] %v4301_v44   ;;  %v404_v50 = vmul.f32 %v370_v45, %v313_v35  ;;  %v403_v51 = vmul.f32 %v365_v46, %v312_v36  ;;  %v4750_v36 = vld [vmem:[%s5924_s4 + $0x108] sm:$0xff]  }
  0x95   : > { %v4306_v56 = vpack.c.bf16 %v404_v50, %v403_v51 }
  0x96   : > { %v380_v57 = vpop.permute.xlu1 %379  ;;  %v375_v58 = vpop.permute.xlu0 %374  ;;  %v4734_v62 = vld [vmem:[#allocation2] sm:$0xff]   ;;  %v4735_v63 = vld [vmem:[#allocation2 + $0x8] sm:$0xff]  }
  0x97   : > { %4320 = vst [vmem:[#allocation2 + $0x18] sm:$0xff] %v4306_v56   ;;  %v406_v49 = vmul.f32 %v380_v57, %v315_v47  ;;  %v405_v59 = vmul.f32 %v375_v58, %v314_v48  ;;  %v562_v2 = vshrl.u32 %v4734_v62, 16  ;;  %v564_v3 = vshll.u32 %v4734_v62, 16  ;;  %v4742_v14 = vld [vmem:[#allocation2 + $0x4] sm:$0xfe]  }
  0x98   : > { %v569_v4 = vshll.u32 %v4735_v63, 16  ;;  %v573_v54 = vshrl.u32 %v4735_v63, 16  ;;  %v4737_v18 = vld [vmem:[#allocation2] sm:$0xff]   ;;  %v717_v23 = vshrl.u32 %v4742_v14, 16  ;;  %v720_v24 = vshll.u32 %v4742_v14, 16  ;;  %v4754_v62 = vld [vmem:[%s5924_s4 + $0x188] sm:$0xff]  }
  0x99   : > { %v4311_v1 = vpack.c.bf16 %v406_v49, %v405_v59  ;;  %v566_v10 = vrot.slane %v564_v3, 1  ;;  %v4745_v29 = vld [vmem:[#allocation2 + $0x4] sm:$0xfe]   ;;  %v4757_v49 = vld [vmem:[%s5924_s4 + $0x110] sm:$0xff]  }
  0x9a   : > { %v390_v5 = vpop.permute.xlu1 %389  ;;  %v385_v6 = vpop.permute.xlu0 %384  ;;  %v5327_v7 = vld [vmem:[#allocation2 + $0x10] sm:$0xff]   ;;  %v571_v11 = vrot.slane %v569_v4, 1  ;;  %v719_v32 = vrot.slane %v717_v23, 1  ;;  %v722_v33 = vrot.slane %v720_v24, 2  ;;  %v655_v47 = vrot.slane %v4745_v29, 1  ;;  %v4766_v24 = vld [vmem:[%s5924_s4 + $0x198] sm:$0xff]  }
  0x9b   : > { %4321 = vst [vmem:[#allocation2 + $0x20] sm:$0xff] %v4311_v1   ;;  %v408_v8 = vmul.f32 %v390_v5, %v317_v60  ;;  %v407_v9 = vmul.f32 %v385_v6, %v316_v61  ;;  %v577_v12 = vshll.u32 %v5327_v7, 16  ;;  %v4743_v15 = vld [vmem:[#allocation2 + $0xc] sm:$0xff]   ;;  %v567_v17 = vor.u32 %v566_v10, %v562_v2  ;;  %v4762_v1 = vld [vmem:[%s5924_s4 + $0x158] sm:$0xff]  }
  0x9c   : > { %v575_v19 = vor.u32 %v573_v54, %v571_v11  ;;  %v725_v25 = vshrl.u32 %v4743_v15, 16  ;;  %v728_v28 = vshll.u32 %v4743_v15, 16  ;;  %v5337_v30 = vld [vmem:[#allocation2 + $0xc] sm:$0xff]   ;;  %v723_v45 = vor.u32 %v722_v33, %v719_v32  ;;  %v4765_v15 = vld [vmem:[%s5924_s4 + $0x1d8] sm:$0xff]   ;;  %v4771_v33 = vld [vmem:[%s5924_s4 + $0x1e0] sm:$0xff]  }
  0x9d   : > { %v4316_v16 = vpack.c.bf16 %v408_v8, %v407_v9  ;;  %v579_v22 = vrot.slane %v577_v12, 1  ;;  %v572_v27 = vsel %vm560_vm0, %v567_v17, %v571_v11  ;;  %v656_v39 = vrot.slane %v5337_v30, 1  ;;  %v4751_v61 = vld [vmem:[#allocation2 + $0x8] sm:$0xff]   ;;  %v4759_v8 = vld [vmem:[%s5924_s4 + $0x1d0] sm:$0xff]   ;;  %v4769_v17 = vld [vmem:[%s5924_s4 + $0x160] sm:$0xff]  }
  0x9e   : > { %v395_v21 = vpop.permute.xlu0 %394  ;;  %1094 = vmatprep.mubr.bf16.mxu0 %v572_v27  ;;  %v727_v34 = vrot.slane %v725_v25, 1  ;;  %v4749_v35 = vld [vmem:[#allocation2 + $0x14] sm:$0xff]   ;;  %v730_v38 = vrot.slane %v728_v28, 2  ;;  %v581_v53 = vshrl.u32 %v5327_v7, 16  ;;  %v4775_v30 = vld [vmem:[%s5924_s4 + $0x168] sm:$0xff]  }
  0x9f   : > { %4322 = vst [vmem:[#allocation2 + $0x28] sm:$0xff] %v4316_v16   ;;  %v409_v26 = vmul.f32 %v395_v21, %v318_v0  ;;  %v580_v31 = vsel %vm560_vm0, %v575_v19, %v579_v22  ;;  %1095 = vmatmul.mubr.bf16.vlgmr.msra.gmra.mrb[0].mxu0 %v4737_v18  ;;  %v5344_v40 = vld [vmem:[#allocation2 + $0x18] sm:$0xff]   ;;  %v734_v43 = vshrl.u32 %v4749_v35, 16  ;;  %v737_v44 = vshll.u32 %v4749_v35, 16  ;;  %v4760_v12 = vld [vmem:[%s5924_s4 + $0x190] sm:$0xff]   ;;  %v4770_v21 = vld [vmem:[%s5924_s4 + $0x120] sm:$0xff]  }
  0xa0   : > { %1102 = vmatprep.mubr.bf16.mxu0 %v580_v31  ;;  %4416 = vmatpush3.bf16.msra.mxu0 %v4741_v13  ;;  %v731_v46 = vor.u32 %v730_v38, %v727_v34  ;;  %v585_v48 = vshll.u32 %v5344_v40, 16  ;;  %v5358_v58 = vld [vmem:[#allocation2 + $0x14] sm:$0xff]   ;;  %v657_v59 = vsel %vm654_vm2, %v655_v47, %v656_v39  ;;  %v583_v3 = vor.u32 %v581_v53, %v579_v22  ;;  %v4776_v38 = vld [vmem:[%s5924_s4 + $0x128] sm:$0xff]  }
  0xa1   : > { %v4287_v37 = vpack.c.bf16 %v409_v26, %v409_v26  ;;  %4417 = vmatprep.subr.bf16.mxu0 %v4748_v20  ;;  %v736_v50 = vrot.slane %v734_v43, 1  ;;  %v739_v51 = vrot.slane %v737_v44, 2  ;;  %v658_v54 = vrot.slane %v5358_v58, 1  ;;  %v4764_v13 = vld [vmem:[%s5924_s4 + $0x118] sm:$0xff]   ;;  %v4761_v23 = vld [vmem:[#allocation2 + $0x10] sm:$0xff]  }
  0xa2   : > { %v4758_v55 = vld [vmem:[#allocation2 + $0x1c] sm:$0xff]   ;;  %v732_v56 = vsel %vm715_vm1, %v723_v45, %v731_v46  ;;  %v587_v57 = vrot.slane %v585_v48, 1  ;;  %v589_v19 = vshrl.u32 %v5344_v40, 16  ;;  %v4786_v58 = vld [vmem:[%s5924_s4 + $0x1f0] sm:$0xff]  }
  0xa3   : > { %475 = vst [vmem:[#allocation2 + $0x30] sm:$0xf] %v4287_v37  ;;  %1167 = vmatprep.mubr.bf16.mxu1 %v732_v56  ;;  %v740_v60 = vor.u32 %v739_v51, %v736_v50  ;;  %v743_v63 = vshrl.u32 %v4758_v55, 16  ;;  %v746_v0 = vshll.u32 %v4758_v55, 16  ;;  %v5372_v2 = vld [vmem:[#allocation2 + $0x20] sm:$0xff]   ;;  %v659_v22 = vsel %vm654_vm2, %v656_v39, %v658_v54  ;;  %v4778_v39 = vld [vmem:[%s5924_s4 + $0x1e8] sm:$0xff]  }
  0xa4   : > { %4418 = vmatpush3.bf16.msra.mxu0 %v4750_v36  ;;  %1168 = vmatmul.mubr.bf16.vlgmr.msra.gmra.mrb[0].mxu1 %v657_v59  ;;  %v588_v7 = vsel %vm560_vm0, %v583_v3, %v587_v57  ;;  %v593_v9 = vshll.u32 %v5372_v2, 16  ;;  %v5403_v25 = vld [vmem:[#allocation2 + $0x1c] sm:$0xff]   ;;  %v591_v28 = vor.u32 %v589_v19, %v587_v57  ;;  %v597_v44 = vshrl.u32 %v5372_v2, 16  ;;  %v4780_v50 = vld [vmem:[%s5924_s4 + $0x1a8] sm:$0xff]  }
  0xa5   : > { %4419 = vmatprep.subr.bf16.mxu0 %v4755_v41  ;;  %4462 = vmatpush3.bf16.msra.mxu1 %v4747_v42  ;;  %v741_v4 = vsel %vm715_vm1, %v731_v46, %v740_v60  ;;  %v745_v5 = vrot.slane %v743_v63, 1  ;;  %v748_v6 = vrot.slane %v746_v0, 2  ;;  %v660_v35 = vrot.slane %v5403_v25, 1  ;;  %v4773_v37 = vld [vmem:[%s5924_s4 + $0x1a0] sm:$0xff]   ;;  %v4781_v42 = vld [vmem:[%s5924_s4 + $0x170] sm:$0xff]   ;;  %v4772_v43 = vld [vmem:[#allocation2 + $0x18] sm:$0xff]  }
  0xa6   : > { %1175 = vmatprep.mubr.bf16.mxu1 %v741_v4  ;;  %v4768_v10 = vld [vmem:[#allocation2 + $0x24] sm:$0xff]   ;;  %4463 = vmatprep.subr.bf16.mxu1 %v4752_v52  ;;  %v595_v20 = vrot.slane %v593_v9, 1  ;;  %v4779_v31 = vld [vmem:[#allocation2 + $0x2c] ss:$0 sps:$4 sm:$0x33]   ;;  %v4783_v46 = vld [vmem:[%s5924_s4 + $0x130] sm:$0xff]  }
  0xa7   : > { %1103 = vmatmul.mubr.bf16.gmra.mrb[4].mxu0 %v4751_v61  ;;  %v749_v11 = vor.u32 %v748_v6, %v745_v5  ;;  %v752_v14 = vshrl.u32 %v4768_v10, 16  ;;  %v755_v16 = vshll.u32 %v4768_v10, 16  ;;  %v4774_v18 = vld [vmem:[#allocation2 + $0x28] ss:$0 sps:$4 sm:$0x11]   ;;  %v761_v40 = vshrl.u32 %v4779_v31, 16 }
  0xa8   : > { %1110 = vmatprep.mubr.bf16.mxu0 %v588_v7  ;;  %4420 = vmatpush3.bf16.msra.mxu0 %v4757_v49  ;;  %v596_v32 = vsel %vm560_vm0, %v591_v28, %v595_v20  ;;  %v601_v34 = vshll.u32 %v4774_v18, 16  ;;  %v764_v41 = vshll.u32 %v4779_v31, 16  ;;  %v661_v47 = vsel %vm654_vm2, %v658_v54, %v660_v35  ;;  %v5431_v48 = vld [vmem:[#allocation2 + $0x24] sm:$0xff]   ;;  %v4789_v51 = vld [vmem:[%s5924_s4 + $0x178] sm:$0xff]   ;;  %v4787_v63 = vld [vmem:[%s5924_s4 + $0x1b0] sm:$0xff]  }
  0xa9   : > { %4464 = vmatpush3.bf16.msra.mxu1 %v4754_v62  ;;  %4421 = vmatprep.subr.bf16.mxu0 %v4762_v1  ;;  %v754_v26 = vrot.slane %v752_v14, 1  ;;  %v750_v27 = vsel %vm715_vm1, %v740_v60, %v749_v11  ;;  %v757_v29 = vrot.slane %v755_v16, 2  ;;  %v599_v53 = vor.u32 %v597_v44, %v595_v20  ;;  %v5440_v57 = vld [vmem:[#allocation2 + $0x8] sm:$0xff]   ;;  %v4795_v59 = vld [vmem:[#allocation2] sm:$0xff]   ;;  %v4790_v1 = vld [vmem:[%s5924_s4 + $0x138] sm:$0xff]  }
  0xaa   : > { %4465 = vmatprep.subr.bf16.mxu1 %v4759_v8  ;;  %v603_v45 = vrot.slane %v601_v34, 1  ;;  %v763_v55 = vrot.slane %v761_v40, 1  ;;  %v766_v56 = vrot.slane %v764_v41, 2  ;;  %v4788_v49 = vld [vmem:[#allocation2 + $0x2c] ss:$0 sps:$4 sm:$0x11]  }
  0xab   : > { %v758_v36 = vor.u32 %v757_v29, %v754_v26  ;;  %v4784_v61 = vld [vmem:[#allocation2] sm:$0xfe]   ;;  %v662_v62 = vrot.slane %v5431_v48, 1  ;;  %v4793_v2 = vld [vmem:[%s5924_s4 + $0x1f8] sm:$0xff]   ;;  %v1320_v3 = vshll.u32 %v4795_v59, 16  ;;  %v1411_v7 = vrot.slane %v5440_v57, 1 }
  0xac   : > { %1176 = vmatmul.mubr.bf16.gmra.mrb[4].mxu1 %v659_v22  ;;  %4422 = vmatpush3.bf16.msra.mxu0 %v4764_v13  ;;  %v604_v60 = vsel %vm560_vm0, %v599_v53, %v603_v45  ;;  %v767_v0 = vor.u32 %v766_v56, %v763_v55  ;;  %v4798_v4 = vld [vmem:[%s5924_s4 + $0x240] sm:$0xff]   ;;  %v1410_v6 = vrot.slane %v4784_v61, 1  ;;  %v5460_v54 = vld [vmem:[#allocation2 + $0x8] sm:$0xff]   ;;  %v664_v9 = vrot.slane %v4788_v49, 1  ;;  %v5480_v31 = vld [vmem:[#allocation2 + $0x10] sm:$0xff]  }
  0xad   : > { %1183 = vmatprep.mubr.bf16.mxu1 %v750_v27  ;;  %4466 = vmatpush3.bf16.msra.mxu1 %v4760_v12  ;;  %v759_v52 = vsel %vm715_vm1, %v749_v11, %v758_v36  ;;  %v4782_v5 = vld [vmem:[#allocation2 + $0x20] sm:$0xff]   ;;  %v663_v8 = vsel %vm654_vm2, %v660_v35, %v662_v62  ;;  %v5463_v10 = vld [vmem:[#allocation2 + $0xc] sm:$0xff]   ;;  %v4794_v11 = vld [vmem:[%s5924_s4 + $0x1b8] sm:$0xff]   ;;  %v1322_v18 = vrot.slane %v1320_v3, 1  ;;  %v1325_v20 = vshll.u32 %v5460_v54, 16 }
  0xae   : > { %4467 = vmatprep.subr.bf16.mxu1 %v4765_v15  ;;  %4423 = vmatprep.subr.bf16.mxu0 %v4769_v17  ;;  %v4802_v12 = vld [vmem:[#allocation2 + $0xc] sm:$0xff]   ;;  %v768_v13 = vsel %vm715_vm1, %v758_v36, %v767_v0  ;;  %v4791_v14 = vld [vmem:[#allocation2 + $0x4] sm:$0xfc]   ;;  %v1318_v17 = vshrl.u32 %v4795_v59, 16  ;;  %v1412_v19 = vsel %vm654_vm2, %v1410_v6, %v1411_v7  ;;  %v5488_v40 = vld [vmem:[#allocation2 + $0x14] sm:$0xff]   ;;  %v1329_v56 = vshrl.u32 %v5460_v54, 16 }
  0xaf   : > { %1111 = vmatmul.mubr.bf16.gmra.mrb[8].mxu0 %v4761_v23  ;;  %v4800_v15 = vld [vmem:[%s5924_s4 + $0x2c0] sm:$0xff]   ;;  %v1479_v22 = vshrl.u32 %v4802_v12, 16  ;;  %v1482_v23 = vshll.u32 %v4802_v12, 16  ;;  %v1573_v26 = vrot.slane %v4791_v14, 2  ;;  %v1327_v34 = vrot.slane %v1325_v20, 1  ;;  %v4806_v45 = vld [vmem:[%s5924_s4 + $0x208] sm:$0xff]  }
  0xb0   : > { %1118 = vmatprep.mubr.bf16.mxu0 %v596_v32  ;;  %4424 = vmatpush3.bf16.msra.mxu0 %v4770_v21  ;;  %v4801_v16 = vld [vmem:[#allocation2 + $0x4] sm:$0xfe]   ;;  %v5474_v21 = vld [vmem:[#allocation2 + $0x10] sm:$0xff]   ;;  %v1323_v27 = vor.u32 %v1322_v18, %v1318_v17  ;;  %v5512_v59 = vld [vmem:[#allocation2 + $0x18] sm:$0xff]   ;;  %v1337_v17 = vshrl.u32 %v5480_v31, 16 }
  0xb1   : > { %4468 = vmatpush3.bf16.msra.mxu1 %v4766_v24  ;;  %4425 = vmatprep.subr.bf16.mxu0 %v4775_v30  ;;  %v1574_v24 = vrot.slane %v5463_v10, 2  ;;  %v1471_v25 = vshrl.u32 %v4801_v16, 16  ;;  %v4799_v28 = vld [vmem:[%s5924_s4 + $0x200] sm:$0xff]   ;;  %v1474_v29 = vshll.u32 %v4801_v16, 16  ;;  %v1413_v30 = vrot.slane %v5474_v21, 1  ;;  %v4812_v32 = vld [vmem:[#allocation2 + $0x14] sm:$0xff]  }
  0xb2   : > { %4469 = vmatprep.subr.bf16.mxu1 %v4771_v33  ;;  %v665_v33 = vsel %vm654_vm2, %v662_v62, %v664_v9  ;;  %v1481_v35 = vrot.slane %v1479_v22, 1  ;;  %v1484_v36 = vrot.slane %v1482_v23, 2  ;;  %v1328_v41 = vsel %vm560_vm0, %v1323_v27, %v1327_v34  ;;  %v4811_v53 = vld [vmem:[%s5924_s4 + $0x250] sm:$0xff]   ;;  %v4818_v62 = vld [vmem:[%s5924_s4 + $0x258] sm:$0xff]   ;;  %v5535_v10 = vld [vmem:[#allocation2 + $0x20] sm:$0xff]  }
  0xb3   : > { %v1414_v44 = vsel %vm654_vm2, %v1411_v7, %v1413_v30  ;;  %v1491_v48 = vshll.u32 %v4812_v32, 16  ;;  %v4813_v49 = vld [vmem:[%s5924_s4 + $0x210] sm:$0xff]   ;;  %v1331_v0 = vor.u32 %v1329_v56, %v1327_v34  ;;  %v4810_v7 = vld [vmem:[%s5924_s4 + $0x288] sm:$0xff]   ;;  %v4821_v18 = vld [vmem:[%s5924_s4 + $0x2d8] sm:$0xff]  }
  0xb4   : > { %1184 = vmatmul.mubr.bf16.gmra.mrb[8].mxu1 %v661_v47  ;;  %4426 = vmatpush3.bf16.msra.mxu0 %v4776_v38  ;;  %v1575_v38 = vsel %vm1572_vm3, %v1573_v26, %v1574_v24  ;;  %v1488_v47 = vshrl.u32 %v4812_v32, 16  ;;  %v4815_v54 = vld [vmem:[%s5924_s4 + $0x2d0] sm:$0xff]   ;;  %v4825_v20 = vld [vmem:[%s5924_s4 + $0x260] sm:$0xff]   ;;  %v4831_v32 = vld [vmem:[%s5924_s4 + $0x268] sm:$0xff]  }
  0xb5   : > { %1191 = vmatprep.mubr.bf16.mxu1 %v759_v52  ;;  %4470 = vmatpush3.bf16.msra.mxu1 %v4773_v37  ;;  %v4805_v37 = vld [vmem:[%s5924_s4 + $0x248] sm:$0xff]   ;;  %v1576_v52 = vrot.slane %v5488_v40, 2 }
  0xb6   : > { %4471 = vmatprep.subr.bf16.mxu1 %v4778_v39  ;;  %4427 = vmatprep.subr.bf16.mxu0 %v4781_v42  ;;  %v1473_v39 = vrot.slane %v1471_v25, 1  ;;  %v1476_v42 = vrot.slane %v1474_v29, 2  ;;  %v1490_v61 = vrot.slane %v1488_v47, 1  ;;  %v4833_v23 = vld [vmem:[#allocation2 + $0x24] sm:$0xff]   ;;  %v4837_v47 = vld [vmem:[%s5924_s4 + $0x270] sm:$0xff]  }
  0xb7   : > { %1119 = vmatmul.mubr.bf16.gmra.mrb[12].mxu0 %v4772_v43  ;;  %v1333_v43 = vshll.u32 %v5480_v31, 16  ;;  %v1577_v3 = vsel %vm1572_vm3, %v1574_v24, %v1576_v52  ;;  %v1417_v24 = vrot.slane %v5535_v10, 1  ;;  %v5557_v25 = vld [vmem:[#allocation2 + $0x28] ss:$0 sps:$4 sm:$0x11]   ;;  %v4854_v10 = vld [vmem:[%s5924_s4 + $0x340] sm:$0xff]  }
  0xb8   : > { %1126 = vmatprep.mubr.bf16.mxu0 %v604_v60  ;;  %4428 = vmatpush3.bf16.msra.mxu0 %v4783_v46  ;;  %v5496_v46 = vld [vmem:[#allocation2 + $0x18] sm:$0xff]   ;;  %v1477_v55 = vor.u32 %v1476_v42, %v1473_v39  ;;  %v4832_v40 = vld [vmem:[%s5924_s4 + $0x228] sm:$0xff]  }
  0xb9   : > { %4472 = vmatpush3.bf16.msra.mxu1 %v4780_v50  ;;  %4429 = vmatprep.subr.bf16.mxu0 %v4789_v51  ;;  %v1485_v50 = vor.u32 %v1484_v36, %v1481_v35  ;;  %v4803_v51 = vld [vmem:[%s5924_s4 + $0x280] sm:$0xff]   ;;  %v1335_v57 = vrot.slane %v1333_v43, 1  ;;  %v1415_v60 = vrot.slane %v5496_v46, 1  ;;  %v1345_v36 = vshrl.u32 %v5512_v59, 16  ;;  %v4834_v46 = vld [vmem:[%s5924_s4 + $0x2e8] sm:$0xff]  }
  0xba   : > { %4473 = vmatprep.subr.bf16.mxu1 %v4786_v58  ;;  %v4808_v58 = vld [vmem:[%s5924_s4 + $0x2c8] sm:$0xff]   ;;  %v4827_v35 = vld [vmem:[%s5924_s4 + $0x2e0] sm:$0xff]  }
  0xbb   : > { %v1336_v6 = vsel %vm560_vm0, %v1331_v0, %v1335_v57  ;;  %v1416_v9 = vsel %vm654_vm2, %v1413_v30, %v1415_v60  ;;  %v1339_v27 = vor.u32 %v1337_v17, %v1335_v57  ;;  %v4826_v30 = vld [vmem:[%s5924_s4 + $0x220] sm:$0xff]   ;;  %v4838_v42 = vld [vmem:[#allocation2 + $0x28] ss:$0 sps:$4 sm:$0x11]   ;;  %v1418_v43 = vsel %vm654_vm2, %v1415_v60, %v1417_v24  ;;  %v4839_v57 = vld [vmem:[%s5924_s4 + $0x230] sm:$0xff]  }
  0xbc   : > { %1192 = vmatmul.mubr.bf16.gmra.mrb[12].mxu1 %v663_v8  ;;  %4430 = vmatpush3.bf16.msra.mxu0 %v4790_v1  ;;  %v1493_v1 = vrot.slane %v1491_v48, 2  ;;  %v1341_v8 = vshll.u32 %v5512_v59, 16  ;;  %v4835_v56 = vld [vmem:[#allocation2 + $0x2c] ss:$0 sps:$4 sm:$0x33]   ;;  %v1357_v59 = vshll.u32 %v4838_v42, 16 }
  0xbd   : > { %1199 = vmatprep.mubr.bf16.mxu1 %v768_v13  ;;  %4474 = vmatpush3.bf16.msra.mxu1 %v4787_v63  ;;  %v1486_v63 = vsel %vm715_vm1, %v1477_v55, %v1485_v50  ;;  %v4816_v13 = vld [vmem:[%s5924_s4 + $0x290] sm:$0xff]   ;;  %v4845_v60 = vld [vmem:[%s5924_s4 + $0x278] sm:$0xff]  }
  0xbe   : > { %4475 = vmatprep.subr.bf16.mxu1 %v4793_v2  ;;  %4507 = vmatprep.subr.bf16.mxu0 %v4798_v4  ;;  %v4823_v2 = vld [vmem:[#allocation2 + $0x1c] sm:$0xff]   ;;  %v5540_v12 = vor.u32 %v1493_v1, %v1490_v61  ;;  %v1343_v22 = vrot.slane %v1341_v8, 1 }
  0xbf   : > { %1127 = vmatmul.mubr.bf16.gmra.mrb[16].mxu0 %v4782_v5  ;;  %v5520_v4 = vld [vmem:[#allocation2 + $0x1c] sm:$0xff]   ;;  %v1497_v14 = vshrl.u32 %v4823_v2, 16 }
  0xc0   : > { %1910 = vmatprep.mubr.bf16.mxu0 %v1412_v19  ;;  %v5522_v5 = vld [vmem:[#allocation2 + $0x20] sm:$0xff]   ;;  %v1578_v16 = vrot.slane %v5520_v4, 2  ;;  %v1495_v26 = vsel %vm715_vm1, %v1485_v50, %v5540_v12  ;;  %v1344_v39 = vsel %vm560_vm0, %v1339_v27, %v1343_v22  ;;  %v4846_v4 = vld [vmem:[%s5924_s4 + $0x238] sm:$0xff]  }
  0xc1   : > { %4476 = vmatpush3.bf16.msra.mxu1 %v4794_v11  ;;  %v4820_v11 = vld [vmem:[%s5924_s4 + $0x218] sm:$0xff]   ;;  %v5550_v19 = vld [vmem:[#allocation2 + $0x24] sm:$0xff]   ;;  %v1349_v21 = vshll.u32 %v5522_v5, 16  ;;  %v1499_v29 = vrot.slane %v1497_v14, 1  ;;  %v1353_v17 = vshrl.u32 %v5522_v5, 16 }
  0xc2   : > { %4553 = vmatprep.subr.bf16.mxu1 %v4800_v15  ;;  %v1500_v15 = vshll.u32 %v4823_v2, 16  ;;  %v1580_v34 = vrot.slane %v5550_v19, 2  ;;  %v4829_v50 = vld [vmem:[%s5924_s4 + $0x2a0] sm:$0xff]   ;;  %v4853_v14 = vld [vmem:[#allocation2 + $0x14] sm:$0xff]  }
  0xc3   : > { %v4856_v19 = vld [vmem:[%s5924_s4 + $0x3c0] sm:$0xff]  }
  0xc4   : > { %1200 = vmatmul.mubr.bf16.gmra.mrb[16].mxu1 %v665_v33  ;;  %v1502_v31 = vrot.slane %v1500_v15, 2  ;;  %v1579_v33 = vsel %vm1572_vm3, %v1576_v52, %v1578_v16  ;;  %v1581_v2 = vsel %vm1572_vm3, %v1578_v16, %v1580_v34  ;;  %v1582_v16 = vrot.slane %v4835_v56, 2  ;;  %v4855_v56 = vld [vmem:[%s5924_s4 + $0x300] sm:$0xff]  }
  0xc5   : > { %1983 = vmatprep.mubr.bf16.mxu1 %v1575_v38  ;;  %v4841_v38 = vld [vmem:[#allocation2 + $0xc] sm:$0xff]  }
  0xc6   : > { %v5593_v48 = vor.u32 %v1502_v31, %v1499_v29  ;;  %v2203_v52 = vshrl.u32 %v4841_v38, 16  ;;  %v2212_v31 = vshrl.u32 %v4853_v14, 16 }
  0xc7   : > { %1911 = vmatmul.mubr.bf16.vlgmr.msra.gmra.mrb[20].mxu0 %v1328_v41  ;;  %v1506_v41 = vshrl.u32 %v4833_v23, 16 }
  0xc8   : > { %1918 = vmatprep.mubr.bf16.mxu0 %v1414_v44  ;;  %4508 = vmatpush3.bf16.msra.mxu0 %v4799_v28  ;;  %v4822_v28 = vld [vmem:[%s5924_s4 + $0x298] sm:$0xff]   ;;  %v1419_v44 = vrot.slane %v5557_v25, 1  ;;  %v1504_v61 = vsel %vm715_vm1, %v5540_v12, %v5593_v48 }
  0xc9   : > { %4509 = vmatprep.subr.bf16.mxu0 %v4805_v37  ;;  %v5578_v37 = vrot.slane %v1349_v21, 1  ;;  %v1508_v55 = vrot.slane %v1506_v41, 1  ;;  %v4849_v25 = vld [vmem:[%s5924_s4 + $0x2f8] sm:$0xff]  }
  0xca   : > { %v1420_v12 = vsel %vm654_vm2, %v1417_v24, %v1419_v44  ;;  %v4860_v41 = vld [vmem:[#allocation2 + $0x18] sm:$0xff]  }
  0xcc   : > { %4510 = vmatpush3.bf16.msra.mxu0 %v4806_v45  ;;  %1984 = vmatmul.mubr.bf16.vlgmr.msra.gmra.mrb[20].mxu1 %v1486_v63  ;;  %v1509_v45 = vshll.u32 %v4833_v23, 16  ;;  %v4836_v63 = vld [vmem:[%s5924_s4 + $0x2a8] sm:$0xff]  }
  0xcd   : > { %4511 = vmatprep.subr.bf16.mxu0 %v4811_v53  ;;  %4554 = vmatpush3.bf16.msra.mxu1 %v4803_v51  ;;  %v4840_v51 = vld [vmem:[#allocation2 + $0x4] sm:$0xfe]   ;;  %v4844_v53 = vld [vmem:[#allocation2 + $0x2c] ss:$0 sps:$4 sm:$0x33]  }
  0xce   : > { %1991 = vmatprep.mubr.bf16.mxu1 %v1577_v3  ;;  %4555 = vmatprep.subr.bf16.mxu1 %v4808_v58  ;;  %v2206_v58 = vshll.u32 %v4841_v38, 16  ;;  %v2195_v0 = vshrl.u32 %v4840_v51, 16  ;;  %v2198_v1 = vshll.u32 %v4840_v51, 16  ;;  %v2205_v3 = vrot.slane %v2203_v52, 1  ;;  %v4851_v51 = vld [vmem:[#allocation2 + $0x4] sm:$0xfe]  }
  0xcf   : > { %1919 = vmatmul.mubr.bf16.gmra.mrb[24].mxu0 %v1336_v6  ;;  %v4842_v6 = vld [vmem:[%s5924_s4 + $0x2f0] sm:$0xff]   ;;  %v2375_v52 = vshrl.u32 %v4860_v41, 16 }
  0xd0   : > { %1926 = vmatprep.mubr.bf16.mxu0 %v1416_v9  ;;  %4512 = vmatpush3.bf16.msra.mxu0 %v4813_v49  ;;  %v1511_v49 = vrot.slane %v1509_v45, 2  ;;  %v2208_v8 = vrot.slane %v2206_v58, 2  ;;  %v1515_v9 = vshrl.u32 %v4844_v53, 16  ;;  %v2197_v21 = vrot.slane %v2195_v0, 1  ;;  %v4870_v0 = vld [vmem:[#allocation2 + $0x20] sm:$0xff]  }
  0xd1   : > { %4513 = vmatprep.subr.bf16.mxu0 %v4818_v62  ;;  %4556 = vmatpush3.bf16.msra.mxu1 %v4810_v7  ;;  %v1347_v62 = vor.u32 %v1345_v36, %v1343_v22  ;;  %v4848_v7 = vld [vmem:[#allocation2 + $0x10] sm:$0xff]   ;;  %v2200_v22 = vrot.slane %v2198_v1, 2  ;;  %v2214_v45 = vrot.slane %v2212_v31, 1 }
  0xd2   : > { %4557 = vmatprep.subr.bf16.mxu1 %v4815_v54  ;;  %v5629_v15 = vor.u32 %v1511_v49, %v1508_v55  ;;  %v2366_v23 = vshrl.u32 %v4848_v7, 16  ;;  %v2369_v24 = vshll.u32 %v4848_v7, 16  ;;  %v5641_v5 = vor.u32 %v2208_v8, %v2205_v3  ;;  %v5677_v8 = vld [vmem:[#allocation2 + $0x14] sm:$0xff]  }
  0xd3   : > { %v1352_v54 = vsel %vm560_vm0, %v1347_v62, %v5578_v37  ;;  %v2201_v36 = vor.u32 %v2200_v22, %v2197_v21  ;;  %v2377_v3 = vrot.slane %v2375_v52, 2  ;;  %v4864_v21 = vld [vmem:[%s5924_s4 + $0x3c8] sm:$0xff]   ;;  %v4869_v22 = vld [vmem:[%s5924_s4 + $0x310] sm:$0xff]  }
  0xd4   : > { %4514 = vmatpush3.bf16.msra.mxu0 %v4820_v11  ;;  %1992 = vmatmul.mubr.bf16.gmra.mrb[24].mxu1 %v1495_v26  ;;  %v4847_v11 = vld [vmem:[#allocation2 + $0x8] sm:$0xfc]   ;;  %v1517_v26 = vrot.slane %v1515_v9, 1  ;;  %v2368_v38 = vrot.slane %v2366_v23, 2 }
  0xd5   : > { %4515 = vmatprep.subr.bf16.mxu0 %v4825_v20  ;;  %1999 = vmatprep.mubr.bf16.mxu1 %v1579_v33  ;;  %v4843_v20 = vld [vmem:[%s5924_s4 + $0x2b0] sm:$0xff]   ;;  %v2358_v27 = vshrl.u32 %v4847_v11, 16  ;;  %v2361_v29 = vshll.u32 %v4847_v11, 16  ;;  %v1355_v33 = vor.u32 %v1353_v17, %v5578_v37  ;;  %v4875_v9 = vld [vmem:[#allocation2 + $0x24] sm:$0xff]   ;;  %v2387_v17 = vshll.u32 %v4870_v0, 16 }
  0xd6   : > { %4558 = vmatpush3.bf16.msra.mxu1 %v4816_v13  ;;  %v1518_v13 = vshll.u32 %v4844_v53, 16  ;;  %v2378_v53 = vshll.u32 %v4860_v41, 16 }
  0xd7   : > { %1927 = vmatmul.mubr.bf16.gmra.mrb[28].mxu0 %v1344_v39  ;;  %4559 = vmatprep.subr.bf16.mxu1 %v4821_v18  ;;  %v1359_v18 = vrot.slane %v1357_v59, 1  ;;  %v2371_v39 = vrot.slane %v2369_v24, 3  ;;  %v2360_v37 = vrot.slane %v2358_v27, 2  ;;  %v2363_v44 = vrot.slane %v2361_v29, 3  ;;  %v4861_v59 = vld [vmem:[%s5924_s4 + $0x348] sm:$0xff]   ;;  %v4874_v24 = vld [vmem:[%s5924_s4 + $0x358] sm:$0xff]  }
  0xd8   : > { %1934 = vmatprep.mubr.bf16.mxu0 %v1418_v43  ;;  %4516 = vmatpush3.bf16.msra.mxu0 %v4826_v30  ;;  %v2215_v30 = vshll.u32 %v4853_v14, 16  ;;  %v5654_v43 = vld [vmem:[#allocation2 + $0xc] sm:$0xff]   ;;  %v4859_v14 = vld [vmem:[%s5924_s4 + $0x380] sm:$0xff]  }
  0xd9   : > { %4517 = vmatprep.subr.bf16.mxu0 %v4831_v32  ;;  %v1513_v32 = vsel %vm715_vm1, %v5593_v48, %v5629_v15  ;;  %v1360_v42 = vsel %vm560_vm0, %v1355_v33, %v1359_v18  ;;  %v4865_v48 = vld [vmem:[#allocation2 + $0x1c] sm:$0xff]   ;;  %v2135_v55 = vrot.slane %v5654_v43, 1  ;;  %v2364_v58 = vor.u32 %v2363_v44, %v2360_v37  ;;  %v4866_v27 = vld [vmem:[%s5924_s4 + $0x388] sm:$0xff]   ;;  %v4871_v33 = vld [vmem:[%s5924_s4 + $0x3d0] sm:$0xff]  }
  0xda   : > { %4560 = vmatpush3.bf16.msra.mxu1 %v4822_v28  ;;  %v1520_v28 = vrot.slane %v1518_v13, 2  ;;  %v4880_v29 = vld [vmem:[#allocation2 + $0x28] sm:$0xff]   ;;  %v4872_v37 = vld [vmem:[%s5924_s4 + $0x390] sm:$0xff]   ;;  %v4876_v43 = vld [vmem:[%s5924_s4 + $0x318] sm:$0xff]  }
  0xdb   : > { %4561 = vmatprep.subr.bf16.mxu1 %v4827_v35  ;;  %v1583_v35 = vsel %vm1572_vm3, %v1580_v34, %v1582_v16  ;;  %v2210_v34 = vsel %vm715_vm1, %v2201_v36, %v5641_v5  ;;  %v2384_v16 = vshrl.u32 %v4870_v0, 16  ;;  %v5709_v36 = vld [vmem:[#allocation2 + $0x1c] sm:$0xff]   ;;  %v2396_v44 = vshll.u32 %v4880_v29, 16 }
  0xdc   : > { %4518 = vmatpush3.bf16.msra.mxu0 %v4832_v40  ;;  %2000 = vmatmul.mubr.bf16.gmra.mrb[28].mxu1 %v1504_v61  ;;  %v4850_v40 = vld [vmem:[%s5924_s4 + $0x2b8] sm:$0xff]   ;;  %v2224_v61 = vshll.u32 %v4865_v48, 16  ;;  %v4883_v0 = vld [vmem:[%s5924_s4 + $0x3e0] sm:$0xff]  }
  0xdd   : > { %4519 = vmatprep.subr.bf16.mxu0 %v4837_v47  ;;  %2007 = vmatprep.mubr.bf16.mxu1 %v1581_v2  ;;  %v2217_v47 = vrot.slane %v2215_v30, 2  ;;  %v4857_v2 = vld [vmem:[#allocation2 + $0x8] sm:$0xfc]   ;;  %v2386_v30 = vrot.slane %v2384_v16, 2 }
  0xde   : > { %4562 = vmatpush3.bf16.msra.mxu1 %v4829_v50  ;;  %v1521_v50 = vor.u32 %v1520_v28, %v1517_v26  ;;  %v5702_v28 = vld [vmem:[#allocation2 + $0x18] sm:$0xff]   ;;  %v5764_v16 = vld [vmem:[#allocation2 + $0x28] sm:$0xff]  }
  0xdf   : > { %1935 = vmatmul.mubr.bf16.gmra.mrb[32].mxu0 %v1352_v54  ;;  %4563 = vmatprep.subr.bf16.mxu1 %v4834_v46  ;;  %v2372_v46 = vor.u32 %v2371_v39, %v2368_v38  ;;  %v2218_v49 = vor.u32 %v2217_v47, %v2214_v45  ;;  %v4862_v54 = vld [vmem:[%s5924_s4 + $0x308] sm:$0xff]   ;;  %v4881_v45 = vld [vmem:[%s5924_s4 + $0x360] sm:$0xff]   ;;  %v2139_v47 = vrot.slane %v5709_v36, 1  ;;  %v4899_v36 = vld [vmem:[%s5924_s4 + $0x3b0] sm:$0xff]  }
  0xe0   : > { %1942 = vmatprep.mubr.bf16.mxu0 %v1420_v12  ;;  %4520 = vmatpush3.bf16.msra.mxu0 %v4839_v57  ;;  %v5665_v57 = vld [vmem:[#allocation2 + $0x10] sm:$0xff]   ;;  %v1522_v62 = vsel %vm715_vm1, %v5629_v15, %v1521_v50  ;;  %v2226_v12 = vrot.slane %v2224_v61, 2  ;;  %v4886_v38 = vld [vmem:[#allocation2 + $0x2c] ss:$0 sps:$4 sm:$0x33]   ;;  %v4882_v50 = vld [vmem:[%s5924_s4 + $0x320] sm:$0xff]  }
  0xe1   : > { %4521 = vmatprep.subr.bf16.mxu0 %v4845_v60  ;;  %v2221_v60 = vshrl.u32 %v4865_v48, 16  ;;  %v2373_v1 = vsel %vm2356_vm4, %v2364_v58, %v2372_v46  ;;  %v2297_v13 = vrot.slane %v5665_v57, 2  ;;  %v4867_v15 = vld [vmem:[%s5924_s4 + $0x350] sm:$0xff]   ;;  %v4877_v48 = vld [vmem:[%s5924_s4 + $0x3d8] sm:$0xff]   ;;  %v2242_v52 = vshll.u32 %v4886_v38, 16  ;;  %v5736_v57 = vld [vmem:[#allocation2 + $0x20] sm:$0xff]  }
  0xe2   : > { %4564 = vmatpush3.bf16.msra.mxu1 %v4836_v63  ;;  %v2134_v63 = vrot.slane %v4851_v51, 1 }
  0xe3   : > { %4565 = vmatprep.subr.bf16.mxu1 %v4842_v6  ;;  %v2380_v6 = vrot.slane %v2378_v53, 3  ;;  %v2223_v11 = vrot.slane %v2221_v60, 1  ;;  %v4887_v53 = vld [vmem:[%s5924_s4 + $0x368] sm:$0xff]   ;;  %v4891_v60 = vld [vmem:[#allocation2 + $0x30] ss:$0 sps:$4 sm:$0x77]  }
  0xe4   : > { %4522 = vmatpush3.bf16.msra.mxu0 %v4846_v4  ;;  %2008 = vmatmul.mubr.bf16.gmra.mrb[32].mxu1 %v1513_v32  ;;  %v2136_v7 = vsel %vm654_vm2, %v2134_v63, %v2135_v55  ;;  %v2219_v4 = vsel %vm715_vm1, %v5641_v5, %v2218_v49  ;;  %v2233_v5 = vshll.u32 %v4875_v9, 16  ;;  %v2389_v32 = vrot.slane %v2387_v17, 3 }
  0xe5   : > { %4599 = vmatprep.subr.bf16.mxu0 %v4854_v10  ;;  %2015 = vmatprep.mubr.bf16.mxu1 %v1583_v35  ;;  %v2381_v18 = vor.u32 %v2380_v6, %v2377_v3  ;;  %v2137_v10 = vrot.slane %v5677_v8, 1  ;;  %v2227_v23 = vor.u32 %v2226_v12, %v2223_v11  ;;  %v2301_v3 = vrot.slane %v5736_v57, 2  ;;  %v4888_v6 = vld [vmem:[%s5924_s4 + $0x328] sm:$0xff]   ;;  %v4885_v11 = vld [vmem:[%s5924_s4 + $0x3a0] sm:$0xff]   ;;  %v4909_v57 = vld [vmem:[#allocation2 + $0x14] sm:$0xff]  }
  0xe6   : > { %4566 = vmatpush3.bf16.msra.mxu1 %v4843_v20  ;;  %v2296_v20 = vrot.slane %v4857_v2, 2  ;;  %v2235_v41 = vrot.slane %v2233_v5, 2  ;;  %v2244_v2 = vrot.slane %v2242_v52, 2  ;;  %v2405_v8 = vshll.u32 %v4891_v60, 16 }
  0xe7   : > { %1943 = vmatmul.mubr.bf16.gmra.mrb[36].mxu0 %v1360_v42  ;;  %4567 = vmatprep.subr.bf16.mxu1 %v4849_v25  ;;  %v2230_v25 = vshrl.u32 %v4875_v9, 16  ;;  %v2382_v31 = vsel %vm2356_vm4, %v2372_v46, %v2381_v18  ;;  %v2138_v35 = vsel %vm654_vm2, %v2135_v55, %v2137_v10  ;;  %v2228_v39 = vsel %vm715_vm1, %v2218_v49, %v2227_v23  ;;  %v4893_v9 = vld [vmem:[%s5924_s4 + $0x370] sm:$0xff]  }
  0xe8   : > { %2736 = vmatprep.mubr.bf16.mxu0 %v2210_v34  ;;  %v2298_v26 = vsel %vm1572_vm3, %v2296_v20, %v2297_v13  ;;  %v2299_v42 = vrot.slane %v5702_v28, 2  ;;  %v2390_v34 = vor.u32 %v2389_v32, %v2386_v30  ;;  %v2239_v46 = vshrl.u32 %v4886_v38, 16  ;;  %v4896_v30 = vld [vmem:[#allocation2 + $0x4] sm:$0xfc]  }
  0xe9   : > { %v2140_v61 = vsel %vm654_vm2, %v2137_v10, %v2139_v47  ;;  %v2407_v20 = vrot.slane %v2405_v8, 3  ;;  %v4892_v10 = vld [vmem:[%s5924_s4 + $0x3a8] sm:$0xff]   ;;  %v2303_v28 = vrot.slane %v5764_v16, 2 }
  0xea   : > { %4568 = vmatpush3.bf16.msra.mxu1 %v4850_v40  ;;  %v2232_v40 = vrot.slane %v2230_v25, 1  ;;  %v2300_v55 = vsel %vm1572_vm3, %v2297_v13, %v2299_v42  ;;  %v2391_v49 = vsel %vm2356_vm4, %v2381_v18, %v2390_v34  ;;  %v4890_v13 = vld [vmem:[%s5924_s4 + $0x3e8] sm:$0xff]   ;;  %v4898_v25 = vld [vmem:[%s5924_s4 + $0x3f0] sm:$0xff]  }
  0xeb   : > { %4645 = vmatprep.subr.bf16.mxu1 %v4856_v19  ;;  %v2393_v19 = vshrl.u32 %v4880_v29, 16  ;;  %v4902_v29 = vld [vmem:[%s5924_s4 + $0x338] sm:$0xff]  }
  0xec   : > { %2016 = vmatmul.mubr.bf16.gmra.mrb[36].mxu1 %v1522_v62  ;;  %v2236_v51 = vor.u32 %v2235_v41, %v2232_v40  ;;  %v5740_v62 = vld [vmem:[#allocation2 + $0x24] sm:$0xff]  }
  0xed   : > { %2809 = vmatprep.mubr.bf16.mxu1 %v2373_v1  ;;  %v2395_v58 = vrot.slane %v2393_v19, 2  ;;  %v2241_v1 = vrot.slane %v2239_v46, 1  ;;  %v4913_v46 = vld [vmem:[#allocation2 + $0x14] sm:$0xff]  }
  0xee   : > { %v2237_v63 = vsel %vm715_vm1, %v2227_v23, %v2236_v51 }
  0xef   : > { %2737 = vmatmul.mubr.bf16.vlgmr.msra.gmra.mrb[40].mxu0 %v2136_v7  ;;  %v2245_v12 = vor.u32 %v2244_v2, %v2241_v1  ;;  %v2981_v1 = vshll.u32 %v4913_v46, 16 }
  0xf0   : > { %2744 = vmatprep.mubr.bf16.mxu0 %v2219_v4  ;;  %4600 = vmatpush3.bf16.msra.mxu0 %v4855_v56  ;;  %v4878_v56 = vld [vmem:[%s5924_s4 + $0x398] sm:$0xff]   ;;  %v2141_v4 = vrot.slane %v5740_v62, 1 }
  0xf1   : > { %4601 = vmatprep.subr.bf16.mxu0 %v4861_v59  ;;  %v2398_v59 = vrot.slane %v2396_v44, 3  ;;  %v2246_v5 = vsel %vm715_vm1, %v2236_v51, %v2245_v12  ;;  %v5793_v44 = vld [vmem:[#allocation2 + $0x10] sm:$0xff]   ;;  %v4910_v51 = vld [vmem:[#allocation2 + $0x8] sm:$0xfc]   ;;  %v4912_v12 = vld [vmem:[#allocation2 + $0x18] sm:$0xff]   ;;  %v2983_v16 = vrot.slane %v2981_v1, 2 }
  0xf2   : > { %v2142_v23 = vsel %vm654_vm2, %v2139_v47, %v2141_v4  ;;  %v3123_v62 = vshrl.u32 %v4910_v51, 16 }
  0xf3   : > { %v2399_v7 = vor.u32 %v2398_v59, %v2395_v58 }
  0xf4   : > { %4602 = vmatpush3.bf16.msra.mxu0 %v4862_v54  ;;  %2810 = vmatmul.mubr.bf16.vlgmr.msra.gmra.mrb[40].mxu1 %v2298_v26  ;;  %v2402_v54 = vshrl.u32 %v4891_v60, 16  ;;  %v5778_v26 = vld [vmem:[#allocation2 + $0xc] sm:$0xff]   ;;  %v3226_v60 = vrot.slane %v5793_v44, 3 }
  0xf5   : > { %4603 = vmatprep.subr.bf16.mxu0 %v4867_v15  ;;  %4646 = vmatpush3.bf16.msra.mxu1 %v4859_v14  ;;  %v4895_v14 = vld [vmem:[%s5924_s4 + $0x330] sm:$0xff]   ;;  %v2302_v15 = vsel %vm1572_vm3, %v2299_v42, %v2301_v3  ;;  %v2400_v17 = vsel %vm2356_vm4, %v2390_v34, %v2399_v7  ;;  %v3063_v38 = vrot.slane %v5778_v26, 2  ;;  %v2304_v42 = vsel %vm1572_vm3, %v2301_v3, %v2303_v28 }
  0xf6   : > { %2817 = vmatprep.mubr.bf16.mxu1 %v2382_v31  ;;  %4647 = vmatprep.subr.bf16.mxu1 %v4864_v21  ;;  %v2404_v18 = vrot.slane %v2402_v54, 2  ;;  %v4901_v21 = vld [vmem:[%s5924_s4 + $0x378] sm:$0xff]   ;;  %v3062_v34 = vrot.slane %v4896_v30, 2  ;;  %v4919_v30 = vld [vmem:[#allocation2 + $0x20] sm:$0xff]  }
  0xf7   : > { %2745 = vmatmul.mubr.bf16.gmra.mrb[44].mxu0 %v2138_v35 }
  0xf8   : > { %2752 = vmatprep.mubr.bf16.mxu0 %v2228_v39  ;;  %4604 = vmatpush3.bf16.msra.mxu0 %v4869_v22  ;;  %v4908_v22 = vld [vmem:[#allocation2 + $0xc] sm:$0xff]   ;;  %v2408_v31 = vor.u32 %v2407_v20, %v2404_v18  ;;  %v4905_v39 = vld [vmem:[%s5924_s4 + $0x3f8] sm:$0xff]   ;;  %v3064_v52 = vsel %vm1572_vm3, %v3062_v34, %v3063_v38 }
  0xf9   : > { %4605 = vmatprep.subr.bf16.mxu0 %v4874_v24  ;;  %4648 = vmatpush3.bf16.msra.mxu1 %v4866_v27  ;;  %v4894_v24 = vld [vmem:[#allocation2 + $0x2c] ss:$0 sps:$4 sm:$0x11]   ;;  %v4907_v27 = vld [vmem:[#allocation2 + $0x4] sm:$0xfe]   ;;  %v2969_v32 = vshrl.u32 %v4908_v22, 16 }
  0xfa   : > { %4649 = vmatprep.subr.bf16.mxu1 %v4871_v33  ;;  %v2972_v33 = vshll.u32 %v4908_v22, 16  ;;  %v2143_v35 = vrot.slane %v4894_v24, 1  ;;  %v2961_v40 = vshrl.u32 %v4907_v27, 16  ;;  %v2964_v41 = vshll.u32 %v4907_v27, 16  ;;  %v4914_v20 = vld [vmem:[#allocation2 + $0x1c] sm:$0xff]  }
  0xfb   : > { %v2409_v19 = vsel %vm2356_vm4, %v2399_v7, %v2408_v31  ;;  %v3067_v27 = vrot.slane %v4914_v20, 2 }
  0xfc   : > { %4606 = vmatpush3.bf16.msra.mxu0 %v4876_v43  ;;  %2818 = vmatmul.mubr.bf16.gmra.mrb[44].mxu1 %v2300_v55  ;;  %v4911_v43 = vld [vmem:[#allocation2 + $0x10] sm:$0xff]   ;;  %v2974_v47 = vrot.slane %v2972_v33, 2  ;;  %v2963_v55 = vrot.slane %v2961_v40, 1  ;;  %v4916_v33 = vld [vmem:[#allocation2 + $0x20] sm:$0xff]  }
  0xfd   : > { %4607 = vmatprep.subr.bf16.mxu0 %v4881_v45  ;;  %2825 = vmatprep.mubr.bf16.mxu1 %v2391_v49  ;;  %v2971_v45 = vrot.slane %v2969_v32, 1  ;;  %v3131_v49 = vshrl.u32 %v4911_v43, 16  ;;  %v3134_v59 = vshll.u32 %v4911_v43, 16  ;;  %v3152_v43 = vshll.u32 %v4919_v30, 16 }
  0xfe   : > { %4650 = vmatpush3.bf16.msra.mxu1 %v4872_v37  ;;  %v4900_v37 = vld [vmem:[#allocation2 + $0x30] ss:$0 sps:$4 sm:$0x33]  }
  0xff   : > { %2753 = vmatmul.mubr.bf16.gmra.mrb[48].mxu0 %v2140_v61  ;;  %4651 = vmatprep.subr.bf16.mxu1 %v4877_v48  ;;  %v2144_v48 = vsel %vm654_vm2, %v2141_v4, %v2143_v35  ;;  %v2305_v58 = vrot.slane %v4900_v37, 2  ;;  %v2975_v61 = vor.u32 %v2974_v47, %v2971_v45  ;;  %v3133_v54 = vrot.slane %v3131_v49, 2 }
 0x100   : > { %2760 = vmatprep.mubr.bf16.mxu0 %v2237_v63  ;;  %4608 = vmatpush3.bf16.msra.mxu0 %v4882_v50  ;;  %v4906_v50 = vld [vmem:[%s5924_s4 + $0x3b8] sm:$0xff]   ;;  %v3126_v63 = vshll.u32 %v4910_v51, 16  ;;  %v3136_v8 = vrot.slane %v3134_v59, 3  ;;  %v3149_v37 = vshrl.u32 %v4919_v30, 16  ;;  %v3154_v51 = vrot.slane %v3152_v43, 3 }
 0x101   : > { %4609 = vmatprep.subr.bf16.mxu0 %v4887_v53  ;;  %v4903_v53 = vld [vmem:[#allocation2 + $0x8] sm:$0xf8]   ;;  %v2306_v7 = vsel %vm1572_vm3, %v2303_v28, %v2305_v58 }
 0x102   : > { %4652 = vmatpush3.bf16.msra.mxu1 %v4878_v56  ;;  %v2966_v56 = vrot.slane %v2964_v41, 2  ;;  %v3225_v2 = vrot.slane %v4903_v53, 3  ;;  %v4918_v41 = vld [vmem:[#allocation2 + $0x24] sm:$0xff]   ;;  %v4925_v58 = vld [vmem:[#allocation2 + $0x2c] ss:$0 sps:$4 sm:$0x33]  }
 0x103   : > { %4653 = vmatprep.subr.bf16.mxu1 %v4883_v0  ;;  %v2978_v0 = vshrl.u32 %v4913_v46, 16  ;;  %v3069_v47 = vrot.slane %v4918_v41, 2  ;;  %v4923_v46 = vld [vmem:[#allocation2 + $0x28] sm:$0xff]   ;;  %v3005_v1 = vshrl.u32 %v4925_v58, 16 }
 0x104   : > { %4610 = vmatpush3.bf16.msra.mxu0 %v4888_v6  ;;  %2826 = vmatmul.mubr.bf16.gmra.mrb[48].mxu1 %v2302_v15  ;;  %v2967_v3 = vor.u32 %v2966_v56, %v2963_v55  ;;  %v3065_v6 = vrot.slane %v4909_v57, 2  ;;  %v3227_v4 = vsel %vm3224_vm5, %v3225_v2, %v3226_v60  ;;  %v4920_v53 = vld [vmem:[#allocation2 + $0x28] sm:$0xff]   ;;  %v3008_v2 = vshll.u32 %v4925_v58, 16 }
 0x105   : > { %4611 = vmatprep.subr.bf16.mxu0 %v4893_v9  ;;  %2833 = vmatprep.mubr.bf16.mxu1 %v2400_v17  ;;  %v4915_v9 = vld [vmem:[#allocation2 + $0x18] sm:$0xff]   ;;  %v2980_v15 = vrot.slane %v2978_v0, 1  ;;  %v3070_v49 = vsel %vm1572_vm3, %v3067_v27, %v3069_v47  ;;  %v4922_v59 = vld [vmem:[#allocation2 + $0x2c] ss:$0 sps:$4 sm:$0x33]  }
 0x106   : > { %4654 = vmatpush3.bf16.msra.mxu1 %v4885_v11  ;;  %v2976_v11 = vsel %vm715_vm1, %v2967_v3, %v2975_v61  ;;  %v4917_v17 = vld [vmem:[#allocation2 + $0x1c] sm:$0xff]   ;;  %v3066_v18 = vsel %vm1572_vm3, %v3063_v38, %v3065_v6  ;;  %v3143_v22 = vshll.u32 %v4915_v9, 16  ;;  %v3068_v40 = vsel %vm1572_vm3, %v3065_v6, %v3067_v27 }
 0x107   : > { %2761 = vmatmul.mubr.bf16.gmra.mrb[52].mxu0 %v2142_v23  ;;  %4655 = vmatprep.subr.bf16.mxu1 %v4890_v13  ;;  %v3125_v13 = vrot.slane %v3123_v62, 2  ;;  %v3228_v23 = vrot.slane %v4912_v12, 3  ;;  %v2990_v26 = vshll.u32 %v4917_v17, 16  ;;  %v3161_v62 = vshll.u32 %v4923_v46, 16 }
 0x108   : > { %2768 = vmatprep.mubr.bf16.mxu0 %v2246_v5  ;;  %4612 = vmatpush3.bf16.msra.mxu0 %v4895_v14  ;;  %v3128_v14 = vrot.slane %v3126_v63, 3  ;;  %v2987_v5 = vshrl.u32 %v4917_v17, 16  ;;  %v3145_v31 = vrot.slane %v3143_v22, 3  ;;  %v3232_v63 = vrot.slane %v4920_v53, 3 }
 0x109   : > { %4613 = vmatprep.subr.bf16.mxu0 %v4901_v21  ;;  %v3140_v21 = vshrl.u32 %v4915_v9, 16  ;;  %v3229_v32 = vsel %vm3224_vm5, %v3226_v60, %v3228_v23  ;;  %v2992_v38 = vrot.slane %v2990_v26, 2  ;;  %v3071_v3 = vrot.slane %v4922_v59, 2 }
 0x10a   : > { %4656 = vmatpush3.bf16.msra.mxu1 %v4892_v10  ;;  %v3137_v10 = vor.u32 %v3136_v8, %v3133_v54  ;;  %v3129_v24 = vor.u32 %v3128_v14, %v3125_v13  ;;  %v3163_v54 = vrot.slane %v3161_v62, 3  ;;  %v4926_v8 = vld [vmem:[#allocation2 + $0x30] ss:$0 sps:$4 sm:$0x77]   ;;  %v3007_v12 = vrot.slane %v3005_v1, 1 }
 0x10b   : > { %4657 = vmatprep.subr.bf16.mxu1 %v4898_v25  ;;  %v2984_v25 = vor.u32 %v2983_v16, %v2980_v15  ;;  %v3010_v13 = vrot.slane %v3008_v2, 2  ;;  %v3072_v14 = vsel %vm1572_vm3, %v3069_v47, %v3071_v3  ;;  %v3167_v16 = vshrl.u32 %v4926_v8, 16 }
 0x10c   : > { %4614 = vmatpush3.bf16.msra.mxu0 %v4902_v29  ;;  %2834 = vmatmul.mubr.bf16.gmra.mrb[52].mxu1 %v2304_v42  ;;  %v3138_v28 = vsel %vm2356_vm4, %v3129_v24, %v3137_v10  ;;  %v3142_v29 = vrot.slane %v3140_v21, 2  ;;  %v3170_v17 = vshll.u32 %v4926_v8, 16 }
 0x10d   : > { %2841 = vmatprep.mubr.bf16.mxu1 %v2409_v19  ;;  %v2985_v35 = vsel %vm715_vm1, %v2975_v61, %v2984_v25  ;;  %v3230_v19 = vrot.slane %v4916_v33, 3  ;;  %v3158_v61 = vshrl.u32 %v4923_v46, 16  ;;  %v3011_v20 = vor.u32 %v3010_v13, %v3007_v12 }
 0x10e   : > { %4658 = vmatpush3.bf16.msra.mxu1 %v4899_v36  ;;  %v2989_v36 = vrot.slane %v2987_v5, 1  ;;  %v3146_v42 = vor.u32 %v3145_v31, %v3142_v29  ;;  %v3169_v21 = vrot.slane %v3167_v16, 2  ;;  %v3172_v22 = vrot.slane %v3170_v17, 3 }
 0x10f   : > { %2769 = vmatmul.mubr.bf16.gmra.mrb[56].mxu0 %v2144_v48  ;;  %4659 = vmatprep.subr.bf16.mxu1 %v4905_v39  ;;  %v4921_v39 = vld [vmem:[#allocation2 + $0x24] sm:$0xff]   ;;  %v3233_v9 = vsel %vm3224_vm5, %v3230_v19, %v3232_v63 }
 0x110   : > { %3562 = vmatprep.mubr.bf16.mxu0 %v3064_v52  ;;  %v2993_v34 = vor.u32 %v2992_v38, %v2989_v36  ;;  %v2996_v44 = vshrl.u32 %v4921_v39, 16  ;;  %v2999_v45 = vshll.u32 %v4921_v39, 16  ;;  %v3147_v48 = vsel %vm2356_vm4, %v3137_v10, %v3146_v42 }
 0x111   : > { %v3231_v52 = vsel %vm3224_vm5, %v3228_v23, %v3230_v19 }
 0x112   : > { %4660 = vmatpush3.bf16.msra.mxu1 %v4906_v50  ;;  %v3151_v50 = vrot.slane %v3149_v37, 2  ;;  %v2994_v55 = vsel %vm715_vm1, %v2984_v25, %v2993_v34  ;;  %v2998_v56 = vrot.slane %v2996_v44, 1  ;;  %v3001_v57 = vrot.slane %v2999_v45, 2 }
 0x113   : > { %v3173_v25 = vor.u32 %v3172_v22, %v3169_v21 }
 0x114   : > { %2842 = vmatmul.mubr.bf16.gmra.mrb[56].mxu1 %v2306_v7  ;;  %v3155_v60 = vor.u32 %v3154_v51, %v3151_v50  ;;  %v3002_v0 = vor.u32 %v3001_v57, %v2998_v56  ;;  %v3160_v7 = vrot.slane %v3158_v61, 2 }
 0x115   : > { %3635 = vmatprep.mubr.bf16.mxu1 %v3227_v4  ;;  %v4924_v4 = vld [vmem:[#allocation2 + $0x30] ss:$0 sps:$4 sm:$0x77]  }
 0x116   : > { %v3156_v6 = vsel %vm2356_vm4, %v3146_v42, %v3155_v60  ;;  %v3164_v15 = vor.u32 %v3163_v54, %v3160_v7  ;;  %v3012_v24 = vsel %vm715_vm1, %v3002_v0, %v3011_v20 }
 0x117   : > { %3563 = vmatmul.mubr.bf16.vlgmr.msra.gmra.mrb[60].mxu0 %v2976_v11  ;;  %v3003_v11 = vsel %vm715_vm1, %v2993_v34, %v3002_v0 }
 0x118   : > { %3570 = vmatprep.mubr.bf16.mxu0 %v3066_v18  ;;  %v3234_v18 = vrot.slane %v4924_v4, 3  ;;  %v3165_v10 = vsel %vm2356_vm4, %v3155_v60, %v3164_v15  ;;  %v3174_v5 = vsel %vm2356_vm4, %v3164_v15, %v3173_v25 }
 0x11a   : > { %v3235_v23 = vsel %vm3224_vm5, %v3232_v63, %v3234_v18 }
 0x11c   : > { %3636 = vmatmul.mubr.bf16.vlgmr.msra.gmra.mrb[60].mxu1 %v3138_v28 }
 0x11d   : > { %3643 = vmatprep.mubr.bf16.mxu1 %v3229_v32  ;;  %v5824_v32 = vld [vmem:[%s5925_s5] ss:$0 sm:$0xff] }
 0x11f   : > { %3571 = vmatmul.mubr.bf16.gmra.mrb[64].mxu0 %v2985_v35 }
 0x120   : > { %3578 = vmatprep.mubr.bf16.mxu0 %v3068_v40 }
 0x124   : > { %3644 = vmatmul.mubr.bf16.gmra.mrb[64].mxu1 %v3147_v48 }
 0x125   : > { %3651 = vmatprep.mubr.bf16.mxu1 %v3231_v52 }
 0x127   : > { %3579 = vmatmul.mubr.bf16.gmra.mrb[68].mxu0 %v2994_v55 }
 0x128   : > { %3586 = vmatprep.mubr.bf16.mxu0 %v3070_v49 }
 0x12c   : > { %3652 = vmatmul.mubr.bf16.gmra.mrb[68].mxu1 %v3156_v6 }
 0x12d   : > { %3659 = vmatprep.mubr.bf16.mxu1 %v3233_v9 }
 0x12f   : > { %3587 = vmatmul.mubr.bf16.gmra.mrb[72].mxu0 %v3003_v11 }
 0x130   : > { %3594 = vmatprep.mubr.bf16.mxu0 %v3072_v14 }
 0x134   : > { %3660 = vmatmul.mubr.bf16.gmra.mrb[72].mxu1 %v3165_v10 }
 0x135   : > { %3667 = vmatprep.mubr.bf16.mxu1 %v3235_v23 }
 0x137   : > { %3595 = vmatmul.mubr.bf16.gmra.mrb[76].mxu0 %v3012_v24 }
 0x13c   : > { %3668 = vmatmul.mubr.bf16.gmra.mrb[76].mxu1 %v3174_v5 }
 0x172   : > { %v4339_v26 = vpop.f32.mrb[0].mxu0 }
 0x173   : > { %v4340_v27 = vpop.f32.mrb[1].mxu0 }
 0x174   : > { %v4341_v28 = vadd.f32 %v4340_v27, %v4339_v26  ;;  %v4342_v29 = vpop.f32.mrb[2].mxu0 }
 0x175   : > { %v4343_v31 = vpop.f32.mrb[3].mxu0 }
 0x176   : > { %v4344_v30 = vadd.f32 %v4343_v31, %v4342_v29  ;;  %v1097_v36 = vadd.f32 %v4341_v28, %v5824_v32 }
 0x177   : > { %v4385_v33 = vpop.f32.mrb[0].mxu1 }
 0x178   : > { %v4386_v35 = vpop.f32.mrb[1].mxu1  ;;  %v1100_v37 = vadd.f32 %v4344_v30, %v5824_v32 }
 0x179   : > { %v4387_v38 = vadd.f32 %v4386_v35, %v4385_v33  ;;  %v4388_v39 = vpop.f32.mrb[2].mxu1 }
 0x17a   : > { %v4345_v40 = vpop.f32.mrb[4].mxu0  ;;  %v4389_v41 = vpop.f32.mrb[3].mxu1 }
 0x17b   : > { %v4346_v42 = vpop.f32.mrb[5].mxu0  ;;  %v1170_v43 = vadd.f32 %v4387_v38, %v1097_v36  ;;  %v4390_v19 = vadd.f32 %v4389_v41, %v4388_v39 }
 0x17c   : > { %v4347_v34 = vadd.f32 %v4346_v42, %v4345_v40  ;;  %v4348_v44 = vpop.f32.mrb[6].mxu0 }
 0x17d   : > { %v4349_v45 = vpop.f32.mrb[7].mxu0  ;;  %v1208_v47 = vsub.f32 0.0, %v1170_v43  ;;  %v1173_v48 = vadd.f32 %v4390_v19, %v1100_v37 }
 0x17e   : > { %v4350_v50 = vadd.f32 %v4349_v45, %v4348_v44  ;;  %v1105_v56 = vadd.f32 %v4347_v34, %v5824_v32 }
 0x17f   : > { %v1218_v51 = vmul.f32 1.442695, %v1208_v47  ;;  %v1209_v46 = vsub.f32 0.0, %v1173_v48  ;;  %v4391_v52 = vpop.f32.mrb[4].mxu1 }
 0x180   : > { %v4392_v53 = vpop.f32.mrb[5].mxu1  ;;  %v1108_v59 = vadd.f32 %v4350_v50, %v5824_v32 }
 0x181   : > { %4927 = vpow2.f32 %v1218_v51  ;;  %v1220_v55 = vmul.f32 1.442695, %v1209_v46  ;;  %v4393_v57 = vadd.f32 %v4392_v53, %v4391_v52  ;;  %v4394_v58 = vpop.f32.mrb[6].mxu1 }
 0x182   : > { %v4351_v49 = vpop.f32.mrb[8].mxu0  ;;  %v4395_v60 = vpop.f32.mrb[7].mxu1 }
 0x183   : > { %v4352_v61 = vpop.f32.mrb[9].mxu0  ;;  %4929 = vpow2.f32 %v1220_v55  ;;  %v1178_v62 = vadd.f32 %v4393_v57, %v1105_v56  ;;  %v4396_v63 = vadd.f32 %v4395_v60, %v4394_v58 }
 0x184   : > { %v4353_v0 = vadd.f32 %v4352_v61, %v4351_v49  ;;  %v4354_v1 = vpop.f32.mrb[10].mxu0 }
 0x185   : > { %v4355_v2 = vpop.f32.mrb[11].mxu0  ;;  %v1210_v3 = vsub.f32 0.0, %v1178_v62  ;;  %v1181_v6 = vadd.f32 %v4396_v63, %v1108_v59 }
 0x186   : > { %v4356_v7 = vadd.f32 %v4355_v2, %v4354_v1  ;;  %v1113_v12 = vadd.f32 %v4353_v0, %v5824_v32 }
 0x187   : > { %v1222_v54 = vmul.f32 1.442695, %v1210_v3  ;;  %v1211_v8 = vsub.f32 0.0, %v1181_v6  ;;  %v4397_v9 = vpop.f32.mrb[8].mxu1 }
 0x188   : > { %v4398_v4 = vpop.f32.mrb[9].mxu1  ;;  %v1116_v16 = vadd.f32 %v4356_v7, %v5824_v32 }
 0x189   : > { %4931 = vpow2.f32 %v1222_v54  ;;  %v1224_v11 = vmul.f32 1.442695, %v1211_v8  ;;  %v4399_v13 = vadd.f32 %v4398_v4, %v4397_v9  ;;  %v4400_v14 = vpop.f32.mrb[10].mxu1 }
 0x18a   : > { %v4357_v15 = vpop.f32.mrb[12].mxu0  ;;  %v4401_v17 = vpop.f32.mrb[11].mxu1 }
 0x18b   : > { %v4358_v18 = vpop.f32.mrb[13].mxu0  ;;  %v4928_v20 = vpop.eup %4927  ;;  %4933 = vpow2.f32 %v1224_v11  ;;  %v1186_v10 = vadd.f32 %v4399_v13, %v1113_v12  ;;  %v4402_v21 = vadd.f32 %v4401_v17, %v4400_v14 }
 0x18c   : > { %v4359_v22 = vadd.f32 %v4358_v18, %v4357_v15  ;;  %v4360_v23 = vpop.f32.mrb[14].mxu0  ;;  %v1238_v24 = vadd.f32 1.0, %v4928_v20 }
 0x18d   : > { %v4361_v25 = vpop.f32.mrb[15].mxu0  ;;  %v4930_v5 = vpop.eup %4929  ;;  %v1212_v26 = vsub.f32 0.0, %v1186_v10  ;;  %v1189_v27 = vadd.f32 %v4402_v21, %v1116_v16 }
 0x18e   : > { %v4362_v28 = vadd.f32 %v4361_v25, %v4360_v23  ;;  %4935 = vrcp.f32 %v1238_v24  ;;  %v1239_v29 = vadd.f32 1.0, %v4930_v5  ;;  %v1121_v38 = vadd.f32 %v4359_v22, %v5824_v32 }
 0x18f   : > { %v1226_v31 = vmul.f32 1.442695, %v1212_v26  ;;  %v1213_v30 = vsub.f32 0.0, %v1189_v27  ;;  %v4403_v33 = vpop.f32.mrb[12].mxu1 }
 0x190   : > { %4937 = vrcp.f32 %v1239_v29  ;;  %v4404_v35 = vpop.f32.mrb[13].mxu1  ;;  %v1124_v42 = vadd.f32 %v4362_v28, %v5824_v32 }
 0x191   : > { %4939 = vpow2.f32 %v1226_v31  ;;  %v1228_v36 = vmul.f32 1.442695, %v1213_v30  ;;  %v4405_v39 = vadd.f32 %v4404_v35, %v4403_v33  ;;  %v4406_v40 = vpop.f32.mrb[14].mxu1 }
 0x192   : > { %v4363_v41 = vpop.f32.mrb[16].mxu0  ;;  %v4407_v37 = vpop.f32.mrb[15].mxu1 }
 0x193   : > { %v4364_v43 = vpop.f32.mrb[17].mxu0  ;;  %v4932_v19 = vpop.eup %4931  ;;  %4941 = vpow2.f32 %v1228_v36  ;;  %v1194_v34 = vadd.f32 %v4405_v39, %v1121_v38  ;;  %v4408_v44 = vadd.f32 %v4407_v37, %v4406_v40 }
 0x194   : > { %v4365_v45 = vadd.f32 %v4364_v43, %v4363_v41  ;;  %v4366_v47 = vpop.f32.mrb[18].mxu0  ;;  %v1240_v48 = vadd.f32 1.0, %v4932_v19 }
 0x195   : > { %v4367_v50 = vpop.f32.mrb[19].mxu0  ;;  %v4934_v51 = vpop.eup %4933  ;;  %v1214_v46 = vsub.f32 0.0, %v1194_v34  ;;  %v1197_v52 = vadd.f32 %v4408_v44, %v1124_v42 }
 0x196   : > { %v4368_v53 = vadd.f32 %v4367_v50, %v4366_v47  ;;  %4943 = vrcp.f32 %v1240_v48  ;;  %v1241_v55 = vadd.f32 1.0, %v4934_v51  ;;  %v1129_v61 = vadd.f32 %v4365_v45, %v5824_v32 }
 0x197   : > { %v1230_v56 = vmul.f32 1.442695, %v1214_v46  ;;  %v1215_v57 = vsub.f32 0.0, %v1197_v52  ;;  %v4409_v58 = vpop.f32.mrb[16].mxu1 }
 0x198   : > { %v4936_v49 = vpop.eup %4935  ;;  %4945 = vrcp.f32 %v1241_v55  ;;  %v4410_v59 = vpop.f32.mrb[17].mxu1  ;;  %v1132_v2 = vadd.f32 %v4368_v53, %v5824_v32 }
 0x199   : > { %1268 = vst [vmem:[%s5838_s22] sm:$0xff] %v4936_v49  ;;  %4947 = vpow2.f32 %v1230_v56  ;;  %v1232_v60 = vmul.f32 1.442695, %v1215_v57  ;;  %v4411_v62 = vadd.f32 %v4410_v59, %v4409_v58  ;;  %v4412_v63 = vpop.f32.mrb[18].mxu1 }
 0x19a   : > { %v4431_v0 = vpop.f32.mrb[20].mxu0  ;;  %v4938_v1 = vpop.eup %4937 }
 0x19b   : > { %v4413_v3 = vpop.f32.mrb[19].mxu1  ;;  %v4432_v6 = vpop.f32.mrb[21].mxu0  ;;  %1269 = vst [vmem:[%s5838_s22 + $0x8] sm:$0xff] %v4938_v1  ;;  %4949 = vpow2.f32 %v1232_v60  ;;  %v1202_v54 = vadd.f32 %v4411_v62, %v1129_v61 }
 0x19c   : > { %v4940_v7 = vpop.eup %4939  ;;  %v4414_v8 = vadd.f32 %v4413_v3, %v4412_v63  ;;  %v4433_v9 = vadd.f32 %v4432_v6, %v4431_v0  ;;  %v4434_v4 = vpop.f32.mrb[22].mxu0 }
 0x19d   : > { %v1242_v11 = vadd.f32 1.0, %v4940_v7  ;;  %v4435_v12 = vpop.f32.mrb[23].mxu0  ;;  %v4942_v13 = vpop.eup %4941  ;;  %v1216_v14 = vsub.f32 0.0, %v1202_v54 }
 0x19e   : > { %v1205_v15 = vadd.f32 %v4414_v8, %v1132_v2  ;;  %v4436_v16 = vadd.f32 %v4435_v12, %v4434_v4  ;;  %v1243_v17 = vadd.f32 1.0, %v4942_v13  ;;  %v1913_v24 = vadd.f32 %v4433_v9, %v5824_v32 }
 0x19f   : > { %4951 = vrcp.f32 %v1242_v11  ;;  %v1234_v18 = vmul.f32 1.442695, %v1216_v14  ;;  %v4477_v10 = vpop.f32.mrb[20].mxu1 }
 0x1a0   : > { %v1217_v20 = vsub.f32 0.0, %v1205_v15  ;;  %v4944_v21 = vpop.eup %4943  ;;  %4953 = vrcp.f32 %v1243_v17  ;;  %v4478_v22 = vpop.f32.mrb[21].mxu1  ;;  %v1916_v28 = vadd.f32 %v4436_v16, %v5824_v32 }
 0x1a1   : > { %1270 = vst [vmem:[%s5838_s22 + $0x10] sm:$0xff] %v4944_v21  ;;  %4955 = vpow2.f32 %v1234_v18  ;;  %v4479_v25 = vadd.f32 %v4478_v22, %v4477_v10  ;;  %v4480_v5 = vpop.f32.mrb[22].mxu1 }
 0x1a2   : > { %v1236_v23 = vmul.f32 1.442695, %v1217_v20  ;;  %v4437_v26 = vpop.f32.mrb[24].mxu0  ;;  %v4946_v27 = vpop.eup %4945 }
 0x1a3   : > { %v4481_v29 = vpop.f32.mrb[23].mxu1  ;;  %v4438_v31 = vpop.f32.mrb[25].mxu0  ;;  %1271 = vst [vmem:[%s5838_s22 + $0x18] sm:$0xff] %v4946_v27  ;;  %v1986_v33 = vadd.f32 %v4479_v25, %v1913_v24 }
 0x1a4   : > { %v4948_v30 = vpop.eup %4947  ;;  %4957 = vpow2.f32 %v1236_v23  ;;  %v4482_v35 = vadd.f32 %v4481_v29, %v4480_v5  ;;  %v4439_v36 = vadd.f32 %v4438_v31, %v4437_v26  ;;  %v4440_v38 = vpop.f32.mrb[26].mxu0 }
 0x1a5   : > { %v1244_v39 = vadd.f32 1.0, %v4948_v30  ;;  %v4441_v40 = vpop.f32.mrb[27].mxu0  ;;  %v4950_v41 = vpop.eup %4949  ;;  %v2024_v42 = vsub.f32 0.0, %v1986_v33 }
 0x1a6   : > { %v1989_v37 = vadd.f32 %v4482_v35, %v1916_v28  ;;  %v4442_v43 = vadd.f32 %v4441_v40, %v4440_v38  ;;  %v1245_v19 = vadd.f32 1.0, %v4950_v41  ;;  %v1921_v51 = vadd.f32 %v4439_v36, %v5824_v32 }
 0x1a7   : > { %4959 = vrcp.f32 %v1244_v39  ;;  %v2034_v34 = vmul.f32 1.442695, %v2024_v42  ;;  %v4483_v45 = vpop.f32.mrb[24].mxu1 }
 0x1a8   : > { %v2025_v44 = vsub.f32 0.0, %v1989_v37  ;;  %4961 = vrcp.f32 %v1245_v19  ;;  %v4484_v48 = vpop.f32.mrb[25].mxu1  ;;  %v1924_v56 = vadd.f32 %v4442_v43, %v5824_v32 }
 0x1a9   : > { %v4952_v47 = vpop.eup %4951  ;;  %4963 = vpow2.f32 %v2034_v34  ;;  %v4485_v46 = vadd.f32 %v4484_v48, %v4483_v45  ;;  %v4486_v52 = vpop.f32.mrb[26].mxu1 }
 0x1aa   : > { %1272 = vst [vmem:[%s5838_s22 + $0x20] sm:$0xff] %v4952_v47  ;;  %v2036_v50 = vmul.f32 1.442695, %v2025_v44  ;;  %v4443_v53 = vpop.f32.mrb[28].mxu0  ;;  %v4954_v55 = vpop.eup %4953 }
 0x1ab   : > { %v4487_v57 = vpop.f32.mrb[27].mxu1  ;;  %v4444_v58 = vpop.f32.mrb[29].mxu0  ;;  %1273 = vst [vmem:[%s5838_s22 + $0x28] sm:$0xff] %v4954_v55  ;;  %v1994_v59 = vadd.f32 %v4485_v46, %v1921_v51 }
 0x1ac   : > { %v4956_v49 = vpop.eup %4955  ;;  %4965 = vpow2.f32 %v2036_v50  ;;  %v4488_v60 = vadd.f32 %v4487_v57, %v4486_v52  ;;  %v4445_v61 = vadd.f32 %v4444_v58, %v4443_v53  ;;  %v4446_v62 = vpop.f32.mrb[30].mxu0 }
 0x1ad   : > { %v1246_v63 = vadd.f32 1.0, %v4956_v49  ;;  %v4447_v0 = vpop.f32.mrb[31].mxu0  ;;  %v2026_v2 = vsub.f32 0.0, %v1994_v59 }
 0x1ae   : > { %v4958_v1 = vpop.eup %4957  ;;  %v1997_v3 = vadd.f32 %v4488_v60, %v1924_v56  ;;  %v4448_v6 = vadd.f32 %v4447_v0, %v4446_v62  ;;  %v1929_v13 = vadd.f32 %v4445_v61, %v5824_v32 }
 0x1af   : > { %4967 = vrcp.f32 %v1246_v63  ;;  %v1247_v7 = vadd.f32 1.0, %v4958_v1  ;;  %v2038_v54 = vmul.f32 1.442695, %v2026_v2  ;;  %v4489_v9 = vpop.f32.mrb[28].mxu1 }
 0x1b0   : > { %v2027_v8 = vsub.f32 0.0, %v1997_v3  ;;  %v4490_v11 = vpop.f32.mrb[29].mxu1  ;;  %v1932_v18 = vadd.f32 %v4448_v6, %v5824_v32 }
 0x1b1   : > { %v4960_v4 = vpop.eup %4959  ;;  %4969 = vrcp.f32 %v1247_v7  ;;  %v4491_v14 = vadd.f32 %v4490_v11, %v4489_v9  ;;  %v4492_v15 = vpop.f32.mrb[30].mxu1 }
 0x1b2   : > { %1274 = vst [vmem:[%s5838_s22 + $0x30] sm:$0xff] %v4960_v4  ;;  %4971 = vpow2.f32 %v2038_v54  ;;  %v2040_v12 = vmul.f32 1.442695, %v2027_v8  ;;  %v4449_v16 = vpop.f32.mrb[32].mxu0  ;;  %v4962_v17 = vpop.eup %4961 }
 0x1b3   : > { %v4493_v20 = vpop.f32.mrb[31].mxu1  ;;  %v4450_v10 = vpop.f32.mrb[33].mxu0  ;;  %1275 = vst [vmem:[%s5838_s22 + $0x38] sm:$0xff] %v4962_v17  ;;  %v2002_v22 = vadd.f32 %v4491_v14, %v1929_v13 }
 0x1b4   : > { %v4964_v21 = vpop.eup %4963  ;;  %4973 = vpow2.f32 %v2040_v12  ;;  %v4494_v23 = vadd.f32 %v4493_v20, %v4492_v15  ;;  %v4451_v24 = vadd.f32 %v4450_v10, %v4449_v16  ;;  %v4452_v25 = vpop.f32.mrb[34].mxu0 }
 0x1b5   : > { %v2054_v5 = vadd.f32 1.0, %v4964_v21  ;;  %v4453_v26 = vpop.f32.mrb[35].mxu0  ;;  %v2028_v28 = vsub.f32 0.0, %v2002_v22 }
 0x1b6   : > { %v4966_v27 = vpop.eup %4965  ;;  %v2005_v29 = vadd.f32 %v4494_v23, %v1932_v18  ;;  %v4454_v31 = vadd.f32 %v4453_v26, %v4452_v25  ;;  %v1937_v41 = vadd.f32 %v4451_v24, %v5824_v32 }
 0x1b7   : > { %4975 = vrcp.f32 %v2054_v5  ;;  %v2055_v30 = vadd.f32 1.0, %v4966_v27  ;;  %v2042_v33 = vmul.f32 1.442695, %v2028_v28  ;;  %v4495_v36 = vpop.f32.mrb[32].mxu1 }
 0x1b8   : > { %v2029_v35 = vsub.f32 0.0, %v2005_v29  ;;  %v4496_v39 = vpop.f32.mrb[33].mxu1  ;;  %v1940_v34 = vadd.f32 %v4454_v31, %v5824_v32 }
 0x1b9   : > { %v4968_v38 = vpop.eup %4967  ;;  %4977 = vrcp.f32 %v2055_v30  ;;  %v4497_v42 = vadd.f32 %v4496_v39, %v4495_v36  ;;  %v4498_v37 = vpop.f32.mrb[34].mxu1 }
 0x1ba   : > { %1276 = vst [vmem:[%s5838_s22 + $0x40] sm:$0xff] %v4968_v38  ;;  %4979 = vpow2.f32 %v2042_v33  ;;  %v2044_v40 = vmul.f32 1.442695, %v2029_v35  ;;  %v4455_v43 = vpop.f32.mrb[36].mxu0  ;;  %v4499_v44 = vpop.f32.mrb[35].mxu1 }
 0x1bb   : > { %v4970_v19 = vpop.eup %4969  ;;  %v4456_v45 = vpop.f32.mrb[37].mxu0  ;;  %v2010_v48 = vadd.f32 %v4497_v42, %v1937_v41  ;;  %v4500_v50 = vadd.f32 %v4499_v44, %v4498_v37 }
 0x1bc   : > { %v4972_v47 = vpop.eup %4971  ;;  %1277 = vst [vmem:[%s5838_s22 + $0x48] sm:$0xff] %v4970_v19  ;;  %4981 = vpow2.f32 %v2044_v40  ;;  %v4457_v51 = vadd.f32 %v4456_v45, %v4455_v43  ;;  %v4458_v46 = vpop.f32.mrb[38].mxu0 }
 0x1bd   : > { %v2056_v52 = vadd.f32 1.0, %v4972_v47  ;;  %v4459_v53 = vpop.f32.mrb[39].mxu0  ;;  %v2030_v56 = vsub.f32 0.0, %v2010_v48  ;;  %v2013_v57 = vadd.f32 %v4500_v50, %v1940_v34 }
 0x1be   : > { %v4974_v55 = vpop.eup %4973  ;;  %v4460_v58 = vadd.f32 %v4459_v53, %v4458_v46  ;;  %v1945_v1 = vadd.f32 %v4457_v51, %v5824_v32 }
 0x1bf   : > { %4983 = vrcp.f32 %v2056_v52  ;;  %v2057_v49 = vadd.f32 1.0, %v4974_v55  ;;  %v2046_v59 = vmul.f32 1.442695, %v2030_v56  ;;  %v2031_v60 = vsub.f32 0.0, %v2013_v57  ;;  %v4501_v61 = vpop.f32.mrb[36].mxu1 }
 0x1c0   : > { %v4502_v63 = vpop.f32.mrb[37].mxu1  ;;  %v1948_v54 = vadd.f32 %v4460_v58, %v5824_v32 }
 0x1c1   : > { %v4976_v62 = vpop.eup %4975  ;;  %4985 = vrcp.f32 %v2057_v49  ;;  %v2048_v0 = vmul.f32 1.442695, %v2031_v60  ;;  %v4503_v2 = vadd.f32 %v4502_v63, %v4501_v61  ;;  %v4504_v3 = vpop.f32.mrb[38].mxu1 }
 0x1c2   : > { %4001 = vst [vmem:[%s5838_s22 + $0x50] sm:$0xff] %v4976_v62  ;;  %4987 = vpow2.f32 %v2046_v59  ;;  %v4523_v6 = vpop.f32.mrb[40].mxu0  ;;  %v4505_v8 = vpop.f32.mrb[39].mxu1 }
 0x1c3   : > { %v4978_v7 = vpop.eup %4977  ;;  %v4524_v9 = vpop.f32.mrb[41].mxu0  ;;  %4989 = vpow2.f32 %v2048_v0  ;;  %v2018_v11 = vadd.f32 %v4503_v2, %v1945_v1  ;;  %v4506_v12 = vadd.f32 %v4505_v8, %v4504_v3 }
 0x1c4   : > { %v4980_v4 = vpop.eup %4979  ;;  %4002 = vst [vmem:[%s5838_s22 + $0x58] sm:$0xff] %v4978_v7  ;;  %v4525_v13 = vadd.f32 %v4524_v9, %v4523_v6  ;;  %v4526_v14 = vpop.f32.mrb[42].mxu0 }
 0x1c5   : > { %v2058_v15 = vadd.f32 1.0, %v4980_v4  ;;  %v4527_v16 = vpop.f32.mrb[43].mxu0  ;;  %v2032_v18 = vsub.f32 0.0, %v2018_v11  ;;  %v2021_v20 = vadd.f32 %v4506_v12, %v1948_v54 }
 0x1c6   : > { %v4982_v17 = vpop.eup %4981  ;;  %v4528_v10 = vadd.f32 %v4527_v16, %v4526_v14  ;;  %v2739_v27 = vadd.f32 %v4525_v13, %v5824_v32 }
 0x1c7   : > { %4991 = vrcp.f32 %v2058_v15  ;;  %v2059_v21 = vadd.f32 1.0, %v4982_v17  ;;  %v2050_v22 = vmul.f32 1.442695, %v2032_v18  ;;  %v2033_v23 = vsub.f32 0.0, %v2021_v20  ;;  %v4569_v24 = vpop.f32.mrb[40].mxu1 }
 0x1c8   : > { %v4570_v5 = vpop.f32.mrb[41].mxu1  ;;  %v2742_v33 = vadd.f32 %v4528_v10, %v5824_v32 }
 0x1c9   : > { %v4984_v25 = vpop.eup %4983  ;;  %4993 = vrcp.f32 %v2059_v21  ;;  %v2052_v26 = vmul.f32 1.442695, %v2033_v23  ;;  %v4571_v28 = vadd.f32 %v4570_v5, %v4569_v24  ;;  %v4572_v29 = vpop.f32.mrb[42].mxu1 }
 0x1ca   : > { %4003 = vst [vmem:[%s5838_s22 + $0x60] sm:$0xff] %v4984_v25  ;;  %4995 = vpow2.f32 %v2050_v22  ;;  %v4529_v31 = vpop.f32.mrb[44].mxu0  ;;  %v4573_v35 = vpop.f32.mrb[43].mxu1 }
 0x1cb   : > { %v4986_v30 = vpop.eup %4985  ;;  %v4530_v36 = vpop.f32.mrb[45].mxu0  ;;  %4997 = vpow2.f32 %v2052_v26  ;;  %v2812_v39 = vadd.f32 %v4571_v28, %v2739_v27  ;;  %v4574_v40 = vadd.f32 %v4573_v35, %v4572_v29 }
 0x1cc   : > { %v4988_v38 = vpop.eup %4987  ;;  %4004 = vst [vmem:[%s5838_s22 + $0x68] sm:$0xff] %v4986_v30  ;;  %v4531_v41 = vadd.f32 %v4530_v36, %v4529_v31  ;;  %v4532_v42 = vpop.f32.mrb[46].mxu0 }
 0x1cd   : > { %v2060_v37 = vadd.f32 1.0, %v4988_v38  ;;  %v4533_v43 = vpop.f32.mrb[47].mxu0  ;;  %v4990_v19 = vpop.eup %4989  ;;  %v2850_v34 = vsub.f32 0.0, %v2812_v39  ;;  %v2815_v44 = vadd.f32 %v4574_v40, %v2742_v33 }
 0x1ce   : > { %v4534_v45 = vadd.f32 %v4533_v43, %v4532_v42  ;;  %v2061_v47 = vadd.f32 1.0, %v4990_v19  ;;  %v2747_v55 = vadd.f32 %v4531_v41, %v5824_v32 }
 0x1cf   : > { %4999 = vrcp.f32 %v2060_v37  ;;  %v2860_v48 = vmul.f32 1.442695, %v2850_v34  ;;  %v2851_v50 = vsub.f32 0.0, %v2815_v44  ;;  %v4575_v51 = vpop.f32.mrb[44].mxu1 }
 0x1d0   : > { %5001 = vrcp.f32 %v2061_v47  ;;  %v4576_v52 = vpop.f32.mrb[45].mxu1  ;;  %v2750_v59 = vadd.f32 %v4534_v45, %v5824_v32 }
 0x1d1   : > { %v4992_v46 = vpop.eup %4991  ;;  %5003 = vpow2.f32 %v2860_v48  ;;  %v2862_v53 = vmul.f32 1.442695, %v2851_v50  ;;  %v4577_v56 = vadd.f32 %v4576_v52, %v4575_v51  ;;  %v4578_v57 = vpop.f32.mrb[46].mxu1 }
 0x1d2   : > { %4005 = vst [vmem:[%s5838_s22 + $0x70] sm:$0xff] %v4992_v46  ;;  %v4535_v58 = vpop.f32.mrb[48].mxu0  ;;  %v4579_v60 = vpop.f32.mrb[47].mxu1 }
 0x1d3   : > { %v4994_v49 = vpop.eup %4993  ;;  %v4536_v61 = vpop.f32.mrb[49].mxu0  ;;  %5005 = vpow2.f32 %v2862_v53  ;;  %v2820_v63 = vadd.f32 %v4577_v56, %v2747_v55  ;;  %v4580_v0 = vadd.f32 %v4579_v60, %v4578_v57 }
 0x1d4   : > { %v4996_v62 = vpop.eup %4995  ;;  %4006 = vst [vmem:[%s5838_s22 + $0x78] sm:$0xff] %v4994_v49  ;;  %v4537_v1 = vadd.f32 %v4536_v61, %v4535_v58  ;;  %v4538_v2 = vpop.f32.mrb[50].mxu0 }
 0x1d5   : > { %v2062_v3 = vadd.f32 1.0, %v4996_v62  ;;  %v4539_v6 = vpop.f32.mrb[51].mxu0  ;;  %v4998_v7 = vpop.eup %4997  ;;  %v2852_v54 = vsub.f32 0.0, %v2820_v63  ;;  %v2823_v8 = vadd.f32 %v4580_v0, %v2750_v59 }
 0x1d6   : > { %v4540_v9 = vadd.f32 %v4539_v6, %v4538_v2  ;;  %v2063_v4 = vadd.f32 1.0, %v4998_v7  ;;  %v2755_v17 = vadd.f32 %v4537_v1, %v5824_v32 }
 0x1d7   : > { %5007 = vrcp.f32 %v2062_v3  ;;  %v2864_v11 = vmul.f32 1.442695, %v2852_v54  ;;  %v2853_v12 = vsub.f32 0.0, %v2823_v8  ;;  %v4581_v13 = vpop.f32.mrb[48].mxu1 }
 0x1d8   : > { %5009 = vrcp.f32 %v2063_v4  ;;  %v4582_v15 = vpop.f32.mrb[49].mxu1  ;;  %v2758_v22 = vadd.f32 %v4540_v9, %v5824_v32 }
 0x1d9   : > { %v5000_v14 = vpop.eup %4999  ;;  %5011 = vpow2.f32 %v2864_v11  ;;  %v2866_v16 = vmul.f32 1.442695, %v2853_v12  ;;  %v4583_v18 = vadd.f32 %v4582_v15, %v4581_v13  ;;  %v4584_v20 = vpop.f32.mrb[50].mxu1 }
 0x1da   : > { %4007 = vst [vmem:[%s5838_s22 + $0x80] sm:$0xff] %v5000_v14  ;;  %v4541_v10 = vpop.f32.mrb[52].mxu0  ;;  %v5002_v21 = vpop.eup %5001 }
 0x1db   : > { %v4585_v23 = vpop.f32.mrb[51].mxu1  ;;  %v4542_v24 = vpop.f32.mrb[53].mxu0  ;;  %4008 = vst [vmem:[%s5838_s22 + $0x88] sm:$0xff] %v5002_v21  ;;  %5013 = vpow2.f32 %v2866_v16  ;;  %v2828_v5 = vadd.f32 %v4583_v18, %v2755_v17 }
 0x1dc   : > { %v5004_v25 = vpop.eup %5003  ;;  %v4586_v26 = vadd.f32 %v4585_v23, %v4584_v20  ;;  %v4543_v27 = vadd.f32 %v4542_v24, %v4541_v10  ;;  %v4544_v28 = vpop.f32.mrb[54].mxu0 }
 0x1dd   : > { %v2880_v29 = vadd.f32 1.0, %v5004_v25  ;;  %v4545_v31 = vpop.f32.mrb[55].mxu0  ;;  %v5006_v30 = vpop.eup %5005  ;;  %v2854_v33 = vsub.f32 0.0, %v2828_v5 }
 0x1de   : > { %v2831_v35 = vadd.f32 %v4586_v26, %v2758_v22  ;;  %v4546_v36 = vadd.f32 %v4545_v31, %v4544_v28  ;;  %v2881_v38 = vadd.f32 1.0, %v5006_v30  ;;  %v2763_v19 = vadd.f32 %v4543_v27, %v5824_v32 }
 0x1df   : > { %5015 = vrcp.f32 %v2880_v29  ;;  %v2868_v39 = vmul.f32 1.442695, %v2854_v33  ;;  %v4587_v41 = vpop.f32.mrb[52].mxu1 }
 0x1e0   : > { %v2855_v40 = vsub.f32 0.0, %v2831_v35  ;;  %5017 = vrcp.f32 %v2881_v38  ;;  %v4588_v37 = vpop.f32.mrb[53].mxu1  ;;  %v2766_v48 = vadd.f32 %v4546_v36, %v5824_v32 }
 0x1e1   : > { %v5008_v42 = vpop.eup %5007  ;;  %5019 = vpow2.f32 %v2868_v39  ;;  %v4589_v34 = vadd.f32 %v4588_v37, %v4587_v41  ;;  %v4590_v44 = vpop.f32.mrb[54].mxu1 }
 0x1e2   : > { %4009 = vst [vmem:[%s5838_s22 + $0x90] sm:$0xff] %v5008_v42  ;;  %v2870_v43 = vmul.f32 1.442695, %v2855_v40  ;;  %v4547_v45 = vpop.f32.mrb[56].mxu0  ;;  %v5010_v47 = vpop.eup %5009 }
 0x1e3   : > { %v4591_v50 = vpop.f32.mrb[55].mxu1  ;;  %v4548_v51 = vpop.f32.mrb[57].mxu0  ;;  %4010 = vst [vmem:[%s5838_s22 + $0x98] sm:$0xff] %v5010_v47  ;;  %v2836_v52 = vadd.f32 %v4589_v34, %v2763_v19 }
 0x1e4   : > { %v5012_v46 = vpop.eup %5011  ;;  %5021 = vpow2.f32 %v2870_v43  ;;  %v4592_v53 = vadd.f32 %v4591_v50, %v4590_v44  ;;  %v4549_v55 = vadd.f32 %v4548_v51, %v4547_v45  ;;  %v4550_v56 = vpop.f32.mrb[58].mxu0 }
 0x1e5   : > { %v2882_v57 = vadd.f32 1.0, %v5012_v46  ;;  %v4551_v58 = vpop.f32.mrb[59].mxu0  ;;  %v5014_v49 = vpop.eup %5013  ;;  %v2856_v59 = vsub.f32 0.0, %v2836_v52 }
 0x1e6   : > { %v2839_v60 = vadd.f32 %v4592_v53, %v2766_v48  ;;  %v4552_v61 = vadd.f32 %v4551_v58, %v4550_v56  ;;  %v2883_v62 = vadd.f32 1.0, %v5014_v49  ;;  %v2771_v7 = vadd.f32 %v4549_v55, %v5824_v32 }
 0x1e7   : > { %5023 = vrcp.f32 %v2882_v57  ;;  %v2872_v63 = vmul.f32 1.442695, %v2856_v59  ;;  %v4593_v1 = vpop.f32.mrb[56].mxu1 }
 0x1e8   : > { %v2857_v0 = vsub.f32 0.0, %v2839_v60  ;;  %5025 = vrcp.f32 %v2883_v62  ;;  %v4594_v3 = vpop.f32.mrb[57].mxu1  ;;  %v2774_v11 = vadd.f32 %v4552_v61, %v5824_v32 }
 0x1e9   : > { %v5016_v2 = vpop.eup %5015  ;;  %5027 = vpow2.f32 %v2872_v63  ;;  %v4595_v54 = vadd.f32 %v4594_v3, %v4593_v1  ;;  %v4596_v8 = vpop.f32.mrb[58].mxu1 }
 0x1ea   : > { %4132 = vst [vmem:[%s5838_s22 + $0xa0] sm:$0xff] %v5016_v2  ;;  %v2874_v6 = vmul.f32 1.442695, %v2857_v0  ;;  %v4615_v9 = vpop.f32.mrb[60].mxu0  ;;  %v5018_v4 = vpop.eup %5017 }
 0x1eb   : > { %v4597_v12 = vpop.f32.mrb[59].mxu1  ;;  %v4616_v13 = vpop.f32.mrb[61].mxu0  ;;  %4133 = vst [vmem:[%s5838_s22 + $0xa8] sm:$0xff] %v5018_v4  ;;  %v2844_v15 = vadd.f32 %v4595_v54, %v2771_v7 }
 0x1ec   : > { %v5020_v14 = vpop.eup %5019  ;;  %5029 = vpow2.f32 %v2874_v6  ;;  %v4598_v16 = vadd.f32 %v4597_v12, %v4596_v8  ;;  %v4617_v17 = vadd.f32 %v4616_v13, %v4615_v9  ;;  %v4618_v18 = vpop.f32.mrb[62].mxu0 }
 0x1ed   : > { %v2884_v20 = vadd.f32 1.0, %v5020_v14  ;;  %v4619_v10 = vpop.f32.mrb[63].mxu0  ;;  %v2858_v22 = vsub.f32 0.0, %v2844_v15 }
 0x1ee   : > { %v5022_v21 = vpop.eup %5021  ;;  %v2847_v23 = vadd.f32 %v4598_v16, %v2774_v11  ;;  %v4620_v24 = vadd.f32 %v4619_v10, %v4618_v18  ;;  %v3565_v30 = vadd.f32 %v4617_v17, %v5824_v32  ;;  %v5896_v10 = vld [vmem:[%s5925_s5] ss:$0 sm:$0xff] }
 0x1ef   : > { %5031 = vrcp.f32 %v2884_v20  ;;  %v2885_v25 = vadd.f32 1.0, %v5022_v21  ;;  %v2876_v5 = vmul.f32 1.442695, %v2858_v22  ;;  %v4661_v27 = vpop.f32.mrb[60].mxu1 }
 0x1f0   : > { %v2859_v26 = vsub.f32 0.0, %v2847_v23  ;;  %v4662_v29 = vpop.f32.mrb[61].mxu1  ;;  %v3568_v39 = vadd.f32 %v4620_v24, %v5824_v32 }
 0x1f1   : > { %v5024_v28 = vpop.eup %5023  ;;  %5033 = vrcp.f32 %v2885_v25  ;;  %v4663_v33 = vadd.f32 %v4662_v29, %v4661_v27  ;;  %v4664_v35 = vpop.f32.mrb[62].mxu1 }
 0x1f2   : > { %4134 = vst [vmem:[%s5838_s22 + $0xb0] sm:$0xff] %v5024_v28  ;;  %5035 = vpow2.f32 %v2876_v5  ;;  %v2878_v31 = vmul.f32 1.442695, %v2859_v26  ;;  %v4621_v36 = vpop.f32.mrb[64].mxu0  ;;  %v5026_v38 = vpop.eup %5025 }
 0x1f3   : > { %v4665_v40 = vpop.f32.mrb[63].mxu1  ;;  %v4622_v41 = vpop.f32.mrb[65].mxu0  ;;  %4135 = vst [vmem:[%s5838_s22 + $0xb8] sm:$0xff] %v5026_v38  ;;  %v3638_v37 = vadd.f32 %v4663_v33, %v3565_v30 }
 0x1f4   : > { %v5028_v42 = vpop.eup %5027  ;;  %5037 = vpow2.f32 %v2878_v31  ;;  %v4666_v43 = vadd.f32 %v4665_v40, %v4664_v35  ;;  %v4623_v19 = vadd.f32 %v4622_v41, %v4621_v36  ;;  %v4624_v34 = vpop.f32.mrb[66].mxu0 }
 0x1f5   : > { %v2886_v44 = vadd.f32 1.0, %v5028_v42  ;;  %v4625_v45 = vpop.f32.mrb[67].mxu0  ;;  %v3676_v48 = vsub.f32 0.0, %v3638_v37 }
 0x1f6   : > { %v5030_v47 = vpop.eup %5029  ;;  %v3641_v50 = vadd.f32 %v4666_v43, %v3568_v39  ;;  %v4626_v51 = vadd.f32 %v4625_v45, %v4624_v34  ;;  %v3573_v49 = vadd.f32 %v4623_v19, %v5824_v32 }
 0x1f7   : > { %5039 = vrcp.f32 %v2886_v44  ;;  %v2887_v46 = vadd.f32 1.0, %v5030_v47  ;;  %v3686_v52 = vmul.f32 1.442695, %v3676_v48  ;;  %v4667_v55 = vpop.f32.mrb[64].mxu1 }
 0x1f8   : > { %v3677_v53 = vsub.f32 0.0, %v3641_v50  ;;  %v4668_v57 = vpop.f32.mrb[65].mxu1  ;;  %v3576_v63 = vadd.f32 %v4626_v51, %v5824_v32 }
 0x1f9   : > { %v5032_v56 = vpop.eup %5031  ;;  %5041 = vrcp.f32 %v2887_v46  ;;  %v4669_v59 = vadd.f32 %v4668_v57, %v4667_v55  ;;  %v4670_v60 = vpop.f32.mrb[66].mxu1 }
 0x1fa   : > { %4136 = vst [vmem:[%s5838_s22 + $0xc0] sm:$0xff] %v5032_v56  ;;  %5043 = vpow2.f32 %v3686_v52  ;;  %v3688_v58 = vmul.f32 1.442695, %v3677_v53  ;;  %v4627_v61 = vpop.f32.mrb[68].mxu0  ;;  %v4671_v0 = vpop.f32.mrb[67].mxu1 }
 0x1fb   : > { %v5034_v62 = vpop.eup %5033  ;;  %v4628_v1 = vpop.f32.mrb[69].mxu0  ;;  %v3646_v3 = vadd.f32 %v4669_v59, %v3573_v49  ;;  %v4672_v6 = vadd.f32 %v4671_v0, %v4670_v60 }
 0x1fc   : > { %v5036_v2 = vpop.eup %5035  ;;  %4137 = vst [vmem:[%s5838_s22 + $0xc8] sm:$0xff] %v5034_v62  ;;  %5045 = vpow2.f32 %v3688_v58  ;;  %v4629_v7 = vadd.f32 %v4628_v1, %v4627_v61  ;;  %v4630_v54 = vpop.f32.mrb[70].mxu0 }
 0x1fd   : > { %v2888_v8 = vadd.f32 1.0, %v5036_v2  ;;  %v4631_v9 = vpop.f32.mrb[71].mxu0  ;;  %v3678_v11 = vsub.f32 0.0, %v3646_v3  ;;  %v3649_v12 = vadd.f32 %v4672_v6, %v3576_v63 }
 0x1fe   : > { %v5038_v4 = vpop.eup %5037  ;;  %v4632_v13 = vadd.f32 %v4631_v9, %v4630_v54  ;;  %v3581_v21 = vadd.f32 %v5896_v10, %v4629_v7 }
 0x1ff   : > { %5047 = vrcp.f32 %v2888_v8  ;;  %v2889_v14 = vadd.f32 1.0, %v5038_v4  ;;  %v3690_v15 = vmul.f32 1.442695, %v3678_v11  ;;  %v3679_v32 = vsub.f32 0.0, %v3649_v12  ;;  %v4673_v16 = vpop.f32.mrb[68].mxu1 }
 0x200   : > { %v4674_v18 = vpop.f32.mrb[69].mxu1  ;;  %v3584_v5 = vadd.f32 %v5896_v10, %v4632_v13 }
 0x201   : > { %v5040_v17 = vpop.eup %5039  ;;  %5049 = vrcp.f32 %v2889_v14  ;;  %v3692_v20 = vmul.f32 1.442695, %v3679_v32  ;;  %v4675_v22 = vadd.f32 %v4674_v18, %v4673_v16  ;;  %v4676_v23 = vpop.f32.mrb[70].mxu1 }
 0x202   : > { %4138 = vst [vmem:[%s5838_s22 + $0xd0] sm:$0xff] %v5040_v17  ;;  %5051 = vpow2.f32 %v3690_v15  ;;  %v4633_v24 = vpop.f32.mrb[72].mxu0  ;;  %v4677_v26 = vpop.f32.mrb[71].mxu1 }
 0x203   : > { %v5042_v25 = vpop.eup %5041  ;;  %v4634_v27 = vpop.f32.mrb[73].mxu0  ;;  %5053 = vpow2.f32 %v3692_v20  ;;  %v3654_v29 = vadd.f32 %v4675_v22, %v3581_v21  ;;  %v4678_v31 = vadd.f32 %v4677_v26, %v4676_v23 }
 0x204   : > { %v5044_v28 = vpop.eup %5043  ;;  %4139 = vst [vmem:[%s5838_s22 + $0xd8] sm:$0xff] %v5042_v25  ;;  %v4635_v30 = vadd.f32 %v4634_v27, %v4633_v24  ;;  %v4636_v33 = vpop.f32.mrb[74].mxu0 }
 0x205   : > { %v3706_v35 = vadd.f32 1.0, %v5044_v28  ;;  %v4637_v36 = vpop.f32.mrb[75].mxu0  ;;  %v3680_v39 = vsub.f32 0.0, %v3654_v29  ;;  %v3657_v40 = vadd.f32 %v4678_v31, %v3584_v5 }
 0x206   : > { %v5046_v38 = vpop.eup %5045  ;;  %v4638_v41 = vadd.f32 %v4637_v36, %v4636_v33  ;;  %v3589_v47 = vadd.f32 %v5896_v10, %v4635_v30 }
 0x207   : > { %5055 = vrcp.f32 %v3706_v35  ;;  %v3707_v42 = vadd.f32 1.0, %v5046_v38  ;;  %v3694_v37 = vmul.f32 1.442695, %v3680_v39  ;;  %v3681_v43 = vsub.f32 0.0, %v3657_v40  ;;  %v4679_v19 = vpop.f32.mrb[72].mxu1 }
 0x208   : > { %v4680_v44 = vpop.f32.mrb[73].mxu1  ;;  %v3592_v52 = vadd.f32 %v5896_v10, %v4638_v41 }
 0x209   : > { %v5048_v34 = vpop.eup %5047  ;;  %5057 = vrcp.f32 %v3707_v42  ;;  %v3696_v45 = vmul.f32 1.442695, %v3681_v43  ;;  %v4681_v48 = vadd.f32 %v4680_v44, %v4679_v19  ;;  %v4682_v50 = vpop.f32.mrb[74].mxu1 }
 0x20a   : > { %4140 = vst [vmem:[%s5838_s22 + $0xe0] sm:$0xff] %v5048_v34  ;;  %5059 = vpow2.f32 %v3694_v37  ;;  %v4639_v51 = vpop.f32.mrb[76].mxu0  ;;  %v4683_v53 = vpop.f32.mrb[75].mxu1 }
 0x20b   : > { %v5050_v46 = vpop.eup %5049  ;;  %v4640_v55 = vpop.f32.mrb[77].mxu0  ;;  %5061 = vpow2.f32 %v3696_v45  ;;  %v3662_v57 = vadd.f32 %v4681_v48, %v3589_v47  ;;  %v4684_v58 = vadd.f32 %v4683_v53, %v4682_v50 }
 0x20c   : > { %v5052_v56 = vpop.eup %5051  ;;  %4141 = vst [vmem:[%s5838_s22 + $0xe8] sm:$0xff] %v5050_v46  ;;  %v4641_v49 = vadd.f32 %v4640_v55, %v4639_v51  ;;  %v4642_v59 = vpop.f32.mrb[78].mxu0 }
 0x20d   : > { %v3708_v60 = vadd.f32 1.0, %v5052_v56  ;;  %v4643_v61 = vpop.f32.mrb[79].mxu0  ;;  %v5054_v62 = vpop.eup %5053  ;;  %v3682_v63 = vsub.f32 0.0, %v3662_v57  ;;  %v3665_v0 = vadd.f32 %v4684_v58, %v3592_v52 }
 0x20e   : > { %v4644_v1 = vadd.f32 %v4643_v61, %v4642_v59  ;;  %v3709_v2 = vadd.f32 1.0, %v5054_v62  ;;  %v3597_v4 = vadd.f32 %v5896_v10, %v4641_v49 }
 0x20f   : > { %5063 = vrcp.f32 %v3708_v60  ;;  %v3698_v3 = vmul.f32 1.442695, %v3682_v63  ;;  %v3683_v6 = vsub.f32 0.0, %v3665_v0  ;;  %v4685_v7 = vpop.f32.mrb[76].mxu1 }
 0x210   : > { %5065 = vrcp.f32 %v3709_v2  ;;  %v4686_v8 = vpop.f32.mrb[77].mxu1  ;;  %v3600_v32 = vadd.f32 %v5896_v10, %v4644_v1 }
 0x211   : > { %v5056_v54 = vpop.eup %5055  ;;  %5067 = vpow2.f32 %v3698_v3  ;;  %v3700_v9 = vmul.f32 1.442695, %v3683_v6  ;;  %v4687_v11 = vadd.f32 %v4686_v8, %v4685_v7  ;;  %v4688_v12 = vpop.f32.mrb[78].mxu1 }
 0x212   : > { %4263 = vst [vmem:[%s5838_s22 + $0xf0] sm:$0xff] %v5056_v54  ;;  %v4689_v14 = vpop.f32.mrb[79].mxu1 }
 0x213   : > { %v5058_v13 = vpop.eup %5057  ;;  %5069 = vpow2.f32 %v3700_v9  ;;  %v3670_v16 = vadd.f32 %v4687_v11, %v3597_v4  ;;  %v4690_v17 = vadd.f32 %v4689_v14, %v4688_v12 }
 0x214   : > { %v5060_v15 = vpop.eup %5059  ;;  %4264 = vst [vmem:[%s5838_s22 + $0xf8] sm:$0xff] %v5058_v13 }
 0x215   : > { %v3710_v18 = vadd.f32 1.0, %v5060_v15  ;;  %v5062_v20 = vpop.eup %5061  ;;  %v3684_v21 = vsub.f32 0.0, %v3670_v16  ;;  %v3673_v22 = vadd.f32 %v4690_v17, %v3600_v32 }
 0x216   : > { %v3711_v23 = vadd.f32 1.0, %v5062_v20 }
 0x217   : > { %5071 = vrcp.f32 %v3710_v18  ;;  %v3702_v24 = vmul.f32 1.442695, %v3684_v21  ;;  %v3685_v25 = vsub.f32 0.0, %v3673_v22 }
 0x218   : > { %5073 = vrcp.f32 %v3711_v23 }
 0x219   : > { %v5064_v5 = vpop.eup %5063  ;;  %5075 = vpow2.f32 %v3702_v24  ;;  %v3704_v26 = vmul.f32 1.442695, %v3685_v25 }
 0x21a   : > { %4265 = vst [vmem:[%s5838_s22 + $0x100] sm:$0xff] %v5064_v5  ;;  %v5066_v27 = vpop.eup %5065 }
 0x21b   : > { %v5068_v10 = vpop.eup %5067  ;;  %4266 = vst [vmem:[%s5838_s22 + $0x108] sm:$0xff] %v5066_v27  ;;  %5077 = vpow2.f32 %v3704_v26 }
 0x21c   : > { %v3712_v28 = vadd.f32 1.0, %v5068_v10 }
 0x21d   : > { %v5070_v29 = vpop.eup %5069 }
 0x21e   : > { %5079 = vrcp.f32 %v3712_v28  ;;  %v3713_v31 = vadd.f32 1.0, %v5070_v29 }
 0x220   : > { %5081 = vrcp.f32 %v3713_v31 }
 0x221   : > { %v5072_v30 = vpop.eup %5071 }
 0x222   : > { %4267 = vst [vmem:[%s5838_s22 + $0x110] sm:$0xff] %v5072_v30  ;;  %v5074_v33 = vpop.eup %5073 }
 0x223   : > { %v5076_v35 = vpop.eup %5075  ;;  %4268 = vst [vmem:[%s5838_s22 + $0x118] sm:$0xff] %v5074_v33 }
 0x224   : > { %v3714_v36 = vadd.f32 1.0, %v5076_v35 }
 0x225   : > { %v5078_v38 = vpop.eup %5077 }
 0x226   : > { %5083 = vrcp.f32 %v3714_v36  ;;  %v3715_v39 = vadd.f32 1.0, %v5078_v38 }
 0x228   : > { %v5080_v40 = vpop.eup %5079  ;;  %5085 = vrcp.f32 %v3715_v39 }
 0x229   : > { %4269 = vst [vmem:[%s5838_s22 + $0x120] sm:$0xff] %v5080_v40 }
 0x22a   : > { %v5082_v41 = vpop.eup %5081 }
 0x22b   : > { %4270 = vst [vmem:[%s5838_s22 + $0x128] sm:$0xff] %v5082_v41 }
 0x230   : > { %v5084_v42 = vpop.eup %5083 }
 0x231   : > { %4271 = vst [vmem:[%s5838_s22 + $0x130] sm:$0xff] %v5084_v42 }
 0x232   : > { %v5086_v37 = vpop.eup %5085 }
 0x233   : > { %4272 = vst [vmem:[%s5838_s22 + $0x138] sm:$0xff] %v5086_v37 }
 0x234 PF: > { %s16_s21 = sadd.s32 1, %s5094_s21  }
 0x235   : > { %p13_p4 = scmp.ge.s32.totalorder %s16_s21, 4  }
 0x237   :  { %15 = sbr.rel (!%p13_p4) target bundleno = 1 (0x1), region = 80 }

</bundles_post_ra>
